<compile_context>
chip_gen: v7x
topology: tpu7x:2x2x1
jax: 0.10.0
libtpu: 0.0.40
codegen_flags: <defaults>
</compile_context>

<pallas_src>
import math
from functools import partial

import numpy as np
import jax
import jax.numpy as jnp
from jax.experimental import pallas as pl
from jax.experimental.pallas import tpu as pltpu

LN_EPS = 1e-5  # PyTorch nn.LayerNorm default
NEG_BIG = -1e30


def _leaky(v, slope=0.3):
    return jnp.where(v > 0, v, slope * v)


# -----------------------------------------------------------------------------
# Fused kernel
# -----------------------------------------------------------------------------
def mgfn_kernel(x_ref, perm_mc_ref, perm_cm_ref, sel_ref, mask_m_ref, mask_c_ref,
                wq_ref, wk_ref, wv_ref, bq_ref, bk_ref, bv_ref,
                wo_ref, bo_ref, w1_ref, b1_ref, w2_ref, b2_ref,
                g1_ref, be1_ref, g2_ref, be2_ref,
                p1_ref, p2_ref,
                fw1_ref, fb1_ref, fw2_ref, fb2_ref, fw3_ref, fb3_ref,
                wdec_ref, bdec_ref,
                out_ref, *, nhead, n_multi):
    f32 = jnp.float32
    bf16 = jnp.bfloat16

    E = wq_ref.shape[2]
    hd = E // nhead
    n_layers = wq_ref.shape[0]
    G = sel_ref.shape[0]

    def layernorm(v, gamma, beta):
        mu = jnp.mean(v, axis=-1, keepdims=True)
        var = jnp.mean((v - mu) * (v - mu), axis=-1, keepdims=True)
        return (v - mu) * jax.lax.rsqrt(var + LN_EPS) * gamma + beta

    def gse_layer(xv, mask, i):
        """One GraphStructuralEncoder layer on (B*L, D) rows; `mask` is the
        block-diagonal additive attention mask encoding the batch structure."""
        xb = xv.astype(bf16)
        # q/k/v projections (repeat(1,1,2) and 1/sqrt(hd) scale folded in).
        q = jnp.dot(xb, wq_ref[i], preferred_element_type=f32) + bq_ref[i]
        k = jnp.dot(xb, wk_ref[i], preferred_element_type=f32) + bk_ref[i]
        v = jnp.dot(xb, wv_ref[i], preferred_element_type=f32) + bv_ref[i]

        heads = []
        for h in range(nhead):
            lo = h * hd
            qh = q[:, lo:lo + hd].astype(bf16)
            kh = k[:, lo:lo + hd].astype(bf16)
            vh = v[:, lo:lo + hd].astype(bf16)
            s = jax.lax.dot_general(qh, kh, (((1,), (1,)), ((), ())),
                                    preferred_element_type=f32)
            s = s + mask                                     # batch-block mask
            s = s - jnp.max(s, axis=-1, keepdims=True)
            e = jnp.exp(s)
            denom = jnp.sum(e, axis=-1, keepdims=True)
            p = e * pl.reciprocal(denom, approx=True)
            heads.append(jnp.dot(p.astype(bf16), vh, preferred_element_type=f32))

        o = jnp.concatenate(heads, axis=-1)                   # (B*L, E)
        # out_proj + split(d_model).sum folded into wo (E, D).
        attn = jnp.dot(o.astype(bf16), wo_ref[i],
                       preferred_element_type=f32) + bo_ref[i]

        y = layernorm(xv + attn, g1_ref[i], be1_ref[i])       # dropout1 = id
        ff = jnp.maximum(
            jnp.dot(y.astype(bf16), w1_ref[i], preferred_element_type=f32)
            + b1_ref[i], 0.0)
        ff = jnp.dot(ff.astype(bf16), w2_ref[i],
                     preferred_element_type=f32) + b2_ref[i]
        return layernorm(y + ff, g2_ref[i], be2_ref[i])       # dropout2 = id

    # ---- multi-pattern stack (batch = node, seq = graph) --------------------
    x2d = x_ref[...]                                          # rows (g, n)
    m = jnp.dot(perm_mc_ref[...], x2d, preferred_element_type=f32)  # rows (n, g)
    mask_m = mask_m_ref[...]
    for i in range(n_multi):
        m = gse_layer(m, mask_m, i)

    # ---- transpose via permutation matmul, cross-graph stack ----------------
    c_in = jnp.dot(perm_cm_ref[...], m, preferred_element_type=f32)  # rows (g, n)
    c = c_in
    mask_c = mask_c_ref[...]
    for i in range(n_multi, n_layers):
        c = gse_layer(c, mask_c, i)

    # ---- para-weighted combine, scrambled view, DeepFc, decoders ------------
    comb = c * p2_ref[0, 0] + c_in * p1_ref[0, 0]             # (G*Nn, Nn)
    # torch .view(-1, Nn*G) realised with constant selector matmuls.
    xv = jnp.concatenate(
        [jnp.dot(sel_ref[j], comb, preferred_element_type=f32) for j in range(G)],
        axis=-1)                                              # (Nn, G*Nn)

    h1 = jnp.dot(xv.astype(bf16), fw1_ref[...], preferred_element_type=f32) + fb1_ref[...]
    h2 = jnp.dot(h1.astype(bf16), fw2_ref[...], preferred_element_type=f32) + fb2_ref[...]
    h2 = _leaky(h2)
    feat = jnp.dot(h2.astype(bf16), fw3_ref[...], preferred_element_type=f32) + fb3_ref[...]
    feat = _leaky(feat)

    # decoder_s / decoder_t fused into one lane-dense matmul.
    out_ref[...] = (jnp.dot(feat.astype(bf16), wdec_ref[...],
                            preferred_element_type=f32) + bdec_ref[...])


# -----------------------------------------------------------------------------
# Wrapper
# -----------------------------------------------------------------------------
_GSE_KEYS = ("wq", "wk", "wv", "bq", "bk", "bv", "wo", "bo",
             "w1", "b1", "w2", "b2", "g1", "be1", "g2", "be2")
_HEAD_KEYS = ("fw1", "fb1", "fw2", "fb2", "fw3", "fb3", "wdec", "bdec")


def mgfn_forward(x, gse_packed, head_params, consts, *, nhead, n_multi):
    """x: (graph_num, node_num, node_num) in PyTorch (seq, batch, feat) layout."""
    G, Nn, _ = x.shape
    GN = G * Nn
    out_dim = head_params["wdec"].shape[0]

    x2d = x.reshape(GN, Nn)                 # contiguous flatten (bitcast in XLA)
    perm_mc, perm_cm, sel, mask_m, mask_c = consts

    gse_args = [gse_packed[k] for k in _GSE_KEYS]
    head_args = [head_params[k] for k in _HEAD_KEYS]
    args = [x2d, perm_mc, perm_cm, sel, mask_m, mask_c, *gse_args,
            head_params["para1"], head_params["para2"], *head_args]

    vmem = pl.BlockSpec(memory_space=pltpu.MemorySpace.VMEM)
    smem = pl.BlockSpec(memory_space=pltpu.MemorySpace.SMEM)
    in_specs = ([vmem] * (6 + len(gse_args)) + [smem, smem]
                + [vmem] * len(head_args))
    assert len(in_specs) == len(args)

    out = pl.pallas_call(
        partial(mgfn_kernel, nhead=nhead, n_multi=n_multi),
        out_shape=jax.ShapeDtypeStruct((Nn, 2 * out_dim), jnp.float32),
        in_specs=in_specs,
        out_specs=vmem,
    )(*args)
    return out[:, :out_dim], out[:, out_dim:]


# -----------------------------------------------------------------------------
# Constant permutation / selector / mask matrices (built on host).
# -----------------------------------------------------------------------------
def build_constants(graph_num, node_num):
    G, Nn = graph_num, node_num
    GN = G * Nn
    perm_mc = np.zeros((GN, GN), np.float32)      # (n,g)-order <- (g,n)-order
    for n in range(Nn):
        for g in range(G):
            perm_mc[n * G + g, g * Nn + n] = 1.0
    perm_cm = np.ascontiguousarray(perm_mc.T)     # (g,n)-order <- (n,g)-order

    sel = np.zeros((G, Nn, GN), np.float32)       # torch .view(-1, Nn*G) selectors
    for j in range(G):
        for r in range(Nn):
            sel[j, r, G * r + j] = 1.0

    r = np.arange(GN)
    mask_m = np.where((r[:, None] // G) == (r[None, :] // G), 0.0, NEG_BIG)
    mask_c = np.where((r[:, None] // Nn) == (r[None, :] // Nn), 0.0, NEG_BIG)
    return (jnp.asarray(perm_mc), jnp.asarray(perm_cm), jnp.asarray(sel),
            jnp.asarray(mask_m.astype(np.float32)),
            jnp.asarray(mask_c.astype(np.float32)))


# -----------------------------------------------------------------------------
# Parameter construction (deterministic, synthetic, PyTorch-shaped then folded).
# -----------------------------------------------------------------------------
def init_gse_params(key, d_model, nhead, dff=64):
    E = 2 * d_model
    hd = E // nhead
    scale = 1.0 / math.sqrt(hd)
    ks = jax.random.split(key, 8)

    def rnd(k, shape, s=0.05):
        return jax.random.normal(k, shape, jnp.float32) * s

    in_proj_w = rnd(ks[0], (3 * E, E))            # nn.MultiheadAttention in_proj
    in_proj_b = rnd(ks[1], (3 * E,), 0.02)
    out_w = rnd(ks[2], (E, E))                    # out_proj.weight
    out_b = rnd(ks[3], (E,), 0.02)
    lin1_w = rnd(ks[4], (dff, d_model))
    lin1_b = rnd(ks[5], (dff,), 0.02)
    lin2_w = rnd(ks[6], (d_model, dff))
    lin2_b = rnd(ks[7], (d_model,), 0.02)
    g1 = jnp.ones((d_model,), jnp.float32); be1 = jnp.zeros((d_model,), jnp.float32)
    g2 = jnp.ones((d_model,), jnp.float32); be2 = jnp.zeros((d_model,), jnp.float32)

    # Fold src.repeat(1,1,2):  [x, x] @ W^T == x @ (W^T[:D] + W^T[D:])
    WqT = in_proj_w[:E].T
    WkT = in_proj_w[E:2 * E].T
    WvT = in_proj_w[2 * E:].T
    wq = (WqT[:d_model] + WqT[d_model:]) * scale          # fold 1/sqrt(hd)
    wk = WkT[:d_model] + WkT[d_model:]
    wv = WvT[:d_model] + WvT[d_model:]
    bq = in_proj_b[:E] * scale
    bk = in_proj_b[E:2 * E]
    bv = in_proj_b[2 * E:]

    # Fold out_proj + split(d_model).sum into one (E, D) matrix.
    WoT = out_w.T
    wo = WoT[:, :d_model] + WoT[:, d_model:]
    bo = out_b[:d_model] + out_b[d_model:]

    return dict(
        wq=wq, wk=wk, wv=wv,
        bq=bq.reshape(1, E), bk=bk.reshape(1, E), bv=bv.reshape(1, E),
        wo=wo, bo=bo.reshape(1, d_model),
        w1=lin1_w.T, b1=lin1_b.reshape(1, -1),
        w2=lin2_w.T, b2=lin2_b.reshape(1, -1),
        g1=g1.reshape(1, -1), be1=be1.reshape(1, -1),
        g2=g2.reshape(1, -1), be2=be2.reshape(1, -1),
    )


def pack_gse_layers(layer_params):
    """Stack per-layer params along a new leading axis; bf16 for MXU weights."""
    bf16_keys = ("wq", "wk", "wv", "wo", "w1", "w2")
    packed = {}
    for k in _GSE_KEYS:
        stacked = jnp.stack([p[k] for p in layer_params], axis=0)
        if k in bf16_keys:
            stacked = stacked.astype(jnp.bfloat16)
        packed[k] = stacked
    return packed


def init_head_params(key, graph_num, node_num, output_dim):
    in_dim = graph_num * node_num
    hid = 2 * in_dim
    ks = jax.random.split(key, 10)

    def rnd(k, shape, s=0.05):
        return jax.random.normal(k, shape, jnp.float32) * s

    fw1 = rnd(ks[0], (in_dim, hid)); fb1 = rnd(ks[1], (1, hid), 0.02)
    fw2 = rnd(ks[2], (hid, hid));    fb2 = rnd(ks[3], (1, hid), 0.02)
    fw3 = rnd(ks[4], (hid, output_dim)); fb3 = rnd(ks[5], (1, output_dim), 0.02)
    ws = rnd(ks[6], (output_dim, output_dim)); bs = rnd(ks[7], (1, output_dim), 0.02)
    wt = rnd(ks[8], (output_dim, output_dim)); bt = rnd(ks[9], (1, output_dim), 0.02)

    return dict(
        para1=jnp.full((1, 1), 0.7, jnp.float32),
        para2=jnp.full((1, 1), 0.3, jnp.float32),
        fw1=fw1.astype(jnp.bfloat16), fb1=fb1,
        fw2=fw2.astype(jnp.bfloat16), fb2=fb2,
        fw3=fw3.astype(jnp.bfloat16), fb3=fb3,
        wdec=jnp.concatenate([ws, wt], axis=1).astype(jnp.bfloat16),
        bdec=jnp.concatenate([bs, bt], axis=1),
    )


# TODO(synk): linear_out, s_linear, o_linear and ConcatLinear are defined in the
# PyTorch module but never used in forward(); they are intentionally omitted.

if __name__ == "__main__":
    graph_num, node_num, output_dim = 4, 16, 32
    nhead = 4 if (node_num and node_num % 2 == 0) else 2
    n_multi, n_cross = 3, 1

    key = jax.random.PRNGKey(0)
    k_x, k_p = jax.random.split(key)
    x = jax.random.normal(k_x, (graph_num, node_num, node_num), jnp.float32)

    keys = jax.random.split(k_p, 5)
    layer_params = ([init_gse_params(keys[i], node_num, nhead) for i in range(n_multi)]
                    + [init_gse_params(keys[3], node_num, nhead)])
    gse_packed = pack_gse_layers(layer_params)
    head_params = init_head_params(keys[4], graph_num, node_num, output_dim)
    consts = build_constants(graph_num, node_num)

    fwd = jax.jit(partial(mgfn_forward, nhead=nhead, n_multi=n_multi))
    out_s, out_t = fwd(x, gse_packed, head_params, consts)
    jax.block_until_ready((out_s, out_t))

    assert out_s.shape == (node_num, output_dim)
    assert out_t.shape == (node_num, output_dim)
    assert out_s.dtype == jnp.float32 and out_t.dtype == jnp.float32
    assert bool(jnp.all(jnp.isfinite(out_s))) and bool(jnp.all(jnp.isfinite(out_t)))
    print("KERNEL_OK")
</pallas_src>

<mosaic_0001>
module attributes {stable_mosaic.version = 11 : i64} {
  func.func @mgfn_kernel(%arg0: memref<64x16xf32, #tpu.memory_space<vmem>>, %arg1: memref<64x64xf32, #tpu.memory_space<vmem>>, %arg2: memref<64x64xf32, #tpu.memory_space<vmem>>, %arg3: memref<4x16x64xf32, #tpu.memory_space<vmem>>, %arg4: memref<64x64xf32, #tpu.memory_space<vmem>>, %arg5: memref<64x64xf32, #tpu.memory_space<vmem>>, %arg6: memref<4x16x32xbf16, #tpu.memory_space<vmem>>, %arg7: memref<4x16x32xbf16, #tpu.memory_space<vmem>>, %arg8: memref<4x16x32xbf16, #tpu.memory_space<vmem>>, %arg9: memref<4x1x32xf32, #tpu.memory_space<vmem>>, %arg10: memref<4x1x32xf32, #tpu.memory_space<vmem>>, %arg11: memref<4x1x32xf32, #tpu.memory_space<vmem>>, %arg12: memref<4x32x16xbf16, #tpu.memory_space<vmem>>, %arg13: memref<4x1x16xf32, #tpu.memory_space<vmem>>, %arg14: memref<4x16x64xbf16, #tpu.memory_space<vmem>>, %arg15: memref<4x1x64xf32, #tpu.memory_space<vmem>>, %arg16: memref<4x64x16xbf16, #tpu.memory_space<vmem>>, %arg17: memref<4x1x16xf32, #tpu.memory_space<vmem>>, %arg18: memref<4x1x16xf32, #tpu.memory_space<vmem>>, %arg19: memref<4x1x16xf32, #tpu.memory_space<vmem>>, %arg20: memref<4x1x16xf32, #tpu.memory_space<vmem>>, %arg21: memref<4x1x16xf32, #tpu.memory_space<vmem>>, %arg22: memref<1x1xf32, #tpu.memory_space<smem>>, %arg23: memref<1x1xf32, #tpu.memory_space<smem>>, %arg24: memref<64x128xbf16, #tpu.memory_space<vmem>>, %arg25: memref<1x128xf32, #tpu.memory_space<vmem>>, %arg26: memref<128x128xbf16, #tpu.memory_space<vmem>>, %arg27: memref<1x128xf32, #tpu.memory_space<vmem>>, %arg28: memref<128x32xbf16, #tpu.memory_space<vmem>>, %arg29: memref<1x32xf32, #tpu.memory_space<vmem>>, %arg30: memref<32x64xbf16, #tpu.memory_space<vmem>>, %arg31: memref<1x64xf32, #tpu.memory_space<vmem>>, %arg32: memref<16x64xf32, #tpu.memory_space<vmem>>) attributes {dimension_semantics = [], scalar_prefetch = 0 : i64, scratch_operands = 0 : i64, tpu.core_type = #tpu.core_type<tc>} {
    %c0 = arith.constant 0 : index
    %c0_0 = arith.constant 0 : index
    %0 = vector.load %arg0[%c0, %c0_0] : memref<64x16xf32, #tpu.memory_space<vmem>>, vector<64x16xf32>
    %c0_1 = arith.constant 0 : index
    %c0_2 = arith.constant 0 : index
    %1 = vector.load %arg1[%c0_1, %c0_2] : memref<64x64xf32, #tpu.memory_space<vmem>>, vector<64x64xf32>
    %cst = arith.constant dense<0.000000e+00> : vector<64x16xf32>
    %2 = tpu.matmul %1, %0, %cst {dimension_numbers = #tpu.dot_dimension_numbers<[1], [0], [0], [1], [0, 0, 1, 1], [], []>} : vector<64x64xf32>, vector<64x16xf32>, vector<64x16xf32> -> vector<64x16xf32>
    %c0_3 = arith.constant 0 : index
    %c0_4 = arith.constant 0 : index
    %3 = vector.load %arg4[%c0_3, %c0_4] : memref<64x64xf32, #tpu.memory_space<vmem>>, vector<64x64xf32>
    %4 = arith.truncf %2 : vector<64x16xf32> to vector<64x16xbf16>
    %c0_5 = arith.constant 0 : index
    %c0_6 = arith.constant 0 : index
    %c0_7 = arith.constant 0 : index
    %5 = vector.load %arg6[%c0_5, %c0_6, %c0_7] : memref<4x16x32xbf16, #tpu.memory_space<vmem>>, vector<1x16x32xbf16>
    %6 = vector.shape_cast %5 : vector<1x16x32xbf16> to vector<16x32xbf16>
    %cst_8 = arith.constant dense<0.000000e+00> : vector<64x32xf32>
    %7 = tpu.matmul %4, %6, %cst_8 {dimension_numbers = #tpu.dot_dimension_numbers<[1], [0], [0], [1], [0, 0, 1, 1], [], []>} : vector<64x16xbf16>, vector<16x32xbf16>, vector<64x32xf32> -> vector<64x32xf32>
    %c0_9 = arith.constant 0 : index
    %c0_10 = arith.constant 0 : index
    %c0_11 = arith.constant 0 : index
    %8 = vector.load %arg9[%c0_9, %c0_10, %c0_11] : memref<4x1x32xf32, #tpu.memory_space<vmem>>, vector<1x1x32xf32>
    %9 = vector.shape_cast %8 : vector<1x1x32xf32> to vector<1x32xf32>
    %10 = vector.broadcast %9 : vector<1x32xf32> to vector<64x32xf32>
    %11 = arith.addf %7, %10 : vector<64x32xf32>
    %c0_12 = arith.constant 0 : index
    %c0_13 = arith.constant 0 : index
    %c0_14 = arith.constant 0 : index
    %12 = vector.load %arg7[%c0_12, %c0_13, %c0_14] : memref<4x16x32xbf16, #tpu.memory_space<vmem>>, vector<1x16x32xbf16>
    %13 = vector.shape_cast %12 : vector<1x16x32xbf16> to vector<16x32xbf16>
    %cst_15 = arith.constant dense<0.000000e+00> : vector<64x32xf32>
    %14 = tpu.matmul %4, %13, %cst_15 {dimension_numbers = #tpu.dot_dimension_numbers<[1], [0], [0], [1], [0, 0, 1, 1], [], []>} : vector<64x16xbf16>, vector<16x32xbf16>, vector<64x32xf32> -> vector<64x32xf32>
    %c0_16 = arith.constant 0 : index
    %c0_17 = arith.constant 0 : index
    %c0_18 = arith.constant 0 : index
    %15 = vector.load %arg10[%c0_16, %c0_17, %c0_18] : memref<4x1x32xf32, #tpu.memory_space<vmem>>, vector<1x1x32xf32>
    %16 = vector.shape_cast %15 : vector<1x1x32xf32> to vector<1x32xf32>
    %17 = vector.broadcast %16 : vector<1x32xf32> to vector<64x32xf32>
    %18 = arith.addf %14, %17 : vector<64x32xf32>
    %c0_19 = arith.constant 0 : index
    %c0_20 = arith.constant 0 : index
    %c0_21 = arith.constant 0 : index
    %19 = vector.load %arg8[%c0_19, %c0_20, %c0_21] : memref<4x16x32xbf16, #tpu.memory_space<vmem>>, vector<1x16x32xbf16>
    %20 = vector.shape_cast %19 : vector<1x16x32xbf16> to vector<16x32xbf16>
    %cst_22 = arith.constant dense<0.000000e+00> : vector<64x32xf32>
    %21 = tpu.matmul %4, %20, %cst_22 {dimension_numbers = #tpu.dot_dimension_numbers<[1], [0], [0], [1], [0, 0, 1, 1], [], []>} : vector<64x16xbf16>, vector<16x32xbf16>, vector<64x32xf32> -> vector<64x32xf32>
    %c0_23 = arith.constant 0 : index
    %c0_24 = arith.constant 0 : index
    %c0_25 = arith.constant 0 : index
    %22 = vector.load %arg11[%c0_23, %c0_24, %c0_25] : memref<4x1x32xf32, #tpu.memory_space<vmem>>, vector<1x1x32xf32>
    %23 = vector.shape_cast %22 : vector<1x1x32xf32> to vector<1x32xf32>
    %24 = vector.broadcast %23 : vector<1x32xf32> to vector<64x32xf32>
    %25 = arith.addf %21, %24 : vector<64x32xf32>
    %26 = vector.extract_strided_slice %11 {offsets = [0, 0], sizes = [64, 8], strides = [1, 1]} : vector<64x32xf32> to vector<64x8xf32>
    %27 = arith.truncf %26 : vector<64x8xf32> to vector<64x8xbf16>
    %28 = vector.extract_strided_slice %18 {offsets = [0, 0], sizes = [64, 8], strides = [1, 1]} : vector<64x32xf32> to vector<64x8xf32>
    %29 = arith.truncf %28 : vector<64x8xf32> to vector<64x8xbf16>
    %30 = vector.extract_strided_slice %25 {offsets = [0, 0], sizes = [64, 8], strides = [1, 1]} : vector<64x32xf32> to vector<64x8xf32>
    %31 = arith.truncf %30 : vector<64x8xf32> to vector<64x8xbf16>
    %cst_26 = arith.constant dense<0.000000e+00> : vector<64x64xf32>
    %32 = tpu.matmul %27, %29, %cst_26 {dimension_numbers = #tpu.dot_dimension_numbers<[1], [1], [0], [0], [0, 0, 1, 0], [], []>} : vector<64x8xbf16>, vector<64x8xbf16>, vector<64x64xf32> -> vector<64x64xf32>
    %33 = arith.addf %32, %3 : vector<64x64xf32>
    %cst_27 = arith.constant dense<0xFF800000> : vector<64xf32>
    %34 = vector.multi_reduction <maximumf>, %33, %cst_27 [1] : vector<64x64xf32> to vector<64xf32>
    %35 = vector.shape_cast %34 : vector<64xf32> to vector<64x1xf32>
    %36 = vector.broadcast %35 : vector<64x1xf32> to vector<64x64xf32>
    %37 = arith.subf %33, %36 : vector<64x64xf32>
    %38 = math.exp %37 : vector<64x64xf32>
    %cst_28 = arith.constant dense<0.000000e+00> : vector<64xf32>
    %39 = vector.multi_reduction <add>, %38, %cst_28 [1] : vector<64x64xf32> to vector<64xf32>
    %40 = vector.shape_cast %39 : vector<64xf32> to vector<64x1xf32>
    %41 = tpu.reciprocal %40 {approx = true} : vector<64x1xf32> -> vector<64x1xf32>
    %42 = vector.broadcast %41 : vector<64x1xf32> to vector<64x64xf32>
    %43 = arith.mulf %38, %42 : vector<64x64xf32>
    %44 = arith.truncf %43 : vector<64x64xf32> to vector<64x64xbf16>
    %cst_29 = arith.constant dense<0.000000e+00> : vector<64x8xf32>
    %45 = tpu.matmul %44, %31, %cst_29 {dimension_numbers = #tpu.dot_dimension_numbers<[1], [0], [0], [1], [0, 0, 1, 1], [], []>} : vector<64x64xbf16>, vector<64x8xbf16>, vector<64x8xf32> -> vector<64x8xf32>
    %46 = vector.extract_strided_slice %11 {offsets = [0, 8], sizes = [64, 8], strides = [1, 1]} : vector<64x32xf32> to vector<64x8xf32>
    %47 = arith.truncf %46 : vector<64x8xf32> to vector<64x8xbf16>
    %48 = vector.extract_strided_slice %18 {offsets = [0, 8], sizes = [64, 8], strides = [1, 1]} : vector<64x32xf32> to vector<64x8xf32>
    %49 = arith.truncf %48 : vector<64x8xf32> to vector<64x8xbf16>
    %50 = vector.extract_strided_slice %25 {offsets = [0, 8], sizes = [64, 8], strides = [1, 1]} : vector<64x32xf32> to vector<64x8xf32>
    %51 = arith.truncf %50 : vector<64x8xf32> to vector<64x8xbf16>
    %cst_30 = arith.constant dense<0.000000e+00> : vector<64x64xf32>
    %52 = tpu.matmul %47, %49, %cst_30 {dimension_numbers = #tpu.dot_dimension_numbers<[1], [1], [0], [0], [0, 0, 1, 0], [], []>} : vector<64x8xbf16>, vector<64x8xbf16>, vector<64x64xf32> -> vector<64x64xf32>
    %53 = arith.addf %52, %3 : vector<64x64xf32>
    %cst_31 = arith.constant dense<0xFF800000> : vector<64xf32>
    %54 = vector.multi_reduction <maximumf>, %53, %cst_31 [1] : vector<64x64xf32> to vector<64xf32>
    %55 = vector.shape_cast %54 : vector<64xf32> to vector<64x1xf32>
    %56 = vector.broadcast %55 : vector<64x1xf32> to vector<64x64xf32>
    %57 = arith.subf %53, %56 : vector<64x64xf32>
    %58 = math.exp %57 : vector<64x64xf32>
    %cst_32 = arith.constant dense<0.000000e+00> : vector<64xf32>
    %59 = vector.multi_reduction <add>, %58, %cst_32 [1] : vector<64x64xf32> to vector<64xf32>
    %60 = vector.shape_cast %59 : vector<64xf32> to vector<64x1xf32>
    %61 = tpu.reciprocal %60 {approx = true} : vector<64x1xf32> -> vector<64x1xf32>
    %62 = vector.broadcast %61 : vector<64x1xf32> to vector<64x64xf32>
    %63 = arith.mulf %58, %62 : vector<64x64xf32>
    %64 = arith.truncf %63 : vector<64x64xf32> to vector<64x64xbf16>
    %cst_33 = arith.constant dense<0.000000e+00> : vector<64x8xf32>
    %65 = tpu.matmul %64, %51, %cst_33 {dimension_numbers = #tpu.dot_dimension_numbers<[1], [0], [0], [1], [0, 0, 1, 1], [], []>} : vector<64x64xbf16>, vector<64x8xbf16>, vector<64x8xf32> -> vector<64x8xf32>
    %66 = vector.extract_strided_slice %11 {offsets = [0, 16], sizes = [64, 8], strides = [1, 1]} : vector<64x32xf32> to vector<64x8xf32>
    %67 = arith.truncf %66 : vector<64x8xf32> to vector<64x8xbf16>
    %68 = vector.extract_strided_slice %18 {offsets = [0, 16], sizes = [64, 8], strides = [1, 1]} : vector<64x32xf32> to vector<64x8xf32>
    %69 = arith.truncf %68 : vector<64x8xf32> to vector<64x8xbf16>
    %70 = vector.extract_strided_slice %25 {offsets = [0, 16], sizes = [64, 8], strides = [1, 1]} : vector<64x32xf32> to vector<64x8xf32>
    %71 = arith.truncf %70 : vector<64x8xf32> to vector<64x8xbf16>
    %cst_34 = arith.constant dense<0.000000e+00> : vector<64x64xf32>
    %72 = tpu.matmul %67, %69, %cst_34 {dimension_numbers = #tpu.dot_dimension_numbers<[1], [1], [0], [0], [0, 0, 1, 0], [], []>} : vector<64x8xbf16>, vector<64x8xbf16>, vector<64x64xf32> -> vector<64x64xf32>
    %73 = arith.addf %72, %3 : vector<64x64xf32>
    %cst_35 = arith.constant dense<0xFF800000> : vector<64xf32>
    %74 = vector.multi_reduction <maximumf>, %73, %cst_35 [1] : vector<64x64xf32> to vector<64xf32>
    %75 = vector.shape_cast %74 : vector<64xf32> to vector<64x1xf32>
    %76 = vector.broadcast %75 : vector<64x1xf32> to vector<64x64xf32>
    %77 = arith.subf %73, %76 : vector<64x64xf32>
    %78 = math.exp %77 : vector<64x64xf32>
    %cst_36 = arith.constant dense<0.000000e+00> : vector<64xf32>
    %79 = vector.multi_reduction <add>, %78, %cst_36 [1] : vector<64x64xf32> to vector<64xf32>
    %80 = vector.shape_cast %79 : vector<64xf32> to vector<64x1xf32>
    %81 = tpu.reciprocal %80 {approx = true} : vector<64x1xf32> -> vector<64x1xf32>
    %82 = vector.broadcast %81 : vector<64x1xf32> to vector<64x64xf32>
    %83 = arith.mulf %78, %82 : vector<64x64xf32>
    %84 = arith.truncf %83 : vector<64x64xf32> to vector<64x64xbf16>
    %cst_37 = arith.constant dense<0.000000e+00> : vector<64x8xf32>
    %85 = tpu.matmul %84, %71, %cst_37 {dimension_numbers = #tpu.dot_dimension_numbers<[1], [0], [0], [1], [0, 0, 1, 1], [], []>} : vector<64x64xbf16>, vector<64x8xbf16>, vector<64x8xf32> -> vector<64x8xf32>
    %86 = vector.extract_strided_slice %11 {offsets = [0, 24], sizes = [64, 8], strides = [1, 1]} : vector<64x32xf32> to vector<64x8xf32>
    %87 = arith.truncf %86 : vector<64x8xf32> to vector<64x8xbf16>
    %88 = vector.extract_strided_slice %18 {offsets = [0, 24], sizes = [64, 8], strides = [1, 1]} : vector<64x32xf32> to vector<64x8xf32>
    %89 = arith.truncf %88 : vector<64x8xf32> to vector<64x8xbf16>
    %90 = vector.extract_strided_slice %25 {offsets = [0, 24], sizes = [64, 8], strides = [1, 1]} : vector<64x32xf32> to vector<64x8xf32>
    %91 = arith.truncf %90 : vector<64x8xf32> to vector<64x8xbf16>
    %cst_38 = arith.constant dense<0.000000e+00> : vector<64x64xf32>
    %92 = tpu.matmul %87, %89, %cst_38 {dimension_numbers = #tpu.dot_dimension_numbers<[1], [1], [0], [0], [0, 0, 1, 0], [], []>} : vector<64x8xbf16>, vector<64x8xbf16>, vector<64x64xf32> -> vector<64x64xf32>
    %93 = arith.addf %92, %3 : vector<64x64xf32>
    %cst_39 = arith.constant dense<0xFF800000> : vector<64xf32>
    %94 = vector.multi_reduction <maximumf>, %93, %cst_39 [1] : vector<64x64xf32> to vector<64xf32>
    %95 = vector.shape_cast %94 : vector<64xf32> to vector<64x1xf32>
    %96 = vector.broadcast %95 : vector<64x1xf32> to vector<64x64xf32>
    %97 = arith.subf %93, %96 : vector<64x64xf32>
    %98 = math.exp %97 : vector<64x64xf32>
    %cst_40 = arith.constant dense<0.000000e+00> : vector<64xf32>
    %99 = vector.multi_reduction <add>, %98, %cst_40 [1] : vector<64x64xf32> to vector<64xf32>
    %100 = vector.shape_cast %99 : vector<64xf32> to vector<64x1xf32>
    %101 = tpu.reciprocal %100 {approx = true} : vector<64x1xf32> -> vector<64x1xf32>
    %102 = vector.broadcast %101 : vector<64x1xf32> to vector<64x64xf32>
    %103 = arith.mulf %98, %102 : vector<64x64xf32>
    %104 = arith.truncf %103 : vector<64x64xf32> to vector<64x64xbf16>
    %cst_41 = arith.constant dense<0.000000e+00> : vector<64x8xf32>
    %105 = tpu.matmul %104, %91, %cst_41 {dimension_numbers = #tpu.dot_dimension_numbers<[1], [0], [0], [1], [0, 0, 1, 1], [], []>} : vector<64x64xbf16>, vector<64x8xbf16>, vector<64x8xf32> -> vector<64x8xf32>
    %106 = tpu.concatenate %45, %65, %85, %105 in 1 : vector<64x8xf32>, vector<64x8xf32>, vector<64x8xf32>, vector<64x8xf32> -> vector<64x32xf32>
    %107 = arith.truncf %106 : vector<64x32xf32> to vector<64x32xbf16>
    %c0_42 = arith.constant 0 : index
    %c0_43 = arith.constant 0 : index
    %c0_44 = arith.constant 0 : index
    %108 = vector.load %arg12[%c0_42, %c0_43, %c0_44] : memref<4x32x16xbf16, #tpu.memory_space<vmem>>, vector<1x32x16xbf16>
    %109 = vector.shape_cast %108 : vector<1x32x16xbf16> to vector<32x16xbf16>
    %cst_45 = arith.constant dense<0.000000e+00> : vector<64x16xf32>
    %110 = tpu.matmul %107, %109, %cst_45 {dimension_numbers = #tpu.dot_dimension_numbers<[1], [0], [0], [1], [0, 0, 1, 1], [], []>} : vector<64x32xbf16>, vector<32x16xbf16>, vector<64x16xf32> -> vector<64x16xf32>
    %c0_46 = arith.constant 0 : index
    %c0_47 = arith.constant 0 : index
    %c0_48 = arith.constant 0 : index
    %111 = vector.load %arg13[%c0_46, %c0_47, %c0_48] : memref<4x1x16xf32, #tpu.memory_space<vmem>>, vector<1x1x16xf32>
    %112 = vector.shape_cast %111 : vector<1x1x16xf32> to vector<1x16xf32>
    %113 = vector.broadcast %112 : vector<1x16xf32> to vector<64x16xf32>
    %114 = arith.addf %110, %113 : vector<64x16xf32>
    %115 = arith.addf %2, %114 : vector<64x16xf32>
    %c0_49 = arith.constant 0 : index
    %c0_50 = arith.constant 0 : index
    %c0_51 = arith.constant 0 : index
    %116 = vector.load %arg18[%c0_49, %c0_50, %c0_51] : memref<4x1x16xf32, #tpu.memory_space<vmem>>, vector<1x1x16xf32>
    %117 = vector.shape_cast %116 : vector<1x1x16xf32> to vector<1x16xf32>
    %c0_52 = arith.constant 0 : index
    %c0_53 = arith.constant 0 : index
    %c0_54 = arith.constant 0 : index
    %118 = vector.load %arg19[%c0_52, %c0_53, %c0_54] : memref<4x1x16xf32, #tpu.memory_space<vmem>>, vector<1x1x16xf32>
    %119 = vector.shape_cast %118 : vector<1x1x16xf32> to vector<1x16xf32>
    %cst_55 = arith.constant dense<0.000000e+00> : vector<64xf32>
    %120 = vector.multi_reduction <add>, %115, %cst_55 [1] : vector<64x16xf32> to vector<64xf32>
    %121 = vector.shape_cast %120 : vector<64xf32> to vector<64x1xf32>
    %cst_56 = arith.constant 1.600000e+01 : f32
    %122 = vector.broadcast %cst_56 : f32 to vector<64x1xf32>
    %123 = arith.divf %121, %122 : vector<64x1xf32>
    %124 = vector.broadcast %123 : vector<64x1xf32> to vector<64x16xf32>
    %125 = arith.subf %115, %124 : vector<64x16xf32>
    %126 = vector.broadcast %123 : vector<64x1xf32> to vector<64x16xf32>
    %127 = arith.subf %115, %126 : vector<64x16xf32>
    %128 = arith.mulf %125, %127 : vector<64x16xf32>
    %cst_57 = arith.constant dense<0.000000e+00> : vector<64xf32>
    %129 = vector.multi_reduction <add>, %128, %cst_57 [1] : vector<64x16xf32> to vector<64xf32>
    %130 = vector.shape_cast %129 : vector<64xf32> to vector<64x1xf32>
    %cst_58 = arith.constant 1.600000e+01 : f32
    %131 = vector.broadcast %cst_58 : f32 to vector<64x1xf32>
    %132 = arith.divf %130, %131 : vector<64x1xf32>
    %133 = vector.broadcast %123 : vector<64x1xf32> to vector<64x16xf32>
    %134 = arith.subf %115, %133 : vector<64x16xf32>
    %cst_59 = arith.constant 9.99999974E-6 : f32
    %135 = vector.broadcast %cst_59 : f32 to vector<64x1xf32>
    %136 = arith.addf %132, %135 : vector<64x1xf32>
    %137 = math.rsqrt %136 : vector<64x1xf32>
    %138 = vector.broadcast %137 : vector<64x1xf32> to vector<64x16xf32>
    %139 = arith.mulf %134, %138 : vector<64x16xf32>
    %140 = vector.broadcast %117 : vector<1x16xf32> to vector<64x16xf32>
    %141 = arith.mulf %139, %140 : vector<64x16xf32>
    %142 = vector.broadcast %119 : vector<1x16xf32> to vector<64x16xf32>
    %143 = arith.addf %141, %142 : vector<64x16xf32>
    %144 = arith.truncf %143 : vector<64x16xf32> to vector<64x16xbf16>
    %c0_60 = arith.constant 0 : index
    %c0_61 = arith.constant 0 : index
    %c0_62 = arith.constant 0 : index
    %145 = vector.load %arg14[%c0_60, %c0_61, %c0_62] : memref<4x16x64xbf16, #tpu.memory_space<vmem>>, vector<1x16x64xbf16>
    %146 = vector.shape_cast %145 : vector<1x16x64xbf16> to vector<16x64xbf16>
    %cst_63 = arith.constant dense<0.000000e+00> : vector<64x64xf32>
    %147 = tpu.matmul %144, %146, %cst_63 {dimension_numbers = #tpu.dot_dimension_numbers<[1], [0], [0], [1], [0, 0, 1, 1], [], []>} : vector<64x16xbf16>, vector<16x64xbf16>, vector<64x64xf32> -> vector<64x64xf32>
    %c0_64 = arith.constant 0 : index
    %c0_65 = arith.constant 0 : index
    %c0_66 = arith.constant 0 : index
    %148 = vector.load %arg15[%c0_64, %c0_65, %c0_66] : memref<4x1x64xf32, #tpu.memory_space<vmem>>, vector<1x1x64xf32>
    %149 = vector.shape_cast %148 : vector<1x1x64xf32> to vector<1x64xf32>
    %150 = vector.broadcast %149 : vector<1x64xf32> to vector<64x64xf32>
    %151 = arith.addf %147, %150 : vector<64x64xf32>
    %cst_67 = arith.constant 0.000000e+00 : f32
    %152 = vector.broadcast %cst_67 : f32 to vector<64x64xf32>
    %153 = arith.maximumf %151, %152 : vector<64x64xf32>
    %154 = arith.truncf %153 : vector<64x64xf32> to vector<64x64xbf16>
    %c0_68 = arith.constant 0 : index
    %c0_69 = arith.constant 0 : index
    %c0_70 = arith.constant 0 : index
    %155 = vector.load %arg16[%c0_68, %c0_69, %c0_70] : memref<4x64x16xbf16, #tpu.memory_space<vmem>>, vector<1x64x16xbf16>
    %156 = vector.shape_cast %155 : vector<1x64x16xbf16> to vector<64x16xbf16>
    %cst_71 = arith.constant dense<0.000000e+00> : vector<64x16xf32>
    %157 = tpu.matmul %154, %156, %cst_71 {dimension_numbers = #tpu.dot_dimension_numbers<[1], [0], [0], [1], [0, 0, 1, 1], [], []>} : vector<64x64xbf16>, vector<64x16xbf16>, vector<64x16xf32> -> vector<64x16xf32>
    %c0_72 = arith.constant 0 : index
    %c0_73 = arith.constant 0 : index
    %c0_74 = arith.constant 0 : index
    %158 = vector.load %arg17[%c0_72, %c0_73, %c0_74] : memref<4x1x16xf32, #tpu.memory_space<vmem>>, vector<1x1x16xf32>
    %159 = vector.shape_cast %158 : vector<1x1x16xf32> to vector<1x16xf32>
    %160 = vector.broadcast %159 : vector<1x16xf32> to vector<64x16xf32>
    %161 = arith.addf %157, %160 : vector<64x16xf32>
    %162 = arith.addf %143, %161 : vector<64x16xf32>
    %c0_75 = arith.constant 0 : index
    %c0_76 = arith.constant 0 : index
    %c0_77 = arith.constant 0 : index
    %163 = vector.load %arg20[%c0_75, %c0_76, %c0_77] : memref<4x1x16xf32, #tpu.memory_space<vmem>>, vector<1x1x16xf32>
    %164 = vector.shape_cast %163 : vector<1x1x16xf32> to vector<1x16xf32>
    %c0_78 = arith.constant 0 : index
    %c0_79 = arith.constant 0 : index
    %c0_80 = arith.constant 0 : index
    %165 = vector.load %arg21[%c0_78, %c0_79, %c0_80] : memref<4x1x16xf32, #tpu.memory_space<vmem>>, vector<1x1x16xf32>
    %166 = vector.shape_cast %165 : vector<1x1x16xf32> to vector<1x16xf32>
    %cst_81 = arith.constant dense<0.000000e+00> : vector<64xf32>
    %167 = vector.multi_reduction <add>, %162, %cst_81 [1] : vector<64x16xf32> to vector<64xf32>
    %168 = vector.shape_cast %167 : vector<64xf32> to vector<64x1xf32>
    %cst_82 = arith.constant 1.600000e+01 : f32
    %169 = vector.broadcast %cst_82 : f32 to vector<64x1xf32>
    %170 = arith.divf %168, %169 : vector<64x1xf32>
    %171 = vector.broadcast %170 : vector<64x1xf32> to vector<64x16xf32>
    %172 = arith.subf %162, %171 : vector<64x16xf32>
    %173 = vector.broadcast %170 : vector<64x1xf32> to vector<64x16xf32>
    %174 = arith.subf %162, %173 : vector<64x16xf32>
    %175 = arith.mulf %172, %174 : vector<64x16xf32>
    %cst_83 = arith.constant dense<0.000000e+00> : vector<64xf32>
    %176 = vector.multi_reduction <add>, %175, %cst_83 [1] : vector<64x16xf32> to vector<64xf32>
    %177 = vector.shape_cast %176 : vector<64xf32> to vector<64x1xf32>
    %cst_84 = arith.constant 1.600000e+01 : f32
    %178 = vector.broadcast %cst_84 : f32 to vector<64x1xf32>
    %179 = arith.divf %177, %178 : vector<64x1xf32>
    %180 = vector.broadcast %170 : vector<64x1xf32> to vector<64x16xf32>
    %181 = arith.subf %162, %180 : vector<64x16xf32>
    %cst_85 = arith.constant 9.99999974E-6 : f32
    %182 = vector.broadcast %cst_85 : f32 to vector<64x1xf32>
    %183 = arith.addf %179, %182 : vector<64x1xf32>
    %184 = math.rsqrt %183 : vector<64x1xf32>
    %185 = vector.broadcast %184 : vector<64x1xf32> to vector<64x16xf32>
    %186 = arith.mulf %181, %185 : vector<64x16xf32>
    %187 = vector.broadcast %164 : vector<1x16xf32> to vector<64x16xf32>
    %188 = arith.mulf %186, %187 : vector<64x16xf32>
    %189 = vector.broadcast %166 : vector<1x16xf32> to vector<64x16xf32>
    %190 = arith.addf %188, %189 : vector<64x16xf32>
    %191 = arith.truncf %190 : vector<64x16xf32> to vector<64x16xbf16>
    %c1 = arith.constant 1 : index
    %c0_86 = arith.constant 0 : index
    %c0_87 = arith.constant 0 : index
    %192 = vector.load %arg6[%c1, %c0_86, %c0_87] : memref<4x16x32xbf16, #tpu.memory_space<vmem>>, vector<1x16x32xbf16>
    %193 = vector.shape_cast %192 : vector<1x16x32xbf16> to vector<16x32xbf16>
    %cst_88 = arith.constant dense<0.000000e+00> : vector<64x32xf32>
    %194 = tpu.matmul %191, %193, %cst_88 {dimension_numbers = #tpu.dot_dimension_numbers<[1], [0], [0], [1], [0, 0, 1, 1], [], []>} : vector<64x16xbf16>, vector<16x32xbf16>, vector<64x32xf32> -> vector<64x32xf32>
    %c1_89 = arith.constant 1 : index
    %c0_90 = arith.constant 0 : index
    %c0_91 = arith.constant 0 : index
    %195 = vector.load %arg9[%c1_89, %c0_90, %c0_91] : memref<4x1x32xf32, #tpu.memory_space<vmem>>, vector<1x1x32xf32>
    %196 = vector.shape_cast %195 : vector<1x1x32xf32> to vector<1x32xf32>
    %197 = vector.broadcast %196 : vector<1x32xf32> to vector<64x32xf32>
    %198 = arith.addf %194, %197 : vector<64x32xf32>
    %c1_92 = arith.constant 1 : index
    %c0_93 = arith.constant 0 : index
    %c0_94 = arith.constant 0 : index
    %199 = vector.load %arg7[%c1_92, %c0_93, %c0_94] : memref<4x16x32xbf16, #tpu.memory_space<vmem>>, vector<1x16x32xbf16>
    %200 = vector.shape_cast %199 : vector<1x16x32xbf16> to vector<16x32xbf16>
    %cst_95 = arith.constant dense<0.000000e+00> : vector<64x32xf32>
    %201 = tpu.matmul %191, %200, %cst_95 {dimension_numbers = #tpu.dot_dimension_numbers<[1], [0], [0], [1], [0, 0, 1, 1], [], []>} : vector<64x16xbf16>, vector<16x32xbf16>, vector<64x32xf32> -> vector<64x32xf32>
    %c1_96 = arith.constant 1 : index
    %c0_97 = arith.constant 0 : index
    %c0_98 = arith.constant 0 : index
    %202 = vector.load %arg10[%c1_96, %c0_97, %c0_98] : memref<4x1x32xf32, #tpu.memory_space<vmem>>, vector<1x1x32xf32>
    %203 = vector.shape_cast %202 : vector<1x1x32xf32> to vector<1x32xf32>
    %204 = vector.broadcast %203 : vector<1x32xf32> to vector<64x32xf32>
    %205 = arith.addf %201, %204 : vector<64x32xf32>
    %c1_99 = arith.constant 1 : index
    %c0_100 = arith.constant 0 : index
    %c0_101 = arith.constant 0 : index
    %206 = vector.load %arg8[%c1_99, %c0_100, %c0_101] : memref<4x16x32xbf16, #tpu.memory_space<vmem>>, vector<1x16x32xbf16>
    %207 = vector.shape_cast %206 : vector<1x16x32xbf16> to vector<16x32xbf16>
    %cst_102 = arith.constant dense<0.000000e+00> : vector<64x32xf32>
    %208 = tpu.matmul %191, %207, %cst_102 {dimension_numbers = #tpu.dot_dimension_numbers<[1], [0], [0], [1], [0, 0, 1, 1], [], []>} : vector<64x16xbf16>, vector<16x32xbf16>, vector<64x32xf32> -> vector<64x32xf32>
    %c1_103 = arith.constant 1 : index
    %c0_104 = arith.constant 0 : index
    %c0_105 = arith.constant 0 : index
    %209 = vector.load %arg11[%c1_103, %c0_104, %c0_105] : memref<4x1x32xf32, #tpu.memory_space<vmem>>, vector<1x1x32xf32>
    %210 = vector.shape_cast %209 : vector<1x1x32xf32> to vector<1x32xf32>
    %211 = vector.broadcast %210 : vector<1x32xf32> to vector<64x32xf32>
    %212 = arith.addf %208, %211 : vector<64x32xf32>
    %213 = vector.extract_strided_slice %198 {offsets = [0, 0], sizes = [64, 8], strides = [1, 1]} : vector<64x32xf32> to vector<64x8xf32>
    %214 = arith.truncf %213 : vector<64x8xf32> to vector<64x8xbf16>
    %215 = vector.extract_strided_slice %205 {offsets = [0, 0], sizes = [64, 8], strides = [1, 1]} : vector<64x32xf32> to vector<64x8xf32>
    %216 = arith.truncf %215 : vector<64x8xf32> to vector<64x8xbf16>
    %217 = vector.extract_strided_slice %212 {offsets = [0, 0], sizes = [64, 8], strides = [1, 1]} : vector<64x32xf32> to vector<64x8xf32>
    %218 = arith.truncf %217 : vector<64x8xf32> to vector<64x8xbf16>
    %cst_106 = arith.constant dense<0.000000e+00> : vector<64x64xf32>
    %219 = tpu.matmul %214, %216, %cst_106 {dimension_numbers = #tpu.dot_dimension_numbers<[1], [1], [0], [0], [0, 0, 1, 0], [], []>} : vector<64x8xbf16>, vector<64x8xbf16>, vector<64x64xf32> -> vector<64x64xf32>
    %220 = arith.addf %219, %3 : vector<64x64xf32>
    %cst_107 = arith.constant dense<0xFF800000> : vector<64xf32>
    %221 = vector.multi_reduction <maximumf>, %220, %cst_107 [1] : vector<64x64xf32> to vector<64xf32>
    %222 = vector.shape_cast %221 : vector<64xf32> to vector<64x1xf32>
    %223 = vector.broadcast %222 : vector<64x1xf32> to vector<64x64xf32>
    %224 = arith.subf %220, %223 : vector<64x64xf32>
    %225 = math.exp %224 : vector<64x64xf32>
    %cst_108 = arith.constant dense<0.000000e+00> : vector<64xf32>
    %226 = vector.multi_reduction <add>, %225, %cst_108 [1] : vector<64x64xf32> to vector<64xf32>
    %227 = vector.shape_cast %226 : vector<64xf32> to vector<64x1xf32>
    %228 = tpu.reciprocal %227 {approx = true} : vector<64x1xf32> -> vector<64x1xf32>
    %229 = vector.broadcast %228 : vector<64x1xf32> to vector<64x64xf32>
    %230 = arith.mulf %225, %229 : vector<64x64xf32>
    %231 = arith.truncf %230 : vector<64x64xf32> to vector<64x64xbf16>
    %cst_109 = arith.constant dense<0.000000e+00> : vector<64x8xf32>
    %232 = tpu.matmul %231, %218, %cst_109 {dimension_numbers = #tpu.dot_dimension_numbers<[1], [0], [0], [1], [0, 0, 1, 1], [], []>} : vector<64x64xbf16>, vector<64x8xbf16>, vector<64x8xf32> -> vector<64x8xf32>
    %233 = vector.extract_strided_slice %198 {offsets = [0, 8], sizes = [64, 8], strides = [1, 1]} : vector<64x32xf32> to vector<64x8xf32>
    %234 = arith.truncf %233 : vector<64x8xf32> to vector<64x8xbf16>
    %235 = vector.extract_strided_slice %205 {offsets = [0, 8], sizes = [64, 8], strides = [1, 1]} : vector<64x32xf32> to vector<64x8xf32>
    %236 = arith.truncf %235 : vector<64x8xf32> to vector<64x8xbf16>
    %237 = vector.extract_strided_slice %212 {offsets = [0, 8], sizes = [64, 8], strides = [1, 1]} : vector<64x32xf32> to vector<64x8xf32>
    %238 = arith.truncf %237 : vector<64x8xf32> to vector<64x8xbf16>
    %cst_110 = arith.constant dense<0.000000e+00> : vector<64x64xf32>
    %239 = tpu.matmul %234, %236, %cst_110 {dimension_numbers = #tpu.dot_dimension_numbers<[1], [1], [0], [0], [0, 0, 1, 0], [], []>} : vector<64x8xbf16>, vector<64x8xbf16>, vector<64x64xf32> -> vector<64x64xf32>
    %240 = arith.addf %239, %3 : vector<64x64xf32>
    %cst_111 = arith.constant dense<0xFF800000> : vector<64xf32>
    %241 = vector.multi_reduction <maximumf>, %240, %cst_111 [1] : vector<64x64xf32> to vector<64xf32>
    %242 = vector.shape_cast %241 : vector<64xf32> to vector<64x1xf32>
    %243 = vector.broadcast %242 : vector<64x1xf32> to vector<64x64xf32>
    %244 = arith.subf %240, %243 : vector<64x64xf32>
    %245 = math.exp %244 : vector<64x64xf32>
    %cst_112 = arith.constant dense<0.000000e+00> : vector<64xf32>
    %246 = vector.multi_reduction <add>, %245, %cst_112 [1] : vector<64x64xf32> to vector<64xf32>
    %247 = vector.shape_cast %246 : vector<64xf32> to vector<64x1xf32>
    %248 = tpu.reciprocal %247 {approx = true} : vector<64x1xf32> -> vector<64x1xf32>
    %249 = vector.broadcast %248 : vector<64x1xf32> to vector<64x64xf32>
    %250 = arith.mulf %245, %249 : vector<64x64xf32>
    %251 = arith.truncf %250 : vector<64x64xf32> to vector<64x64xbf16>
    %cst_113 = arith.constant dense<0.000000e+00> : vector<64x8xf32>
    %252 = tpu.matmul %251, %238, %cst_113 {dimension_numbers = #tpu.dot_dimension_numbers<[1], [0], [0], [1], [0, 0, 1, 1], [], []>} : vector<64x64xbf16>, vector<64x8xbf16>, vector<64x8xf32> -> vector<64x8xf32>
    %253 = vector.extract_strided_slice %198 {offsets = [0, 16], sizes = [64, 8], strides = [1, 1]} : vector<64x32xf32> to vector<64x8xf32>
    %254 = arith.truncf %253 : vector<64x8xf32> to vector<64x8xbf16>
    %255 = vector.extract_strided_slice %205 {offsets = [0, 16], sizes = [64, 8], strides = [1, 1]} : vector<64x32xf32> to vector<64x8xf32>
    %256 = arith.truncf %255 : vector<64x8xf32> to vector<64x8xbf16>
    %257 = vector.extract_strided_slice %212 {offsets = [0, 16], sizes = [64, 8], strides = [1, 1]} : vector<64x32xf32> to vector<64x8xf32>
    %258 = arith.truncf %257 : vector<64x8xf32> to vector<64x8xbf16>
    %cst_114 = arith.constant dense<0.000000e+00> : vector<64x64xf32>
    %259 = tpu.matmul %254, %256, %cst_114 {dimension_numbers = #tpu.dot_dimension_numbers<[1], [1], [0], [0], [0, 0, 1, 0], [], []>} : vector<64x8xbf16>, vector<64x8xbf16>, vector<64x64xf32> -> vector<64x64xf32>
    %260 = arith.addf %259, %3 : vector<64x64xf32>
    %cst_115 = arith.constant dense<0xFF800000> : vector<64xf32>
    %261 = vector.multi_reduction <maximumf>, %260, %cst_115 [1] : vector<64x64xf32> to vector<64xf32>
    %262 = vector.shape_cast %261 : vector<64xf32> to vector<64x1xf32>
    %263 = vector.broadcast %262 : vector<64x1xf32> to vector<64x64xf32>
    %264 = arith.subf %260, %263 : vector<64x64xf32>
    %265 = math.exp %264 : vector<64x64xf32>
    %cst_116 = arith.constant dense<0.000000e+00> : vector<64xf32>
    %266 = vector.multi_reduction <add>, %265, %cst_116 [1] : vector<64x64xf32> to vector<64xf32>
    %267 = vector.shape_cast %266 : vector<64xf32> to vector<64x1xf32>
    %268 = tpu.reciprocal %267 {approx = true} : vector<64x1xf32> -> vector<64x1xf32>
    %269 = vector.broadcast %268 : vector<64x1xf32> to vector<64x64xf32>
    %270 = arith.mulf %265, %269 : vector<64x64xf32>
    %271 = arith.truncf %270 : vector<64x64xf32> to vector<64x64xbf16>
    %cst_117 = arith.constant dense<0.000000e+00> : vector<64x8xf32>
    %272 = tpu.matmul %271, %258, %cst_117 {dimension_numbers = #tpu.dot_dimension_numbers<[1], [0], [0], [1], [0, 0, 1, 1], [], []>} : vector<64x64xbf16>, vector<64x8xbf16>, vector<64x8xf32> -> vector<64x8xf32>
    %273 = vector.extract_strided_slice %198 {offsets = [0, 24], sizes = [64, 8], strides = [1, 1]} : vector<64x32xf32> to vector<64x8xf32>
    %274 = arith.truncf %273 : vector<64x8xf32> to vector<64x8xbf16>
    %275 = vector.extract_strided_slice %205 {offsets = [0, 24], sizes = [64, 8], strides = [1, 1]} : vector<64x32xf32> to vector<64x8xf32>
    %276 = arith.truncf %275 : vector<64x8xf32> to vector<64x8xbf16>
    %277 = vector.extract_strided_slice %212 {offsets = [0, 24], sizes = [64, 8], strides = [1, 1]} : vector<64x32xf32> to vector<64x8xf32>
    %278 = arith.truncf %277 : vector<64x8xf32> to vector<64x8xbf16>
    %cst_118 = arith.constant dense<0.000000e+00> : vector<64x64xf32>
    %279 = tpu.matmul %274, %276, %cst_118 {dimension_numbers = #tpu.dot_dimension_numbers<[1], [1], [0], [0], [0, 0, 1, 0], [], []>} : vector<64x8xbf16>, vector<64x8xbf16>, vector<64x64xf32> -> vector<64x64xf32>
    %280 = arith.addf %279, %3 : vector<64x64xf32>
    %cst_119 = arith.constant dense<0xFF800000> : vector<64xf32>
    %281 = vector.multi_reduction <maximumf>, %280, %cst_119 [1] : vector<64x64xf32> to vector<64xf32>
    %282 = vector.shape_cast %281 : vector<64xf32> to vector<64x1xf32>
    %283 = vector.broadcast %282 : vector<64x1xf32> to vector<64x64xf32>
    %284 = arith.subf %280, %283 : vector<64x64xf32>
    %285 = math.exp %284 : vector<64x64xf32>
    %cst_120 = arith.constant dense<0.000000e+00> : vector<64xf32>
    %286 = vector.multi_reduction <add>, %285, %cst_120 [1] : vector<64x64xf32> to vector<64xf32>
    %287 = vector.shape_cast %286 : vector<64xf32> to vector<64x1xf32>
    %288 = tpu.reciprocal %287 {approx = true} : vector<64x1xf32> -> vector<64x1xf32>
    %289 = vector.broadcast %288 : vector<64x1xf32> to vector<64x64xf32>
    %290 = arith.mulf %285, %289 : vector<64x64xf32>
    %291 = arith.truncf %290 : vector<64x64xf32> to vector<64x64xbf16>
    %cst_121 = arith.constant dense<0.000000e+00> : vector<64x8xf32>
    %292 = tpu.matmul %291, %278, %cst_121 {dimension_numbers = #tpu.dot_dimension_numbers<[1], [0], [0], [1], [0, 0, 1, 1], [], []>} : vector<64x64xbf16>, vector<64x8xbf16>, vector<64x8xf32> -> vector<64x8xf32>
    %293 = tpu.concatenate %232, %252, %272, %292 in 1 : vector<64x8xf32>, vector<64x8xf32>, vector<64x8xf32>, vector<64x8xf32> -> vector<64x32xf32>
    %294 = arith.truncf %293 : vector<64x32xf32> to vector<64x32xbf16>
    %c1_122 = arith.constant 1 : index
    %c0_123 = arith.constant 0 : index
    %c0_124 = arith.constant 0 : index
    %295 = vector.load %arg12[%c1_122, %c0_123, %c0_124] : memref<4x32x16xbf16, #tpu.memory_space<vmem>>, vector<1x32x16xbf16>
    %296 = vector.shape_cast %295 : vector<1x32x16xbf16> to vector<32x16xbf16>
    %cst_125 = arith.constant dense<0.000000e+00> : vector<64x16xf32>
    %297 = tpu.matmul %294, %296, %cst_125 {dimension_numbers = #tpu.dot_dimension_numbers<[1], [0], [0], [1], [0, 0, 1, 1], [], []>} : vector<64x32xbf16>, vector<32x16xbf16>, vector<64x16xf32> -> vector<64x16xf32>
    %c1_126 = arith.constant 1 : index
    %c0_127 = arith.constant 0 : index
    %c0_128 = arith.constant 0 : index
    %298 = vector.load %arg13[%c1_126, %c0_127, %c0_128] : memref<4x1x16xf32, #tpu.memory_space<vmem>>, vector<1x1x16xf32>
    %299 = vector.shape_cast %298 : vector<1x1x16xf32> to vector<1x16xf32>
    %300 = vector.broadcast %299 : vector<1x16xf32> to vector<64x16xf32>
    %301 = arith.addf %297, %300 : vector<64x16xf32>
    %302 = arith.addf %190, %301 : vector<64x16xf32>
    %c1_129 = arith.constant 1 : index
    %c0_130 = arith.constant 0 : index
    %c0_131 = arith.constant 0 : index
    %303 = vector.load %arg18[%c1_129, %c0_130, %c0_131] : memref<4x1x16xf32, #tpu.memory_space<vmem>>, vector<1x1x16xf32>
    %304 = vector.shape_cast %303 : vector<1x1x16xf32> to vector<1x16xf32>
    %c1_132 = arith.constant 1 : index
    %c0_133 = arith.constant 0 : index
    %c0_134 = arith.constant 0 : index
    %305 = vector.load %arg19[%c1_132, %c0_133, %c0_134] : memref<4x1x16xf32, #tpu.memory_space<vmem>>, vector<1x1x16xf32>
    %306 = vector.shape_cast %305 : vector<1x1x16xf32> to vector<1x16xf32>
    %cst_135 = arith.constant dense<0.000000e+00> : vector<64xf32>
    %307 = vector.multi_reduction <add>, %302, %cst_135 [1] : vector<64x16xf32> to vector<64xf32>
    %308 = vector.shape_cast %307 : vector<64xf32> to vector<64x1xf32>
    %cst_136 = arith.constant 1.600000e+01 : f32
    %309 = vector.broadcast %cst_136 : f32 to vector<64x1xf32>
    %310 = arith.divf %308, %309 : vector<64x1xf32>
    %311 = vector.broadcast %310 : vector<64x1xf32> to vector<64x16xf32>
    %312 = arith.subf %302, %311 : vector<64x16xf32>
    %313 = vector.broadcast %310 : vector<64x1xf32> to vector<64x16xf32>
    %314 = arith.subf %302, %313 : vector<64x16xf32>
    %315 = arith.mulf %312, %314 : vector<64x16xf32>
    %cst_137 = arith.constant dense<0.000000e+00> : vector<64xf32>
    %316 = vector.multi_reduction <add>, %315, %cst_137 [1] : vector<64x16xf32> to vector<64xf32>
    %317 = vector.shape_cast %316 : vector<64xf32> to vector<64x1xf32>
    %cst_138 = arith.constant 1.600000e+01 : f32
    %318 = vector.broadcast %cst_138 : f32 to vector<64x1xf32>
    %319 = arith.divf %317, %318 : vector<64x1xf32>
    %320 = vector.broadcast %310 : vector<64x1xf32> to vector<64x16xf32>
    %321 = arith.subf %302, %320 : vector<64x16xf32>
    %cst_139 = arith.constant 9.99999974E-6 : f32
    %322 = vector.broadcast %cst_139 : f32 to vector<64x1xf32>
    %323 = arith.addf %319, %322 : vector<64x1xf32>
    %324 = math.rsqrt %323 : vector<64x1xf32>
    %325 = vector.broadcast %324 : vector<64x1xf32> to vector<64x16xf32>
    %326 = arith.mulf %321, %325 : vector<64x16xf32>
    %327 = vector.broadcast %304 : vector<1x16xf32> to vector<64x16xf32>
    %328 = arith.mulf %326, %327 : vector<64x16xf32>
    %329 = vector.broadcast %306 : vector<1x16xf32> to vector<64x16xf32>
    %330 = arith.addf %328, %329 : vector<64x16xf32>
    %331 = arith.truncf %330 : vector<64x16xf32> to vector<64x16xbf16>
    %c1_140 = arith.constant 1 : index
    %c0_141 = arith.constant 0 : index
    %c0_142 = arith.constant 0 : index
    %332 = vector.load %arg14[%c1_140, %c0_141, %c0_142] : memref<4x16x64xbf16, #tpu.memory_space<vmem>>, vector<1x16x64xbf16>
    %333 = vector.shape_cast %332 : vector<1x16x64xbf16> to vector<16x64xbf16>
    %cst_143 = arith.constant dense<0.000000e+00> : vector<64x64xf32>
    %334 = tpu.matmul %331, %333, %cst_143 {dimension_numbers = #tpu.dot_dimension_numbers<[1], [0], [0], [1], [0, 0, 1, 1], [], []>} : vector<64x16xbf16>, vector<16x64xbf16>, vector<64x64xf32> -> vector<64x64xf32>
    %c1_144 = arith.constant 1 : index
    %c0_145 = arith.constant 0 : index
    %c0_146 = arith.constant 0 : index
    %335 = vector.load %arg15[%c1_144, %c0_145, %c0_146] : memref<4x1x64xf32, #tpu.memory_space<vmem>>, vector<1x1x64xf32>
    %336 = vector.shape_cast %335 : vector<1x1x64xf32> to vector<1x64xf32>
    %337 = vector.broadcast %336 : vector<1x64xf32> to vector<64x64xf32>
    %338 = arith.addf %334, %337 : vector<64x64xf32>
    %cst_147 = arith.constant 0.000000e+00 : f32
    %339 = vector.broadcast %cst_147 : f32 to vector<64x64xf32>
    %340 = arith.maximumf %338, %339 : vector<64x64xf32>
    %341 = arith.truncf %340 : vector<64x64xf32> to vector<64x64xbf16>
    %c1_148 = arith.constant 1 : index
    %c0_149 = arith.constant 0 : index
    %c0_150 = arith.constant 0 : index
    %342 = vector.load %arg16[%c1_148, %c0_149, %c0_150] : memref<4x64x16xbf16, #tpu.memory_space<vmem>>, vector<1x64x16xbf16>
    %343 = vector.shape_cast %342 : vector<1x64x16xbf16> to vector<64x16xbf16>
    %cst_151 = arith.constant dense<0.000000e+00> : vector<64x16xf32>
    %344 = tpu.matmul %341, %343, %cst_151 {dimension_numbers = #tpu.dot_dimension_numbers<[1], [0], [0], [1], [0, 0, 1, 1], [], []>} : vector<64x64xbf16>, vector<64x16xbf16>, vector<64x16xf32> -> vector<64x16xf32>
    %c1_152 = arith.constant 1 : index
    %c0_153 = arith.constant 0 : index
    %c0_154 = arith.constant 0 : index
    %345 = vector.load %arg17[%c1_152, %c0_153, %c0_154] : memref<4x1x16xf32, #tpu.memory_space<vmem>>, vector<1x1x16xf32>
    %346 = vector.shape_cast %345 : vector<1x1x16xf32> to vector<1x16xf32>
    %347 = vector.broadcast %346 : vector<1x16xf32> to vector<64x16xf32>
    %348 = arith.addf %344, %347 : vector<64x16xf32>
    %349 = arith.addf %330, %348 : vector<64x16xf32>
    %c1_155 = arith.constant 1 : index
    %c0_156 = arith.constant 0 : index
    %c0_157 = arith.constant 0 : index
    %350 = vector.load %arg20[%c1_155, %c0_156, %c0_157] : memref<4x1x16xf32, #tpu.memory_space<vmem>>, vector<1x1x16xf32>
    %351 = vector.shape_cast %350 : vector<1x1x16xf32> to vector<1x16xf32>
    %c1_158 = arith.constant 1 : index
    %c0_159 = arith.constant 0 : index
    %c0_160 = arith.constant 0 : index
    %352 = vector.load %arg21[%c1_158, %c0_159, %c0_160] : memref<4x1x16xf32, #tpu.memory_space<vmem>>, vector<1x1x16xf32>
    %353 = vector.shape_cast %352 : vector<1x1x16xf32> to vector<1x16xf32>
    %cst_161 = arith.constant dense<0.000000e+00> : vector<64xf32>
    %354 = vector.multi_reduction <add>, %349, %cst_161 [1] : vector<64x16xf32> to vector<64xf32>
    %355 = vector.shape_cast %354 : vector<64xf32> to vector<64x1xf32>
    %cst_162 = arith.constant 1.600000e+01 : f32
    %356 = vector.broadcast %cst_162 : f32 to vector<64x1xf32>
    %357 = arith.divf %355, %356 : vector<64x1xf32>
    %358 = vector.broadcast %357 : vector<64x1xf32> to vector<64x16xf32>
    %359 = arith.subf %349, %358 : vector<64x16xf32>
    %360 = vector.broadcast %357 : vector<64x1xf32> to vector<64x16xf32>
    %361 = arith.subf %349, %360 : vector<64x16xf32>
    %362 = arith.mulf %359, %361 : vector<64x16xf32>
    %cst_163 = arith.constant dense<0.000000e+00> : vector<64xf32>
    %363 = vector.multi_reduction <add>, %362, %cst_163 [1] : vector<64x16xf32> to vector<64xf32>
    %364 = vector.shape_cast %363 : vector<64xf32> to vector<64x1xf32>
    %cst_164 = arith.constant 1.600000e+01 : f32
    %365 = vector.broadcast %cst_164 : f32 to vector<64x1xf32>
    %366 = arith.divf %364, %365 : vector<64x1xf32>
    %367 = vector.broadcast %357 : vector<64x1xf32> to vector<64x16xf32>
    %368 = arith.subf %349, %367 : vector<64x16xf32>
    %cst_165 = arith.constant 9.99999974E-6 : f32
    %369 = vector.broadcast %cst_165 : f32 to vector<64x1xf32>
    %370 = arith.addf %366, %369 : vector<64x1xf32>
    %371 = math.rsqrt %370 : vector<64x1xf32>
    %372 = vector.broadcast %371 : vector<64x1xf32> to vector<64x16xf32>
    %373 = arith.mulf %368, %372 : vector<64x16xf32>
    %374 = vector.broadcast %351 : vector<1x16xf32> to vector<64x16xf32>
    %375 = arith.mulf %373, %374 : vector<64x16xf32>
    %376 = vector.broadcast %353 : vector<1x16xf32> to vector<64x16xf32>
    %377 = arith.addf %375, %376 : vector<64x16xf32>
    %378 = arith.truncf %377 : vector<64x16xf32> to vector<64x16xbf16>
    %c2 = arith.constant 2 : index
    %c0_166 = arith.constant 0 : index
    %c0_167 = arith.constant 0 : index
    %379 = vector.load %arg6[%c2, %c0_166, %c0_167] : memref<4x16x32xbf16, #tpu.memory_space<vmem>>, vector<1x16x32xbf16>
    %380 = vector.shape_cast %379 : vector<1x16x32xbf16> to vector<16x32xbf16>
    %cst_168 = arith.constant dense<0.000000e+00> : vector<64x32xf32>
    %381 = tpu.matmul %378, %380, %cst_168 {dimension_numbers = #tpu.dot_dimension_numbers<[1], [0], [0], [1], [0, 0, 1, 1], [], []>} : vector<64x16xbf16>, vector<16x32xbf16>, vector<64x32xf32> -> vector<64x32xf32>
    %c2_169 = arith.constant 2 : index
    %c0_170 = arith.constant 0 : index
    %c0_171 = arith.constant 0 : index
    %382 = vector.load %arg9[%c2_169, %c0_170, %c0_171] : memref<4x1x32xf32, #tpu.memory_space<vmem>>, vector<1x1x32xf32>
    %383 = vector.shape_cast %382 : vector<1x1x32xf32> to vector<1x32xf32>
    %384 = vector.broadcast %383 : vector<1x32xf32> to vector<64x32xf32>
    %385 = arith.addf %381, %384 : vector<64x32xf32>
    %c2_172 = arith.constant 2 : index
    %c0_173 = arith.constant 0 : index
    %c0_174 = arith.constant 0 : index
    %386 = vector.load %arg7[%c2_172, %c0_173, %c0_174] : memref<4x16x32xbf16, #tpu.memory_space<vmem>>, vector<1x16x32xbf16>
    %387 = vector.shape_cast %386 : vector<1x16x32xbf16> to vector<16x32xbf16>
    %cst_175 = arith.constant dense<0.000000e+00> : vector<64x32xf32>
    %388 = tpu.matmul %378, %387, %cst_175 {dimension_numbers = #tpu.dot_dimension_numbers<[1], [0], [0], [1], [0, 0, 1, 1], [], []>} : vector<64x16xbf16>, vector<16x32xbf16>, vector<64x32xf32> -> vector<64x32xf32>
    %c2_176 = arith.constant 2 : index
    %c0_177 = arith.constant 0 : index
    %c0_178 = arith.constant 0 : index
    %389 = vector.load %arg10[%c2_176, %c0_177, %c0_178] : memref<4x1x32xf32, #tpu.memory_space<vmem>>, vector<1x1x32xf32>
    %390 = vector.shape_cast %389 : vector<1x1x32xf32> to vector<1x32xf32>
    %391 = vector.broadcast %390 : vector<1x32xf32> to vector<64x32xf32>
    %392 = arith.addf %388, %391 : vector<64x32xf32>
    %c2_179 = arith.constant 2 : index
    %c0_180 = arith.constant 0 : index
    %c0_181 = arith.constant 0 : index
    %393 = vector.load %arg8[%c2_179, %c0_180, %c0_181] : memref<4x16x32xbf16, #tpu.memory_space<vmem>>, vector<1x16x32xbf16>
    %394 = vector.shape_cast %393 : vector<1x16x32xbf16> to vector<16x32xbf16>
    %cst_182 = arith.constant dense<0.000000e+00> : vector<64x32xf32>
    %395 = tpu.matmul %378, %394, %cst_182 {dimension_numbers = #tpu.dot_dimension_numbers<[1], [0], [0], [1], [0, 0, 1, 1], [], []>} : vector<64x16xbf16>, vector<16x32xbf16>, vector<64x32xf32> -> vector<64x32xf32>
    %c2_183 = arith.constant 2 : index
    %c0_184 = arith.constant 0 : index
    %c0_185 = arith.constant 0 : index
    %396 = vector.load %arg11[%c2_183, %c0_184, %c0_185] : memref<4x1x32xf32, #tpu.memory_space<vmem>>, vector<1x1x32xf32>
    %397 = vector.shape_cast %396 : vector<1x1x32xf32> to vector<1x32xf32>
    %398 = vector.broadcast %397 : vector<1x32xf32> to vector<64x32xf32>
    %399 = arith.addf %395, %398 : vector<64x32xf32>
    %400 = vector.extract_strided_slice %385 {offsets = [0, 0], sizes = [64, 8], strides = [1, 1]} : vector<64x32xf32> to vector<64x8xf32>
    %401 = arith.truncf %400 : vector<64x8xf32> to vector<64x8xbf16>
    %402 = vector.extract_strided_slice %392 {offsets = [0, 0], sizes = [64, 8], strides = [1, 1]} : vector<64x32xf32> to vector<64x8xf32>
    %403 = arith.truncf %402 : vector<64x8xf32> to vector<64x8xbf16>
    %404 = vector.extract_strided_slice %399 {offsets = [0, 0], sizes = [64, 8], strides = [1, 1]} : vector<64x32xf32> to vector<64x8xf32>
    %405 = arith.truncf %404 : vector<64x8xf32> to vector<64x8xbf16>
    %cst_186 = arith.constant dense<0.000000e+00> : vector<64x64xf32>
    %406 = tpu.matmul %401, %403, %cst_186 {dimension_numbers = #tpu.dot_dimension_numbers<[1], [1], [0], [0], [0, 0, 1, 0], [], []>} : vector<64x8xbf16>, vector<64x8xbf16>, vector<64x64xf32> -> vector<64x64xf32>
    %407 = arith.addf %406, %3 : vector<64x64xf32>
    %cst_187 = arith.constant dense<0xFF800000> : vector<64xf32>
    %408 = vector.multi_reduction <maximumf>, %407, %cst_187 [1] : vector<64x64xf32> to vector<64xf32>
    %409 = vector.shape_cast %408 : vector<64xf32> to vector<64x1xf32>
    %410 = vector.broadcast %409 : vector<64x1xf32> to vector<64x64xf32>
    %411 = arith.subf %407, %410 : vector<64x64xf32>
    %412 = math.exp %411 : vector<64x64xf32>
    %cst_188 = arith.constant dense<0.000000e+00> : vector<64xf32>
    %413 = vector.multi_reduction <add>, %412, %cst_188 [1] : vector<64x64xf32> to vector<64xf32>
    %414 = vector.shape_cast %413 : vector<64xf32> to vector<64x1xf32>
    %415 = tpu.reciprocal %414 {approx = true} : vector<64x1xf32> -> vector<64x1xf32>
    %416 = vector.broadcast %415 : vector<64x1xf32> to vector<64x64xf32>
    %417 = arith.mulf %412, %416 : vector<64x64xf32>
    %418 = arith.truncf %417 : vector<64x64xf32> to vector<64x64xbf16>
    %cst_189 = arith.constant dense<0.000000e+00> : vector<64x8xf32>
    %419 = tpu.matmul %418, %405, %cst_189 {dimension_numbers = #tpu.dot_dimension_numbers<[1], [0], [0], [1], [0, 0, 1, 1], [], []>} : vector<64x64xbf16>, vector<64x8xbf16>, vector<64x8xf32> -> vector<64x8xf32>
    %420 = vector.extract_strided_slice %385 {offsets = [0, 8], sizes = [64, 8], strides = [1, 1]} : vector<64x32xf32> to vector<64x8xf32>
    %421 = arith.truncf %420 : vector<64x8xf32> to vector<64x8xbf16>
    %422 = vector.extract_strided_slice %392 {offsets = [0, 8], sizes = [64, 8], strides = [1, 1]} : vector<64x32xf32> to vector<64x8xf32>
    %423 = arith.truncf %422 : vector<64x8xf32> to vector<64x8xbf16>
    %424 = vector.extract_strided_slice %399 {offsets = [0, 8], sizes = [64, 8], strides = [1, 1]} : vector<64x32xf32> to vector<64x8xf32>
    %425 = arith.truncf %424 : vector<64x8xf32> to vector<64x8xbf16>
    %cst_190 = arith.constant dense<0.000000e+00> : vector<64x64xf32>
    %426 = tpu.matmul %421, %423, %cst_190 {dimension_numbers = #tpu.dot_dimension_numbers<[1], [1], [0], [0], [0, 0, 1, 0], [], []>} : vector<64x8xbf16>, vector<64x8xbf16>, vector<64x64xf32> -> vector<64x64xf32>
    %427 = arith.addf %426, %3 : vector<64x64xf32>
    %cst_191 = arith.constant dense<0xFF800000> : vector<64xf32>
    %428 = vector.multi_reduction <maximumf>, %427, %cst_191 [1] : vector<64x64xf32> to vector<64xf32>
    %429 = vector.shape_cast %428 : vector<64xf32> to vector<64x1xf32>
    %430 = vector.broadcast %429 : vector<64x1xf32> to vector<64x64xf32>
    %431 = arith.subf %427, %430 : vector<64x64xf32>
    %432 = math.exp %431 : vector<64x64xf32>
    %cst_192 = arith.constant dense<0.000000e+00> : vector<64xf32>
    %433 = vector.multi_reduction <add>, %432, %cst_192 [1] : vector<64x64xf32> to vector<64xf32>
    %434 = vector.shape_cast %433 : vector<64xf32> to vector<64x1xf32>
    %435 = tpu.reciprocal %434 {approx = true} : vector<64x1xf32> -> vector<64x1xf32>
    %436 = vector.broadcast %435 : vector<64x1xf32> to vector<64x64xf32>
    %437 = arith.mulf %432, %436 : vector<64x64xf32>
    %438 = arith.truncf %437 : vector<64x64xf32> to vector<64x64xbf16>
    %cst_193 = arith.constant dense<0.000000e+00> : vector<64x8xf32>
    %439 = tpu.matmul %438, %425, %cst_193 {dimension_numbers = #tpu.dot_dimension_numbers<[1], [0], [0], [1], [0, 0, 1, 1], [], []>} : vector<64x64xbf16>, vector<64x8xbf16>, vector<64x8xf32> -> vector<64x8xf32>
    %440 = vector.extract_strided_slice %385 {offsets = [0, 16], sizes = [64, 8], strides = [1, 1]} : vector<64x32xf32> to vector<64x8xf32>
    %441 = arith.truncf %440 : vector<64x8xf32> to vector<64x8xbf16>
    %442 = vector.extract_strided_slice %392 {offsets = [0, 16], sizes = [64, 8], strides = [1, 1]} : vector<64x32xf32> to vector<64x8xf32>
    %443 = arith.truncf %442 : vector<64x8xf32> to vector<64x8xbf16>
    %444 = vector.extract_strided_slice %399 {offsets = [0, 16], sizes = [64, 8], strides = [1, 1]} : vector<64x32xf32> to vector<64x8xf32>
    %445 = arith.truncf %444 : vector<64x8xf32> to vector<64x8xbf16>
    %cst_194 = arith.constant dense<0.000000e+00> : vector<64x64xf32>
    %446 = tpu.matmul %441, %443, %cst_194 {dimension_numbers = #tpu.dot_dimension_numbers<[1], [1], [0], [0], [0, 0, 1, 0], [], []>} : vector<64x8xbf16>, vector<64x8xbf16>, vector<64x64xf32> -> vector<64x64xf32>
    %447 = arith.addf %446, %3 : vector<64x64xf32>
    %cst_195 = arith.constant dense<0xFF800000> : vector<64xf32>
    %448 = vector.multi_reduction <maximumf>, %447, %cst_195 [1] : vector<64x64xf32> to vector<64xf32>
    %449 = vector.shape_cast %448 : vector<64xf32> to vector<64x1xf32>
    %450 = vector.broadcast %449 : vector<64x1xf32> to vector<64x64xf32>
    %451 = arith.subf %447, %450 : vector<64x64xf32>
    %452 = math.exp %451 : vector<64x64xf32>
    %cst_196 = arith.constant dense<0.000000e+00> : vector<64xf32>
    %453 = vector.multi_reduction <add>, %452, %cst_196 [1] : vector<64x64xf32> to vector<64xf32>
    %454 = vector.shape_cast %453 : vector<64xf32> to vector<64x1xf32>
    %455 = tpu.reciprocal %454 {approx = true} : vector<64x1xf32> -> vector<64x1xf32>
    %456 = vector.broadcast %455 : vector<64x1xf32> to vector<64x64xf32>
    %457 = arith.mulf %452, %456 : vector<64x64xf32>
    %458 = arith.truncf %457 : vector<64x64xf32> to vector<64x64xbf16>
    %cst_197 = arith.constant dense<0.000000e+00> : vector<64x8xf32>
    %459 = tpu.matmul %458, %445, %cst_197 {dimension_numbers = #tpu.dot_dimension_numbers<[1], [0], [0], [1], [0, 0, 1, 1], [], []>} : vector<64x64xbf16>, vector<64x8xbf16>, vector<64x8xf32> -> vector<64x8xf32>
    %460 = vector.extract_strided_slice %385 {offsets = [0, 24], sizes = [64, 8], strides = [1, 1]} : vector<64x32xf32> to vector<64x8xf32>
    %461 = arith.truncf %460 : vector<64x8xf32> to vector<64x8xbf16>
    %462 = vector.extract_strided_slice %392 {offsets = [0, 24], sizes = [64, 8], strides = [1, 1]} : vector<64x32xf32> to vector<64x8xf32>
    %463 = arith.truncf %462 : vector<64x8xf32> to vector<64x8xbf16>
    %464 = vector.extract_strided_slice %399 {offsets = [0, 24], sizes = [64, 8], strides = [1, 1]} : vector<64x32xf32> to vector<64x8xf32>
    %465 = arith.truncf %464 : vector<64x8xf32> to vector<64x8xbf16>
    %cst_198 = arith.constant dense<0.000000e+00> : vector<64x64xf32>
    %466 = tpu.matmul %461, %463, %cst_198 {dimension_numbers = #tpu.dot_dimension_numbers<[1], [1], [0], [0], [0, 0, 1, 0], [], []>} : vector<64x8xbf16>, vector<64x8xbf16>, vector<64x64xf32> -> vector<64x64xf32>
    %467 = arith.addf %466, %3 : vector<64x64xf32>
    %cst_199 = arith.constant dense<0xFF800000> : vector<64xf32>
    %468 = vector.multi_reduction <maximumf>, %467, %cst_199 [1] : vector<64x64xf32> to vector<64xf32>
    %469 = vector.shape_cast %468 : vector<64xf32> to vector<64x1xf32>
    %470 = vector.broadcast %469 : vector<64x1xf32> to vector<64x64xf32>
    %471 = arith.subf %467, %470 : vector<64x64xf32>
    %472 = math.exp %471 : vector<64x64xf32>
    %cst_200 = arith.constant dense<0.000000e+00> : vector<64xf32>
    %473 = vector.multi_reduction <add>, %472, %cst_200 [1] : vector<64x64xf32> to vector<64xf32>
    %474 = vector.shape_cast %473 : vector<64xf32> to vector<64x1xf32>
    %475 = tpu.reciprocal %474 {approx = true} : vector<64x1xf32> -> vector<64x1xf32>
    %476 = vector.broadcast %475 : vector<64x1xf32> to vector<64x64xf32>
    %477 = arith.mulf %472, %476 : vector<64x64xf32>
    %478 = arith.truncf %477 : vector<64x64xf32> to vector<64x64xbf16>
    %cst_201 = arith.constant dense<0.000000e+00> : vector<64x8xf32>
    %479 = tpu.matmul %478, %465, %cst_201 {dimension_numbers = #tpu.dot_dimension_numbers<[1], [0], [0], [1], [0, 0, 1, 1], [], []>} : vector<64x64xbf16>, vector<64x8xbf16>, vector<64x8xf32> -> vector<64x8xf32>
    %480 = tpu.concatenate %419, %439, %459, %479 in 1 : vector<64x8xf32>, vector<64x8xf32>, vector<64x8xf32>, vector<64x8xf32> -> vector<64x32xf32>
    %481 = arith.truncf %480 : vector<64x32xf32> to vector<64x32xbf16>
    %c2_202 = arith.constant 2 : index
    %c0_203 = arith.constant 0 : index
    %c0_204 = arith.constant 0 : index
    %482 = vector.load %arg12[%c2_202, %c0_203, %c0_204] : memref<4x32x16xbf16, #tpu.memory_space<vmem>>, vector<1x32x16xbf16>
    %483 = vector.shape_cast %482 : vector<1x32x16xbf16> to vector<32x16xbf16>
    %cst_205 = arith.constant dense<0.000000e+00> : vector<64x16xf32>
    %484 = tpu.matmul %481, %483, %cst_205 {dimension_numbers = #tpu.dot_dimension_numbers<[1], [0], [0], [1], [0, 0, 1, 1], [], []>} : vector<64x32xbf16>, vector<32x16xbf16>, vector<64x16xf32> -> vector<64x16xf32>
    %c2_206 = arith.constant 2 : index
    %c0_207 = arith.constant 0 : index
    %c0_208 = arith.constant 0 : index
    %485 = vector.load %arg13[%c2_206, %c0_207, %c0_208] : memref<4x1x16xf32, #tpu.memory_space<vmem>>, vector<1x1x16xf32>
    %486 = vector.shape_cast %485 : vector<1x1x16xf32> to vector<1x16xf32>
    %487 = vector.broadcast %486 : vector<1x16xf32> to vector<64x16xf32>
    %488 = arith.addf %484, %487 : vector<64x16xf32>
    %489 = arith.addf %377, %488 : vector<64x16xf32>
    %c2_209 = arith.constant 2 : index
    %c0_210 = arith.constant 0 : index
    %c0_211 = arith.constant 0 : index
    %490 = vector.load %arg18[%c2_209, %c0_210, %c0_211] : memref<4x1x16xf32, #tpu.memory_space<vmem>>, vector<1x1x16xf32>
    %491 = vector.shape_cast %490 : vector<1x1x16xf32> to vector<1x16xf32>
    %c2_212 = arith.constant 2 : index
    %c0_213 = arith.constant 0 : index
    %c0_214 = arith.constant 0 : index
    %492 = vector.load %arg19[%c2_212, %c0_213, %c0_214] : memref<4x1x16xf32, #tpu.memory_space<vmem>>, vector<1x1x16xf32>
    %493 = vector.shape_cast %492 : vector<1x1x16xf32> to vector<1x16xf32>
    %cst_215 = arith.constant dense<0.000000e+00> : vector<64xf32>
    %494 = vector.multi_reduction <add>, %489, %cst_215 [1] : vector<64x16xf32> to vector<64xf32>
    %495 = vector.shape_cast %494 : vector<64xf32> to vector<64x1xf32>
    %cst_216 = arith.constant 1.600000e+01 : f32
    %496 = vector.broadcast %cst_216 : f32 to vector<64x1xf32>
    %497 = arith.divf %495, %496 : vector<64x1xf32>
    %498 = vector.broadcast %497 : vector<64x1xf32> to vector<64x16xf32>
    %499 = arith.subf %489, %498 : vector<64x16xf32>
    %500 = vector.broadcast %497 : vector<64x1xf32> to vector<64x16xf32>
    %501 = arith.subf %489, %500 : vector<64x16xf32>
    %502 = arith.mulf %499, %501 : vector<64x16xf32>
    %cst_217 = arith.constant dense<0.000000e+00> : vector<64xf32>
    %503 = vector.multi_reduction <add>, %502, %cst_217 [1] : vector<64x16xf32> to vector<64xf32>
    %504 = vector.shape_cast %503 : vector<64xf32> to vector<64x1xf32>
    %cst_218 = arith.constant 1.600000e+01 : f32
    %505 = vector.broadcast %cst_218 : f32 to vector<64x1xf32>
    %506 = arith.divf %504, %505 : vector<64x1xf32>
    %507 = vector.broadcast %497 : vector<64x1xf32> to vector<64x16xf32>
    %508 = arith.subf %489, %507 : vector<64x16xf32>
    %cst_219 = arith.constant 9.99999974E-6 : f32
    %509 = vector.broadcast %cst_219 : f32 to vector<64x1xf32>
    %510 = arith.addf %506, %509 : vector<64x1xf32>
    %511 = math.rsqrt %510 : vector<64x1xf32>
    %512 = vector.broadcast %511 : vector<64x1xf32> to vector<64x16xf32>
    %513 = arith.mulf %508, %512 : vector<64x16xf32>
    %514 = vector.broadcast %491 : vector<1x16xf32> to vector<64x16xf32>
    %515 = arith.mulf %513, %514 : vector<64x16xf32>
    %516 = vector.broadcast %493 : vector<1x16xf32> to vector<64x16xf32>
    %517 = arith.addf %515, %516 : vector<64x16xf32>
    %518 = arith.truncf %517 : vector<64x16xf32> to vector<64x16xbf16>
    %c2_220 = arith.constant 2 : index
    %c0_221 = arith.constant 0 : index
    %c0_222 = arith.constant 0 : index
    %519 = vector.load %arg14[%c2_220, %c0_221, %c0_222] : memref<4x16x64xbf16, #tpu.memory_space<vmem>>, vector<1x16x64xbf16>
    %520 = vector.shape_cast %519 : vector<1x16x64xbf16> to vector<16x64xbf16>
    %cst_223 = arith.constant dense<0.000000e+00> : vector<64x64xf32>
    %521 = tpu.matmul %518, %520, %cst_223 {dimension_numbers = #tpu.dot_dimension_numbers<[1], [0], [0], [1], [0, 0, 1, 1], [], []>} : vector<64x16xbf16>, vector<16x64xbf16>, vector<64x64xf32> -> vector<64x64xf32>
    %c2_224 = arith.constant 2 : index
    %c0_225 = arith.constant 0 : index
    %c0_226 = arith.constant 0 : index
    %522 = vector.load %arg15[%c2_224, %c0_225, %c0_226] : memref<4x1x64xf32, #tpu.memory_space<vmem>>, vector<1x1x64xf32>
    %523 = vector.shape_cast %522 : vector<1x1x64xf32> to vector<1x64xf32>
    %524 = vector.broadcast %523 : vector<1x64xf32> to vector<64x64xf32>
    %525 = arith.addf %521, %524 : vector<64x64xf32>
    %cst_227 = arith.constant 0.000000e+00 : f32
    %526 = vector.broadcast %cst_227 : f32 to vector<64x64xf32>
    %527 = arith.maximumf %525, %526 : vector<64x64xf32>
    %528 = arith.truncf %527 : vector<64x64xf32> to vector<64x64xbf16>
    %c2_228 = arith.constant 2 : index
    %c0_229 = arith.constant 0 : index
    %c0_230 = arith.constant 0 : index
    %529 = vector.load %arg16[%c2_228, %c0_229, %c0_230] : memref<4x64x16xbf16, #tpu.memory_space<vmem>>, vector<1x64x16xbf16>
    %530 = vector.shape_cast %529 : vector<1x64x16xbf16> to vector<64x16xbf16>
    %cst_231 = arith.constant dense<0.000000e+00> : vector<64x16xf32>
    %531 = tpu.matmul %528, %530, %cst_231 {dimension_numbers = #tpu.dot_dimension_numbers<[1], [0], [0], [1], [0, 0, 1, 1], [], []>} : vector<64x64xbf16>, vector<64x16xbf16>, vector<64x16xf32> -> vector<64x16xf32>
    %c2_232 = arith.constant 2 : index
    %c0_233 = arith.constant 0 : index
    %c0_234 = arith.constant 0 : index
    %532 = vector.load %arg17[%c2_232, %c0_233, %c0_234] : memref<4x1x16xf32, #tpu.memory_space<vmem>>, vector<1x1x16xf32>
    %533 = vector.shape_cast %532 : vector<1x1x16xf32> to vector<1x16xf32>
    %534 = vector.broadcast %533 : vector<1x16xf32> to vector<64x16xf32>
    %535 = arith.addf %531, %534 : vector<64x16xf32>
    %536 = arith.addf %517, %535 : vector<64x16xf32>
    %c2_235 = arith.constant 2 : index
    %c0_236 = arith.constant 0 : index
    %c0_237 = arith.constant 0 : index
    %537 = vector.load %arg20[%c2_235, %c0_236, %c0_237] : memref<4x1x16xf32, #tpu.memory_space<vmem>>, vector<1x1x16xf32>
    %538 = vector.shape_cast %537 : vector<1x1x16xf32> to vector<1x16xf32>
    %c2_238 = arith.constant 2 : index
    %c0_239 = arith.constant 0 : index
    %c0_240 = arith.constant 0 : index
    %539 = vector.load %arg21[%c2_238, %c0_239, %c0_240] : memref<4x1x16xf32, #tpu.memory_space<vmem>>, vector<1x1x16xf32>
    %540 = vector.shape_cast %539 : vector<1x1x16xf32> to vector<1x16xf32>
    %cst_241 = arith.constant dense<0.000000e+00> : vector<64xf32>
    %541 = vector.multi_reduction <add>, %536, %cst_241 [1] : vector<64x16xf32> to vector<64xf32>
    %542 = vector.shape_cast %541 : vector<64xf32> to vector<64x1xf32>
    %cst_242 = arith.constant 1.600000e+01 : f32
    %543 = vector.broadcast %cst_242 : f32 to vector<64x1xf32>
    %544 = arith.divf %542, %543 : vector<64x1xf32>
    %545 = vector.broadcast %544 : vector<64x1xf32> to vector<64x16xf32>
    %546 = arith.subf %536, %545 : vector<64x16xf32>
    %547 = vector.broadcast %544 : vector<64x1xf32> to vector<64x16xf32>
    %548 = arith.subf %536, %547 : vector<64x16xf32>
    %549 = arith.mulf %546, %548 : vector<64x16xf32>
    %cst_243 = arith.constant dense<0.000000e+00> : vector<64xf32>
    %550 = vector.multi_reduction <add>, %549, %cst_243 [1] : vector<64x16xf32> to vector<64xf32>
    %551 = vector.shape_cast %550 : vector<64xf32> to vector<64x1xf32>
    %cst_244 = arith.constant 1.600000e+01 : f32
    %552 = vector.broadcast %cst_244 : f32 to vector<64x1xf32>
    %553 = arith.divf %551, %552 : vector<64x1xf32>
    %554 = vector.broadcast %544 : vector<64x1xf32> to vector<64x16xf32>
    %555 = arith.subf %536, %554 : vector<64x16xf32>
    %cst_245 = arith.constant 9.99999974E-6 : f32
    %556 = vector.broadcast %cst_245 : f32 to vector<64x1xf32>
    %557 = arith.addf %553, %556 : vector<64x1xf32>
    %558 = math.rsqrt %557 : vector<64x1xf32>
    %559 = vector.broadcast %558 : vector<64x1xf32> to vector<64x16xf32>
    %560 = arith.mulf %555, %559 : vector<64x16xf32>
    %561 = vector.broadcast %538 : vector<1x16xf32> to vector<64x16xf32>
    %562 = arith.mulf %560, %561 : vector<64x16xf32>
    %563 = vector.broadcast %540 : vector<1x16xf32> to vector<64x16xf32>
    %564 = arith.addf %562, %563 : vector<64x16xf32>
    %c0_246 = arith.constant 0 : index
    %c0_247 = arith.constant 0 : index
    %565 = vector.load %arg2[%c0_246, %c0_247] : memref<64x64xf32, #tpu.memory_space<vmem>>, vector<64x64xf32>
    %cst_248 = arith.constant dense<0.000000e+00> : vector<64x16xf32>
    %566 = tpu.matmul %565, %564, %cst_248 {dimension_numbers = #tpu.dot_dimension_numbers<[1], [0], [0], [1], [0, 0, 1, 1], [], []>} : vector<64x64xf32>, vector<64x16xf32>, vector<64x16xf32> -> vector<64x16xf32>
    %c0_249 = arith.constant 0 : index
    %c0_250 = arith.constant 0 : index
    %567 = vector.load %arg5[%c0_249, %c0_250] : memref<64x64xf32, #tpu.memory_space<vmem>>, vector<64x64xf32>
    %568 = arith.truncf %566 : vector<64x16xf32> to vector<64x16xbf16>
    %c3 = arith.constant 3 : index
    %c0_251 = arith.constant 0 : index
    %c0_252 = arith.constant 0 : index
    %569 = vector.load %arg6[%c3, %c0_251, %c0_252] : memref<4x16x32xbf16, #tpu.memory_space<vmem>>, vector<1x16x32xbf16>
    %570 = vector.shape_cast %569 : vector<1x16x32xbf16> to vector<16x32xbf16>
    %cst_253 = arith.constant dense<0.000000e+00> : vector<64x32xf32>
    %571 = tpu.matmul %568, %570, %cst_253 {dimension_numbers = #tpu.dot_dimension_numbers<[1], [0], [0], [1], [0, 0, 1, 1], [], []>} : vector<64x16xbf16>, vector<16x32xbf16>, vector<64x32xf32> -> vector<64x32xf32>
    %c3_254 = arith.constant 3 : index
    %c0_255 = arith.constant 0 : index
    %c0_256 = arith.constant 0 : index
    %572 = vector.load %arg9[%c3_254, %c0_255, %c0_256] : memref<4x1x32xf32, #tpu.memory_space<vmem>>, vector<1x1x32xf32>
    %573 = vector.shape_cast %572 : vector<1x1x32xf32> to vector<1x32xf32>
    %574 = vector.broadcast %573 : vector<1x32xf32> to vector<64x32xf32>
    %575 = arith.addf %571, %574 : vector<64x32xf32>
    %c3_257 = arith.constant 3 : index
    %c0_258 = arith.constant 0 : index
    %c0_259 = arith.constant 0 : index
    %576 = vector.load %arg7[%c3_257, %c0_258, %c0_259] : memref<4x16x32xbf16, #tpu.memory_space<vmem>>, vector<1x16x32xbf16>
    %577 = vector.shape_cast %576 : vector<1x16x32xbf16> to vector<16x32xbf16>
    %cst_260 = arith.constant dense<0.000000e+00> : vector<64x32xf32>
    %578 = tpu.matmul %568, %577, %cst_260 {dimension_numbers = #tpu.dot_dimension_numbers<[1], [0], [0], [1], [0, 0, 1, 1], [], []>} : vector<64x16xbf16>, vector<16x32xbf16>, vector<64x32xf32> -> vector<64x32xf32>
    %c3_261 = arith.constant 3 : index
    %c0_262 = arith.constant 0 : index
    %c0_263 = arith.constant 0 : index
    %579 = vector.load %arg10[%c3_261, %c0_262, %c0_263] : memref<4x1x32xf32, #tpu.memory_space<vmem>>, vector<1x1x32xf32>
    %580 = vector.shape_cast %579 : vector<1x1x32xf32> to vector<1x32xf32>
    %581 = vector.broadcast %580 : vector<1x32xf32> to vector<64x32xf32>
    %582 = arith.addf %578, %581 : vector<64x32xf32>
    %c3_264 = arith.constant 3 : index
    %c0_265 = arith.constant 0 : index
    %c0_266 = arith.constant 0 : index
    %583 = vector.load %arg8[%c3_264, %c0_265, %c0_266] : memref<4x16x32xbf16, #tpu.memory_space<vmem>>, vector<1x16x32xbf16>
    %584 = vector.shape_cast %583 : vector<1x16x32xbf16> to vector<16x32xbf16>
    %cst_267 = arith.constant dense<0.000000e+00> : vector<64x32xf32>
    %585 = tpu.matmul %568, %584, %cst_267 {dimension_numbers = #tpu.dot_dimension_numbers<[1], [0], [0], [1], [0, 0, 1, 1], [], []>} : vector<64x16xbf16>, vector<16x32xbf16>, vector<64x32xf32> -> vector<64x32xf32>
    %c3_268 = arith.constant 3 : index
    %c0_269 = arith.constant 0 : index
    %c0_270 = arith.constant 0 : index
    %586 = vector.load %arg11[%c3_268, %c0_269, %c0_270] : memref<4x1x32xf32, #tpu.memory_space<vmem>>, vector<1x1x32xf32>
    %587 = vector.shape_cast %586 : vector<1x1x32xf32> to vector<1x32xf32>
    %588 = vector.broadcast %587 : vector<1x32xf32> to vector<64x32xf32>
    %589 = arith.addf %585, %588 : vector<64x32xf32>
    %590 = vector.extract_strided_slice %575 {offsets = [0, 0], sizes = [64, 8], strides = [1, 1]} : vector<64x32xf32> to vector<64x8xf32>
    %591 = arith.truncf %590 : vector<64x8xf32> to vector<64x8xbf16>
    %592 = vector.extract_strided_slice %582 {offsets = [0, 0], sizes = [64, 8], strides = [1, 1]} : vector<64x32xf32> to vector<64x8xf32>
    %593 = arith.truncf %592 : vector<64x8xf32> to vector<64x8xbf16>
    %594 = vector.extract_strided_slice %589 {offsets = [0, 0], sizes = [64, 8], strides = [1, 1]} : vector<64x32xf32> to vector<64x8xf32>
    %595 = arith.truncf %594 : vector<64x8xf32> to vector<64x8xbf16>
    %cst_271 = arith.constant dense<0.000000e+00> : vector<64x64xf32>
    %596 = tpu.matmul %591, %593, %cst_271 {dimension_numbers = #tpu.dot_dimension_numbers<[1], [1], [0], [0], [0, 0, 1, 0], [], []>} : vector<64x8xbf16>, vector<64x8xbf16>, vector<64x64xf32> -> vector<64x64xf32>
    %597 = arith.addf %596, %567 : vector<64x64xf32>
    %cst_272 = arith.constant dense<0xFF800000> : vector<64xf32>
    %598 = vector.multi_reduction <maximumf>, %597, %cst_272 [1] : vector<64x64xf32> to vector<64xf32>
    %599 = vector.shape_cast %598 : vector<64xf32> to vector<64x1xf32>
    %600 = vector.broadcast %599 : vector<64x1xf32> to vector<64x64xf32>
    %601 = arith.subf %597, %600 : vector<64x64xf32>
    %602 = math.exp %601 : vector<64x64xf32>
    %cst_273 = arith.constant dense<0.000000e+00> : vector<64xf32>
    %603 = vector.multi_reduction <add>, %602, %cst_273 [1] : vector<64x64xf32> to vector<64xf32>
    %604 = vector.shape_cast %603 : vector<64xf32> to vector<64x1xf32>
    %605 = tpu.reciprocal %604 {approx = true} : vector<64x1xf32> -> vector<64x1xf32>
    %606 = vector.broadcast %605 : vector<64x1xf32> to vector<64x64xf32>
    %607 = arith.mulf %602, %606 : vector<64x64xf32>
    %608 = arith.truncf %607 : vector<64x64xf32> to vector<64x64xbf16>
    %cst_274 = arith.constant dense<0.000000e+00> : vector<64x8xf32>
    %609 = tpu.matmul %608, %595, %cst_274 {dimension_numbers = #tpu.dot_dimension_numbers<[1], [0], [0], [1], [0, 0, 1, 1], [], []>} : vector<64x64xbf16>, vector<64x8xbf16>, vector<64x8xf32> -> vector<64x8xf32>
    %610 = vector.extract_strided_slice %575 {offsets = [0, 8], sizes = [64, 8], strides = [1, 1]} : vector<64x32xf32> to vector<64x8xf32>
    %611 = arith.truncf %610 : vector<64x8xf32> to vector<64x8xbf16>
    %612 = vector.extract_strided_slice %582 {offsets = [0, 8], sizes = [64, 8], strides = [1, 1]} : vector<64x32xf32> to vector<64x8xf32>
    %613 = arith.truncf %612 : vector<64x8xf32> to vector<64x8xbf16>
    %614 = vector.extract_strided_slice %589 {offsets = [0, 8], sizes = [64, 8], strides = [1, 1]} : vector<64x32xf32> to vector<64x8xf32>
    %615 = arith.truncf %614 : vector<64x8xf32> to vector<64x8xbf16>
    %cst_275 = arith.constant dense<0.000000e+00> : vector<64x64xf32>
    %616 = tpu.matmul %611, %613, %cst_275 {dimension_numbers = #tpu.dot_dimension_numbers<[1], [1], [0], [0], [0, 0, 1, 0], [], []>} : vector<64x8xbf16>, vector<64x8xbf16>, vector<64x64xf32> -> vector<64x64xf32>
    %617 = arith.addf %616, %567 : vector<64x64xf32>
    %cst_276 = arith.constant dense<0xFF800000> : vector<64xf32>
    %618 = vector.multi_reduction <maximumf>, %617, %cst_276 [1] : vector<64x64xf32> to vector<64xf32>
    %619 = vector.shape_cast %618 : vector<64xf32> to vector<64x1xf32>
    %620 = vector.broadcast %619 : vector<64x1xf32> to vector<64x64xf32>
    %621 = arith.subf %617, %620 : vector<64x64xf32>
    %622 = math.exp %621 : vector<64x64xf32>
    %cst_277 = arith.constant dense<0.000000e+00> : vector<64xf32>
    %623 = vector.multi_reduction <add>, %622, %cst_277 [1] : vector<64x64xf32> to vector<64xf32>
    %624 = vector.shape_cast %623 : vector<64xf32> to vector<64x1xf32>
    %625 = tpu.reciprocal %624 {approx = true} : vector<64x1xf32> -> vector<64x1xf32>
    %626 = vector.broadcast %625 : vector<64x1xf32> to vector<64x64xf32>
    %627 = arith.mulf %622, %626 : vector<64x64xf32>
    %628 = arith.truncf %627 : vector<64x64xf32> to vector<64x64xbf16>
    %cst_278 = arith.constant dense<0.000000e+00> : vector<64x8xf32>
    %629 = tpu.matmul %628, %615, %cst_278 {dimension_numbers = #tpu.dot_dimension_numbers<[1], [0], [0], [1], [0, 0, 1, 1], [], []>} : vector<64x64xbf16>, vector<64x8xbf16>, vector<64x8xf32> -> vector<64x8xf32>
    %630 = vector.extract_strided_slice %575 {offsets = [0, 16], sizes = [64, 8], strides = [1, 1]} : vector<64x32xf32> to vector<64x8xf32>
    %631 = arith.truncf %630 : vector<64x8xf32> to vector<64x8xbf16>
    %632 = vector.extract_strided_slice %582 {offsets = [0, 16], sizes = [64, 8], strides = [1, 1]} : vector<64x32xf32> to vector<64x8xf32>
    %633 = arith.truncf %632 : vector<64x8xf32> to vector<64x8xbf16>
    %634 = vector.extract_strided_slice %589 {offsets = [0, 16], sizes = [64, 8], strides = [1, 1]} : vector<64x32xf32> to vector<64x8xf32>
    %635 = arith.truncf %634 : vector<64x8xf32> to vector<64x8xbf16>
    %cst_279 = arith.constant dense<0.000000e+00> : vector<64x64xf32>
    %636 = tpu.matmul %631, %633, %cst_279 {dimension_numbers = #tpu.dot_dimension_numbers<[1], [1], [0], [0], [0, 0, 1, 0], [], []>} : vector<64x8xbf16>, vector<64x8xbf16>, vector<64x64xf32> -> vector<64x64xf32>
    %637 = arith.addf %636, %567 : vector<64x64xf32>
    %cst_280 = arith.constant dense<0xFF800000> : vector<64xf32>
    %638 = vector.multi_reduction <maximumf>, %637, %cst_280 [1] : vector<64x64xf32> to vector<64xf32>
    %639 = vector.shape_cast %638 : vector<64xf32> to vector<64x1xf32>
    %640 = vector.broadcast %639 : vector<64x1xf32> to vector<64x64xf32>
    %641 = arith.subf %637, %640 : vector<64x64xf32>
    %642 = math.exp %641 : vector<64x64xf32>
    %cst_281 = arith.constant dense<0.000000e+00> : vector<64xf32>
    %643 = vector.multi_reduction <add>, %642, %cst_281 [1] : vector<64x64xf32> to vector<64xf32>
    %644 = vector.shape_cast %643 : vector<64xf32> to vector<64x1xf32>
    %645 = tpu.reciprocal %644 {approx = true} : vector<64x1xf32> -> vector<64x1xf32>
    %646 = vector.broadcast %645 : vector<64x1xf32> to vector<64x64xf32>
    %647 = arith.mulf %642, %646 : vector<64x64xf32>
    %648 = arith.truncf %647 : vector<64x64xf32> to vector<64x64xbf16>
    %cst_282 = arith.constant dense<0.000000e+00> : vector<64x8xf32>
    %649 = tpu.matmul %648, %635, %cst_282 {dimension_numbers = #tpu.dot_dimension_numbers<[1], [0], [0], [1], [0, 0, 1, 1], [], []>} : vector<64x64xbf16>, vector<64x8xbf16>, vector<64x8xf32> -> vector<64x8xf32>
    %650 = vector.extract_strided_slice %575 {offsets = [0, 24], sizes = [64, 8], strides = [1, 1]} : vector<64x32xf32> to vector<64x8xf32>
    %651 = arith.truncf %650 : vector<64x8xf32> to vector<64x8xbf16>
    %652 = vector.extract_strided_slice %582 {offsets = [0, 24], sizes = [64, 8], strides = [1, 1]} : vector<64x32xf32> to vector<64x8xf32>
    %653 = arith.truncf %652 : vector<64x8xf32> to vector<64x8xbf16>
    %654 = vector.extract_strided_slice %589 {offsets = [0, 24], sizes = [64, 8], strides = [1, 1]} : vector<64x32xf32> to vector<64x8xf32>
    %655 = arith.truncf %654 : vector<64x8xf32> to vector<64x8xbf16>
    %cst_283 = arith.constant dense<0.000000e+00> : vector<64x64xf32>
    %656 = tpu.matmul %651, %653, %cst_283 {dimension_numbers = #tpu.dot_dimension_numbers<[1], [1], [0], [0], [0, 0, 1, 0], [], []>} : vector<64x8xbf16>, vector<64x8xbf16>, vector<64x64xf32> -> vector<64x64xf32>
    %657 = arith.addf %656, %567 : vector<64x64xf32>
    %cst_284 = arith.constant dense<0xFF800000> : vector<64xf32>
    %658 = vector.multi_reduction <maximumf>, %657, %cst_284 [1] : vector<64x64xf32> to vector<64xf32>
    %659 = vector.shape_cast %658 : vector<64xf32> to vector<64x1xf32>
    %660 = vector.broadcast %659 : vector<64x1xf32> to vector<64x64xf32>
    %661 = arith.subf %657, %660 : vector<64x64xf32>
    %662 = math.exp %661 : vector<64x64xf32>
    %cst_285 = arith.constant dense<0.000000e+00> : vector<64xf32>
    %663 = vector.multi_reduction <add>, %662, %cst_285 [1] : vector<64x64xf32> to vector<64xf32>
    %664 = vector.shape_cast %663 : vector<64xf32> to vector<64x1xf32>
    %665 = tpu.reciprocal %664 {approx = true} : vector<64x1xf32> -> vector<64x1xf32>
    %666 = vector.broadcast %665 : vector<64x1xf32> to vector<64x64xf32>
    %667 = arith.mulf %662, %666 : vector<64x64xf32>
    %668 = arith.truncf %667 : vector<64x64xf32> to vector<64x64xbf16>
    %cst_286 = arith.constant dense<0.000000e+00> : vector<64x8xf32>
    %669 = tpu.matmul %668, %655, %cst_286 {dimension_numbers = #tpu.dot_dimension_numbers<[1], [0], [0], [1], [0, 0, 1, 1], [], []>} : vector<64x64xbf16>, vector<64x8xbf16>, vector<64x8xf32> -> vector<64x8xf32>
    %670 = tpu.concatenate %609, %629, %649, %669 in 1 : vector<64x8xf32>, vector<64x8xf32>, vector<64x8xf32>, vector<64x8xf32> -> vector<64x32xf32>
    %671 = arith.truncf %670 : vector<64x32xf32> to vector<64x32xbf16>
    %c3_287 = arith.constant 3 : index
    %c0_288 = arith.constant 0 : index
    %c0_289 = arith.constant 0 : index
    %672 = vector.load %arg12[%c3_287, %c0_288, %c0_289] : memref<4x32x16xbf16, #tpu.memory_space<vmem>>, vector<1x32x16xbf16>
    %673 = vector.shape_cast %672 : vector<1x32x16xbf16> to vector<32x16xbf16>
    %cst_290 = arith.constant dense<0.000000e+00> : vector<64x16xf32>
    %674 = tpu.matmul %671, %673, %cst_290 {dimension_numbers = #tpu.dot_dimension_numbers<[1], [0], [0], [1], [0, 0, 1, 1], [], []>} : vector<64x32xbf16>, vector<32x16xbf16>, vector<64x16xf32> -> vector<64x16xf32>
    %c3_291 = arith.constant 3 : index
    %c0_292 = arith.constant 0 : index
    %c0_293 = arith.constant 0 : index
    %675 = vector.load %arg13[%c3_291, %c0_292, %c0_293] : memref<4x1x16xf32, #tpu.memory_space<vmem>>, vector<1x1x16xf32>
    %676 = vector.shape_cast %675 : vector<1x1x16xf32> to vector<1x16xf32>
    %677 = vector.broadcast %676 : vector<1x16xf32> to vector<64x16xf32>
    %678 = arith.addf %674, %677 : vector<64x16xf32>
    %679 = arith.addf %566, %678 : vector<64x16xf32>
    %c3_294 = arith.constant 3 : index
    %c0_295 = arith.constant 0 : index
    %c0_296 = arith.constant 0 : index
    %680 = vector.load %arg18[%c3_294, %c0_295, %c0_296] : memref<4x1x16xf32, #tpu.memory_space<vmem>>, vector<1x1x16xf32>
    %681 = vector.shape_cast %680 : vector<1x1x16xf32> to vector<1x16xf32>
    %c3_297 = arith.constant 3 : index
    %c0_298 = arith.constant 0 : index
    %c0_299 = arith.constant 0 : index
    %682 = vector.load %arg19[%c3_297, %c0_298, %c0_299] : memref<4x1x16xf32, #tpu.memory_space<vmem>>, vector<1x1x16xf32>
    %683 = vector.shape_cast %682 : vector<1x1x16xf32> to vector<1x16xf32>
    %cst_300 = arith.constant dense<0.000000e+00> : vector<64xf32>
    %684 = vector.multi_reduction <add>, %679, %cst_300 [1] : vector<64x16xf32> to vector<64xf32>
    %685 = vector.shape_cast %684 : vector<64xf32> to vector<64x1xf32>
    %cst_301 = arith.constant 1.600000e+01 : f32
    %686 = vector.broadcast %cst_301 : f32 to vector<64x1xf32>
    %687 = arith.divf %685, %686 : vector<64x1xf32>
    %688 = vector.broadcast %687 : vector<64x1xf32> to vector<64x16xf32>
    %689 = arith.subf %679, %688 : vector<64x16xf32>
    %690 = vector.broadcast %687 : vector<64x1xf32> to vector<64x16xf32>
    %691 = arith.subf %679, %690 : vector<64x16xf32>
    %692 = arith.mulf %689, %691 : vector<64x16xf32>
    %cst_302 = arith.constant dense<0.000000e+00> : vector<64xf32>
    %693 = vector.multi_reduction <add>, %692, %cst_302 [1] : vector<64x16xf32> to vector<64xf32>
    %694 = vector.shape_cast %693 : vector<64xf32> to vector<64x1xf32>
    %cst_303 = arith.constant 1.600000e+01 : f32
    %695 = vector.broadcast %cst_303 : f32 to vector<64x1xf32>
    %696 = arith.divf %694, %695 : vector<64x1xf32>
    %697 = vector.broadcast %687 : vector<64x1xf32> to vector<64x16xf32>
    %698 = arith.subf %679, %697 : vector<64x16xf32>
    %cst_304 = arith.constant 9.99999974E-6 : f32
    %699 = vector.broadcast %cst_304 : f32 to vector<64x1xf32>
    %700 = arith.addf %696, %699 : vector<64x1xf32>
    %701 = math.rsqrt %700 : vector<64x1xf32>
    %702 = vector.broadcast %701 : vector<64x1xf32> to vector<64x16xf32>
    %703 = arith.mulf %698, %702 : vector<64x16xf32>
    %704 = vector.broadcast %681 : vector<1x16xf32> to vector<64x16xf32>
    %705 = arith.mulf %703, %704 : vector<64x16xf32>
    %706 = vector.broadcast %683 : vector<1x16xf32> to vector<64x16xf32>
    %707 = arith.addf %705, %706 : vector<64x16xf32>
    %708 = arith.truncf %707 : vector<64x16xf32> to vector<64x16xbf16>
    %c3_305 = arith.constant 3 : index
    %c0_306 = arith.constant 0 : index
    %c0_307 = arith.constant 0 : index
    %709 = vector.load %arg14[%c3_305, %c0_306, %c0_307] : memref<4x16x64xbf16, #tpu.memory_space<vmem>>, vector<1x16x64xbf16>
    %710 = vector.shape_cast %709 : vector<1x16x64xbf16> to vector<16x64xbf16>
    %cst_308 = arith.constant dense<0.000000e+00> : vector<64x64xf32>
    %711 = tpu.matmul %708, %710, %cst_308 {dimension_numbers = #tpu.dot_dimension_numbers<[1], [0], [0], [1], [0, 0, 1, 1], [], []>} : vector<64x16xbf16>, vector<16x64xbf16>, vector<64x64xf32> -> vector<64x64xf32>
    %c3_309 = arith.constant 3 : index
    %c0_310 = arith.constant 0 : index
    %c0_311 = arith.constant 0 : index
    %712 = vector.load %arg15[%c3_309, %c0_310, %c0_311] : memref<4x1x64xf32, #tpu.memory_space<vmem>>, vector<1x1x64xf32>
    %713 = vector.shape_cast %712 : vector<1x1x64xf32> to vector<1x64xf32>
    %714 = vector.broadcast %713 : vector<1x64xf32> to vector<64x64xf32>
    %715 = arith.addf %711, %714 : vector<64x64xf32>
    %cst_312 = arith.constant 0.000000e+00 : f32
    %716 = vector.broadcast %cst_312 : f32 to vector<64x64xf32>
    %717 = arith.maximumf %715, %716 : vector<64x64xf32>
    %718 = arith.truncf %717 : vector<64x64xf32> to vector<64x64xbf16>
    %c3_313 = arith.constant 3 : index
    %c0_314 = arith.constant 0 : index
    %c0_315 = arith.constant 0 : index
    %719 = vector.load %arg16[%c3_313, %c0_314, %c0_315] : memref<4x64x16xbf16, #tpu.memory_space<vmem>>, vector<1x64x16xbf16>
    %720 = vector.shape_cast %719 : vector<1x64x16xbf16> to vector<64x16xbf16>
    %cst_316 = arith.constant dense<0.000000e+00> : vector<64x16xf32>
    %721 = tpu.matmul %718, %720, %cst_316 {dimension_numbers = #tpu.dot_dimension_numbers<[1], [0], [0], [1], [0, 0, 1, 1], [], []>} : vector<64x64xbf16>, vector<64x16xbf16>, vector<64x16xf32> -> vector<64x16xf32>
    %c3_317 = arith.constant 3 : index
    %c0_318 = arith.constant 0 : index
    %c0_319 = arith.constant 0 : index
    %722 = vector.load %arg17[%c3_317, %c0_318, %c0_319] : memref<4x1x16xf32, #tpu.memory_space<vmem>>, vector<1x1x16xf32>
    %723 = vector.shape_cast %722 : vector<1x1x16xf32> to vector<1x16xf32>
    %724 = vector.broadcast %723 : vector<1x16xf32> to vector<64x16xf32>
    %725 = arith.addf %721, %724 : vector<64x16xf32>
    %726 = arith.addf %707, %725 : vector<64x16xf32>
    %c3_320 = arith.constant 3 : index
    %c0_321 = arith.constant 0 : index
    %c0_322 = arith.constant 0 : index
    %727 = vector.load %arg20[%c3_320, %c0_321, %c0_322] : memref<4x1x16xf32, #tpu.memory_space<vmem>>, vector<1x1x16xf32>
    %728 = vector.shape_cast %727 : vector<1x1x16xf32> to vector<1x16xf32>
    %c3_323 = arith.constant 3 : index
    %c0_324 = arith.constant 0 : index
    %c0_325 = arith.constant 0 : index
    %729 = vector.load %arg21[%c3_323, %c0_324, %c0_325] : memref<4x1x16xf32, #tpu.memory_space<vmem>>, vector<1x1x16xf32>
    %730 = vector.shape_cast %729 : vector<1x1x16xf32> to vector<1x16xf32>
    %cst_326 = arith.constant dense<0.000000e+00> : vector<64xf32>
    %731 = vector.multi_reduction <add>, %726, %cst_326 [1] : vector<64x16xf32> to vector<64xf32>
    %732 = vector.shape_cast %731 : vector<64xf32> to vector<64x1xf32>
    %cst_327 = arith.constant 1.600000e+01 : f32
    %733 = vector.broadcast %cst_327 : f32 to vector<64x1xf32>
    %734 = arith.divf %732, %733 : vector<64x1xf32>
    %735 = vector.broadcast %734 : vector<64x1xf32> to vector<64x16xf32>
    %736 = arith.subf %726, %735 : vector<64x16xf32>
    %737 = vector.broadcast %734 : vector<64x1xf32> to vector<64x16xf32>
    %738 = arith.subf %726, %737 : vector<64x16xf32>
    %739 = arith.mulf %736, %738 : vector<64x16xf32>
    %cst_328 = arith.constant dense<0.000000e+00> : vector<64xf32>
    %740 = vector.multi_reduction <add>, %739, %cst_328 [1] : vector<64x16xf32> to vector<64xf32>
    %741 = vector.shape_cast %740 : vector<64xf32> to vector<64x1xf32>
    %cst_329 = arith.constant 1.600000e+01 : f32
    %742 = vector.broadcast %cst_329 : f32 to vector<64x1xf32>
    %743 = arith.divf %741, %742 : vector<64x1xf32>
    %744 = vector.broadcast %734 : vector<64x1xf32> to vector<64x16xf32>
    %745 = arith.subf %726, %744 : vector<64x16xf32>
    %cst_330 = arith.constant 9.99999974E-6 : f32
    %746 = vector.broadcast %cst_330 : f32 to vector<64x1xf32>
    %747 = arith.addf %743, %746 : vector<64x1xf32>
    %748 = math.rsqrt %747 : vector<64x1xf32>
    %749 = vector.broadcast %748 : vector<64x1xf32> to vector<64x16xf32>
    %750 = arith.mulf %745, %749 : vector<64x16xf32>
    %751 = vector.broadcast %728 : vector<1x16xf32> to vector<64x16xf32>
    %752 = arith.mulf %750, %751 : vector<64x16xf32>
    %753 = vector.broadcast %730 : vector<1x16xf32> to vector<64x16xf32>
    %754 = arith.addf %752, %753 : vector<64x16xf32>
    %c0_331 = arith.constant 0 : index
    %c0_332 = arith.constant 0 : index
    %755 = memref.load %arg23[%c0_331, %c0_332] : memref<1x1xf32, #tpu.memory_space<smem>>
    %756 = vector.broadcast %755 : f32 to vector<64x16xf32>
    %757 = arith.mulf %754, %756 : vector<64x16xf32>
    %c0_333 = arith.constant 0 : index
    %c0_334 = arith.constant 0 : index
    %758 = memref.load %arg22[%c0_333, %c0_334] : memref<1x1xf32, #tpu.memory_space<smem>>
    %759 = vector.broadcast %758 : f32 to vector<64x16xf32>
    %760 = arith.mulf %566, %759 : vector<64x16xf32>
    %761 = arith.addf %757, %760 : vector<64x16xf32>
    %c0_335 = arith.constant 0 : index
    %c0_336 = arith.constant 0 : index
    %c0_337 = arith.constant 0 : index
    %762 = vector.load %arg3[%c0_335, %c0_336, %c0_337] : memref<4x16x64xf32, #tpu.memory_space<vmem>>, vector<1x16x64xf32>
    %763 = vector.shape_cast %762 : vector<1x16x64xf32> to vector<16x64xf32>
    %cst_338 = arith.constant dense<0.000000e+00> : vector<16x16xf32>
    %764 = tpu.matmul %763, %761, %cst_338 {dimension_numbers = #tpu.dot_dimension_numbers<[1], [0], [0], [1], [0, 0, 1, 1], [], []>} : vector<16x64xf32>, vector<64x16xf32>, vector<16x16xf32> -> vector<16x16xf32>
    %c1_339 = arith.constant 1 : index
    %c0_340 = arith.constant 0 : index
    %c0_341 = arith.constant 0 : index
    %765 = vector.load %arg3[%c1_339, %c0_340, %c0_341] : memref<4x16x64xf32, #tpu.memory_space<vmem>>, vector<1x16x64xf32>
    %766 = vector.shape_cast %765 : vector<1x16x64xf32> to vector<16x64xf32>
    %cst_342 = arith.constant dense<0.000000e+00> : vector<16x16xf32>
    %767 = tpu.matmul %766, %761, %cst_342 {dimension_numbers = #tpu.dot_dimension_numbers<[1], [0], [0], [1], [0, 0, 1, 1], [], []>} : vector<16x64xf32>, vector<64x16xf32>, vector<16x16xf32> -> vector<16x16xf32>
    %c2_343 = arith.constant 2 : index
    %c0_344 = arith.constant 0 : index
    %c0_345 = arith.constant 0 : index
    %768 = vector.load %arg3[%c2_343, %c0_344, %c0_345] : memref<4x16x64xf32, #tpu.memory_space<vmem>>, vector<1x16x64xf32>
    %769 = vector.shape_cast %768 : vector<1x16x64xf32> to vector<16x64xf32>
    %cst_346 = arith.constant dense<0.000000e+00> : vector<16x16xf32>
    %770 = tpu.matmul %769, %761, %cst_346 {dimension_numbers = #tpu.dot_dimension_numbers<[1], [0], [0], [1], [0, 0, 1, 1], [], []>} : vector<16x64xf32>, vector<64x16xf32>, vector<16x16xf32> -> vector<16x16xf32>
    %c3_347 = arith.constant 3 : index
    %c0_348 = arith.constant 0 : index
    %c0_349 = arith.constant 0 : index
    %771 = vector.load %arg3[%c3_347, %c0_348, %c0_349] : memref<4x16x64xf32, #tpu.memory_space<vmem>>, vector<1x16x64xf32>
    %772 = vector.shape_cast %771 : vector<1x16x64xf32> to vector<16x64xf32>
    %cst_350 = arith.constant dense<0.000000e+00> : vector<16x16xf32>
    %773 = tpu.matmul %772, %761, %cst_350 {dimension_numbers = #tpu.dot_dimension_numbers<[1], [0], [0], [1], [0, 0, 1, 1], [], []>} : vector<16x64xf32>, vector<64x16xf32>, vector<16x16xf32> -> vector<16x16xf32>
    %774 = tpu.concatenate %764, %767, %770, %773 in 1 : vector<16x16xf32>, vector<16x16xf32>, vector<16x16xf32>, vector<16x16xf32> -> vector<16x64xf32>
    %775 = arith.truncf %774 : vector<16x64xf32> to vector<16x64xbf16>
    %c0_351 = arith.constant 0 : index
    %c0_352 = arith.constant 0 : index
    %776 = vector.load %arg24[%c0_351, %c0_352] : memref<64x128xbf16, #tpu.memory_space<vmem>>, vector<64x128xbf16>
    %cst_353 = arith.constant dense<0.000000e+00> : vector<16x128xf32>
    %777 = tpu.matmul %775, %776, %cst_353 {dimension_numbers = #tpu.dot_dimension_numbers<[1], [0], [0], [1], [0, 0, 1, 1], [], []>} : vector<16x64xbf16>, vector<64x128xbf16>, vector<16x128xf32> -> vector<16x128xf32>
    %c0_354 = arith.constant 0 : index
    %c0_355 = arith.constant 0 : index
    %778 = vector.load %arg25[%c0_354, %c0_355] : memref<1x128xf32, #tpu.memory_space<vmem>>, vector<1x128xf32>
    %779 = vector.broadcast %778 : vector<1x128xf32> to vector<16x128xf32>
    %780 = arith.addf %777, %779 : vector<16x128xf32>
    %781 = arith.truncf %780 : vector<16x128xf32> to vector<16x128xbf16>
    %c0_356 = arith.constant 0 : index
    %c0_357 = arith.constant 0 : index
    %782 = vector.load %arg26[%c0_356, %c0_357] : memref<128x128xbf16, #tpu.memory_space<vmem>>, vector<128x128xbf16>
    %cst_358 = arith.constant dense<0.000000e+00> : vector<16x128xf32>
    %783 = tpu.matmul %781, %782, %cst_358 {dimension_numbers = #tpu.dot_dimension_numbers<[1], [0], [0], [1], [0, 0, 1, 1], [], []>} : vector<16x128xbf16>, vector<128x128xbf16>, vector<16x128xf32> -> vector<16x128xf32>
    %c0_359 = arith.constant 0 : index
    %c0_360 = arith.constant 0 : index
    %784 = vector.load %arg27[%c0_359, %c0_360] : memref<1x128xf32, #tpu.memory_space<vmem>>, vector<1x128xf32>
    %785 = vector.broadcast %784 : vector<1x128xf32> to vector<16x128xf32>
    %786 = arith.addf %783, %785 : vector<16x128xf32>
    %cst_361 = arith.constant 0.000000e+00 : f32
    %787 = vector.broadcast %cst_361 : f32 to vector<16x128xf32>
    %788 = arith.cmpf ogt, %786, %787 : vector<16x128xf32>
    %cst_362 = arith.constant 3.000000e-01 : f32
    %789 = vector.broadcast %cst_362 : f32 to vector<16x128xf32>
    %790 = arith.mulf %789, %786 : vector<16x128xf32>
    %791 = arith.select %788, %786, %790 : vector<16x128xi1>, vector<16x128xf32>
    %792 = arith.truncf %791 : vector<16x128xf32> to vector<16x128xbf16>
    %c0_363 = arith.constant 0 : index
    %c0_364 = arith.constant 0 : index
    %793 = vector.load %arg28[%c0_363, %c0_364] : memref<128x32xbf16, #tpu.memory_space<vmem>>, vector<128x32xbf16>
    %cst_365 = arith.constant dense<0.000000e+00> : vector<16x32xf32>
    %794 = tpu.matmul %792, %793, %cst_365 {dimension_numbers = #tpu.dot_dimension_numbers<[1], [0], [0], [1], [0, 0, 1, 1], [], []>} : vector<16x128xbf16>, vector<128x32xbf16>, vector<16x32xf32> -> vector<16x32xf32>
    %c0_366 = arith.constant 0 : index
    %c0_367 = arith.constant 0 : index
    %795 = vector.load %arg29[%c0_366, %c0_367] : memref<1x32xf32, #tpu.memory_space<vmem>>, vector<1x32xf32>
    %796 = vector.broadcast %795 : vector<1x32xf32> to vector<16x32xf32>
    %797 = arith.addf %794, %796 : vector<16x32xf32>
    %cst_368 = arith.constant 0.000000e+00 : f32
    %798 = vector.broadcast %cst_368 : f32 to vector<16x32xf32>
    %799 = arith.cmpf ogt, %797, %798 : vector<16x32xf32>
    %cst_369 = arith.constant 3.000000e-01 : f32
    %800 = vector.broadcast %cst_369 : f32 to vector<16x32xf32>
    %801 = arith.mulf %800, %797 : vector<16x32xf32>
    %802 = arith.select %799, %797, %801 : vector<16x32xi1>, vector<16x32xf32>
    %803 = arith.truncf %802 : vector<16x32xf32> to vector<16x32xbf16>
    %c0_370 = arith.constant 0 : index
    %c0_371 = arith.constant 0 : index
    %804 = vector.load %arg30[%c0_370, %c0_371] : memref<32x64xbf16, #tpu.memory_space<vmem>>, vector<32x64xbf16>
    %cst_372 = arith.constant dense<0.000000e+00> : vector<16x64xf32>
    %805 = tpu.matmul %803, %804, %cst_372 {dimension_numbers = #tpu.dot_dimension_numbers<[1], [0], [0], [1], [0, 0, 1, 1], [], []>} : vector<16x32xbf16>, vector<32x64xbf16>, vector<16x64xf32> -> vector<16x64xf32>
    %c0_373 = arith.constant 0 : index
    %c0_374 = arith.constant 0 : index
    %806 = vector.load %arg31[%c0_373, %c0_374] : memref<1x64xf32, #tpu.memory_space<vmem>>, vector<1x64xf32>
    %807 = vector.broadcast %806 : vector<1x64xf32> to vector<16x64xf32>
    %808 = arith.addf %805, %807 : vector<16x64xf32>
    %c0_375 = arith.constant 0 : index
    %c0_376 = arith.constant 0 : index
    %809 = vector.load %arg32[%c0_375, %c0_376] : memref<16x64xf32, #tpu.memory_space<vmem>>, vector<16x64xf32>
    tpu.vector_store %arg32[%c0_375, %c0_376], %808 {strides = array<i32>} : memref<16x64xf32, #tpu.memory_space<vmem>>, vector<16x64xf32>,
    return
  }
}

</mosaic_0001>

<bundles_post_ra>
// kernel: mgfn_forward.1
= control target key start
LH: loop header
LB: loop body
LE: loop exit
PB: predicated region body
PF: predicated region fallthrough
CT: control target
= control target key end

     0   :  { %s13541_s6 = smov 1   ;;  %s13542_s10 = smov 2   ;;  %s16894_s0 = inlined_call_operand.smem [shape: u32[33], index: -1, kind: input, shape index: {}] }
   0x1   :  { %s13611_s5 = sld [smem:[%s16894_s0]]   ;;  %s13543_s14 = smov 3  }
   0x2   :  { %s13616_s9 = sld [smem:[%s16894_s0 + %s13541_s6]]   ;;  %s13544_s18 = smov 4  }
   0x3   :  { %s13621_s13 = sld [smem:[%s16894_s0 + %s13542_s10]]   ;;  %s13545_s22 = smov 5  }
   0x4   :  { %s13626_s17 = sld [smem:[%s16894_s0 + %s13543_s14]]   ;;  %s13546_s26 = smov 6  }
   0x5   :  { %s13631_s21 = sld [smem:[%s16894_s0 + %s13544_s18]]   ;;  %s13547_s30 = smov 7  }
   0x6   :  { %s13636_s25 = sld [smem:[%s16894_s0 + %s13545_s22]]   ;;  %s13548_s4 = smov 8  }
   0x7   :  { %16906 = sst [smem:[#allocation39_spill]] %s13611_s5  ;;  %s13549_s10 = smov 9  }
   0x8   :  { %16907 = sst [smem:[#allocation40_spill]] %s13616_s9  ;;  %s13550_s15 = smov 10  }
   0x9   :  { %16908 = sst [smem:[#allocation41_spill]] %s13621_s13  ;;  %s13551_s20 = smov 11  }
   0xa   :  { %16909 = sst [smem:[#allocation42_spill]] %s13626_s17  ;;  %s13553_s1 = smov 13  }
   0xb   :  { %16910 = sst [smem:[#allocation43_spill]] %s13631_s21  ;;  %s13554_s7 = smov 14  }
   0xc   :  { %16911 = sst [smem:[#allocation44_spill]] %s13636_s25  ;;  %s13556_s22 = smov 16  }
   0xd   :  { %s13641_s29 = sld [smem:[%s16894_s0 + %s13546_s26]]   ;;  %s13552_s26 = smov 12  }
   0xe   :  { %s13646_s3 = sld [smem:[%s16894_s0 + %s13547_s30]]   ;;  %s13557_s28 = smov 17  }
   0xf   :  { %s13651_s8 = sld [smem:[%s16894_s0 + %s13548_s4]]  }
  0x10   :  { %s13656_s14 = sld [smem:[%s16894_s0 + %s13549_s10]]  }
  0x11   :  { %s13661_s19 = sld [smem:[%s16894_s0 + %s13550_s15]]   ;;  %s13555_s15 = smov 15  }
  0x12   :  { %s13666_s24 = sld [smem:[%s16894_s0 + %s13551_s20]]  }
  0x13   :  { %s13671_s30 = sld [smem:[%s16894_s0 + %s13552_s26]]  }
  0x14   :  { %s13676_s6 = sld [smem:[%s16894_s0 + %s13553_s1]]  }
  0x15   :  { %s13681_s12 = sld [smem:[%s16894_s0 + %s13554_s7]]   ;;  %s13558_s7 = smov 18  }
  0x16   :  { %s13686_s20 = sld [smem:[%s16894_s0 + %s13555_s15]]   ;;  %s13559_s15 = smov 19  }
  0x17   :  { %s13691_s27 = sld [smem:[%s16894_s0 + %s13556_s22]]   ;;  %s13560_s22 = smov 20  }
  0x18   :  { %s13696_s4 = sld [smem:[%s16894_s0 + %s13557_s28]]   ;;  %s13561_s28 = smov 21  }
  0x19   :  { %16912 = sst [smem:[#allocation45_spill]] %s13671_s30 }
  0x1a   :  { %s13701_s17 = sld [smem:[%s16894_s0 + %s13558_s7]]   ;;  %s13562_s7 = smov 22  }
  0x1b   :  { %s13706_s25 = sld [smem:[%s16894_s0 + %s13559_s15]]   ;;  %s13563_s15 = smov 23  }
  0x1c   :  { %s13711_s13 = sld [smem:[%s16894_s0 + %s13560_s22]]   ;;  %s13564_s22 = smov 24  }
  0x1d   :  { %16913 = sst [smem:[#allocation46_spill]] %s13691_s27 }
  0x1e   :  { %s13716_s27 = sld [smem:[%s16894_s0 + %s13561_s28]]   ;;  %s13565_s28 = smov 25  }
  0x1f   :  { %s13721_s30 = sld [smem:[%s16894_s0 + %s13562_s7]]   ;;  %s13566_s7 = smov 26  }
  0x20   :  { %s13726_s21 = sld [smem:[%s16894_s0 + %s13563_s15]]   ;;  %s13567_s15 = smov 27  }
  0x21   :  { %s13731_s9 = sld [smem:[%s16894_s0 + %s13564_s22]]   ;;  %s13568_s22 = smov 28  }
  0x22   :  { %s13736_s5 = sld [smem:[%s16894_s0 + %s13565_s28]]   ;;  %s13569_s28 = smov 29  }
  0x25   :  { %16914 = sst [smem:[#allocation47_spill]] %s13721_s30 }
  0x26   :  { %16915 = sst [smem:[#allocation48_spill]] %s13726_s21 }
  0x27   :  { %16916 = sst [smem:[#allocation49_spill]] %s13731_s9 }
  0x28   :  { %16917 = sst [smem:[#allocation50_spill]] %s13736_s5 }
  0x29   :  { %s13741_s30 = sld [smem:[%s16894_s0 + %s13566_s7]]   ;;  %s13570_s7 = smov 30  }
  0x2a   :  { %s13746_s21 = sld [smem:[%s16894_s0 + %s13567_s15]]   ;;  %s13571_s15 = smov 31  }
  0x2b   :  { %s13751_s9 = sld [smem:[%s16894_s0 + %s13568_s22]]   ;;  %s13572_s22 = smov 32  }
  0x2c   :  { %s13756_s5 = sld [smem:[%s16894_s0 + %s13569_s28]]  }
  0x2f   :  { %16918 = sst [smem:[#allocation51_spill]] %s13741_s30 }
  0x30   :  { %16919 = sst [smem:[#allocation52_spill]] %s13746_s21 }
  0x31   :  { %16920 = sst [smem:[#allocation53_spill]] %s13751_s9 }
  0x32   :  { %s13761_s30 = sld [smem:[%s16894_s0 + %s13570_s7]]  }
  0x33   :  { %s13766_s21 = sld [smem:[%s16894_s0 + %s13571_s15]]  }
  0x34   :  { %s13771_s9 = sld [smem:[%s16894_s0 + %s13572_s22]]  }
  0x35   :  { %72 = vsyncpa [#allocation5], 0 }
  0x36   :  { %73 = vsyncpa [#allocation7], 0 }
  0x37   :  { %74 = vsyncpa [#allocation10], 0 }
  0x38   :  { %75 = vsyncpa [#allocation13], 0 }
  0x39   :  { %76 = vsyncpa [#allocation16], 0 }
  0x3a   :  { %77 = vsyncpa [#allocation19], 0 }
  0x3b   :  { %78 = vsyncpa [#allocation22], 0 }
  0x3c   :  { %79 = vsyncpa [#allocation25], 0 }
  0x3d   :  { %80 = vsyncpa [#allocation28], 0  ;;  %s13573_s28 = smov [#allocation6]   ;;  %s13574_s2 = smov [#allocation9]  }
  0x3e   :  { %s110_s1 = sshll.u32 %s13573_s28, 4  ;;  %s134_s7 = sshll.u32 %s13574_s2, 4  ;;  %s111_s1 = int_to_ptr.vmem [resolvable:$true] %s110_s1  ;;  %s13773_s7 = int_to_ptr.vmem [resolvable:$true] %s134_s7 }
  0x3f   :  { %s13149_s0 = scalar_lea.hbm %s13646_s3, 512 }
  0x40   :  { %p13150_p0 = scmp.ne.s32.totalorder %s13646_s3, %s13149_s0  ;;  %p13153_p1 = scmp.lt.u32.totalorder %s13149_s0, %s13646_s3 }
  0x42   :  { %p13155_p2 = pnand %p13153_p1, %p13150_p0 }
  0x44   :  { %13158 = shalt.err (!%p13155_p2)
}
  0x45   :  { %s13159_s10 = scalar_lea.vmem %s111_s1, 512  ;;  %p13164_p4 = scmp.lt.s32.totalorder %s111_s1, %s111_s1 }
  0x46   :  { %p13160_p3 = scmp.ne.s32.totalorder %s111_s1, %s13159_s10  ;;  %p13165_p5 = scmp.lt.s32.totalorder %s13159_s10, %s13159_s10 }
  0x48   :  { %p13166_p6 = por %p13165_p5, %p13164_p4 }
  0x4a   :  { %p13167_p7 = pnand %p13166_p6, %p13160_p3 }
  0x4c   :  { %13170 = shalt.err (!%p13167_p7)
}
  0x4d   :  { %s13575_s11 = smov 64   ;;  %s13576_s15 = smov 4  }
  0x4e   :  { %116 = dma.hbm_to_vmem [thread:$0]  %s13646_s3, 512, %s111_s1, [#allocation7], %s13575_s11, %s13575_s11, %s13576_s15  }
  0x4f   :  { %s13171_s16 = scalar_lea.hbm %s13656_s14, 64 }
  0x50   :  { %p13172_p8 = scmp.ne.s32.totalorder %s13656_s14, %s13171_s16  ;;  %p13175_p9 = scmp.lt.u32.totalorder %s13171_s16, %s13656_s14 }
  0x52   :  { %p13177_p10 = pnand %p13175_p9, %p13172_p8 }
  0x54   :  { %13180 = shalt.err (!%p13177_p10)
}
  0x55   :  { %s13181_s18 = scalar_lea.vmem %s13773_s7, 64  ;;  %p13186_p12 = scmp.lt.s32.totalorder %s13773_s7, %s13773_s7 }
  0x56   :  { %p13182_p11 = scmp.ne.s32.totalorder %s13773_s7, %s13181_s18  ;;  %p13187_p13 = scmp.lt.s32.totalorder %s13181_s18, %s13181_s18 }
  0x58   :  { %p13188_p0 = por %p13187_p13, %p13186_p12 }
  0x5a   :  { %p13189_p1 = pnand %p13188_p0, %p13182_p11 }
  0x5c   :  { %13192 = shalt.err (!%p13189_p1)
}
  0x5d   :  { %s13577_s22 = smov 16   ;;  %s13578_s3 = smov 1  }
  0x5e   :  { %140 = dma.hbm_to_vmem [thread:$0]  %s13656_s14, 64, %s13773_s7, [#allocation10], %s13577_s22, %s13577_s22, %s13578_s3  }
  0x5f   :  { %s13579_s23 = smov [#allocation12]   ;;  %s13580_s28 = smov [#allocation15]  }
  0x60   :  { %s158_s26 = sshll.u32 %s13579_s23, 4  ;;  %s184_s1 = sshll.u32 %s13580_s28, 4  ;;  %s159_s26 = int_to_ptr.vmem [resolvable:$true] %s158_s26  ;;  %s13794_s1 = int_to_ptr.vmem [resolvable:$true] %s184_s1 }
  0x61   :  { %s13193_s2 = scalar_lea.hbm %s13666_s24, 64 }
  0x62   :  { %p13194_p2 = scmp.ne.s32.totalorder %s13666_s24, %s13193_s2  ;;  %p13197_p3 = scmp.lt.u32.totalorder %s13193_s2, %s13666_s24 }
  0x64   :  { %p13199_p4 = pnand %p13197_p3, %p13194_p2 }
  0x66   :  { %13202 = shalt.err (!%p13199_p4)
}
  0x67   :  { %s13203_s0 = scalar_lea.vmem %s159_s26, 64  ;;  %p13208_p6 = scmp.lt.s32.totalorder %s159_s26, %s159_s26 }
  0x68   :  { %p13204_p5 = scmp.ne.s32.totalorder %s159_s26, %s13203_s0  ;;  %p13209_p7 = scmp.lt.s32.totalorder %s13203_s0, %s13203_s0 }
  0x6a   :  { %p13210_p8 = por %p13209_p7, %p13208_p6 }
  0x6c   :  { %p13211_p9 = pnand %p13210_p8, %p13204_p5 }
  0x6e   :  { %13214 = shalt.err (!%p13211_p9)
}
  0x6f   :  { %164 = dma.hbm_to_vmem [thread:$0]  %s13666_s24, 64, %s159_s26, [#allocation13], %s13577_s22, %s13577_s22, %s13578_s3  }
  0x70   :  { %s13215_s14 = scalar_lea.hbm %s13681_s12, 512 }
  0x71   :  { %p13216_p10 = scmp.ne.s32.totalorder %s13681_s12, %s13215_s14  ;;  %p13219_p11 = scmp.lt.u32.totalorder %s13215_s14, %s13681_s12 }
  0x73   :  { %p13221_p12 = pnand %p13219_p11, %p13216_p10 }
  0x75   :  { %13224 = shalt.err (!%p13221_p12)
}
  0x76   :  { %s13225_s7 = scalar_lea.vmem %s13794_s1, 512  ;;  %p13230_p0 = scmp.lt.s32.totalorder %s13794_s1, %s13794_s1 }
  0x77   :  { %p13226_p13 = scmp.ne.s32.totalorder %s13794_s1, %s13225_s7  ;;  %p13231_p1 = scmp.lt.s32.totalorder %s13225_s7, %s13225_s7 }
  0x79   :  { %p13232_p2 = por %p13231_p1, %p13230_p0 }
  0x7b   :  { %p13233_p3 = pnand %p13232_p2, %p13226_p13 }
  0x7d   :  { %13236 = shalt.err (!%p13233_p3)
}
  0x7e   :  { %190 = dma.hbm_to_vmem [thread:$0]  %s13681_s12, 512, %s13794_s1, [#allocation16], %s13575_s11, %s13575_s11, %s13576_s15  }
  0x7f   :  { %s13581_s24 = smov [#allocation18]   ;;  %s13582_s16 = smov [#allocation21]  }
  0x80   :  { %s210_s10 = sshll.u32 %s13581_s24, 4  ;;  %s234_s18 = sshll.u32 %s13582_s16, 4  ;;  %s211_s10 = int_to_ptr.vmem [resolvable:$true] %s210_s10  ;;  %s13815_s18 = int_to_ptr.vmem [resolvable:$true] %s234_s18 }
  0x81   :  { %s13237_s23 = scalar_lea.hbm %s13696_s4, 64 }
  0x82   :  { %p13238_p4 = scmp.ne.s32.totalorder %s13696_s4, %s13237_s23  ;;  %p13241_p5 = scmp.lt.u32.totalorder %s13237_s23, %s13696_s4 }
  0x84   :  { %p13243_p6 = pnand %p13241_p5, %p13238_p4 }
  0x86   :  { %13246 = shalt.err (!%p13243_p6)
}
  0x87   :  { %s13247_s26 = scalar_lea.vmem %s211_s10, 64  ;;  %p13252_p8 = scmp.lt.s32.totalorder %s211_s10, %s211_s10 }
  0x88   :  { %p13248_p7 = scmp.ne.s32.totalorder %s211_s10, %s13247_s26  ;;  %p13253_p9 = scmp.lt.s32.totalorder %s13247_s26, %s13247_s26 }
  0x8a   :  { %p13254_p10 = por %p13253_p9, %p13252_p8 }
  0x8c   :  { %p13255_p11 = pnand %p13254_p10, %p13248_p7 }
  0x8e   :  { %13258 = shalt.err (!%p13255_p11)
}
  0x8f   :  { %216 = dma.hbm_to_vmem [thread:$0]  %s13696_s4, 64, %s211_s10, [#allocation19], %s13577_s22, %s13577_s22, %s13578_s3  }
  0x90   :  { %s13259_s12 = scalar_lea.hbm %s13706_s25, 64 }
  0x91   :  { %p13260_p12 = scmp.ne.s32.totalorder %s13706_s25, %s13259_s12  ;;  %p13263_p13 = scmp.lt.u32.totalorder %s13259_s12, %s13706_s25 }
  0x93   :  { %p13265_p0 = pnand %p13263_p13, %p13260_p12 }
  0x95   :  { %13268 = shalt.err (!%p13265_p0)
}
  0x96   :  { %s13269_s28 = scalar_lea.vmem %s13815_s18, 64  ;;  %p13274_p2 = scmp.lt.s32.totalorder %s13815_s18, %s13815_s18 }
  0x97   :  { %p13270_p1 = scmp.ne.s32.totalorder %s13815_s18, %s13269_s28  ;;  %p13275_p3 = scmp.lt.s32.totalorder %s13269_s28, %s13269_s28 }
  0x99   :  { %p13276_p4 = por %p13275_p3, %p13274_p2 }
  0x9b   :  { %p13277_p5 = pnand %p13276_p4, %p13270_p1 }
  0x9d   :  { %13280 = shalt.err (!%p13277_p5)
}
  0x9e   :  { %240 = dma.hbm_to_vmem [thread:$0]  %s13706_s25, 64, %s13815_s18, [#allocation22], %s13577_s22, %s13577_s22, %s13578_s3  }
  0x9f   :  { %s13583_s4 = smov [#allocation24]   ;;  %s13584_s2 = smov [#allocation27]  }
  0xa0   :  { %s258_s1 = sshll.u32 %s13583_s4, 4  ;;  %s295_s0 = sshll.u32 %s13584_s2, 4  ;;  %s259_s1 = int_to_ptr.vmem [resolvable:$true] %s258_s1  ;;  %s296_s0 = int_to_ptr.vmem [resolvable:$true] %s295_s0 }
  0xa1   :  { %s13281_s14 = scalar_lea.hbm %s13716_s27, 64 }
  0xa2   :  { %p13282_p6 = scmp.ne.s32.totalorder %s13716_s27, %s13281_s14  ;;  %p13285_p7 = scmp.lt.u32.totalorder %s13281_s14, %s13716_s27 }
  0xa4   :  { %p13287_p8 = pnand %p13285_p7, %p13282_p6 }
  0xa6   :  { %13290 = shalt.err (!%p13287_p8)
}
  0xa7   :  { %s13291_s7 = scalar_lea.vmem %s259_s1, 64  ;;  %p13296_p10 = scmp.lt.s32.totalorder %s259_s1, %s259_s1 }
  0xa8   :  { %p13292_p9 = scmp.ne.s32.totalorder %s259_s1, %s13291_s7  ;;  %p13297_p11 = scmp.lt.s32.totalorder %s13291_s7, %s13291_s7 }
  0xaa   :  { %p13298_p12 = por %p13297_p11, %p13296_p10 }
  0xac   :  { %p13299_p13 = pnand %p13298_p12, %p13292_p9 }
  0xae   :  { %13302 = shalt.err (!%p13299_p13)
}
  0xaf   :  { %264 = dma.hbm_to_vmem [thread:$0]  %s13716_s27, 64, %s259_s1, [#allocation25], %s13577_s22, %s13577_s22, %s13578_s3  }
  0xb0   :  { %s13303_s25 = scalar_lea.hbm %s13756_s5, 16 }
  0xb1   :  { %p13304_p0 = scmp.ne.s32.totalorder %s13756_s5, %s13303_s25  ;;  %p13307_p1 = scmp.lt.u32.totalorder %s13303_s25, %s13756_s5 }
  0xb3   :  { %p13309_p2 = pnand %p13307_p1, %p13304_p0 }
  0xb5   :  { %13312 = shalt.err (!%p13309_p2)
}
  0xb6   :  { %s13313_s24 = scalar_lea.vmem %s296_s0, 16  ;;  %s13317_s10 = scalar_lea.vmem %s296_s0, 32 }
  0xb7   :  { %p13314_p3 = scmp.ne.s32.totalorder %s296_s0, %s13313_s24  ;;  %p13318_p4 = scmp.lt.s32.totalorder %s296_s0, %s296_s0 }
  0xb8   :  { %p13319_p5 = scmp.lt.s32.totalorder %s13317_s10, %s13313_s24 }
  0xba   :  { %p13320_p6 = por %p13319_p5, %p13318_p4 }
  0xbc   :  { %p13321_p7 = pnand %p13320_p6, %p13314_p3 }
  0xbe   :  { %13324 = shalt.err (!%p13321_p7)
}
  0xbf   :  { %298 = dma.hbm_to_vmem [thread:$0]  %s13756_s5, 16, %s296_s0, [#allocation28]  }
  0xc0   :  { %s13585_s16 = smov [#allocation4]   ;;  %s13586_s18 = smov [#allocation8]  }
  0xc1   :  { %s98_s27 = sshll.u32 %s13585_s16, 4  ;;  %s122_s23 = sshll.u32 %s13586_s18, 4  ;;  %s99_s27 = int_to_ptr.vmem [resolvable:$true] %s98_s27  ;;  %s13847_s23 = int_to_ptr.vmem [resolvable:$true] %s122_s23 }
  0xc2   :  { %s13325_s26 = scalar_lea.hbm %s13641_s29, 512 }
  0xc3   :  { %p13326_p8 = scmp.ne.s32.totalorder %s13641_s29, %s13325_s26  ;;  %p13329_p9 = scmp.lt.u32.totalorder %s13325_s26, %s13641_s29 }
  0xc5   :  { %p13331_p10 = pnand %p13329_p9, %p13326_p8 }
  0xc7   :  { %13334 = shalt.err (!%p13331_p10)
}
  0xc8   :  { %s13335_s12 = scalar_lea.vmem %s99_s27, 512  ;;  %p13340_p12 = scmp.lt.s32.totalorder %s99_s27, %s99_s27 }
  0xc9   :  { %p13336_p11 = scmp.ne.s32.totalorder %s99_s27, %s13335_s12  ;;  %p13341_p13 = scmp.lt.s32.totalorder %s13335_s12, %s13335_s12 }
  0xcb   :  { %p13342_p0 = por %p13341_p13, %p13340_p12 }
  0xcd   :  { %p13343_p1 = pnand %p13342_p0, %p13336_p11 }
  0xcf   :  { %13346 = shalt.err (!%p13343_p1)
}
  0xd0   :  { %104 = dma.hbm_to_vmem [thread:$0]  %s13641_s29, 512, %s99_s27, [#allocation5], %s13575_s11, %s13575_s11, %s13576_s15  }
  0xd1   :  { %s13347_s5 = scalar_lea.hbm %s13651_s8, 512 }
  0xd2   :  { %p13348_p2 = scmp.ne.s32.totalorder %s13651_s8, %s13347_s5  ;;  %p13351_p3 = scmp.lt.u32.totalorder %s13347_s5, %s13651_s8 }
  0xd4   :  { %p13353_p4 = pnand %p13351_p3, %p13348_p2 }
  0xd6   :  { %13356 = shalt.err (!%p13353_p4)
}
  0xd7   :  { %s13357_s28 = scalar_lea.vmem %s13847_s23, 512  ;;  %p13362_p6 = scmp.lt.s32.totalorder %s13847_s23, %s13847_s23 }
  0xd8   :  { %p13358_p5 = scmp.ne.s32.totalorder %s13847_s23, %s13357_s28  ;;  %p13363_p7 = scmp.lt.s32.totalorder %s13357_s28, %s13357_s28 }
  0xda   :  { %p13364_p8 = por %p13363_p7, %p13362_p6 }
  0xdc   :  { %p13365_p9 = pnand %p13364_p8, %p13358_p5 }
  0xde   :  { %13368 = shalt.err (!%p13365_p9)
}
  0xdf   :  { %128 = dma.hbm_to_vmem [thread:$0]  %s13651_s8, 512, %s13847_s23, [#allocation7], %s13575_s11, %s13575_s11, %s13576_s15  }
  0xe0   :  { %s13587_s29 = smov [#allocation11]   ;;  %s13588_s1 = smov [#allocation14]  }
  0xe1   :  { %s146_s4 = sshll.u32 %s13587_s29, 4  ;;  %s172_s2 = sshll.u32 %s13588_s1, 4  ;;  %s147_s4 = int_to_ptr.vmem [resolvable:$true] %s146_s4  ;;  %s13868_s2 = int_to_ptr.vmem [resolvable:$true] %s172_s2 }
  0xe2   :  { %s13369_s0 = scalar_lea.hbm %s13661_s19, 64 }
  0xe3   :  { %p13370_p10 = scmp.ne.s32.totalorder %s13661_s19, %s13369_s0  ;;  %p13373_p11 = scmp.lt.u32.totalorder %s13369_s0, %s13661_s19 }
  0xe5   :  { %p13375_p12 = pnand %p13373_p11, %p13370_p10 }
  0xe7   :  { %13378 = shalt.err (!%p13375_p12)
}
  0xe8   :  { %s13379_s14 = scalar_lea.vmem %s147_s4, 64  ;;  %p13384_p0 = scmp.lt.s32.totalorder %s147_s4, %s147_s4 }
  0xe9   :  { %p13380_p13 = scmp.ne.s32.totalorder %s147_s4, %s13379_s14  ;;  %p13385_p1 = scmp.lt.s32.totalorder %s13379_s14, %s13379_s14 }
  0xeb   :  { %p13386_p2 = por %p13385_p1, %p13384_p0 }
  0xed   :  { %p13387_p3 = pnand %p13386_p2, %p13380_p13 }
  0xef   :  { %13390 = shalt.err (!%p13387_p3)
}
  0xf0   :  { %152 = dma.hbm_to_vmem [thread:$0]  %s13661_s19, 64, %s147_s4, [#allocation10], %s13577_s22, %s13577_s22, %s13578_s3  }
  0xf1   :  { %s13391_s8 = scalar_lea.hbm %s13676_s6, 64 }
  0xf2   :  { %p13392_p4 = scmp.ne.s32.totalorder %s13676_s6, %s13391_s8  ;;  %p13395_p5 = scmp.lt.u32.totalorder %s13391_s8, %s13676_s6 }
  0xf4   :  { %p13397_p6 = pnand %p13395_p5, %p13392_p4 }
  0xf6   :  { %13400 = shalt.err (!%p13397_p6)
}
  0xf7   :  { %s13401_s7 = scalar_lea.vmem %s13868_s2, 64  ;;  %p13406_p8 = scmp.lt.s32.totalorder %s13868_s2, %s13868_s2 }
  0xf8   :  { %p13402_p7 = scmp.ne.s32.totalorder %s13868_s2, %s13401_s7  ;;  %p13407_p9 = scmp.lt.s32.totalorder %s13401_s7, %s13401_s7 }
  0xfa   :  { %p13408_p10 = por %p13407_p9, %p13406_p8 }
  0xfc   :  { %p13409_p11 = pnand %p13408_p10, %p13402_p7 }
  0xfe   :  { %13412 = shalt.err (!%p13409_p11)
}
  0xff   :  { %178 = dma.hbm_to_vmem [thread:$0]  %s13676_s6, 64, %s13868_s2, [#allocation13], %s13577_s22, %s13577_s22, %s13578_s3  }
 0x100   :  { %s13589_s19 = smov [#allocation17]   ;;  %s13590_s24 = smov [#allocation20]  }
 0x101   :  { %s196_s25 = sshll.u32 %s13589_s19, 4  ;;  %s222_s10 = sshll.u32 %s13590_s24, 4  ;;  %s197_s25 = int_to_ptr.vmem [resolvable:$true] %s196_s25  ;;  %s13889_s10 = int_to_ptr.vmem [resolvable:$true] %s222_s10 }
 0x102   :  { %s13413_s16 = scalar_lea.hbm %s13686_s20, 64 }
 0x103   :  { %p13414_p12 = scmp.ne.s32.totalorder %s13686_s20, %s13413_s16  ;;  %p13417_p13 = scmp.lt.u32.totalorder %s13413_s16, %s13686_s20 }
 0x105   :  { %p13419_p0 = pnand %p13417_p13, %p13414_p12 }
 0x107   :  { %13422 = shalt.err (!%p13419_p0)
}
 0x108   :  { %s13423_s27 = scalar_lea.vmem %s197_s25, 64  ;;  %p13428_p2 = scmp.lt.s32.totalorder %s197_s25, %s197_s25 }
 0x109   :  { %p13424_p1 = scmp.ne.s32.totalorder %s197_s25, %s13423_s27  ;;  %p13429_p3 = scmp.lt.s32.totalorder %s13423_s27, %s13423_s27 }
 0x10b   :  { %p13430_p4 = por %p13429_p3, %p13428_p2 }
 0x10d   :  { %p13431_p5 = pnand %p13430_p4, %p13424_p1 }
 0x10f   :  { %13434 = shalt.err (!%p13431_p5)
}
 0x110   :  { %202 = dma.hbm_to_vmem [thread:$0]  %s13686_s20, 64, %s197_s25, [#allocation16], %s13577_s22, %s13577_s22, %s13578_s3  }
 0x111   :  { %s13435_s6 = scalar_lea.hbm %s13701_s17, 64 }
 0x112   :  { %p13436_p6 = scmp.ne.s32.totalorder %s13701_s17, %s13435_s6  ;;  %p13439_p7 = scmp.lt.u32.totalorder %s13435_s6, %s13701_s17 }
 0x114   :  { %p13441_p8 = pnand %p13439_p7, %p13436_p6 }
 0x116   :  { %13444 = shalt.err (!%p13441_p8)
}
 0x117   :  { %s13445_s18 = scalar_lea.vmem %s13889_s10, 64  ;;  %p13450_p10 = scmp.lt.s32.totalorder %s13889_s10, %s13889_s10 }
 0x118   :  { %p13446_p9 = scmp.ne.s32.totalorder %s13889_s10, %s13445_s18  ;;  %p13451_p11 = scmp.lt.s32.totalorder %s13445_s18, %s13445_s18 }
 0x11a   :  { %p13452_p12 = por %p13451_p11, %p13450_p10 }
 0x11c   :  { %p13453_p13 = pnand %p13452_p12, %p13446_p9 }
 0x11e   :  { %13456 = shalt.err (!%p13453_p13)
}
 0x11f   :  { %228 = dma.hbm_to_vmem [thread:$0]  %s13701_s17, 64, %s13889_s10, [#allocation19], %s13577_s22, %s13577_s22, %s13578_s3  }
 0x120   :  { %s13591_s20 = smov [#allocation23]   ;;  %s13592_s26 = smov [#allocation26]  }
 0x121   :  { %s246_s23 = sshll.u32 %s13591_s20, 4  ;;  %s278_s12 = sshll.u32 %s13592_s26, 4  ;;  %s247_s23 = int_to_ptr.vmem [resolvable:$true] %s246_s23  ;;  %s13910_s12 = int_to_ptr.vmem [resolvable:$true] %s278_s12 }
 0x122   :  { %s13457_s5 = scalar_lea.hbm %s13711_s13, 64 }
 0x123   :  { %p13458_p0 = scmp.ne.s32.totalorder %s13711_s13, %s13457_s5  ;;  %p13461_p1 = scmp.lt.u32.totalorder %s13457_s5, %s13711_s13 }
 0x125   :  { %p13463_p2 = pnand %p13461_p1, %p13458_p0 }
 0x127   :  { %13466 = shalt.err (!%p13463_p2)
}
 0x128   :  { %s13467_s28 = scalar_lea.vmem %s247_s23, 64  ;;  %p13472_p4 = scmp.lt.s32.totalorder %s247_s23, %s247_s23 }
 0x129   :  { %p13468_p3 = scmp.ne.s32.totalorder %s247_s23, %s13467_s28  ;;  %p13473_p5 = scmp.lt.s32.totalorder %s13467_s28, %s13467_s28 }
 0x12b   :  { %p13474_p6 = por %p13473_p5, %p13472_p4 }
 0x12d   :  { %p13475_p7 = pnand %p13474_p6, %p13468_p3 }
 0x12f   :  { %13478 = shalt.err (!%p13475_p7)
}
 0x130   :  { %s16921_s17 = sld [smem:[#allocation51_spill]] }
 0x131   :  { %252 = dma.hbm_to_vmem [thread:$0]  %s13711_s13, 64, %s247_s23, [#allocation22], %s13577_s22, %s13577_s22, %s13578_s3  }
 0x136   :  { %s13479_s29 = scalar_lea.hbm %s16921_s17, 1024 }
 0x137   :  { %p13480_p8 = scmp.ne.s32.totalorder %s16921_s17, %s13479_s29  ;;  %p13483_p9 = scmp.lt.u32.totalorder %s13479_s29, %s16921_s17 }
 0x139   :  { %p13485_p10 = pnand %p13483_p9, %p13480_p8 }
 0x13b   :  { %13488 = shalt.err (!%p13485_p10)
}
 0x13c   :  { %s13489_s4 = scalar_lea.vmem %s13910_s12, 1024  ;;  %p13494_p12 = scmp.lt.s32.totalorder %s13910_s12, %s13910_s12 }
 0x13d   :  { %p13490_p11 = scmp.ne.s32.totalorder %s13910_s12, %s13489_s4  ;;  %p13495_p13 = scmp.lt.s32.totalorder %s13489_s4, %s13489_s4 }
 0x13f   :  { %p13496_p0 = por %p13495_p13, %p13494_p12 }
 0x141   :  { %p13497_p1 = pnand %p13496_p0, %p13490_p11 }
 0x143   :  { %13500 = shalt.err (!%p13497_p1)
}
 0x144   :  { %284 = dma.hbm_to_vmem [thread:$0]  %s16921_s17, 1024, %s13910_s12, [#allocation25], %s13575_s11, %s13575_s11, %s13576_s15  }
 0x145   :  { %s13593_s13 = smov [#allocation29]   ;;  %s13501_s1 = scalar_lea.hbm %s13766_s21, 16 }
 0x146   :  { %s307_s3 = sshll.u32 %s13593_s13, 4  ;;  %p13502_p2 = scmp.ne.s32.totalorder %s13766_s21, %s13501_s1  ;;  %s308_s3 = int_to_ptr.vmem [resolvable:$true] %s307_s3 }
 0x147   :  { %p13505_p3 = scmp.lt.u32.totalorder %s13501_s1, %s13766_s21 }
 0x149   :  { %p13507_p4 = pnand %p13505_p3, %p13502_p2 }
 0x14b   :  { %13510 = shalt.err (!%p13507_p4)
}
 0x14c   :  { %s13511_s2 = scalar_lea.vmem %s308_s3, 16  ;;  %s13515_s0 = scalar_lea.vmem %s308_s3, 32 }
 0x14d   :  { %p13512_p5 = scmp.ne.s32.totalorder %s308_s3, %s13511_s2  ;;  %p13516_p6 = scmp.lt.s32.totalorder %s308_s3, %s308_s3 }
 0x14e   :  { %p13517_p7 = scmp.lt.s32.totalorder %s13515_s0, %s13511_s2 }
 0x150   :  { %p13518_p8 = por %p13517_p7, %p13516_p6 }
 0x152   :  { %p13519_p9 = pnand %p13518_p8, %p13512_p5 }
 0x154   :  { %13522 = shalt.err (!%p13519_p9)
}
 0x155   :  { %310 = dma.hbm_to_vmem [thread:$0]  %s13766_s21, 16, %s308_s3, [#allocation28]  }
 0x156   :  { %13523 = dma.done.wait [#allocation5], 512  }
 0x157   :  { %13524 = vsyncadd [#allocation5], 4294966784 }
 0x158   :  { %13525 = dma.done.wait [#allocation7], 1024  }
 0x159   :  { %13526 = vsyncadd [#allocation7], 4294966272 }
 0x15a   :  { %13527 = dma.done.wait [#allocation10], 128  }
 0x15b   :  { %13528 = vsyncadd [#allocation10], 4294967168 }
 0x15c   :  { %13529 = dma.done.wait [#allocation13], 128  }
 0x15d   :  { %13530 = vsyncadd [#allocation13], 4294967168 }
 0x15e   :  { %13531 = dma.done.wait [#allocation16], 576  }
 0x15f   :  { %13532 = vsyncadd [#allocation16], 4294966720 }
 0x160   :  { %13533 = dma.done.wait [#allocation19], 128  }
 0x161   :  { %13534 = vsyncadd [#allocation19], 4294967168 }
 0x162   :  { %13535 = dma.done.wait [#allocation22], 128  }
 0x163   :  { %13536 = vsyncadd [#allocation22], 4294967168 }
 0x164   :  { %13537 = dma.done.wait [#allocation25], 1088  }
 0x165   :  { %13538 = vsyncadd [#allocation25], 4294966208 }
 0x166   :  { %13539 = dma.done.wait [#allocation28], 32  }
 0x167   :  { %13540 = vsyncadd [#allocation28], 4294967264  ;;  %s16922_s11 = sld [smem:[#allocation39_spill]]  ;;  %s16923_s21 = sld [smem:[#allocation40_spill]]  ;;  %vm379_vm0 = vcmask 523264   ;;  %v12399_v20 = vld [vmem:[#allocation4] sm:$0xff]  }
 0x168   :  { %v12400_v21 = vld [vmem:[#allocation8] sm:$0xff]   ;;  %10974 = vmatprep.subr.bf16.mxu1 %v12399_v20  ;;  %vm536_vm1 = vcmask 130048   ;;  %v10078_v38 = vld [vmem:[#allocation12] ss:$0 sm:$0xff]  ;;  %vm786_vm2 = vcmask 64512   ;;  %s16924_s15 = sld [smem:[#allocation43_spill]] }
 0x169   :  { %10975 = vmatpush3.bf16.msra.mxu1 %v12399_v20  ;;  %v12401_v22 = vld [vmem:[#allocation6] sm:$0xff]   ;;  %s13594_s14 = smov 120   ;;  %s13595_s8 = smov 112   ;;  %vm2027_vm3 = vcmask 195584   ;;  %vm2063_vm4 = vcmask 261120   ;;  %vm13600_vm5 = vmmov 0  }
 0x16a   :  { %10984 = vmatprep.subr.bf16.mxu1 %v12401_v22  ;;  %v10066_v36 = vld [vmem:[#allocation9] ss:$0 sm:$0xff]  ;;  %s13596_s7 = smov 104   ;;  %s13597_s19 = smov 8   ;;  %vm9618_vm6 = vcmask 392192  }
 0x16b   :  { %s16925_s25 = sld [smem:[#allocation45_spill]]  ;;  %s13598_s24 = smov 24  }
 0x16c   :  { %s16930_s10 = sld [smem:[#allocation46_spill]]  ;;  %s16940_s16 = sld [smem:[#allocation41_spill]] }
 0x16d   :  { %v363_v0 = vld [vmem:[%s16922_s11] sm:$0xff]  ;;  %v364_v1 = vld [vmem:[%s16922_s11 + $0x8] sm:$0xff]  ;;  %v365_v2 = vld [vmem:[%s16922_s11 + $0x10] sm:$0xff]  ;;  %s16941_s27 = sld [smem:[#allocation44_spill]]  ;;  %s16947_s6 = sld [smem:[#allocation42_spill]] }
 0x16e   :  { %v11922_v3 = vpack.c.bf16 %v364_v1, %v363_v0  ;;  %v366_v4 = vld [vmem:[%s16922_s11 + $0x18] sm:$0xff]  ;;  %v367_v6 = vld [vmem:[%s16922_s11 + $0x20] sm:$0xff]  ;;  %v368_v7 = vld [vmem:[%s16922_s11 + $0x28] sm:$0xff]  ;;  %s16948_s18 = sld [smem:[#allocation47_spill]]  ;;  %s16949_s20 = sld [smem:[#allocation48_spill]] }
 0x16f   :  { %v11926_v5 = vpack.c.bf16 %v366_v4, %v365_v2  ;;  %v371_v8 = vld [vmem:[%s16923_s21] sm:$0xff]  ;;  %v369_v9 = vld [vmem:[%s16922_s11 + $0x30] sm:$0xff]  ;;  %v11930_v10 = vpack.c.bf16 %v368_v7, %v367_v6  ;;  %v370_v11 = vld [vmem:[%s16922_s11 + $0x38] sm:$0xff]  ;;  %s16950_s23 = sld [smem:[#allocation49_spill]]  ;;  %s13602_s26 = smov 48  }
 0x170   :  { %11923 = vmatprep.subr.bf16.mxu0 %v11922_v3  ;;  %10962 = vmatprep.mubr.msk.f32.mxu0 %vm379_vm0, %v371_v8  ;;  %v11934_v12 = vpack.c.bf16 %v370_v11, %v369_v9  ;;  %v372_v13 = vld [vmem:[%s16923_s21 + $0x8] sm:$0xff]  ;;  %v373_v14 = vld [vmem:[%s16923_s21 + $0x10] sm:$0xff]  ;;  %v374_v15 = vld [vmem:[%s16923_s21 + $0x18] sm:$0xff]  ;;  %s16951_s12 = sld [smem:[#allocation53_spill]]  ;;  %s16952_s5 = sld [smem:[#allocation50_spill]] }
 0x171   :  { %11925 = vmatpush3.bf16.msra.mxu0 %v11922_v3  ;;  %v375_v16 = vld [vmem:[%s16923_s21 + $0x20] sm:$0xff]  ;;  %v376_v17 = vld [vmem:[%s16923_s21 + $0x28] sm:$0xff]  ;;  %v377_v18 = vld [vmem:[%s16923_s21 + $0x30] sm:$0xff]  ;;  %s16953_s28 = sld [smem:[#allocation52_spill]] }
 0x172   :  { %11927 = vmatprep.subr.bf16.mxu0 %v11926_v5  ;;  %v378_v19 = vld [vmem:[%s16923_s21 + $0x38] sm:$0xff] }
 0x175   :  { %11929 = vmatpush3.bf16.msra.mxu0 %v11926_v5 }
 0x176   :  { %11931 = vmatprep.subr.bf16.mxu0 %v11930_v10 }
 0x179   :  { %11933 = vmatpush3.bf16.msra.mxu0 %v11930_v10 }
 0x17a   :  { %11935 = vmatprep.subr.bf16.mxu0 %v11934_v12 }
 0x17d   :  { %11937 = vmatpush3.bf16.msra.mxu0 %v11934_v12 }
 0x17e   :  { %10994 = vmatprep.subr.bf16.mxu0 %v12400_v21 }
 0x180   :  { %10963 = vmatmul.mubr.msk.f32.vlgmr.msra.gmra.mrb[0].mxu0 %vm379_vm0, %v372_v13 }
 0x181   :  { %10965 = vmatprep.mubr.msk.f32.mxu0 %vm379_vm0, %v373_v14  ;;  %10995 = vmatpush3.bf16.msra.mxu0 %v12400_v21  ;;  %v10072_v14 = vld [vmem:[#allocation11] ss:$0 sm:$0xff] }
 0x184   :  { %10966 = vmatmul.mubr.msk.f32.gmra.mrb[2].mxu0 %vm379_vm0, %v374_v15 }
 0x185   :  { %10968 = vmatprep.mubr.msk.f32.mxu0 %vm379_vm0, %v375_v16 }
 0x188   :  { %10969 = vmatmul.mubr.msk.f32.gmra.mrb[4].mxu0 %vm379_vm0, %v376_v17 }
 0x189   :  { %10971 = vmatprep.mubr.msk.f32.mxu0 %vm379_vm0, %v377_v18 }
 0x18c   :  { %10972 = vmatmul.mubr.msk.f32.gmra.mrb[6].mxu0 %vm379_vm0, %v378_v19 }
 0x253   :  { %v13959_v23 = vpop.f32.mrb[0].mxu0 }
 0x254   :  { %v13961_v24 = vpop.f32.mrb[1].mxu0 }
 0x255   :  { %v517_v25 = vpack.c.bf16 %v13959_v23, %v13961_v24 }
 0x257   :  { %v13965_v26 = vpop.f32.mrb[2].mxu0  ;;  %10976 = vmatprep.mubr.msk.bf16.mxu1 %vm536_vm1, %v517_v25  ;;  %10996 = vmatprep.mubr.msk.bf16.mxu0 %vm536_vm1, %v517_v25 }
 0x258   :  { %v13969_v27 = vpop.f32.mrb[3].mxu0 }
 0x259   :  { %v518_v28 = vpack.c.bf16 %v13965_v26, %v13969_v27 }
 0x25b   :  { %v13973_v29 = vpop.f32.mrb[4].mxu0  ;;  %10977 = vmatmul.mubr.msk.bf16.vlgmr.msra.gmra.mrb[0].mxu1 %vm536_vm1, %v518_v28  ;;  %10997 = vmatmul.mubr.msk.bf16.vlgmr.msra.gmra.mrb[8].mxu0 %vm536_vm1, %v518_v28 }
 0x25c   :  { %v13977_v30 = vpop.f32.mrb[5].mxu0  ;;  %10985 = vmatpush3.bf16.msra.mxu1 %v12401_v22 }
 0x25d   :  { %v519_v31 = vpack.c.bf16 %v13973_v29, %v13977_v30 }
 0x25f   :  { %v13981_v32 = vpop.f32.mrb[6].mxu0  ;;  %10980 = vmatprep.mubr.msk.bf16.mxu1 %vm536_vm1, %v519_v31  ;;  %11000 = vmatprep.mubr.msk.bf16.mxu0 %vm536_vm1, %v519_v31 }
 0x260   :  { %v13985_v33 = vpop.f32.mrb[7].mxu0 }
 0x261   :  { %v520_v34 = vpack.c.bf16 %v13981_v32, %v13985_v33 }
 0x263   :  { %10981 = vmatmul.mubr.msk.bf16.gmra.mrb[4].mxu1 %vm536_vm1, %v520_v34  ;;  %11001 = vmatmul.mubr.msk.bf16.gmra.mrb[12].mxu0 %vm536_vm1, %v520_v34 }
 0x264   :  { %10986 = vmatprep.mubr.msk.bf16.mxu1 %vm536_vm1, %v517_v25 }
 0x26b   :  { %10987 = vmatmul.mubr.msk.bf16.vlgmr.msra.gmra.mrb[8].mxu1 %vm536_vm1, %v518_v28 }
 0x26c   :  { %10990 = vmatprep.mubr.msk.bf16.mxu1 %vm536_vm1, %v519_v31 }
 0x273   :  { %10991 = vmatmul.mubr.msk.bf16.gmra.mrb[12].mxu1 %vm536_vm1, %v520_v34 }
 0x32e   :  { %v10978_v35 = vpop.f32.mrb[0].mxu1  ;;  %v10998_v37 = vpop.f32.mrb[8].mxu0 }
 0x32f   :  { %v583_v39 = vpop.f32.mrb[1].mxu1  ;;  %v743_v40 = vpop.f32.mrb[9].mxu0  ;;  %v592_v43 = vadd.f32 %v10978_v35, %v10066_v36  ;;  %v752_v44 = vadd.f32 %v10998_v37, %v10078_v38 }
 0x330   :  { %v10979_v41 = vpop.f32.mrb[2].mxu1  ;;  %v10999_v42 = vpop.f32.mrb[10].mxu0  ;;  %v584_v49 = vadd.f32 %v10066_v36, %v583_v39  ;;  %v744_v50 = vadd.f32 %v10078_v38, %v743_v40 }
 0x331   :  { %v595_v45 = vadd.f32 %v10979_v41, %v10066_v36  ;;  %v755_v46 = vadd.f32 %v10999_v42, %v10078_v38  ;;  %v586_v47 = vpop.f32.mrb[3].mxu1  ;;  %v746_v48 = vpop.f32.mrb[11].mxu0 }
 0x332   :  { %v587_v51 = vadd.f32 %v10066_v36, %v586_v47  ;;  %v747_v52 = vadd.f32 %v10078_v38, %v746_v48  ;;  %v14055_v47 = vld [vmem:[%s16924_s15] sm:$0xff] }
 0x333   :  { %v13995_v53 = vpack.c.bf16 %v595_v45, %v592_v43  ;;  %v13997_v54 = vpack.c.bf16 %v755_v46, %v752_v44  ;;  %v14052_v46 = vld [vmem:[%s16924_s15 + $0x10] sm:$0xff] }
 0x334   :  { %v13999_v55 = vpack.c.bf16 %v587_v51, %v584_v49  ;;  %v14001_v56 = vpack.c.bf16 %v747_v52, %v744_v50  ;;  %v14058_v49 = vld [vmem:[%s16924_s15 + $0x18] sm:$0xff]  ;;  %v14062_v52 = vld [vmem:[%s16924_s15 + $0x8] sm:$0xff] }
 0x336   :  { %v10982_v57 = vpop.f32.mrb[4].mxu1  ;;  %v11002_v58 = vpop.f32.mrb[12].mxu0  ;;  %11012 = vmatprep.mubr.msk.bf16.mxu1 %vm786_vm2, %v13999_v55  ;;  %11020 = vmatprep.subr.bf16.mxu0 %v14001_v56 }
 0x337   :  { %v599_v59 = vpop.f32.mrb[5].mxu1  ;;  %v759_v60 = vpop.f32.mrb[13].mxu0  ;;  %11021 = vmatpush3.bf16.msra.mxu0 %v14001_v56  ;;  %v608_v63 = vadd.f32 %v10982_v57, %v10066_v36  ;;  %v768_v0 = vadd.f32 %v11002_v58, %v10078_v38 }
 0x338   :  { %v10983_v61 = vpop.f32.mrb[6].mxu1  ;;  %v11003_v62 = vpop.f32.mrb[14].mxu0  ;;  %11022 = vmatprep.subr.bf16.mxu0 %v13997_v54  ;;  %v600_v5 = vadd.f32 %v10066_v36, %v599_v59  ;;  %v760_v6 = vadd.f32 %v10078_v38, %v759_v60 }
 0x339   :  { %v611_v1 = vadd.f32 %v10983_v61, %v10066_v36  ;;  %v771_v2 = vadd.f32 %v11003_v62, %v10078_v38  ;;  %v602_v3 = vpop.f32.mrb[7].mxu1  ;;  %v762_v4 = vpop.f32.mrb[15].mxu0 }
 0x33a   :  { %v603_v7 = vadd.f32 %v10066_v36, %v602_v3  ;;  %v763_v8 = vadd.f32 %v10078_v38, %v762_v4  ;;  %v14075_v4 = vld [vmem:[%s16924_s15 + $0x30] sm:$0xff] }
 0x33b   :  { %v14008_v9 = vpack.c.bf16 %v611_v1, %v608_v63  ;;  %v14010_v10 = vpack.c.bf16 %v771_v2, %v768_v0  ;;  %11023 = vmatpush3.bf16.msra.mxu0 %v13997_v54  ;;  %v14071_v1 = vld [vmem:[%s16924_s15 + $0x20] sm:$0xff] }
 0x33c   :  { %v14013_v11 = vpack.c.bf16 %v603_v7, %v600_v5  ;;  %v14015_v12 = vpack.c.bf16 %v763_v8, %v760_v6  ;;  %v14078_v6 = vld [vmem:[%s16924_s15 + $0x28] sm:$0xff] }
 0x33e   :  { %v10988_v13 = vpop.f32.mrb[8].mxu1  ;;  %11024 = vmatprep.subr.bf16.mxu0 %v14015_v12 }
 0x33f   :  { %v663_v15 = vpop.f32.mrb[9].mxu1  ;;  %11025 = vmatpush3.bf16.msra.mxu0 %v14015_v12  ;;  %v672_v17 = vadd.f32 %v10988_v13, %v10072_v14  ;;  %v14082_v13 = vld [vmem:[%s16924_s15 + $0x38] sm:$0xff] }
 0x340   :  { %v10989_v16 = vpop.f32.mrb[10].mxu1  ;;  %11026 = vmatprep.subr.bf16.mxu0 %v14010_v10  ;;  %v664_v20 = vadd.f32 %v10072_v14, %v663_v15 }
 0x341   :  { %v675_v18 = vadd.f32 %v10989_v16, %v10072_v14  ;;  %v666_v19 = vpop.f32.mrb[11].mxu1 }
 0x342   :  { %v667_v21 = vadd.f32 %v10072_v14, %v666_v19 }
 0x343   :  { %v14020_v22 = vpack.c.bf16 %v675_v18, %v672_v17  ;;  %11027 = vmatpush3.bf16.msra.mxu0 %v14010_v10 }
 0x344   :  { %v14023_v25 = vpack.c.bf16 %v667_v21, %v664_v20 }
 0x345   :  { %v803_v43 = vsel %vm786_vm2, %v14020_v22, 0 }
 0x346   :  { %v10992_v28 = vpop.f32.mrb[12].mxu1  ;;  %12018 = vmatprep.subr.msk.bf16.mxu1 %vm786_vm2, %v14023_v25  ;;  %v800_v31 = vsel %vm786_vm2, %v14023_v25, 0 }
 0x347   :  { %v679_v34 = vpop.f32.mrb[13].mxu1  ;;  %11005 = vmatpush3.bf16.xpose.msra.mxu1 %v800_v31  ;;  %v688_v36 = vadd.f32 %v10992_v28, %v10072_v14 }
 0x348   :  { %v10993_v35 = vpop.f32.mrb[14].mxu1  ;;  %12019 = vmatprep.subr.msk.bf16.mxu1 %vm786_vm2, %v14020_v22  ;;  %v680_v39 = vadd.f32 %v10072_v14, %v679_v34 }
 0x349   :  { %v691_v37 = vadd.f32 %v10993_v35, %v10072_v14  ;;  %v682_v38 = vpop.f32.mrb[15].mxu1 }
 0x34a   :  { %v683_v40 = vadd.f32 %v10072_v14, %v682_v38 }
 0x34b   :  { %v14031_v41 = vpack.c.bf16 %v691_v37, %v688_v36 }
 0x34c   :  { %v14033_v42 = vpack.c.bf16 %v683_v40, %v680_v39 }
 0x34d   :  { %v809_v45 = vsel %vm786_vm2, %v14031_v41, 0 }
 0x34e   :  { %v806_v44 = vsel %vm786_vm2, %v14033_v42, 0 }
 0x34f   :  { %11007 = vmatpush3.bf16.xpose.msra.mxu1 %v803_v43 }
 0x350   :  { %12020 = vmatprep.subr.msk.bf16.mxu1 %vm786_vm2, %v14033_v42 }
 0x357   :  { %11009 = vmatpush3.bf16.xpose.msra.mxu1 %v806_v44 }
 0x358   :  { %12021 = vmatprep.subr.msk.bf16.mxu1 %vm786_vm2, %v14031_v41 }
 0x35f   :  { %11011 = vmatpush3.bf16.xpose.msra.mxu1 %v809_v45 }
 0x366   :  { %11013 = vmatmul.mubr.msk.bf16.vlgmr.msra.gmra.mrb[16].mxu1 %vm786_vm2, %v13995_v53 }
 0x367   :  { %11016 = vmatprep.mubr.msk.bf16.mxu1 %vm786_vm2, %v14013_v11 }
 0x36e   :  { %11017 = vmatmul.mubr.msk.bf16.gmra.mrb[20].mxu1 %vm786_vm2, %v14008_v9 }
 0x439   :  { %v11014_v48 = vpop.f32.mrb[16].mxu1 }
 0x43a   :  { %v854_v50 = vadd.f32 %v11014_v48, %v14052_v46  ;;  %v845_v51 = vpop.f32.mrb[17].mxu1 }
 0x43b   :  { %v846_v57 = vadd.f32 %v845_v51, %v14055_v47  ;;  %v11015_v58 = vpop.f32.mrb[18].mxu1 }
 0x43c   :  { %v857_v59 = vadd.f32 %v11015_v58, %v14058_v49  ;;  %v848_v60 = vpop.f32.mrb[19].mxu1  ;;  %v882_v61 = vsel %vm379_vm0, %v854_v50, -inf }
 0x43d   :  { %v849_v62 = vadd.f32 %v848_v60, %v14062_v52  ;;  %883 = vmax.xlane.f32.xlu1 %v882_v61  ;;  %v876_v63 = vsel %vm379_vm0, %v846_v57, -inf }
 0x43e   :  { %877 = vmax.xlane.f32.xlu0 %v876_v63  ;;  %v885_v0 = vsel %vm379_vm0, %v857_v59, -inf }
 0x43f   :  { %v879_v3 = vsel %vm379_vm0, %v849_v62, -inf }
 0x441   :  { %886 = vmax.xlane.f32.xlu1 %v885_v0  ;;  %v11018_v2 = vpop.f32.mrb[20].mxu1 }
 0x442   :  { %880 = vmax.xlane.f32.xlu0 %v879_v3  ;;  %v861_v5 = vpop.f32.mrb[21].mxu1  ;;  %v870_v15 = vadd.f32 %v11018_v2, %v14075_v4 }
 0x443   :  { %v862_v7 = vadd.f32 %v861_v5, %v14071_v1  ;;  %v11019_v8 = vpop.f32.mrb[22].mxu1 }
 0x444   :  { %v864_v14 = vpop.f32.mrb[23].mxu1  ;;  %v873_v18 = vadd.f32 %v11019_v8, %v14082_v13  ;;  %v894_v20 = vsel %vm379_vm0, %v870_v15, -inf }
 0x445   :  { %v14086_v16 = vadd.f32 %v864_v14, %v14078_v6  ;;  %v888_v17 = vsel %vm379_vm0, %v862_v7, -inf }
 0x446   :  { %889 = vmax.xlane.f32.xlu0 %v888_v17  ;;  %v897_v21 = vsel %vm379_vm0, %v873_v18, -inf }
 0x447   :  { %v891_v19 = vsel %vm379_vm0, %v14086_v16, -inf }
 0x448   :  { %892 = vmax.xlane.f32.xlu1 %v891_v19 }
 0x44a   :  { %895 = vmax.xlane.f32.xlu0 %v894_v20 }
 0x44c   :  { %898 = vmax.xlane.f32.xlu1 %v897_v21 }
 0x4ca   :  { %v884_v28 = vpop.xlane.xlu1 %883 }
 0x4cb   :  { %v902_v31 = vsub.f32 %v854_v50, %v884_v28  ;;  %v878_v34 = vpop.xlane.xlu0 %877 }
 0x4cc   :  { %v900_v35 = vsub.f32 %v846_v57, %v878_v34 }
 0x4cd   :  { %v912_v36 = vmul.f32 1.442695, %v902_v31 }
 0x4ce   :  { %v908_v37 = vmul.f32 1.442695, %v900_v35  ;;  %v887_v38 = vpop.xlane.xlu1 %886 }
 0x4cf   :  { %12461 = vpow2.f32 %v912_v36  ;;  %v903_v39 = vsub.f32 %v857_v59, %v887_v38  ;;  %v881_v40 = vpop.xlane.xlu0 %880 }
 0x4d0   :  { %v901_v43 = vsub.f32 %v849_v62, %v881_v40  ;;  %12463 = vpow2.f32 %v908_v37 }
 0x4d1   :  { %v914_v44 = vmul.f32 1.442695, %v903_v39 }
 0x4d2   :  { %v910_v45 = vmul.f32 1.442695, %v901_v43 }
 0x4d3   :  { %12465 = vpow2.f32 %v914_v44  ;;  %v890_v48 = vpop.xlane.xlu0 %889 }
 0x4d4   :  { %12467 = vpow2.f32 %v910_v45  ;;  %v904_v51 = vsub.f32 %v862_v7, %v890_v48 }
 0x4d5   :  { %v893_v17 = vpop.xlane.xlu1 %892 }
 0x4d6   :  { %v916_v50 = vmul.f32 1.442695, %v904_v51  ;;  %v905_v21 = vsub.f32 %v14086_v16, %v893_v17 }
 0x4d7   :  { %v896_v58 = vpop.xlane.xlu0 %895 }
 0x4d8   :  { %v906_v60 = vsub.f32 %v870_v15, %v896_v58  ;;  %v918_v31 = vmul.f32 1.442695, %v905_v21 }
 0x4d9   :  { %v12462_v61 = vpop.eup %12461  ;;  %v899_v19 = vpop.xlane.xlu1 %898 }
 0x4da   :  { %v920_v63 = vmul.f32 1.442695, %v906_v60  ;;  %v930_v57 = vsel %vm379_vm0, %v12462_v61, 0.0  ;;  %v12464_v0 = vpop.eup %12463  ;;  %v907_v20 = vsub.f32 %v873_v18, %v899_v19 }
 0x4db   :  { %931 = vadd.xlane.f32.xlu0 %v930_v57  ;;  %v924_v2 = vsel %vm379_vm0, %v12464_v0, 0.0 }
 0x4dc   :  { %12469 = vpow2.f32 %v920_v63  ;;  %v922_v28 = vmul.f32 1.442695, %v907_v20 }
 0x4dd   :  { %v12466_v59 = vpop.eup %12465  ;;  %12471 = vpow2.f32 %v916_v50 }
 0x4de   :  { %v933_v62 = vsel %vm379_vm0, %v12466_v59, 0.0  ;;  %v12468_v3 = vpop.eup %12467  ;;  %12473 = vpow2.f32 %v922_v28 }
 0x4df   :  { %934 = vadd.xlane.f32.xlu1 %v933_v62  ;;  %925 = vadd.xlane.f32.xlu0 %v924_v2  ;;  %v927_v5 = vsel %vm379_vm0, %v12468_v3, 0.0  ;;  %12475 = vpow2.f32 %v918_v31 }
 0x4e3   :  { %928 = vadd.xlane.f32.xlu1 %v927_v5 }
 0x4e6   :  { %v14098_v7 = vpop.eup %12469 }
 0x4e7   :  { %v942_v8 = vsel %vm379_vm0, %v14098_v7, 0.0  ;;  %v14102_v14 = vpop.eup %12471 }
 0x4e8   :  { %943 = vadd.xlane.f32.xlu0 %v942_v8  ;;  %v936_v15 = vsel %vm379_vm0, %v14102_v14, 0.0  ;;  %v12474_v34 = vpop.eup %12473 }
 0x4e9   :  { %v945_v35 = vsel %vm379_vm0, %v12474_v34, 0.0  ;;  %v12476_v36 = vpop.eup %12475 }
 0x4ea   :  { %v939_v37 = vsel %vm379_vm0, %v12476_v36, 0.0 }
 0x4ec   :  { %937 = vadd.xlane.f32.xlu0 %v936_v15 }
 0x4f4   :  { %1063 = vrot.lane.b32.xlu1 %v14020_v22, %s13594_s14 }
 0x4f8   :  { %1065 = vrot.lane.b32.xlu1 %v14033_v42, %s13594_s14 }
 0x502   :  { %1061 = vrot.lane.b32.xlu0 %v14023_v25, %s13594_s14 }
 0x506   :  { %1049 = vrot.lane.b32.xlu0 %v13999_v55, %s13594_s14 }
 0x50a   :  { %1053 = vrot.lane.b32.xlu0 %v14013_v11, %s13594_s14 }
 0x51c   :  { %946 = vadd.xlane.f32.xlu1 %v945_v35 }
 0x520   :  { %940 = vadd.xlane.f32.xlu1 %v939_v37 }
 0x531   :  { %1067 = vrot.lane.b32.xlu1 %v14031_v41, %s13594_s14 }
 0x535   :  { %1051 = vrot.lane.b32.xlu1 %v13995_v53, %s13594_s14 }
 0x539   :  { %1055 = vrot.lane.b32.xlu1 %v14008_v9, %s13594_s14 }
 0x568   :  { %v932_v16 = vpop.xlane.xlu0 %931 }
 0x56c   :  { %v935_v18 = vpop.xlane.xlu1 %934  ;;  %v926_v38 = vpop.xlane.xlu0 %925 }
 0x56d   :  { %12477 = vrcp.f32 %v935_v18 }
 0x56e   :  { %12479 = vrcp.f32 %v926_v38 }
 0x56f   :  { %12481 = vrcp.f32 %v932_v16 }
 0x570   :  { %v929_v39 = vpop.xlane.xlu1 %928 }
 0x571   :  { %12483 = vrcp.f32 %v929_v39 }
 0x574   :  { %v1064_v8 = vpop.permute.xlu1 %1063 }
 0x575   :  { %v944_v40 = vpop.xlane.xlu0 %943 }
 0x577   :  { %v12478_v43 = vpop.eup %12477 }
 0x578   :  { %v12480_v44 = vpop.eup %12479  ;;  %v959_v58 = vmul.f32 %v12478_v43, %v12466_v59  ;;  %v1085_v59 = vsel %vm786_vm2, %v1064_v8, 0 }
 0x579   :  { %v938_v45 = vpop.xlane.xlu0 %937  ;;  %v12482_v48 = vpop.eup %12481  ;;  %v956_v60 = vmul.f32 %v12480_v44, %v12464_v0 }
 0x57a   :  { %v958_v63 = vmul.f32 %v12482_v48, %v12462_v61  ;;  %v1066_v0 = vpop.permute.xlu1 %1065 }
 0x57b   :  { %v12484_v51 = vpop.eup %12483  ;;  %v1088_v61 = vsel %vm786_vm2, %v1066_v0, 0 }
 0x57c   :  { %v957_v50 = vmul.f32 %v12484_v51, %v12468_v3  ;;  %v965_v2 = vpack.c.bf16 %v959_v58, %v958_v63 }
 0x57d   :  { %v1062_v57 = vpop.permute.xlu0 %1061 }
 0x57e   :  { %12022 = vmatprep.subr.msk.bf16.mxu0 %vm786_vm2, %v1062_v57  ;;  %v964_v62 = vpack.c.bf16 %v957_v50, %v956_v60  ;;  %v1082_v5 = vsel %vm786_vm2, %v1062_v57, 0 }
 0x580   :  { %11028 = vmatprep.mubr.msk.bf16.mxu0 %vm379_vm0, %v964_v62 }
 0x581   :  { %11029 = vmatmul.mubr.msk.bf16.vlgmr.msra.gmra.mrb[16].mxu0 %vm379_vm0, %v965_v2 }
 0x582   :  { %11037 = vmatpush3.bf16.xpose.msra.mxu0 %v1082_v5 }
 0x583   :  { %12023 = vmatprep.subr.msk.bf16.mxu0 %vm786_vm2, %v1064_v8 }
 0x58a   :  { %11039 = vmatpush3.bf16.xpose.msra.mxu0 %v1085_v59 }
 0x58b   :  { %12024 = vmatprep.subr.msk.bf16.mxu0 %vm786_vm2, %v1066_v0 }
 0x592   :  { %11041 = vmatpush3.bf16.xpose.msra.mxu0 %v1088_v61 }
 0x5a9   :  { %v947_v3 = vpop.xlane.xlu1 %946 }
 0x5aa   :  { %12485 = vrcp.f32 %v947_v3 }
 0x5ab   :  { %12487 = vrcp.f32 %v938_v45 }
 0x5ac   :  { %12489 = vrcp.f32 %v944_v40  ;;  %v1050_v40 = vpop.permute.xlu0 %1049 }
 0x5ad   :  { %v941_v15 = vpop.xlane.xlu1 %940 }
 0x5ae   :  { %12491 = vrcp.f32 %v941_v15 }
 0x5b0   :  { %v1054_v44 = vpop.permute.xlu0 %1053 }
 0x5b1   :  { %v1068_v17 = vpop.permute.xlu1 %1067 }
 0x5b2   :  { %12025 = vmatprep.subr.msk.bf16.mxu0 %vm786_vm2, %v1068_v17  ;;  %v1091_v19 = vsel %vm786_vm2, %v1068_v17, 0 }
 0x5b3   :  { %11043 = vmatpush3.bf16.xpose.msra.mxu0 %v1091_v19 }
 0x5b4   :  { %v12486_v20 = vpop.eup %12485 }
 0x5b5   :  { %v12488_v21 = vpop.eup %12487  ;;  %v963_v35 = vmul.f32 %v12486_v20, %v12474_v34  ;;  %v1052_v43 = vpop.permute.xlu1 %1051 }
 0x5b6   :  { %v12490_v28 = vpop.eup %12489  ;;  %v960_v37 = vmul.f32 %v12488_v21, %v14102_v14 }
 0x5b7   :  { %v962_v18 = vmul.f32 %v12490_v28, %v14098_v7 }
 0x5b8   :  { %v12492_v31 = vpop.eup %12491 }
 0x5b9   :  { %v961_v16 = vmul.f32 %v12492_v31, %v12476_v36  ;;  %v967_v39 = vpack.c.bf16 %v963_v35, %v962_v18  ;;  %v1056_v34 = vpop.permute.xlu1 %1055 }
 0x5bb   :  { %v966_v38 = vpack.c.bf16 %v961_v16, %v960_v37 }
 0x5bd   :  { %11032 = vmatprep.mubr.msk.bf16.mxu0 %vm379_vm0, %v966_v38 }
 0x5be   :  { %11033 = vmatmul.mubr.msk.bf16.gmra.mrb[20].mxu0 %vm379_vm0, %v967_v39 }
 0x5bf   :  { %11044 = vmatprep.mubr.msk.bf16.mxu0 %vm786_vm2, %v1050_v40 }
 0x5c6   :  { %11045 = vmatmul.mubr.msk.bf16.vlgmr.msra.gmra.mrb[24].mxu0 %vm786_vm2, %v1052_v43 }
 0x5c7   :  { %11048 = vmatprep.mubr.msk.bf16.mxu0 %vm786_vm2, %v1054_v44 }
 0x5ce   :  { %11049 = vmatmul.mubr.msk.bf16.gmra.mrb[28].mxu0 %vm786_vm2, %v1056_v34 }
 0x654   :  { %v14143_v14 = vpop.f32.mrb[16].mxu0 }
 0x655   :  { %v14145_v7 = vpop.f32.mrb[17].mxu0 }
 0x656   :  { %v14147_v36 = vpop.f32.mrb[18].mxu0 }
 0x657   :  { %v14149_v45 = vpop.f32.mrb[19].mxu0 }
 0x691   :  { %v14151_v48 = vpop.f32.mrb[20].mxu0 }
 0x692   :  { %v14153_v51 = vpop.f32.mrb[21].mxu0 }
 0x693   :  { %v14155_v58 = vpop.f32.mrb[22].mxu0 }
 0x694   :  { %v14157_v60 = vpop.f32.mrb[23].mxu0 }
 0x699   :  { %v11046_v50 = vpop.f32.mrb[24].mxu0 }
 0x69a   :  { %v1136_v63 = vadd.f32 %v11046_v50, %v14052_v46  ;;  %v1127_v57 = vpop.f32.mrb[25].mxu0 }
 0x69b   :  { %v11047_v62 = vpop.f32.mrb[26].mxu0  ;;  %v1128_v2 = vadd.f32 %v1127_v57, %v14055_v47 }
 0x69c   :  { %v1130_v5 = vpop.f32.mrb[27].mxu0  ;;  %v1164_v8 = vsel %vm379_vm0, %v1136_v63, -inf  ;;  %v1139_v61 = vadd.f32 %v11047_v62, %v14058_v49 }
 0x69d   :  { %v1131_v59 = vadd.f32 %v1130_v5, %v14062_v52  ;;  %1165 = vmax.xlane.f32.xlu0 %v1164_v8  ;;  %v1158_v3 = vsel %vm379_vm0, %v1128_v2, -inf }
 0x69e   :  { %v1167_v28 = vsel %vm379_vm0, %v1139_v61, -inf }
 0x69f   :  { %v1161_v0 = vsel %vm379_vm0, %v1131_v59, -inf }
 0x6a0   :  { %1162 = vmax.xlane.f32.xlu1 %v1161_v0 }
 0x6a1   :  { %1159 = vmax.xlane.f32.xlu0 %v1158_v3  ;;  %v11050_v15 = vpop.f32.mrb[28].mxu0 }
 0x6a2   :  { %v1143_v17 = vpop.f32.mrb[29].mxu0  ;;  %v1152_v20 = vadd.f32 %v11050_v15, %v14075_v4 }
 0x6a3   :  { %v11051_v19 = vpop.f32.mrb[30].mxu0  ;;  %v1144_v31 = vadd.f32 %v1143_v17, %v14071_v1 }
 0x6a4   :  { %v1146_v21 = vpop.f32.mrb[31].mxu0  ;;  %v1176_v35 = vsel %vm379_vm0, %v1152_v20, -inf  ;;  %v14178_v16 = vadd.f32 %v11051_v19, %v14082_v13 }
 0x6a5   :  { %1168 = vmax.xlane.f32.xlu0 %v1167_v28  ;;  %v1170_v37 = vsel %vm379_vm0, %v1144_v31, -inf  ;;  %v14181_v18 = vadd.f32 %v1146_v21, %v14078_v6 }
 0x6a6   :  { %v1179_v38 = vsel %vm379_vm0, %v14178_v16, -inf }
 0x6a7   :  { %v1173_v39 = vsel %vm379_vm0, %v14181_v18, -inf }
 0x6a9   :  { %1177 = vmax.xlane.f32.xlu0 %v1176_v35 }
 0x6ad   :  { %1171 = vmax.xlane.f32.xlu0 %v1170_v37 }
 0x6b1   :  { %1256 = vrot.lane.b32.xlu1 %v13997_v54, %s13594_s14 }
 0x6b5   :  { %1258 = vrot.lane.b32.xlu1 %v14015_v12, %s13594_s14 }
 0x6c3   :  { %1254 = vrot.lane.b32.xlu0 %v14001_v56, %s13594_s14 }
 0x6d9   :  { %1180 = vmax.xlane.f32.xlu1 %v1179_v38 }
 0x6dd   :  { %1174 = vmax.xlane.f32.xlu1 %v1173_v39 }
 0x6ee   :  { %1260 = vrot.lane.b32.xlu1 %v14010_v10, %s13594_s14 }
 0x72a   :  { %v1166_v40 = vpop.xlane.xlu0 %1165 }
 0x72b   :  { %v1184_v43 = vsub.f32 %v1136_v63, %v1166_v40 }
 0x72d   :  { %v1194_v44 = vmul.f32 1.442695, %v1184_v43  ;;  %v1163_v34 = vpop.xlane.xlu1 %1162 }
 0x72e   :  { %v1160_v50 = vpop.xlane.xlu0 %1159  ;;  %v1183_v62 = vsub.f32 %v1131_v59, %v1163_v34 }
 0x72f   :  { %12493 = vpow2.f32 %v1194_v44  ;;  %v1182_v57 = vsub.f32 %v1128_v2, %v1160_v50 }
 0x730   :  { %v1192_v3 = vmul.f32 1.442695, %v1183_v62 }
 0x731   :  { %v1190_v5 = vmul.f32 1.442695, %v1182_v57 }
 0x732   :  { %v1169_v8 = vpop.xlane.xlu0 %1168 }
 0x733   :  { %12495 = vpow2.f32 %v1190_v5  ;;  %v1185_v0 = vsub.f32 %v1139_v61, %v1169_v8  ;;  %v1257_v61 = vpop.permute.xlu1 %1256 }
 0x735   :  { %v1196_v15 = vmul.f32 1.442695, %v1185_v0 }
 0x736   :  { %v1178_v17 = vpop.xlane.xlu0 %1177 }
 0x737   :  { %12497 = vpow2.f32 %v1196_v15  ;;  %v1188_v19 = vsub.f32 %v1152_v20, %v1178_v17 }
 0x738   :  { %12499 = vpow2.f32 %v1192_v3 }
 0x739   :  { %v14189_v21 = vpop.eup %12493  ;;  %v1202_v28 = vmul.f32 1.442695, %v1188_v19 }
 0x73a   :  { %v1172_v63 = vpop.xlane.xlu0 %1171  ;;  %v1212_v35 = vsel %vm379_vm0, %v14189_v21, 0.0 }
 0x73b   :  { %12501 = vpow2.f32 %v1202_v28  ;;  %v1186_v2 = vsub.f32 %v1144_v31, %v1172_v63  ;;  %1213 = vadd.xlane.f32.xlu0 %v1212_v35  ;;  %v1259_v31 = vpop.permute.xlu1 %1258 }
 0x73d   :  { %v14193_v59 = vpop.eup %12495  ;;  %v1198_v37 = vmul.f32 1.442695, %v1186_v2 }
 0x73e   :  { %v1255_v38 = vpop.permute.xlu0 %1254  ;;  %v1206_v39 = vsel %vm379_vm0, %v14193_v59, 0.0 }
 0x73f   :  { %12503 = vpow2.f32 %v1198_v37  ;;  %1207 = vadd.xlane.f32.xlu0 %v1206_v39  ;;  %11052 = vmatprep.subr.bf16.mxu1 %v1255_v38 }
 0x740   :  { %11053 = vmatpush3.bf16.msra.mxu1 %v1255_v38 }
 0x741   :  { %v12498_v20 = vpop.eup %12497  ;;  %11054 = vmatprep.subr.bf16.mxu1 %v1257_v61 }
 0x742   :  { %v1215_v40 = vsel %vm379_vm0, %v12498_v20, 0.0  ;;  %v12500_v43 = vpop.eup %12499 }
 0x743   :  { %1216 = vadd.xlane.f32.xlu1 %v1215_v40  ;;  %v1209_v34 = vsel %vm379_vm0, %v12500_v43, 0.0 }
 0x744   :  { %11055 = vmatpush3.bf16.msra.mxu1 %v1257_v61 }
 0x745   :  { %v14198_v44 = vpop.eup %12501  ;;  %11056 = vmatprep.subr.bf16.mxu1 %v1259_v31 }
 0x746   :  { %v1224_v50 = vsel %vm379_vm0, %v14198_v44, 0.0 }
 0x747   :  { %1210 = vadd.xlane.f32.xlu1 %v1209_v34  ;;  %1225 = vadd.xlane.f32.xlu0 %v1224_v50 }
 0x748   :  { %11057 = vmatpush3.bf16.msra.mxu1 %v1259_v31 }
 0x749   :  { %v14203_v57 = vpop.eup %12503 }
 0x74a   :  { %v1218_v62 = vsel %vm379_vm0, %v14203_v57, 0.0 }
 0x74b   :  { %1219 = vadd.xlane.f32.xlu0 %v1218_v62 }
 0x758   :  { %1353 = vrot.lane.b32.xlu1 %v14020_v22, %s13595_s8 }
 0x75c   :  { %1355 = vrot.lane.b32.xlu1 %v14033_v42, %s13595_s8 }
 0x766   :  { %v1181_v5 = vpop.xlane.xlu1 %1180 }
 0x767   :  { %v1189_v8 = vsub.f32 %v14178_v16, %v1181_v5 }
 0x769   :  { %v1204_v0 = vmul.f32 1.442695, %v1189_v8 }
 0x76a   :  { %v1175_v3 = vpop.xlane.xlu1 %1174 }
 0x76b   :  { %12505 = vpow2.f32 %v1204_v0  ;;  %v1187_v15 = vsub.f32 %v14181_v18, %v1175_v3 }
 0x76d   :  { %v1200_v17 = vmul.f32 1.442695, %v1187_v15 }
 0x76e   :  { %v1261_v19 = vpop.permute.xlu1 %1260 }
 0x76f   :  { %11058 = vmatprep.subr.bf16.mxu1 %v1261_v19  ;;  %12507 = vpow2.f32 %v1200_v17 }
 0x770   :  { %11059 = vmatpush3.bf16.msra.mxu1 %v1261_v19 }
 0x775   :  { %v12506_v28 = vpop.eup %12505 }
 0x776   :  { %v1227_v63 = vsel %vm379_vm0, %v12506_v28, 0.0 }
 0x777   :  { %1228 = vadd.xlane.f32.xlu0 %v1227_v63 }
 0x779   :  { %v12508_v35 = vpop.eup %12507 }
 0x77a   :  { %v1221_v2 = vsel %vm379_vm0, %v12508_v35, 0.0 }
 0x780   :  { %1222 = vadd.xlane.f32.xlu1 %v1221_v2 }
 0x78d   :  { %1351 = vrot.lane.b32.xlu0 %v14023_v25, %s13595_s8 }
 0x791   :  { %1357 = vrot.lane.b32.xlu1 %v14031_v41, %s13595_s8  ;;  %1343 = vrot.lane.b32.xlu0 %v13999_v55, %s13595_s8 }
 0x795   :  { %1345 = vrot.lane.b32.xlu1 %v13995_v53, %s13595_s8  ;;  %1347 = vrot.lane.b32.xlu0 %v14013_v11, %s13595_s8 }
 0x799   :  { %1349 = vrot.lane.b32.xlu1 %v14008_v9, %s13595_s8 }
 0x7c8   :  { %v1214_v16 = vpop.xlane.xlu0 %1213 }
 0x7cc   :  { %v1208_v18 = vpop.xlane.xlu0 %1207 }
 0x7d0   :  { %v1217_v37 = vpop.xlane.xlu1 %1216 }
 0x7d1   :  { %12509 = vrcp.f32 %v1217_v37 }
 0x7d2   :  { %12511 = vrcp.f32 %v1208_v18 }
 0x7d3   :  { %12513 = vrcp.f32 %v1214_v16 }
 0x7d4   :  { %v1211_v61 = vpop.xlane.xlu1 %1210  ;;  %v1226_v3 = vpop.xlane.xlu0 %1225 }
 0x7d5   :  { %12515 = vrcp.f32 %v1211_v61 }
 0x7d8   :  { %v1220_v15 = vpop.xlane.xlu0 %1219  ;;  %v1354_v17 = vpop.permute.xlu1 %1353 }
 0x7db   :  { %v12510_v38 = vpop.eup %12509 }
 0x7dc   :  { %v12512_v39 = vpop.eup %12511  ;;  %v1241_v34 = vmul.f32 %v12510_v38, %v12498_v20  ;;  %v1356_v2 = vpop.permute.xlu1 %1355 }
 0x7dd   :  { %v12514_v40 = vpop.eup %12513  ;;  %v1238_v50 = vmul.f32 %v12512_v39, %v14193_v59  ;;  %v1375_v59 = vsel %vm786_vm2, %v1354_v17, 0  ;;  %v1378_v38 = vsel %vm786_vm2, %v1356_v2, 0 }
 0x7de   :  { %v1240_v5 = vmul.f32 %v12514_v40, %v14189_v21 }
 0x7df   :  { %v12516_v31 = vpop.eup %12515 }
 0x7e0   :  { %v1239_v62 = vmul.f32 %v12516_v31, %v12500_v43  ;;  %v1247_v0 = vpack.c.bf16 %v1241_v34, %v1240_v5 }
 0x7e2   :  { %v1246_v8 = vpack.c.bf16 %v1239_v62, %v1238_v50 }
 0x7e4   :  { %11060 = vmatprep.mubr.msk.bf16.mxu1 %vm379_vm0, %v1246_v8 }
 0x7e5   :  { %11061 = vmatmul.mubr.msk.bf16.vlgmr.msra.gmra.mrb[24].mxu1 %vm379_vm0, %v1247_v0 }
 0x804   :  { %v1229_v19 = vpop.xlane.xlu0 %1228 }
 0x805   :  { %12517 = vrcp.f32 %v1229_v19 }
 0x806   :  { %12519 = vrcp.f32 %v1220_v15 }
 0x807   :  { %12521 = vrcp.f32 %v1226_v3 }
 0x808   :  { %v1352_v63 = vpop.permute.xlu0 %1351 }
 0x809   :  { %12026 = vmatprep.subr.msk.bf16.mxu1 %vm786_vm2, %v1352_v63  ;;  %v1372_v20 = vsel %vm786_vm2, %v1352_v63, 0 }
 0x80a   :  { %11069 = vmatpush3.bf16.xpose.msra.mxu1 %v1372_v20 }
 0x80b   :  { %12027 = vmatprep.subr.msk.bf16.mxu1 %vm786_vm2, %v1354_v17 }
 0x80c   :  { %v1344_v5 = vpop.permute.xlu0 %1343 }
 0x80d   :  { %v1223_v21 = vpop.xlane.xlu1 %1222 }
 0x80e   :  { %12523 = vrcp.f32 %v1223_v21 }
 0x80f   :  { %v12518_v43 = vpop.eup %12517 }
 0x810   :  { %v12520_v16 = vpop.eup %12519  ;;  %v1245_v61 = vmul.f32 %v12518_v43, %v12506_v28 }
 0x811   :  { %v12522_v18 = vpop.eup %12521  ;;  %v1242_v39 = vmul.f32 %v12520_v16, %v14203_v57  ;;  %v1358_v31 = vpop.permute.xlu1 %1357 }
 0x812   :  { %11071 = vmatpush3.bf16.xpose.msra.mxu1 %v1375_v59  ;;  %v1244_v34 = vmul.f32 %v12522_v18, %v14198_v44  ;;  %v1381_v28 = vsel %vm786_vm2, %v1358_v31, 0 }
 0x813   :  { %12028 = vmatprep.subr.msk.bf16.mxu1 %vm786_vm2, %v1356_v2 }
 0x814   :  { %v1249_v62 = vpack.c.bf16 %v1245_v61, %v1244_v34 }
 0x815   :  { %v1346_v57 = vpop.permute.xlu1 %1345 }
 0x818   :  { %v12524_v37 = vpop.eup %12523 }
 0x819   :  { %v1243_v40 = vmul.f32 %v12524_v37, %v12508_v35  ;;  %v1348_v35 = vpop.permute.xlu0 %1347  ;;  %v1350_v44 = vpop.permute.xlu1 %1349 }
 0x81a   :  { %11073 = vmatpush3.bf16.xpose.msra.mxu1 %v1378_v38 }
 0x81b   :  { %12029 = vmatprep.subr.msk.bf16.mxu1 %vm786_vm2, %v1358_v31  ;;  %v1248_v50 = vpack.c.bf16 %v1243_v40, %v1242_v39 }
 0x81d   :  { %11064 = vmatprep.mubr.msk.bf16.mxu1 %vm379_vm0, %v1248_v50 }
 0x81e   :  { %11065 = vmatmul.mubr.msk.bf16.gmra.mrb[28].mxu1 %vm379_vm0, %v1249_v62 }
 0x81f   :  { %11076 = vmatprep.mubr.msk.bf16.mxu1 %vm786_vm2, %v1344_v5 }
 0x822   :  { %11075 = vmatpush3.bf16.xpose.msra.mxu1 %v1381_v28 }
 0x829   :  { %11077 = vmatmul.mubr.msk.bf16.vlgmr.msra.gmra.mrb[32].mxu1 %vm786_vm2, %v1346_v57 }
 0x82a   :  { %11080 = vmatprep.mubr.msk.bf16.mxu1 %vm786_vm2, %v1348_v35 }
 0x831   :  { %11081 = vmatmul.mubr.msk.bf16.gmra.mrb[36].mxu1 %vm786_vm2, %v1350_v44 }
 0x8b8   :  { %v14247_v8 = vpop.f32.mrb[24].mxu1 }
 0x8b9   :  { %v14249_v0 = vpop.f32.mrb[25].mxu1 }
 0x8ba   :  { %v14251_v3 = vpop.f32.mrb[26].mxu1 }
 0x8bb   :  { %v12149_v15 = vpack.i.bf16 %v14251_v3, %v14247_v8  ;;  %v14255_v17 = vpop.f32.mrb[27].mxu1 }
 0x8bc   :  { %v12144_v19 = vpack.i.bf16 %v14255_v17, %v14249_v0 }
 0x8f1   :  { %v14259_v63 = vpop.f32.mrb[28].mxu1 }
 0x8f2   :  { %v14261_v2 = vpop.f32.mrb[29].mxu1 }
 0x8f3   :  { %v14263_v20 = vpop.f32.mrb[30].mxu1 }
 0x8f4   :  { %v14267_v59 = vpop.f32.mrb[31].mxu1 }
 0x8fc   :  { %v11078_v16 = vpop.f32.mrb[32].mxu1 }
 0x8fd   :  { %v1426_v18 = vadd.f32 %v11078_v16, %v14052_v46  ;;  %v1417_v37 = vpop.f32.mrb[33].mxu1 }
 0x8fe   :  { %v11079_v61 = vpop.f32.mrb[34].mxu1  ;;  %v1418_v38 = vadd.f32 %v1417_v37, %v14055_v47 }
 0x8ff   :  { %v1420_v39 = vpop.f32.mrb[35].mxu1  ;;  %v1454_v40 = vsel %vm379_vm0, %v1426_v18, -inf  ;;  %v1429_v50 = vadd.f32 %v11079_v61, %v14058_v49 }
 0x900   :  { %v1421_v31 = vadd.f32 %v1420_v39, %v14062_v52  ;;  %1455 = vmax.xlane.f32.xlu0 %v1454_v40  ;;  %v1448_v62 = vsel %vm379_vm0, %v1418_v38, -inf }
 0x901   :  { %v1457_v35 = vsel %vm379_vm0, %v1429_v50, -inf }
 0x902   :  { %v1451_v34 = vsel %vm379_vm0, %v1421_v31, -inf }
 0x903   :  { %1452 = vmax.xlane.f32.xlu1 %v1451_v34 }
 0x904   :  { %1449 = vmax.xlane.f32.xlu0 %v1448_v62  ;;  %v11082_v5 = vpop.f32.mrb[36].mxu1 }
 0x905   :  { %v1433_v46 = vpop.f32.mrb[37].mxu1  ;;  %v1442_v57 = vadd.f32 %v11082_v5, %v14075_v4 }
 0x906   :  { %v11083_v28 = vpop.f32.mrb[38].mxu1  ;;  %v1434_v52 = vadd.f32 %v1433_v46, %v14071_v1 }
 0x907   :  { %v1436_v47 = vpop.f32.mrb[39].mxu1  ;;  %v1466_v44 = vsel %vm379_vm0, %v1442_v57, -inf  ;;  %v14290_v4 = vadd.f32 %v11083_v28, %v14082_v13 }
 0x908   :  { %1458 = vmax.xlane.f32.xlu0 %v1457_v35  ;;  %v1460_v49 = vsel %vm379_vm0, %v1434_v52, -inf  ;;  %v14293_v1 = vadd.f32 %v1436_v47, %v14078_v6 }
 0x909   :  { %v1469_v16 = vsel %vm379_vm0, %v14290_v4, -inf }
 0x90a   :  { %v1463_v37 = vsel %vm379_vm0, %v14293_v1, -inf }
 0x90c   :  { %1467 = vmax.xlane.f32.xlu0 %v1466_v44 }
 0x910   :  { %1461 = vmax.xlane.f32.xlu0 %v1460_v49 }
 0x914   :  { %1542 = vrot.lane.b32.xlu1 %v13997_v54, %s13595_s8 }
 0x918   :  { %1544 = vrot.lane.b32.xlu1 %v14015_v12, %s13595_s8 }
 0x926   :  { %1540 = vrot.lane.b32.xlu0 %v14001_v56, %s13595_s8 }
 0x93c   :  { %1470 = vmax.xlane.f32.xlu1 %v1469_v16 }
 0x940   :  { %1464 = vmax.xlane.f32.xlu1 %v1463_v37 }
 0x951   :  { %1546 = vrot.lane.b32.xlu1 %v14010_v10, %s13595_s8 }
 0x98d   :  { %v1456_v61 = vpop.xlane.xlu0 %1455 }
 0x98e   :  { %v1474_v39 = vsub.f32 %v1426_v18, %v1456_v61 }
 0x990   :  { %v1484_v40 = vmul.f32 1.442695, %v1474_v39  ;;  %v1453_v34 = vpop.xlane.xlu1 %1452 }
 0x991   :  { %v1450_v13 = vpop.xlane.xlu0 %1449  ;;  %v1473_v6 = vsub.f32 %v1421_v31, %v1453_v34 }
 0x992   :  { %12525 = vpow2.f32 %v1484_v40  ;;  %v1472_v62 = vsub.f32 %v1418_v38, %v1450_v13 }
 0x993   :  { %v1482_v47 = vmul.f32 1.442695, %v1473_v6 }
 0x994   :  { %v1480_v5 = vmul.f32 1.442695, %v1472_v62 }
 0x995   :  { %v1459_v46 = vpop.xlane.xlu0 %1458 }
 0x996   :  { %12527 = vpow2.f32 %v1480_v5  ;;  %v1475_v28 = vsub.f32 %v1429_v50, %v1459_v46  ;;  %v1543_v50 = vpop.permute.xlu1 %1542 }
 0x998   :  { %v1486_v35 = vmul.f32 1.442695, %v1475_v28 }
 0x999   :  { %v1468_v44 = vpop.xlane.xlu0 %1467 }
 0x99a   :  { %12529 = vpow2.f32 %v1486_v35  ;;  %v1478_v49 = vsub.f32 %v1442_v57, %v1468_v44 }
 0x99b   :  { %12531 = vpow2.f32 %v1482_v47 }
 0x99c   :  { %v14301_v16 = vpop.eup %12525  ;;  %v1492_v37 = vmul.f32 1.442695, %v1478_v49 }
 0x99d   :  { %v1462_v18 = vpop.xlane.xlu0 %1461  ;;  %v1502_v61 = vsel %vm379_vm0, %v14301_v16, 0.0 }
 0x99e   :  { %12533 = vpow2.f32 %v1492_v37  ;;  %v1476_v38 = vsub.f32 %v1434_v52, %v1462_v18  ;;  %1503 = vadd.xlane.f32.xlu0 %v1502_v61  ;;  %v1545_v52 = vpop.permute.xlu1 %1544 }
 0x9a0   :  { %v14305_v31 = vpop.eup %12527  ;;  %v1488_v39 = vmul.f32 1.442695, %v1476_v38 }
 0x9a1   :  { %v1541_v40 = vpop.permute.xlu0 %1540  ;;  %v1496_v34 = vsel %vm379_vm0, %v14305_v31, 0.0 }
 0x9a2   :  { %12535 = vpow2.f32 %v1488_v39  ;;  %1497 = vadd.xlane.f32.xlu0 %v1496_v34  ;;  %11084 = vmatprep.subr.bf16.mxu0 %v1541_v40 }
 0x9a3   :  { %11085 = vmatpush3.bf16.msra.mxu0 %v1541_v40 }
 0x9a4   :  { %v12530_v57 = vpop.eup %12529  ;;  %11086 = vmatprep.subr.bf16.mxu0 %v1543_v50 }
 0x9a5   :  { %v1505_v13 = vsel %vm379_vm0, %v12530_v57, 0.0  ;;  %v12532_v62 = vpop.eup %12531 }
 0x9a6   :  { %1506 = vadd.xlane.f32.xlu1 %v1505_v13  ;;  %v1499_v5 = vsel %vm379_vm0, %v12532_v62, 0.0 }
 0x9a7   :  { %11087 = vmatpush3.bf16.msra.mxu0 %v1543_v50 }
 0x9a8   :  { %v14310_v6 = vpop.eup %12533  ;;  %11088 = vmatprep.subr.bf16.mxu0 %v1545_v52 }
 0x9a9   :  { %v1514_v46 = vsel %vm379_vm0, %v14310_v6, 0.0 }
 0x9aa   :  { %1500 = vadd.xlane.f32.xlu1 %v1499_v5  ;;  %1515 = vadd.xlane.f32.xlu0 %v1514_v46 }
 0x9ab   :  { %11089 = vmatpush3.bf16.msra.mxu0 %v1545_v52 }
 0x9ac   :  { %v14315_v28 = vpop.eup %12535 }
 0x9ad   :  { %v1508_v47 = vsel %vm379_vm0, %v14315_v28, 0.0 }
 0x9ae   :  { %1509 = vadd.xlane.f32.xlu0 %v1508_v47 }
 0x9bb   :  { %1639 = vrot.lane.b32.xlu1 %v14020_v22, %s13596_s7 }
 0x9bf   :  { %1641 = vrot.lane.b32.xlu1 %v14033_v42, %s13596_s7 }
 0x9c9   :  { %v1471_v35 = vpop.xlane.xlu1 %1470 }
 0x9ca   :  { %v1479_v44 = vsub.f32 %v14290_v4, %v1471_v35 }
 0x9cc   :  { %v1494_v49 = vmul.f32 1.442695, %v1479_v44 }
 0x9cd   :  { %v1465_v37 = vpop.xlane.xlu1 %1464 }
 0x9ce   :  { %12537 = vpow2.f32 %v1494_v49  ;;  %v1477_v18 = vsub.f32 %v14293_v1, %v1465_v37 }
 0x9d0   :  { %v1490_v61 = vmul.f32 1.442695, %v1477_v18 }
 0x9d1   :  { %v1547_v38 = vpop.permute.xlu1 %1546 }
 0x9d2   :  { %11090 = vmatprep.subr.bf16.mxu0 %v1547_v38  ;;  %12539 = vpow2.f32 %v1490_v61 }
 0x9d3   :  { %11091 = vmatpush3.bf16.msra.mxu0 %v1547_v38 }
 0x9d8   :  { %v12538_v39 = vpop.eup %12537 }
 0x9d9   :  { %v1517_v50 = vsel %vm379_vm0, %v12538_v39, 0.0 }
 0x9da   :  { %1518 = vadd.xlane.f32.xlu0 %v1517_v50 }
 0x9dc   :  { %v12540_v22 = vpop.eup %12539 }
 0x9dd   :  { %v1511_v42 = vsel %vm379_vm0, %v12540_v22, 0.0 }
 0x9e3   :  { %1512 = vadd.xlane.f32.xlu1 %v1511_v42 }
 0x9f0   :  { %1637 = vrot.lane.b32.xlu0 %v14023_v25, %s13596_s7 }
 0x9f4   :  { %1643 = vrot.lane.b32.xlu1 %v14031_v41, %s13596_s7  ;;  %1629 = vrot.lane.b32.xlu0 %v13999_v55, %s13596_s7 }
 0x9f8   :  { %1631 = vrot.lane.b32.xlu1 %v13995_v53, %s13596_s7  ;;  %1633 = vrot.lane.b32.xlu0 %v14013_v11, %s13596_s7 }
 0x9fc   :  { %1635 = vrot.lane.b32.xlu1 %v14008_v9, %s13596_s7 }
 0xa2b   :  { %v1504_v4 = vpop.xlane.xlu0 %1503 }
 0xa2f   :  { %v1498_v1 = vpop.xlane.xlu0 %1497 }
 0xa33   :  { %v1507_v40 = vpop.xlane.xlu1 %1506 }
 0xa34   :  { %12541 = vrcp.f32 %v1507_v40 }
 0xa35   :  { %12543 = vrcp.f32 %v1498_v1 }
 0xa36   :  { %12545 = vrcp.f32 %v1504_v4 }
 0xa37   :  { %v1501_v25 = vpop.xlane.xlu1 %1500  ;;  %v1516_v47 = vpop.xlane.xlu0 %1515 }
 0xa38   :  { %12547 = vrcp.f32 %v1501_v25 }
 0xa3b   :  { %v1510_v35 = vpop.xlane.xlu0 %1509  ;;  %v1640_v44 = vpop.permute.xlu1 %1639 }
 0xa3e   :  { %v12542_v41 = vpop.eup %12541 }
 0xa3f   :  { %v12544_v34 = vpop.eup %12543  ;;  %v1531_v52 = vmul.f32 %v12542_v41, %v12530_v57  ;;  %v1642_v18 = vpop.permute.xlu1 %1641 }
 0xa40   :  { %v12546_v55 = vpop.eup %12545  ;;  %v1528_v53 = vmul.f32 %v12544_v34, %v14305_v31  ;;  %v1661_v31 = vsel %vm786_vm2, %v1640_v44, 0  ;;  %v1664_v4 = vsel %vm786_vm2, %v1642_v18, 0 }
 0xa41   :  { %v1530_v11 = vmul.f32 %v12546_v55, %v14301_v16 }
 0xa42   :  { %v12548_v13 = vpop.eup %12547 }
 0xa43   :  { %v1529_v5 = vmul.f32 %v12548_v13, %v12532_v62  ;;  %v1537_v9 = vpack.c.bf16 %v1531_v52, %v1530_v11 }
 0xa45   :  { %v1536_v46 = vpack.c.bf16 %v1529_v5, %v1528_v53 }
 0xa47   :  { %11092 = vmatprep.mubr.msk.bf16.mxu0 %vm379_vm0, %v1536_v46 }
 0xa48   :  { %11093 = vmatmul.mubr.msk.bf16.vlgmr.msra.gmra.mrb[32].mxu0 %vm379_vm0, %v1537_v9 }
 0xa67   :  { %v1519_v49 = vpop.xlane.xlu0 %1518 }
 0xa68   :  { %12549 = vrcp.f32 %v1519_v49 }
 0xa69   :  { %12551 = vrcp.f32 %v1510_v35 }
 0xa6a   :  { %12553 = vrcp.f32 %v1516_v47 }
 0xa6b   :  { %v1638_v37 = vpop.permute.xlu0 %1637 }
 0xa6c   :  { %12030 = vmatprep.subr.msk.bf16.mxu0 %vm786_vm2, %v1638_v37  ;;  %v1658_v57 = vsel %vm786_vm2, %v1638_v37, 0 }
 0xa6d   :  { %11101 = vmatpush3.bf16.xpose.msra.mxu0 %v1658_v57 }
 0xa6e   :  { %12031 = vmatprep.subr.msk.bf16.mxu0 %vm786_vm2, %v1640_v44 }
 0xa6f   :  { %v1630_v13 = vpop.permute.xlu0 %1629 }
 0xa70   :  { %v1513_v16 = vpop.xlane.xlu1 %1512 }
 0xa71   :  { %12555 = vrcp.f32 %v1513_v16 }
 0xa72   :  { %v12550_v62 = vpop.eup %12549 }
 0xa73   :  { %v12552_v61 = vpop.eup %12551  ;;  %v1535_v42 = vmul.f32 %v12550_v62, %v12538_v39 }
 0xa74   :  { %v12554_v38 = vpop.eup %12553  ;;  %v1532_v1 = vmul.f32 %v12552_v61, %v14315_v28  ;;  %v1644_v25 = vpop.permute.xlu1 %1643 }
 0xa75   :  { %11103 = vmatpush3.bf16.xpose.msra.mxu0 %v1661_v31  ;;  %v1534_v41 = vmul.f32 %v12554_v38, %v14310_v6  ;;  %v1667_v39 = vsel %vm786_vm2, %v1644_v25, 0  ;;  %v13101_v31 = vld [vmem:[%s16924_s15] sm:$0xff] }
 0xa76   :  { %12032 = vmatprep.subr.msk.bf16.mxu0 %vm786_vm2, %v1642_v18 }
 0xa77   :  { %v1539_v55 = vpack.c.bf16 %v1535_v42, %v1534_v41  ;;  %v13104_v41 = vld [vmem:[%s16924_s15 + $0x18] sm:$0xff] }
 0xa78   :  { %v1632_v28 = vpop.permute.xlu1 %1631 }
 0xa7b   :  { %v12556_v50 = vpop.eup %12555 }
 0xa7c   :  { %v1533_v40 = vmul.f32 %v12556_v50, %v12540_v22  ;;  %v1634_v22 = vpop.permute.xlu0 %1633  ;;  %v1636_v6 = vpop.permute.xlu1 %1635  ;;  %v13102_v50 = vld [vmem:[%s16924_s15 + $0x10] sm:$0xff] }
 0xa7d   :  { %11105 = vmatpush3.bf16.xpose.msra.mxu0 %v1664_v4  ;;  %v13103_v4 = vld [vmem:[%s16924_s15 + $0x8] sm:$0xff] }
 0xa7e   :  { %12033 = vmatprep.subr.msk.bf16.mxu0 %vm786_vm2, %v1644_v25  ;;  %v1538_v34 = vpack.c.bf16 %v1533_v40, %v1532_v1 }
 0xa80   :  { %11096 = vmatprep.mubr.msk.bf16.mxu0 %vm379_vm0, %v1538_v34 }
 0xa81   :  { %11097 = vmatmul.mubr.msk.bf16.gmra.mrb[36].mxu0 %vm379_vm0, %v1539_v55 }
 0xa82   :  { %11108 = vmatprep.mubr.msk.bf16.mxu0 %vm786_vm2, %v1630_v13 }
 0xa85   :  { %11107 = vmatpush3.bf16.xpose.msra.mxu0 %v1667_v39 }
 0xa8c   :  { %11109 = vmatmul.mubr.msk.bf16.vlgmr.msra.gmra.mrb[40].mxu0 %vm786_vm2, %v1632_v28 }
 0xa8d   :  { %11112 = vmatprep.mubr.msk.bf16.mxu0 %vm786_vm2, %v1634_v22 }
 0xa94   :  { %11113 = vmatmul.mubr.msk.bf16.gmra.mrb[44].mxu0 %vm786_vm2, %v1636_v6  ;;  %v13105_v6 = vld [vmem:[%s16924_s15 + $0x20] sm:$0xff] }
 0xb1b   :  { %v14359_v52 = vpop.f32.mrb[32].mxu0 }
 0xb1c   :  { %v14361_v53 = vpop.f32.mrb[33].mxu0 }
 0xb1d   :  { %v14363_v5 = vpop.f32.mrb[34].mxu0 }
 0xb1e   :  { %v12159_v11 = vpack.i.bf16 %v14363_v5, %v14359_v52  ;;  %v14367_v46 = vpop.f32.mrb[35].mxu0 }
 0xb1f   :  { %v12154_v9 = vpack.i.bf16 %v14367_v46, %v14361_v53 }
 0xb54   :  { %v14371_v47 = vpop.f32.mrb[36].mxu0 }
 0xb55   :  { %v14373_v35 = vpop.f32.mrb[37].mxu0 }
 0xb56   :  { %v14375_v44 = vpop.f32.mrb[38].mxu0 }
 0xb57   :  { %v14379_v37 = vpop.f32.mrb[39].mxu0 }
 0xb5f   :  { %v11110_v57 = vpop.f32.mrb[40].mxu0 }
 0xb60   :  { %v1703_v16 = vpop.f32.mrb[41].mxu0  ;;  %v1712_v42 = vadd.f32 %v13102_v50, %v11110_v57  ;;  %v13107_v50 = vld [vmem:[%s16924_s15 + $0x38] sm:$0xff] }
 0xb61   :  { %v1704_v62 = vadd.f32 %v13101_v31, %v1703_v16  ;;  %v11111_v61 = vpop.f32.mrb[42].mxu0  ;;  %v13106_v16 = vld [vmem:[%s16924_s15 + $0x28] sm:$0xff] }
 0xb62   :  { %v1706_v38 = vpop.f32.mrb[43].mxu0  ;;  %v1715_v34 = vadd.f32 %v13104_v41, %v11111_v61  ;;  %v1740_v13 = vsel %vm379_vm0, %v1712_v42, -inf  ;;  %v13108_v61 = vld [vmem:[%s16924_s15 + $0x30] sm:$0xff] }
 0xb63   :  { %v1707_v1 = vadd.f32 %v13103_v4, %v1706_v38  ;;  %v1734_v40 = vsel %vm379_vm0, %v1704_v62, -inf }
 0xb64   :  { %1735 = vmax.xlane.f32.xlu0 %v1734_v40  ;;  %v1743_v38 = vsel %vm379_vm0, %v1715_v34, -inf }
 0xb65   :  { %v1737_v25 = vsel %vm379_vm0, %v1707_v1, -inf }
 0xb66   :  { %1738 = vmax.xlane.f32.xlu1 %v1737_v25 }
 0xb67   :  { %v11114_v55 = vpop.f32.mrb[44].mxu0 }
 0xb68   :  { %1741 = vmax.xlane.f32.xlu0 %v1740_v13  ;;  %v1719_v39 = vpop.f32.mrb[45].mxu0  ;;  %v1728_v25 = vadd.f32 %v13108_v61, %v11114_v55 }
 0xb69   :  { %v11115_v28 = vpop.f32.mrb[46].mxu0  ;;  %v1720_v57 = vadd.f32 %v13105_v6, %v1719_v39 }
 0xb6a   :  { %v1722_v22 = vpop.f32.mrb[47].mxu0  ;;  %v1731_v4 = vadd.f32 %v13107_v50, %v11115_v28  ;;  %v1752_v39 = vsel %vm379_vm0, %v1728_v25, -inf }
 0xb6b   :  { %v1723_v31 = vadd.f32 %v13106_v16, %v1722_v22  ;;  %v1746_v41 = vsel %vm379_vm0, %v1720_v57, -inf }
 0xb6c   :  { %1744 = vmax.xlane.f32.xlu0 %v1743_v38  ;;  %v1755_v13 = vsel %vm379_vm0, %v1731_v4, -inf }
 0xb6d   :  { %v1749_v40 = vsel %vm379_vm0, %v1723_v31, -inf }
 0xb6e   :  { %1750 = vmax.xlane.f32.xlu1 %v1749_v40 }
 0xb70   :  { %1747 = vmax.xlane.f32.xlu0 %v1746_v41 }
 0xb72   :  { %1756 = vmax.xlane.f32.xlu1 %v1755_v13 }
 0xb74   :  { %1753 = vmax.xlane.f32.xlu0 %v1752_v39 }
 0xb8a   :  { %1826 = vrot.lane.b32.xlu0 %v14001_v56, %s13596_s7 }
 0xbf1   :  { %v1736_v22 = vpop.xlane.xlu0 %1735 }
 0xbf2   :  { %v1758_v6 = vsub.f32 %v1704_v62, %v1736_v22 }
 0xbf3   :  { %v1739_v28 = vpop.xlane.xlu1 %1738 }
 0xbf4   :  { %v1766_v50 = vmul.f32 1.442695, %v1758_v6  ;;  %v1759_v40 = vsub.f32 %v1707_v1, %v1739_v28 }
 0xbf5   :  { %v1742_v16 = vpop.xlane.xlu0 %1741 }
 0xbf6   :  { %v1760_v38 = vsub.f32 %v1712_v42, %v1742_v16  ;;  %v1768_v13 = vmul.f32 1.442695, %v1759_v40 }
 0xbf8   :  { %v1770_v55 = vmul.f32 1.442695, %v1760_v38 }
 0xbf9   :  { %v1745_v61 = vpop.xlane.xlu0 %1744 }
 0xbfa   :  { %12557 = vpow2.f32 %v1770_v55  ;;  %v1761_v41 = vsub.f32 %v1715_v34, %v1745_v61 }
 0xbfb   :  { %v1751_v18 = vpop.xlane.xlu1 %1750  ;;  %12559 = vpow2.f32 %v1766_v50 }
 0xbfc   :  { %v1772_v49 = vmul.f32 1.442695, %v1761_v41 }
 0xbfd   :  { %v1748_v43 = vpop.xlane.xlu0 %1747 }
 0xbfe   :  { %12561 = vpow2.f32 %v1772_v49  ;;  %v1762_v39 = vsub.f32 %v1720_v57, %v1748_v43  ;;  %v1763_v43 = vsub.f32 %v1723_v31, %v1751_v18 }
 0xbff   :  { %12563 = vpow2.f32 %v1768_v13  ;;  %v1757_v56 = vpop.xlane.xlu1 %1756 }
 0xc00   :  { %v1774_v42 = vmul.f32 1.442695, %v1762_v39  ;;  %v1765_v6 = vsub.f32 %v1731_v4, %v1757_v56  ;;  %v1776_v38 = vmul.f32 1.442695, %v1763_v43 }
 0xc01   :  { %v1754_v21 = vpop.xlane.xlu0 %1753 }
 0xc02   :  { %v1764_v62 = vsub.f32 %v1728_v25, %v1754_v21  ;;  %v1780_v57 = vmul.f32 1.442695, %v1765_v6 }
 0xc04   :  { %v14401_v22 = vpop.eup %12557  ;;  %v1778_v1 = vmul.f32 1.442695, %v1764_v62 }
 0xc05   :  { %v1827_v28 = vpop.permute.xlu0 %1826  ;;  %v1788_v34 = vsel %vm379_vm0, %v14401_v22, 0.0  ;;  %v12560_v16 = vpop.eup %12559 }
 0xc06   :  { %12565 = vpow2.f32 %v1778_v1  ;;  %1789 = vadd.xlane.f32.xlu0 %v1788_v34  ;;  %11116 = vmatprep.subr.bf16.mxu1 %v1827_v28  ;;  %v1782_v21 = vsel %vm379_vm0, %v12560_v16, 0.0 }
 0xc07   :  { %11117 = vmatpush3.bf16.msra.mxu1 %v1827_v28  ;;  %12567 = vpow2.f32 %v1774_v42 }
 0xc08   :  { %v14405_v49 = vpop.eup %12561  ;;  %12569 = vpow2.f32 %v1780_v57 }
 0xc09   :  { %v1791_v4 = vsel %vm379_vm0, %v14405_v49, 0.0  ;;  %v12564_v25 = vpop.eup %12563  ;;  %12571 = vpow2.f32 %v1776_v38 }
 0xc0a   :  { %1783 = vadd.xlane.f32.xlu0 %v1782_v21  ;;  %1792 = vadd.xlane.f32.xlu1 %v1791_v4  ;;  %v1785_v50 = vsel %vm379_vm0, %v12564_v25, 0.0 }
 0xc0e   :  { %1786 = vadd.xlane.f32.xlu1 %v1785_v50 }
 0xc10   :  { %v14411_v40 = vpop.eup %12565 }
 0xc11   :  { %v1800_v18 = vsel %vm379_vm0, %v14411_v40, 0.0  ;;  %v12568_v31 = vpop.eup %12567 }
 0xc12   :  { %1801 = vadd.xlane.f32.xlu1 %v1800_v18  ;;  %v1794_v55 = vsel %vm379_vm0, %v12568_v31, 0.0  ;;  %v12570_v61 = vpop.eup %12569  ;;  %v12402_v18 = vld [vmem:[%s16925_s25] sm:$0xff]  }
 0xc13   :  { %v1803_v41 = vsel %vm379_vm0, %v12570_v61, 0.0  ;;  %v12572_v13 = vpop.eup %12571 }
 0xc14   :  { %v1797_v39 = vsel %vm379_vm0, %v12572_v13, 0.0 }
 0xc16   :  { %1795 = vadd.xlane.f32.xlu1 %v1794_v55  ;;  %v12403_v55 = vld [vmem:[%s16925_s25 + $0x8] sm:$0xff]  }
 0xc1a   :  { %1804 = vadd.xlane.f32.xlu1 %v1803_v41 }
 0xc1e   :  { %1798 = vadd.xlane.f32.xlu1 %v1797_v39 }
 0xc20   :  { %1830 = vrot.lane.b32.xlu0 %v14015_v12, %s13596_s7 }
 0xc24   :  { %1832 = vrot.lane.b32.xlu0 %v14010_v10, %s13596_s7 }
 0xc28   :  { %12145 = vrot.lane.b32.xlu0 %v12144_v19, %s13597_s19 }
 0xc2c   :  { %12155 = vrot.lane.b32.xlu0 %v12154_v9, %s13577_s22 }
 0xc2f   :  { %1828 = vrot.lane.b32.xlu1 %v13997_v54, %s13596_s7 }
 0xc33   :  { %12150 = vrot.lane.b32.xlu1 %v12149_v15, %s13597_s19 }
 0xc37   :  { %12160 = vrot.lane.b32.xlu1 %v12159_v11, %s13577_s22 }
 0xc93   :  { %v1790_v10 = vpop.xlane.xlu0 %1789 }
 0xc97   :  { %v1793_v12 = vpop.xlane.xlu1 %1792  ;;  %v1784_v0 = vpop.xlane.xlu0 %1783 }
 0xc98   :  { %12573 = vrcp.f32 %v1784_v0  ;;  %v16927_v0 = vpack.i.bf16 %v14267_v59, %v14261_v2 }
 0xc9b   :  { %v1787_v17 = vpop.xlane.xlu1 %1786  ;;  %v1831_v15 = vpop.permute.xlu0 %1830 }
 0xc9c   :  { %12575 = vrcp.f32 %v1787_v17 }
 0xc9d   :  { %12577 = vrcp.f32 %v1793_v12 }
 0xc9e   :  { %12579 = vrcp.f32 %v1790_v10 }
 0xc9f   :  { %v1802_v19 = vpop.xlane.xlu1 %1801  ;;  %v1833_v6 = vpop.permute.xlu0 %1832 }
 0xca2   :  { %v12574_v46 = vpop.eup %12573 }
 0xca3   :  { %v1796_v53 = vpop.xlane.xlu1 %1795  ;;  %v1814_v56 = vmul.f32 %v12574_v46, %v12560_v16 }
 0xca4   :  { %12581 = vrcp.f32 %v1796_v53 }
 0xca6   :  { %v12576_v54 = vpop.eup %12575 }
 0xca7   :  { %v1805_v9 = vpop.xlane.xlu1 %1804  ;;  %v1815_v62 = vmul.f32 %v12576_v54, %v12564_v25  ;;  %v12578_v5 = vpop.eup %12577  ;;  %v16928_v54 = vpack.i.bf16 %v14375_v44, %v14371_v47 }
 0xca8   :  { %v12580_v11 = vpop.eup %12579  ;;  %v1817_v28 = vmul.f32 %v12578_v5, %v14405_v49 }
 0xca9   :  { %v1822_v8 = vpack.c.bf16 %v1815_v62, %v1814_v56  ;;  %v1816_v16 = vmul.f32 %v12580_v11, %v14401_v22 }
 0xcab   :  { %v1799_v3 = vpop.xlane.xlu1 %1798  ;;  %11124 = vmatprep.mubr.msk.bf16.mxu1 %vm379_vm0, %v1822_v8  ;;  %v1823_v57 = vpack.c.bf16 %v1817_v28, %v1816_v16 }
 0xcac   :  { %12583 = vrcp.f32 %v1799_v3 }
 0xcad   :  { %12585 = vrcp.f32 %v1805_v9 }
 0xcae   :  { %12587 = vrcp.f32 %v1802_v19  ;;  %v12582_v42 = vpop.eup %12581 }
 0xcaf   :  { %v1829_v52 = vpop.permute.xlu1 %1828  ;;  %v1818_v43 = vmul.f32 %v12582_v42, %v12568_v31 }
 0xcb0   :  { %11118 = vmatprep.subr.bf16.mxu1 %v1829_v52 }
 0xcb1   :  { %11119 = vmatpush3.bf16.msra.mxu1 %v1829_v52 }
 0xcb2   :  { %11120 = vmatprep.subr.bf16.mxu1 %v1831_v15 }
 0xcb3   :  { %v12151_v2 = vpop.permute.xlu1 %12150 }
 0xcb4   :  { %v12153_v8 = vunpack.i.h.bf16 %v12151_v2  ;;  %v12152_v3 = vunpack.i.l.bf16 %v12151_v2 }
 0xcb5   :  { %11121 = vmatpush3.bf16.msra.mxu1 %v1831_v15 }
 0xcb6   :  { %v12584_v1 = vpop.eup %12583  ;;  %11122 = vmatprep.subr.bf16.mxu1 %v1833_v6  ;;  %v2014_v11 = vsel %vm786_vm2, %v14147_v36, %v12153_v8  ;;  %v2013_v42 = vsel %vm786_vm2, %v14143_v14, %v12152_v3 }
 0xcb7   :  { %v1819_v34 = vmul.f32 %v12584_v1, %v12572_v13  ;;  %v12586_v21 = vpop.eup %12585  ;;  %v12161_v59 = vpop.permute.xlu1 %12160 }
 0xcb8   :  { %v12588_v25 = vpop.eup %12587  ;;  %v1821_v38 = vmul.f32 %v12586_v21, %v12570_v61  ;;  %v16926_v61 = vpack.i.bf16 %v14263_v20, %v14259_v63  ;;  %v16929_v63 = vpack.i.bf16 %v14379_v37, %v14373_v35  ;;  %v12146_v20 = vpop.permute.xlu0 %12145  ;;  %v12163_v15 = vunpack.i.h.bf16 %v12161_v59 }
 0xcb9   :  { %11123 = vmatpush3.bf16.msra.mxu1 %v1833_v6  ;;  %v1824_v4 = vpack.c.bf16 %v1819_v34, %v1818_v43  ;;  %v1820_v50 = vmul.f32 %v12588_v25, %v14411_v40  ;;  %v12148_v9 = vunpack.i.h.bf16 %v12146_v20  ;;  %v12147_v56 = vunpack.i.l.bf16 %v12146_v20 }
 0xcba   :  { %11132 = vmatprep.subr.bf16.mxu1 %v12402_v18  ;;  %v12162_v47 = vunpack.i.l.bf16 %v12161_v59  ;;  %v2022_v16 = vsel %vm536_vm1, %v2014_v11, %v12163_v15  ;;  %v10116_v15 = vld [vmem:[#allocation14] ss:$0 sm:$0xff] }
 0xcbb   :  { %v1825_v49 = vpack.c.bf16 %v1821_v38, %v1820_v50  ;;  %v2012_v35 = vsel %vm786_vm2, %v14149_v45, %v12148_v9  ;;  %v2011_v37 = vsel %vm786_vm2, %v14145_v7, %v12147_v56 }
 0xcbc   :  { %11125 = vmatmul.mubr.msk.bf16.vlgmr.msra.gmra.mrb[40].mxu1 %vm379_vm0, %v1823_v57  ;;  %v12156_v62 = vpop.permute.xlu0 %12155  ;;  %v2021_v34 = vsel %vm536_vm1, %v2013_v42, %v12162_v47 }
 0xcbd   :  { %11128 = vmatprep.mubr.msk.bf16.mxu1 %vm379_vm0, %v1824_v4  ;;  %11133 = vmatpush3.bf16.msra.mxu1 %v12402_v18  ;;  %v12158_v44 = vunpack.i.h.bf16 %v12156_v62  ;;  %v12157_v52 = vunpack.i.l.bf16 %v12156_v62 }
 0xcbe   :  { %11134 = vmatprep.subr.bf16.mxu1 %v12403_v55 }
 0xcbf   :  { %v2019_v57 = vsel %vm536_vm1, %v2011_v37, %v12157_v52  ;;  %v2020_v7 = vsel %vm536_vm1, %v2012_v35, %v12158_v44 }
 0xcc1   :  { %11135 = vmatpush3.bf16.msra.mxu1 %v12403_v55 }
 0xcc4   :  { %11129 = vmatmul.mubr.msk.bf16.gmra.mrb[44].mxu1 %vm379_vm0, %v1825_v49 }
 0xd8f   :  { %v11126_v22 = vpop.f32.mrb[40].mxu1 }
 0xd90   :  { %v1884_v31 = vpop.f32.mrb[41].mxu1 }
 0xd91   :  { %v11127_v41 = vpop.f32.mrb[42].mxu1 }
 0xd92   :  { %v12169_v13 = vpack.i.bf16 %v11127_v41, %v11126_v22  ;;  %v1887_v39 = vpop.f32.mrb[43].mxu1 }
 0xd93   :  { %v12164_v10 = vpack.i.bf16 %v1887_v39, %v1884_v31 }
 0xd94   :  { %12170 = vrot.lane.b32.xlu1 %v12169_v13, %s13598_s24 }
 0xd95   :  { %12165 = vrot.lane.b32.xlu0 %v12164_v10, %s13598_s24 }
 0xd97   :  { %v11130_v40 = vpop.f32.mrb[44].mxu1 }
 0xd98   :  { %12180 = vrot.lane.b32.xlu1 %v16926_v61, %s13597_s19  ;;  %v1900_v12 = vpop.f32.mrb[45].mxu1 }
 0xd99   :  { %12175 = vrot.lane.b32.xlu0 %v16927_v0, %s13597_s19  ;;  %v11131_v17 = vpop.f32.mrb[46].mxu1 }
 0xd9a   :  { %v12199_v19 = vpack.i.bf16 %v11131_v17, %v11130_v40  ;;  %v1903_v53 = vpop.f32.mrb[47].mxu1 }
 0xd9b   :  { %v12194_v46 = vpack.i.bf16 %v1903_v53, %v1900_v12 }
 0xd9c   :  { %12190 = vrot.lane.b32.xlu1 %v16928_v54, %s13577_s22 }
 0xd9d   :  { %12185 = vrot.lane.b32.xlu0 %v16929_v63, %s13577_s22 }
 0xda0   :  { %12200 = vrot.lane.b32.xlu1 %v12199_v19, %s13598_s24 }
 0xda1   :  { %12195 = vrot.lane.b32.xlu0 %v12194_v46, %s13598_s24 }
 0xe06   :  { %v12171_v5 = vpop.permute.xlu1 %12170 }
 0xe07   :  { %v12173_v6 = vunpack.i.h.bf16 %v12171_v5  ;;  %v12172_v1 = vunpack.i.l.bf16 %v12171_v5  ;;  %v12166_v28 = vpop.permute.xlu0 %12165 }
 0xe08   :  { %v12168_v43 = vunpack.i.h.bf16 %v12166_v28  ;;  %v12167_v45 = vunpack.i.l.bf16 %v12166_v28 }
 0xe09   :  { %v2031_v21 = vsel %vm2027_vm3, %v2022_v16, %v12173_v6  ;;  %v2030_v36 = vsel %vm2027_vm3, %v2021_v34, %v12172_v1 }
 0xe0a   :  { %v2037_v4 = vpack.c.bf16 %v2031_v21, %v2030_v36  ;;  %v2028_v14 = vsel %vm2027_vm3, %v2019_v57, %v12167_v45  ;;  %v2029_v25 = vsel %vm2027_vm3, %v2020_v7, %v12168_v43  ;;  %v12181_v38 = vpop.permute.xlu1 %12180 }
 0xe0b   :  { %v12176_v50 = vpop.permute.xlu0 %12175  ;;  %v2036_v49 = vpack.c.bf16 %v2029_v25, %v2028_v14  ;;  %v12183_v18 = vunpack.i.h.bf16 %v12181_v38  ;;  %v12182_v55 = vunpack.i.l.bf16 %v12181_v38 }
 0xe0c   :  { %v12178_v31 = vunpack.i.h.bf16 %v12176_v50  ;;  %v12177_v41 = vunpack.i.l.bf16 %v12176_v50 }
 0xe0d   :  { %11136 = vmatprep.mubr.msk.bf16.mxu1 %vm2063_vm4, %v2036_v49  ;;  %v2018_v12 = vsel %vm786_vm2, %v14155_v58, %v12183_v18  ;;  %v2017_v0 = vsel %vm786_vm2, %v14151_v48, %v12182_v55 }
 0xe0e   :  { %v12191_v22 = vpop.permute.xlu1 %12190  ;;  %11137 = vmatmul.mubr.msk.bf16.vlgmr.msra.gmra.mrb[48].mxu1 %vm2063_vm4, %v2037_v4  ;;  %v2016_v19 = vsel %vm786_vm2, %v14157_v60, %v12178_v31  ;;  %v2015_v53 = vsel %vm786_vm2, %v14153_v51, %v12177_v41 }
 0xe0f   :  { %v12186_v13 = vpop.permute.xlu0 %12185  ;;  %v12193_v39 = vunpack.i.h.bf16 %v12191_v22  ;;  %v12192_v10 = vunpack.i.l.bf16 %v12191_v22 }
 0xe10   :  { %v12188_v40 = vunpack.i.h.bf16 %v12186_v13  ;;  %v12187_v61 = vunpack.i.l.bf16 %v12186_v13 }
 0xe11   :  { %v2025_v2 = vsel %vm536_vm1, %v2017_v0, %v12192_v10  ;;  %v2026_v20 = vsel %vm536_vm1, %v2018_v12, %v12193_v39 }
 0xe12   :  { %v12201_v17 = vpop.permute.xlu1 %12200  ;;  %v2023_v58 = vsel %vm536_vm1, %v2015_v53, %v12187_v61  ;;  %v2024_v48 = vsel %vm536_vm1, %v2016_v19, %v12188_v40 }
 0xe13   :  { %v12203_v46 = vunpack.i.h.bf16 %v12201_v17  ;;  %v12202_v54 = vunpack.i.l.bf16 %v12201_v17  ;;  %v12196_v63 = vpop.permute.xlu0 %12195 }
 0xe14   :  { %v12198_v59 = vunpack.i.h.bf16 %v12196_v63  ;;  %v12197_v9 = vunpack.i.l.bf16 %v12196_v63 }
 0xe15   :  { %v2035_v56 = vsel %vm2027_vm3, %v2026_v20, %v12203_v46  ;;  %v2034_v60 = vsel %vm2027_vm3, %v2025_v2, %v12202_v54 }
 0xe16   :  { %v2032_v62 = vsel %vm2027_vm3, %v2023_v58, %v12197_v9  ;;  %v2033_v51 = vsel %vm2027_vm3, %v2024_v48, %v12198_v59  ;;  %v2039_v8 = vpack.c.bf16 %v2035_v56, %v2034_v60 }
 0xe17   :  { %v2038_v3 = vpack.c.bf16 %v2033_v51, %v2032_v62 }
 0xe19   :  { %11140 = vmatprep.mubr.msk.bf16.mxu1 %vm2063_vm4, %v2038_v3 }
 0xe1a   :  { %11141 = vmatmul.mubr.msk.bf16.gmra.mrb[52].mxu1 %vm2063_vm4, %v2039_v8 }
 0xee1   :  { %v11138_v47 = vpop.f32.mrb[48].mxu1 }
 0xee2   :  { %v2119_v44 = vadd.f32 %v11138_v47, %v10116_v15  ;;  %v2110_v52 = vpop.f32.mrb[49].mxu1 }
 0xee3   :  { %v2111_v35 = vadd.f32 %v10116_v15, %v2110_v52  ;;  %v11139_v37 = vpop.f32.mrb[50].mxu1 }
 0xee4   :  { %v2143_v5 = vadd.f32 %v2119_v44, %v13969_v27  ;;  %v2122_v11 = vadd.f32 %v11139_v37, %v10116_v15  ;;  %v2113_v42 = vpop.f32.mrb[51].mxu1 }
 0xee5   :  { %v2141_v6 = vadd.f32 %v2111_v35, %v13961_v24  ;;  %v2114_v1 = vadd.f32 %v10116_v15, %v2113_v42 }
 0xee6   :  { %v2144_v28 = vadd.f32 %v13965_v26, %v2122_v11  ;;  %v2157_v45 = vsel %vm536_vm1, %v2143_v5, 0.0 }
 0xee7   :  { %v2142_v34 = vadd.f32 %v13959_v23, %v2114_v1  ;;  %v2151_v16 = vsel %vm536_vm1, %v2141_v6, 0.0  ;;  %v12405_v1 = vld [vmem:[%s16930_s10] sm:$0xff]  }
 0xee8   :  { %2152 = vadd.xlane.f32.xlu0 %v2151_v16  ;;  %v2160_v24 = vsel %vm536_vm1, %v2144_v28, 0.0  ;;  %11154 = vmatprep.subr.bf16.mxu1 %v12405_v1 }
 0xee9   :  { %v2154_v43 = vsel %vm536_vm1, %v2142_v34, 0.0  ;;  %11155 = vmatpush3.bf16.msra.mxu1 %v12405_v1 }
 0xeea   :  { %2155 = vadd.xlane.f32.xlu1 %v2154_v43 }
 0xeec   :  { %2158 = vadd.xlane.f32.xlu0 %v2157_v45 }
 0xeed   :  { %v11142_v57 = vpop.f32.mrb[52].mxu1 }
 0xeee   :  { %v2135_v27 = vadd.f32 %v11142_v57, %v10116_v15  ;;  %v2126_v7 = vpop.f32.mrb[53].mxu1 }
 0xeef   :  { %v2127_v21 = vadd.f32 %v10116_v15, %v2126_v7  ;;  %v11143_v36 = vpop.f32.mrb[54].mxu1 }
 0xef0   :  { %v2147_v26 = vadd.f32 %v2135_v27, %v13985_v33  ;;  %v2138_v4 = vadd.f32 %v11143_v36, %v10116_v15  ;;  %v2129_v23 = vpop.f32.mrb[55].mxu1  ;;  %2161 = vadd.xlane.f32.xlu0 %v2160_v24 }
 0xef1   :  { %v2145_v14 = vadd.f32 %v2127_v21, %v13977_v30  ;;  %v2130_v25 = vadd.f32 %v10116_v15, %v2129_v23 }
 0xef2   :  { %v2148_v38 = vadd.f32 %v13981_v32, %v2138_v4  ;;  %v2169_v55 = vsel %vm536_vm1, %v2147_v26, 0.0 }
 0xef3   :  { %v2146_v50 = vadd.f32 %v13973_v29, %v2130_v25  ;;  %v2163_v49 = vsel %vm536_vm1, %v2145_v14, 0.0 }
 0xef4   :  { %2164 = vadd.xlane.f32.xlu0 %v2163_v49  ;;  %v2172_v33 = vsel %vm536_vm1, %v2148_v38, 0.0 }
 0xef5   :  { %v2166_v18 = vsel %vm536_vm1, %v2146_v50, 0.0 }
 0xef6   :  { %2167 = vadd.xlane.f32.xlu1 %v2166_v18 }
 0xef8   :  { %2170 = vadd.xlane.f32.xlu0 %v2169_v55 }
 0xefa   :  { %2173 = vadd.xlane.f32.xlu1 %v2172_v33 }
 0xf75   :  { %v2153_v22 = vpop.xlane.xlu0 %2152 }
 0xf76   :  { %v2176_v31 = vmul.f32 0.0625, %v2153_v22 }
 0xf77   :  { %v2156_v30 = vpop.xlane.xlu1 %2155 }
 0xf78   :  { %v14521_v41 = vsub.f32 %v2141_v6, %v2176_v31  ;;  %v2177_v32 = vmul.f32 0.0625, %v2156_v30  ;;  %v12404_v6 = vld [vmem:[#allocation15] sm:$0xff]  }
 0xf79   :  { %v2159_v13 = vpop.xlane.xlu0 %2158  ;;  %11144 = vmatprep.subr.bf16.mxu0 %v12404_v6 }
 0xf7a   :  { %v14523_v29 = vsub.f32 %v2142_v34, %v2177_v32  ;;  %v2178_v39 = vmul.f32 0.0625, %v2159_v13  ;;  %v2192_v10 = vmul.f32 %v14521_v41, %v14521_v41  ;;  %11145 = vmatpush3.bf16.msra.mxu0 %v12404_v6 }
 0xf7c   :  { %v14527_v40 = vsub.f32 %v2143_v5, %v2178_v39  ;;  %v2200_v61 = vsel %vm536_vm1, %v2192_v10, 0.0  ;;  %v2193_v12 = vmul.f32 %v14523_v29, %v14523_v29 }
 0xf7d   :  { %2201 = vadd.xlane.f32.xlu0 %v2200_v61  ;;  %v2162_v0 = vpop.xlane.xlu0 %2161  ;;  %v10124_v61 = vld [vmem:[#allocation21] ss:$0 sm:$0xff] }
 0xf7e   :  { %v2179_v17 = vmul.f32 0.0625, %v2162_v0  ;;  %v2203_v19 = vsel %vm536_vm1, %v2193_v12, 0.0  ;;  %v2194_v53 = vmul.f32 %v14527_v40, %v14527_v40 }
 0xf7f   :  { %2204 = vadd.xlane.f32.xlu1 %v2203_v19 }
 0xf80   :  { %v14535_v46 = vsub.f32 %v2144_v28, %v2179_v17  ;;  %v2206_v54 = vsel %vm536_vm1, %v2194_v53, 0.0  ;;  %v12406_v28 = vld [vmem:[%s16930_s10 + $0x8] sm:$0xff]  }
 0xf81   :  { %2207 = vadd.xlane.f32.xlu0 %v2206_v54  ;;  %v2165_v63 = vpop.xlane.xlu0 %2164  ;;  %11156 = vmatprep.subr.bf16.mxu1 %v12406_v28 }
 0xf82   :  { %v2180_v2 = vmul.f32 0.0625, %v2165_v63  ;;  %v2195_v20 = vmul.f32 %v14535_v46, %v14535_v46  ;;  %11157 = vmatpush3.bf16.msra.mxu1 %v12406_v28  ;;  %v12407_v28 = vld [vmem:[%s16930_s10 + $0x10] sm:$0xff]  }
 0xf83   :  { %v2168_v59 = vpop.xlane.xlu1 %2167  ;;  %11158 = vmatprep.subr.bf16.mxu1 %v12407_v28 }
 0xf84   :  { %v14540_v9 = vsub.f32 %v2145_v14, %v2180_v2  ;;  %v2181_v58 = vmul.f32 0.0625, %v2168_v59  ;;  %v2209_v48 = vsel %vm536_vm1, %v2195_v20, 0.0 }
 0xf85   :  { %2210 = vadd.xlane.f32.xlu1 %v2209_v48  ;;  %v2171_v56 = vpop.xlane.xlu0 %2170 }
 0xf86   :  { %v14543_v60 = vsub.f32 %v2146_v50, %v2181_v58  ;;  %v2182_v62 = vmul.f32 0.0625, %v2171_v56  ;;  %v2196_v51 = vmul.f32 %v14540_v9, %v14540_v9  ;;  %v10123_v50 = vld [vmem:[#allocation20] ss:$0 sm:$0xff]  ;;  %11159 = vmatpush3.bf16.msra.mxu1 %v12407_v28 }
 0xf87   :  { %v2174_v8 = vpop.xlane.xlu1 %2173 }
 0xf88   :  { %v14547_v3 = vsub.f32 %v2147_v26, %v2182_v62  ;;  %v2183_v15 = vmul.f32 0.0625, %v2174_v8  ;;  %v2212_v47 = vsel %vm536_vm1, %v2196_v51, 0.0  ;;  %v2197_v44 = vmul.f32 %v14543_v60, %v14543_v60 }
 0xf89   :  { %2213 = vadd.xlane.f32.xlu0 %v2212_v47 }
 0xf8a   :  { %v14552_v52 = vsub.f32 %v2148_v38, %v2183_v15  ;;  %v2215_v35 = vsel %vm536_vm1, %v2197_v44, 0.0  ;;  %v2198_v37 = vmul.f32 %v14547_v3, %v14547_v3 }
 0xf8b   :  { %2216 = vadd.xlane.f32.xlu1 %v2215_v35 }
 0xf8c   :  { %v2218_v5 = vsel %vm536_vm1, %v2198_v37, 0.0  ;;  %v2199_v11 = vmul.f32 %v14552_v52, %v14552_v52 }
 0xf8d   :  { %2219 = vadd.xlane.f32.xlu0 %v2218_v5 }
 0xf8e   :  { %v2221_v42 = vsel %vm536_vm1, %v2199_v11, 0.0 }
 0xf8f   :  { %2222 = vadd.xlane.f32.xlu1 %v2221_v42 }
0x100a   :  { %v2202_v34 = vpop.xlane.xlu0 %2201 }
0x100b   :  { %v2224_v16 = vmul.f32 0.0625, %v2202_v34  ;;  %v10125_v34 = vld [vmem:[#allocation17] ss:$0 sm:$0xff] }
0x100c   :  { %v2205_v43 = vpop.xlane.xlu1 %2204 }
0x100d   :  { %v2232_v45 = vadd.f32 1e-05, %v2224_v16  ;;  %v2225_v57 = vmul.f32 0.0625, %v2205_v43 }
0x100e   :  { %v2208_v27 = vpop.xlane.xlu0 %2207 }
0x100f   :  { %12589 = vrsqrt.f32 %v2232_v45  ;;  %v2233_v7 = vadd.f32 1e-05, %v2225_v57  ;;  %v2226_v21 = vmul.f32 0.0625, %v2208_v27 }
0x1011   :  { %12591 = vrsqrt.f32 %v2233_v7  ;;  %v2234_v36 = vadd.f32 1e-05, %v2226_v21 }
0x1012   :  { %v2211_v24 = vpop.xlane.xlu1 %2210 }
0x1013   :  { %12593 = vrsqrt.f32 %v2234_v36  ;;  %v2227_v26 = vmul.f32 0.0625, %v2211_v24 }
0x1015   :  { %v2235_v4 = vadd.f32 1e-05, %v2227_v26 }
0x1016   :  { %v2214_v23 = vpop.xlane.xlu0 %2213 }
0x1017   :  { %12595 = vrsqrt.f32 %v2235_v4  ;;  %v2228_v14 = vmul.f32 0.0625, %v2214_v23 }
0x1018   :  { %v2217_v25 = vpop.xlane.xlu1 %2216 }
0x1019   :  { %v12590_v38 = vpop.eup %12589  ;;  %v2236_v49 = vadd.f32 1e-05, %v2228_v14  ;;  %v2229_v18 = vmul.f32 0.0625, %v2217_v25 }
0x101a   :  { %v2220_v55 = vpop.xlane.xlu0 %2219  ;;  %v2248_v33 = vmul.f32 %v12590_v38, %v14521_v41 }
0x101b   :  { %v12592_v22 = vpop.eup %12591  ;;  %12597 = vrsqrt.f32 %v2236_v49  ;;  %v2237_v31 = vadd.f32 1e-05, %v2229_v18  ;;  %v2230_v30 = vmul.f32 0.0625, %v2220_v55 }
0x101c   :  { %v2223_v32 = vpop.xlane.xlu1 %2222  ;;  %v2249_v13 = vmul.f32 %v12592_v22, %v14523_v29  ;;  %v2262_v39 = vmul.f32 %v10123_v50, %v2248_v33 }
0x101d   :  { %v12594_v10 = vpop.eup %12593  ;;  %12599 = vrsqrt.f32 %v2237_v31  ;;  %v2238_v12 = vadd.f32 1e-05, %v2230_v30  ;;  %v2231_v0 = vmul.f32 0.0625, %v2223_v32 }
0x101e   :  { %v2250_v17 = vmul.f32 %v12594_v10, %v14527_v40  ;;  %v2263_v19 = vmul.f32 %v10123_v50, %v2249_v13  ;;  %v14566_v54 = vadd.f32 %v10124_v61, %v2262_v39 }
0x101f   :  { %12601 = vrsqrt.f32 %v2238_v12  ;;  %v2239_v53 = vadd.f32 1e-05, %v2231_v0  ;;  %v10131_v12 = vld [vmem:[#allocation18] ss:$0 sm:$0xff] }
0x1020   :  { %v14568_v41 = vadd.f32 %v10124_v61, %v2263_v19  ;;  %v2264_v2 = vmul.f32 %v10123_v50, %v2250_v17 }
0x1021   :  { %v12596_v63 = vpop.eup %12595  ;;  %12603 = vrsqrt.f32 %v2239_v53 }
0x1022   :  { %v2251_v29 = vmul.f32 %v12596_v63, %v14535_v46  ;;  %v2284_v20 = vpack.c.bf16 %v14568_v41, %v14566_v54  ;;  %v14574_v40 = vadd.f32 %v10124_v61, %v2264_v2 }
0x1024   :  { %v2265_v59 = vmul.f32 %v10123_v50, %v2251_v29  ;;  %11146 = vmatprep.mubr.msk.bf16.mxu0 %vm536_vm1, %v2284_v20 }
0x1025   :  { %v12598_v58 = vpop.eup %12597 }
0x1026   :  { %v14576_v48 = vadd.f32 %v10124_v61, %v2265_v59  ;;  %v2252_v56 = vmul.f32 %v12598_v58, %v14540_v9 }
0x1027   :  { %v12600_v62 = vpop.eup %12599 }
0x1028   :  { %v2285_v51 = vpack.c.bf16 %v14576_v48, %v14574_v40  ;;  %v2253_v8 = vmul.f32 %v12600_v62, %v14543_v60  ;;  %v2266_v46 = vmul.f32 %v10123_v50, %v2252_v56 }
0x1029   :  { %v12602_v15 = vpop.eup %12601 }
0x102a   :  { %11147 = vmatmul.mubr.msk.bf16.vlgmr.msra.gmra.mrb[48].mxu0 %vm536_vm1, %v2285_v51  ;;  %v2267_v47 = vmul.f32 %v10123_v50, %v2253_v8  ;;  %v2254_v44 = vmul.f32 %v12602_v15, %v14547_v3  ;;  %v14584_v37 = vadd.f32 %v10124_v61, %v2266_v46 }
0x102b   :  { %v12604_v35 = vpop.eup %12603 }
0x102c   :  { %v14586_v5 = vadd.f32 %v10124_v61, %v2267_v47  ;;  %v2255_v9 = vmul.f32 %v12604_v35, %v14552_v52  ;;  %v2268_v11 = vmul.f32 %v10123_v50, %v2254_v44  ;;  %v12408_v52 = vld [vmem:[%s16930_s10 + $0x18] sm:$0xff]  }
0x102d   :  { %11160 = vmatprep.subr.bf16.mxu1 %v12408_v52 }
0x102e   :  { %v2286_v60 = vpack.c.bf16 %v14586_v5, %v14584_v37  ;;  %v2269_v42 = vmul.f32 %v10123_v50, %v2255_v9  ;;  %v14592_v6 = vadd.f32 %v10124_v61, %v2268_v11  ;;  %11161 = vmatpush3.bf16.msra.mxu1 %v12408_v52 }
0x1030   :  { %11150 = vmatprep.mubr.msk.bf16.mxu0 %vm536_vm1, %v2286_v60  ;;  %v14594_v1 = vadd.f32 %v10124_v61, %v2269_v42 }
0x1032   :  { %v2287_v3 = vpack.c.bf16 %v14594_v1, %v14592_v6 }
0x1034   :  { %11151 = vmatmul.mubr.msk.bf16.gmra.mrb[52].mxu0 %vm536_vm1, %v2287_v3 }
0x10fd   :  { %v11148_v16 = vpop.f32.mrb[48].mxu0 }
0x10fe   :  { %v2358_v43 = vadd.f32 %v11148_v16, %v10125_v34  ;;  %v2349_v45 = vpop.f32.mrb[49].mxu0 }
0x10ff   :  { %v2350_v57 = vadd.f32 %v10125_v34, %v2349_v45  ;;  %v11149_v27 = vpop.f32.mrb[50].mxu0 }
0x1100   :  { %v2361_v7 = vadd.f32 %v11149_v27, %v10125_v34  ;;  %v2352_v21 = vpop.f32.mrb[51].mxu0  ;;  %v2382_v24 = vmax.f32 %v2358_v43, 0.0 }
0x1101   :  { %v2353_v36 = vadd.f32 %v10125_v34, %v2352_v21  ;;  %v2380_v4 = vmax.f32 %v2350_v57, 0.0 }
0x1102   :  { %v2383_v26 = vmax.f32 %v2361_v7, 0.0 }
0x1103   :  { %v2381_v23 = vmax.f32 %v2353_v36, 0.0 }
0x1104   :  { %v2389_v14 = vpack.c.bf16 %v2383_v26, %v2382_v24 }
0x1105   :  { %v2388_v25 = vpack.c.bf16 %v2381_v23, %v2380_v4 }
0x1107   :  { %v11152_v38 = vpop.f32.mrb[52].mxu0  ;;  %11162 = vmatprep.mubr.msk.bf16.mxu1 %vm379_vm0, %v2388_v25 }
0x1108   :  { %v2374_v50 = vadd.f32 %v11152_v38, %v10125_v34  ;;  %v2365_v49 = vpop.f32.mrb[53].mxu0  ;;  %11163 = vmatmul.mubr.msk.bf16.vlgmr.msra.gmra.mrb[56].mxu1 %vm379_vm0, %v2389_v14 }
0x1109   :  { %v2366_v18 = vadd.f32 %v10125_v34, %v2365_v49  ;;  %v11153_v55 = vpop.f32.mrb[54].mxu0 }
0x110a   :  { %v2377_v33 = vadd.f32 %v11153_v55, %v10125_v34  ;;  %v2368_v22 = vpop.f32.mrb[55].mxu0  ;;  %v2386_v30 = vmax.f32 %v2374_v50, 0.0 }
0x110b   :  { %v2369_v31 = vadd.f32 %v10125_v34, %v2368_v22  ;;  %v2384_v13 = vmax.f32 %v2366_v18, 0.0 }
0x110c   :  { %v2387_v32 = vmax.f32 %v2377_v33, 0.0 }
0x110d   :  { %v2385_v39 = vmax.f32 %v2369_v31, 0.0 }
0x110e   :  { %v2391_v10 = vpack.c.bf16 %v2387_v32, %v2386_v30 }
0x110f   :  { %v2390_v61 = vpack.c.bf16 %v2385_v39, %v2384_v13 }
0x1111   :  { %11166 = vmatprep.mubr.msk.bf16.mxu1 %vm379_vm0, %v2390_v61 }
0x1112   :  { %11167 = vmatmul.mubr.msk.bf16.gmra.mrb[60].mxu1 %vm379_vm0, %v2391_v10 }
0x11db   :  { %v11164_v0 = vpop.f32.mrb[56].mxu1 }
0x11dc   :  { %v2477_v17 = vpop.f32.mrb[57].mxu1  ;;  %v2486_v19 = vadd.f32 %v11164_v0, %v10131_v12 }
0x11dd   :  { %v2478_v53 = vadd.f32 %v10131_v12, %v2477_v17  ;;  %v11165_v63 = vpop.f32.mrb[58].mxu1 }
0x11de   :  { %v2480_v2 = vpop.f32.mrb[59].mxu1  ;;  %v2489_v20 = vadd.f32 %v11165_v63, %v10131_v12  ;;  %v2510_v58 = vadd.f32 %v2486_v19, %v14574_v40 }
0x11df   :  { %v2508_v29 = vadd.f32 %v2478_v53, %v14566_v54  ;;  %v2481_v59 = vadd.f32 %v10131_v12, %v2480_v2 }
0x11e0   :  { %v2511_v51 = vadd.f32 %v2489_v20, %v14576_v48  ;;  %v2524_v15 = vsel %vm536_vm1, %v2510_v58, 0.0 }
0x11e1   :  { %v2509_v56 = vadd.f32 %v2481_v59, %v14568_v41  ;;  %v2518_v62 = vsel %vm536_vm1, %v2508_v29, 0.0  ;;  %v12409_v59 = vld [vmem:[#allocation6 + $0x8] sm:$0xff]  }
0x11e2   :  { %2519 = vadd.xlane.f32.xlu0 %v2518_v62  ;;  %v2527_v40 = vsel %vm536_vm1, %v2511_v51, 0.0  ;;  %11180 = vmatprep.subr.bf16.mxu1 %v12409_v59 }
0x11e3   :  { %v2521_v8 = vsel %vm536_vm1, %v2509_v56, 0.0  ;;  %11181 = vmatpush3.bf16.msra.mxu1 %v12409_v59 }
0x11e4   :  { %2522 = vadd.xlane.f32.xlu1 %v2521_v8 }
0x11e5   :  { %v11168_v46 = vpop.f32.mrb[60].mxu1 }
0x11e6   :  { %2525 = vadd.xlane.f32.xlu0 %v2524_v15  ;;  %v2493_v47 = vpop.f32.mrb[61].mxu1  ;;  %v2502_v54 = vadd.f32 %v11168_v46, %v10131_v12 }
0x11e7   :  { %v2494_v44 = vadd.f32 %v10131_v12, %v2493_v47  ;;  %v11169_v35 = vpop.f32.mrb[62].mxu1 }
0x11e8   :  { %2528 = vadd.xlane.f32.xlu1 %v2527_v40  ;;  %v2496_v41 = vpop.f32.mrb[63].mxu1  ;;  %v2505_v11 = vadd.f32 %v11169_v35, %v10131_v12  ;;  %v2514_v48 = vadd.f32 %v2502_v54, %v14592_v6 }
0x11e9   :  { %v2512_v9 = vadd.f32 %v2494_v44, %v14584_v37  ;;  %v2497_v60 = vadd.f32 %v10131_v12, %v2496_v41 }
0x11ea   :  { %v2515_v28 = vadd.f32 %v2505_v11, %v14594_v1  ;;  %v2536_v34 = vsel %vm536_vm1, %v2514_v48, 0.0 }
0x11eb   :  { %v2513_v42 = vadd.f32 %v2497_v60, %v14586_v5  ;;  %v2530_v3 = vsel %vm536_vm1, %v2512_v9, 0.0 }
0x11ec   :  { %2531 = vadd.xlane.f32.xlu0 %v2530_v3  ;;  %v2539_v16 = vsel %vm536_vm1, %v2515_v28, 0.0 }
0x11ed   :  { %v2533_v52 = vsel %vm536_vm1, %v2513_v42, 0.0 }
0x11ee   :  { %2534 = vadd.xlane.f32.xlu1 %v2533_v52 }
0x11f0   :  { %2537 = vadd.xlane.f32.xlu0 %v2536_v34  ;;  %v10140_v34 = vld [vmem:[#allocation23] ss:$0 sm:$0xff] }
0x11f2   :  { %2540 = vadd.xlane.f32.xlu1 %v2539_v16 }
0x126f   :  { %v2520_v37 = vpop.xlane.xlu0 %2519 }
0x1270   :  { %v2542_v43 = vmul.f32 0.0625, %v2520_v37 }
0x1271   :  { %v2523_v45 = vpop.xlane.xlu1 %2522 }
0x1272   :  { %v14621_v6 = vsub.f32 %v2508_v29, %v2542_v43  ;;  %v2543_v5 = vmul.f32 0.0625, %v2523_v45 }
0x1273   :  { %v2526_v57 = vpop.xlane.xlu0 %2525 }
0x1274   :  { %v14623_v27 = vsub.f32 %v2509_v56, %v2543_v5  ;;  %v2544_v7 = vmul.f32 0.0625, %v2526_v57  ;;  %v2558_v1 = vmul.f32 %v14621_v6, %v14621_v6  ;;  %v14661_v56 = vld [vmem:[#allocation8 + $0x8] sm:$0xff]  }
0x1275   :  { %v2529_v21 = vpop.xlane.xlu1 %2528 }
0x1276   :  { %v14627_v36 = vsub.f32 %v2510_v58, %v2544_v7  ;;  %v2545_v24 = vmul.f32 0.0625, %v2529_v21  ;;  %v2566_v26 = vsel %vm536_vm1, %v2558_v1, 0.0  ;;  %v2559_v4 = vmul.f32 %v14623_v27, %v14623_v27  ;;  %v12410_v58 = vld [vmem:[#allocation4 + $0x8] sm:$0xff]  }
0x1277   :  { %2567 = vadd.xlane.f32.xlu0 %v2566_v26  ;;  %11170 = vmatprep.subr.bf16.mxu0 %v12410_v58  ;;  %v10141_v26 = vld [vmem:[#allocation24] ss:$0 sm:$0xff] }
0x1278   :  { %v14632_v23 = vsub.f32 %v2511_v51, %v2545_v24  ;;  %v2569_v14 = vsel %vm536_vm1, %v2559_v4, 0.0  ;;  %v2560_v25 = vmul.f32 %v14627_v36, %v14627_v36  ;;  %11171 = vmatpush3.bf16.msra.mxu0 %v12410_v58 }
0x1279   :  { %2570 = vadd.xlane.f32.xlu1 %v2569_v14  ;;  %v2532_v38 = vpop.xlane.xlu0 %2531  ;;  %11190 = vmatprep.subr.bf16.mxu0 %v14661_v56 }
0x127a   :  { %v2546_v50 = vmul.f32 0.0625, %v2532_v38  ;;  %v2572_v49 = vsel %vm536_vm1, %v2560_v25, 0.0  ;;  %v2561_v18 = vmul.f32 %v14632_v23, %v14632_v23 }
0x127b   :  { %v2535_v55 = vpop.xlane.xlu1 %2534  ;;  %2573 = vadd.xlane.f32.xlu0 %v2572_v49 }
0x127c   :  { %v14640_v33 = vsub.f32 %v2512_v9, %v2546_v50  ;;  %v2547_v22 = vmul.f32 0.0625, %v2535_v55  ;;  %v2575_v31 = vsel %vm536_vm1, %v2561_v18, 0.0 }
0x127d   :  { %2576 = vadd.xlane.f32.xlu1 %v2575_v31  ;;  %v2538_v30 = vpop.xlane.xlu0 %2537 }
0x127e   :  { %v14643_v32 = vsub.f32 %v2513_v42, %v2547_v22  ;;  %v2548_v13 = vmul.f32 0.0625, %v2538_v30  ;;  %v2562_v39 = vmul.f32 %v14640_v33, %v14640_v33 }
0x127f   :  { %v2541_v10 = vpop.xlane.xlu1 %2540 }
0x1280   :  { %v14647_v61 = vsub.f32 %v2514_v48, %v2548_v13  ;;  %v2549_v12 = vmul.f32 0.0625, %v2541_v10  ;;  %v2578_v0 = vsel %vm536_vm1, %v2562_v39, 0.0  ;;  %v2563_v17 = vmul.f32 %v14643_v32, %v14643_v32 }
0x1281   :  { %2579 = vadd.xlane.f32.xlu0 %v2578_v0 }
0x1282   :  { %v14652_v19 = vsub.f32 %v2515_v28, %v2549_v12  ;;  %v2581_v53 = vsel %vm536_vm1, %v2563_v17, 0.0  ;;  %v2564_v63 = vmul.f32 %v14647_v61, %v14647_v61 }
0x1283   :  { %2582 = vadd.xlane.f32.xlu1 %v2581_v53 }
0x1284   :  { %v2584_v2 = vsel %vm536_vm1, %v2564_v63, 0.0  ;;  %v2565_v29 = vmul.f32 %v14652_v19, %v14652_v19 }
0x1285   :  { %2585 = vadd.xlane.f32.xlu0 %v2584_v2 }
0x1286   :  { %v2587_v20 = vsel %vm536_vm1, %v2565_v29, 0.0 }
0x1287   :  { %2588 = vadd.xlane.f32.xlu1 %v2587_v20 }
0x1304   :  { %v2568_v62 = vpop.xlane.xlu0 %2567 }
0x1305   :  { %v2590_v51 = vmul.f32 0.0625, %v2568_v62 }
0x1306   :  { %v2571_v8 = vpop.xlane.xlu1 %2570 }
0x1307   :  { %v2598_v46 = vadd.f32 1e-05, %v2590_v51  ;;  %v2591_v15 = vmul.f32 0.0625, %v2571_v8  ;;  %v10148_v51 = vld [vmem:[#allocation11 + $0x1] ss:$0 sm:$0xff] }
0x1308   :  { %v2574_v47 = vpop.xlane.xlu0 %2573 }
0x1309   :  { %12605 = vrsqrt.f32 %v2598_v46  ;;  %v2599_v54 = vadd.f32 1e-05, %v2591_v15  ;;  %v2592_v44 = vmul.f32 0.0625, %v2574_v47 }
0x130a   :  { %v2577_v35 = vpop.xlane.xlu1 %2576 }
0x130b   :  { %12607 = vrsqrt.f32 %v2599_v54  ;;  %v2600_v40 = vadd.f32 1e-05, %v2592_v44  ;;  %v2593_v41 = vmul.f32 0.0625, %v2577_v35 }
0x130d   :  { %12609 = vrsqrt.f32 %v2600_v40  ;;  %v2601_v9 = vadd.f32 1e-05, %v2593_v41 }
0x130e   :  { %v2580_v11 = vpop.xlane.xlu0 %2579 }
0x130f   :  { %12611 = vrsqrt.f32 %v2601_v9  ;;  %v2594_v60 = vmul.f32 0.0625, %v2580_v11 }
0x1310   :  { %v2583_v48 = vpop.xlane.xlu1 %2582 }
0x1311   :  { %v2602_v42 = vadd.f32 1e-05, %v2594_v60  ;;  %v2595_v3 = vmul.f32 0.0625, %v2583_v48 }
0x1312   :  { %v2586_v28 = vpop.xlane.xlu0 %2585 }
0x1313   :  { %v12606_v52 = vpop.eup %12605  ;;  %12613 = vrsqrt.f32 %v2602_v42  ;;  %v2603_v16 = vadd.f32 1e-05, %v2595_v3  ;;  %v2596_v37 = vmul.f32 0.0625, %v2586_v28 }
0x1314   :  { %v2589_v43 = vpop.xlane.xlu1 %2588  ;;  %v2614_v45 = vmul.f32 %v12606_v52, %v14621_v6 }
0x1315   :  { %v12608_v5 = vpop.eup %12607  ;;  %12615 = vrsqrt.f32 %v2603_v16  ;;  %v2604_v57 = vadd.f32 1e-05, %v2596_v37  ;;  %v2597_v7 = vmul.f32 0.0625, %v2589_v43 }
0x1316   :  { %v2615_v1 = vmul.f32 %v12608_v5, %v14623_v27  ;;  %v2628_v21 = vmul.f32 %v10140_v34, %v2614_v45 }
0x1317   :  { %v12610_v24 = vpop.eup %12609  ;;  %12617 = vrsqrt.f32 %v2604_v57  ;;  %v2605_v4 = vadd.f32 1e-05, %v2597_v7 }
0x1318   :  { %v2616_v14 = vmul.f32 %v12610_v24, %v14627_v36  ;;  %v2629_v25 = vmul.f32 %v10140_v34, %v2615_v1  ;;  %v14668_v6 = vadd.f32 %v10141_v26, %v2628_v21 }
0x1319   :  { %v12612_v38 = vpop.eup %12611  ;;  %12619 = vrsqrt.f32 %v2605_v4 }
0x131a   :  { %v2630_v50 = vmul.f32 %v10140_v34, %v2616_v14  ;;  %v2617_v49 = vmul.f32 %v12612_v38, %v14632_v23  ;;  %v14670_v18 = vadd.f32 %v10141_v26, %v2629_v25 }
0x131c   :  { %v2631_v55 = vmul.f32 %v10140_v34, %v2617_v49  ;;  %v2650_v27 = vpack.c.bf16 %v14670_v18, %v14668_v6  ;;  %v14674_v31 = vadd.f32 %v10141_v26, %v2630_v50 }
0x131d   :  { %v12614_v22 = vpop.eup %12613 }
0x131e   :  { %v14676_v30 = vadd.f32 %v10141_v26, %v2631_v55  ;;  %11172 = vmatprep.mubr.msk.bf16.mxu0 %vm536_vm1, %v2650_v27  ;;  %11182 = vmatprep.mubr.msk.bf16.mxu1 %vm536_vm1, %v2650_v27  ;;  %v2618_v36 = vmul.f32 %v12614_v22, %v14640_v33 }
0x131f   :  { %v12616_v23 = vpop.eup %12615 }
0x1320   :  { %v2651_v13 = vpack.c.bf16 %v14676_v30, %v14674_v31  ;;  %v2619_v39 = vmul.f32 %v12616_v23, %v14643_v32  ;;  %v2632_v10 = vmul.f32 %v10140_v34, %v2618_v36 }
0x1321   :  { %v12618_v12 = vpop.eup %12617 }
0x1322   :  { %11173 = vmatmul.mubr.msk.bf16.vlgmr.msra.gmra.mrb[56].mxu0 %vm536_vm1, %v2651_v13  ;;  %11183 = vmatmul.mubr.msk.bf16.vlgmr.msra.gmra.mrb[64].mxu1 %vm536_vm1, %v2651_v13  ;;  %v2633_v0 = vmul.f32 %v10140_v34, %v2619_v39  ;;  %v2620_v17 = vmul.f32 %v12618_v12, %v14647_v61  ;;  %v14688_v63 = vadd.f32 %v10141_v26, %v2632_v10  ;;  %v10154_v39 = vld [vmem:[#allocation12 + $0x1] ss:$0 sm:$0xff] }
0x1323   :  { %v12620_v53 = vpop.eup %12619  ;;  %11191 = vmatpush3.bf16.msra.mxu0 %v14661_v56  ;;  %v10142_v56 = vld [vmem:[#allocation9 + $0x1] ss:$0 sm:$0xff] }
0x1324   :  { %v14690_v33 = vadd.f32 %v10141_v26, %v2633_v0  ;;  %v2621_v2 = vmul.f32 %v12620_v53, %v14652_v19  ;;  %v2634_v29 = vmul.f32 %v10140_v34, %v2620_v17 }
0x1326   :  { %v2652_v32 = vpack.c.bf16 %v14690_v33, %v14688_v63  ;;  %v2635_v20 = vmul.f32 %v10140_v34, %v2621_v2  ;;  %v14697_v59 = vadd.f32 %v10141_v26, %v2634_v29 }
0x1328   :  { %11176 = vmatprep.mubr.msk.bf16.mxu0 %vm536_vm1, %v2652_v32  ;;  %11186 = vmatprep.mubr.msk.bf16.mxu1 %vm536_vm1, %v2652_v32  ;;  %v14699_v61 = vadd.f32 %v10141_v26, %v2635_v20 }
0x132a   :  { %v2653_v58 = vpack.c.bf16 %v14699_v61, %v14697_v59 }
0x132c   :  { %11177 = vmatmul.mubr.msk.bf16.gmra.mrb[60].mxu0 %vm536_vm1, %v2653_v58  ;;  %11187 = vmatmul.mubr.msk.bf16.gmra.mrb[68].mxu1 %vm536_vm1, %v2653_v58 }
0x132d   :  { %11192 = vmatprep.mubr.msk.bf16.mxu0 %vm536_vm1, %v2650_v27 }
0x1334   :  { %11193 = vmatmul.mubr.msk.bf16.vlgmr.msra.gmra.mrb[64].mxu0 %vm536_vm1, %v2651_v13 }
0x1335   :  { %11196 = vmatprep.mubr.msk.bf16.mxu0 %vm536_vm1, %v2652_v32 }
0x133c   :  { %11197 = vmatmul.mubr.msk.bf16.gmra.mrb[68].mxu0 %vm536_vm1, %v2653_v58 }
0x13f5   :  { %v11174_v19 = vpop.f32.mrb[56].mxu0  ;;  %v11184_v62 = vpop.f32.mrb[64].mxu1 }
0x13f6   :  { %v2717_v8 = vpop.f32.mrb[57].mxu0  ;;  %v2799_v46 = vpop.f32.mrb[65].mxu1  ;;  %v2726_v54 = vadd.f32 %v11174_v19, %v10142_v56  ;;  %v2808_v44 = vadd.f32 %v11184_v62, %v10148_v51 }
0x13f7   :  { %v11175_v15 = vpop.f32.mrb[58].mxu0  ;;  %v11185_v47 = vpop.f32.mrb[66].mxu1  ;;  %v2718_v11 = vadd.f32 %v10142_v56, %v2717_v8  ;;  %v2800_v60 = vadd.f32 %v10148_v51, %v2799_v46 }
0x13f8   :  { %v2729_v35 = vadd.f32 %v11175_v15, %v10142_v56  ;;  %v2811_v40 = vadd.f32 %v11185_v47, %v10148_v51  ;;  %v2720_v41 = vpop.f32.mrb[59].mxu0  ;;  %v2802_v9 = vpop.f32.mrb[67].mxu1 }
0x13f9   :  { %v2721_v48 = vadd.f32 %v10142_v56, %v2720_v41  ;;  %v2803_v42 = vadd.f32 %v10148_v51, %v2802_v9  ;;  %v14766_v9 = vld [vmem:[%s16924_s15] sm:$0xff] }
0x13fa   :  { %v14709_v3 = vpack.c.bf16 %v2729_v35, %v2726_v54  ;;  %v14711_v28 = vpack.c.bf16 %v2811_v40, %v2808_v44 }
0x13fb   :  { %v14713_v52 = vpack.c.bf16 %v2721_v48, %v2718_v11  ;;  %v14715_v34 = vpack.c.bf16 %v2803_v42, %v2800_v60  ;;  %v14770_v42 = vld [vmem:[%s16924_s15 + $0x10] sm:$0xff] }
0x13fc   :  { %v2940_v23 = vsel %vm786_vm2, %v14711_v28, 0 }
0x13fd   :  { %12034 = vmatprep.subr.msk.bf16.mxu1 %vm786_vm2, %v14715_v34  ;;  %11208 = vmatprep.mubr.msk.bf16.mxu1 %vm786_vm2, %v14713_v52  ;;  %v2937_v16 = vsel %vm786_vm2, %v14715_v34, 0 }
0x13fe   :  { %11201 = vmatpush3.bf16.xpose.msra.mxu1 %v2937_v16 }
0x13ff   :  { %v11178_v37 = vpop.f32.mrb[60].mxu0  ;;  %v11188_v43 = vpop.f32.mrb[68].mxu1  ;;  %12035 = vmatprep.subr.msk.bf16.mxu1 %vm786_vm2, %v14711_v28 }
0x1400   :  { %v2733_v45 = vpop.f32.mrb[61].mxu0  ;;  %v2815_v5 = vpop.f32.mrb[69].mxu1  ;;  %v2742_v1 = vadd.f32 %v11178_v37, %v10142_v56  ;;  %v2824_v21 = vadd.f32 %v11188_v43, %v10148_v51  ;;  %v14774_v37 = vld [vmem:[%s16924_s15 + $0x8] sm:$0xff] }
0x1401   :  { %v11179_v57 = vpop.f32.mrb[62].mxu0  ;;  %v11189_v7 = vpop.f32.mrb[70].mxu1  ;;  %v2734_v25 = vadd.f32 %v10142_v56, %v2733_v45  ;;  %v2816_v38 = vadd.f32 %v10148_v51, %v2815_v5  ;;  %v14779_v5 = vld [vmem:[%s16924_s15 + $0x18] sm:$0xff] }
0x1402   :  { %v2745_v24 = vadd.f32 %v11179_v57, %v10142_v56  ;;  %v2827_v26 = vadd.f32 %v11189_v7, %v10148_v51  ;;  %v2736_v4 = vpop.f32.mrb[63].mxu0  ;;  %v2818_v14 = vpop.f32.mrb[71].mxu1 }
0x1403   :  { %v2737_v50 = vadd.f32 %v10142_v56, %v2736_v4  ;;  %v2819_v49 = vadd.f32 %v10148_v51, %v2818_v14 }
0x1404   :  { %v14725_v55 = vpack.c.bf16 %v2745_v24, %v2742_v1  ;;  %v14727_v27 = vpack.c.bf16 %v2827_v26, %v2824_v21  ;;  %v14785_v26 = vld [vmem:[%s16924_s15 + $0x20] sm:$0xff] }
0x1405   :  { %v14729_v22 = vpack.c.bf16 %v2737_v50, %v2734_v25  ;;  %v14731_v36 = vpack.c.bf16 %v2819_v49, %v2816_v38  ;;  %v14790_v50 = vld [vmem:[%s16924_s15 + $0x30] sm:$0xff] }
0x1406   :  { %11203 = vmatpush3.bf16.xpose.msra.mxu1 %v2940_v23  ;;  %v2946_v35 = vsel %vm786_vm2, %v14727_v27, 0  ;;  %v14794_v23 = vld [vmem:[%s16924_s15 + $0x28] sm:$0xff] }
0x1407   :  { %v11194_v13 = vpop.f32.mrb[64].mxu0  ;;  %12036 = vmatprep.subr.msk.bf16.mxu1 %vm786_vm2, %v14731_v36  ;;  %v2943_v58 = vsel %vm786_vm2, %v14731_v36, 0 }
0x1408   :  { %v2881_v10 = vpop.f32.mrb[65].mxu0  ;;  %v2890_v0 = vadd.f32 %v11194_v13, %v10154_v39 }
0x1409   :  { %v11195_v12 = vpop.f32.mrb[66].mxu0  ;;  %v2882_v2 = vadd.f32 %v10154_v39, %v2881_v10  ;;  %v14801_v10 = vld [vmem:[%s16924_s15 + $0x38] sm:$0xff] }
0x140a   :  { %v2893_v17 = vadd.f32 %v11195_v12, %v10154_v39  ;;  %v2884_v53 = vpop.f32.mrb[67].mxu0 }
0x140b   :  { %v2885_v29 = vadd.f32 %v10154_v39, %v2884_v53 }
0x140c   :  { %v14737_v32 = vpack.c.bf16 %v2893_v17, %v2890_v0 }
0x140d   :  { %v14739_v20 = vpack.c.bf16 %v2885_v29, %v2882_v2 }
0x140e   :  { %11205 = vmatpush3.bf16.xpose.msra.mxu1 %v2943_v58 }
0x140f   :  { %v11198_v19 = vpop.f32.mrb[68].mxu0  ;;  %12037 = vmatprep.subr.msk.bf16.mxu1 %vm786_vm2, %v14727_v27  ;;  %11216 = vmatprep.subr.bf16.mxu0 %v14739_v20 }
0x1410   :  { %v2897_v56 = vpop.f32.mrb[69].mxu0  ;;  %11217 = vmatpush3.bf16.msra.mxu0 %v14739_v20  ;;  %v2906_v51 = vadd.f32 %v11198_v19, %v10154_v39 }
0x1411   :  { %v11199_v62 = vpop.f32.mrb[70].mxu0  ;;  %11218 = vmatprep.subr.bf16.mxu0 %v14737_v32  ;;  %v2898_v15 = vadd.f32 %v10154_v39, %v2897_v56 }
0x1412   :  { %v2909_v8 = vadd.f32 %v11199_v62, %v10154_v39  ;;  %v2900_v46 = vpop.f32.mrb[71].mxu0 }
0x1413   :  { %v2901_v47 = vadd.f32 %v10154_v39, %v2900_v46 }
0x1414   :  { %v14748_v54 = vpack.c.bf16 %v2909_v8, %v2906_v51  ;;  %11219 = vmatpush3.bf16.msra.mxu0 %v14737_v32 }
0x1415   :  { %v14751_v44 = vpack.c.bf16 %v2901_v47, %v2898_v15 }
0x1416   :  { %11207 = vmatpush3.bf16.xpose.msra.mxu1 %v2946_v35 }
0x1417   :  { %11220 = vmatprep.subr.bf16.mxu0 %v14751_v44 }
0x1418   :  { %11221 = vmatpush3.bf16.msra.mxu0 %v14751_v44 }
0x1419   :  { %11222 = vmatprep.subr.bf16.mxu0 %v14748_v54 }
0x141c   :  { %11223 = vmatpush3.bf16.msra.mxu0 %v14748_v54 }
0x141d   :  { %11209 = vmatmul.mubr.msk.bf16.vlgmr.msra.gmra.mrb[72].mxu1 %vm786_vm2, %v14709_v3 }
0x141e   :  { %11212 = vmatprep.mubr.msk.bf16.mxu1 %vm786_vm2, %v14729_v22 }
0x1425   :  { %11213 = vmatmul.mubr.msk.bf16.gmra.mrb[76].mxu1 %vm786_vm2, %v14725_v55 }
0x14f0   :  { %v11210_v40 = vpop.f32.mrb[72].mxu1 }
0x14f1   :  { %v2982_v41 = vpop.f32.mrb[73].mxu1  ;;  %v2991_v16 = vadd.f32 %v14770_v42, %v11210_v40 }
0x14f2   :  { %v2983_v11 = vadd.f32 %v14766_v9, %v2982_v41  ;;  %v11211_v60 = vpop.f32.mrb[74].mxu1 }
0x14f3   :  { %v2985_v48 = vpop.f32.mrb[75].mxu1  ;;  %v2994_v57 = vadd.f32 %v14779_v5, %v11211_v60  ;;  %v3019_v21 = vsel %vm379_vm0, %v2991_v16, -inf }
0x14f4   :  { %v2986_v43 = vadd.f32 %v14774_v37, %v2985_v48  ;;  %v3013_v45 = vsel %vm379_vm0, %v2983_v11, -inf }
0x14f5   :  { %3014 = vmax.xlane.f32.xlu0 %v3013_v45  ;;  %v3022_v25 = vsel %vm379_vm0, %v2994_v57, -inf }
0x14f6   :  { %v3016_v7 = vsel %vm379_vm0, %v2986_v43, -inf }
0x14f7   :  { %3017 = vmax.xlane.f32.xlu1 %v3016_v7 }
0x14f8   :  { %v11214_v1 = vpop.f32.mrb[76].mxu1 }
0x14f9   :  { %3020 = vmax.xlane.f32.xlu0 %v3019_v21  ;;  %v2998_v24 = vpop.f32.mrb[77].mxu1  ;;  %v3007_v49 = vadd.f32 %v14790_v50, %v11214_v1 }
0x14fa   :  { %v2999_v4 = vadd.f32 %v14785_v26, %v2998_v24  ;;  %v11215_v14 = vpop.f32.mrb[78].mxu1 }
0x14fb   :  { %3023 = vmax.xlane.f32.xlu1 %v3022_v25  ;;  %v3001_v38 = vpop.f32.mrb[79].mxu1  ;;  %v3010_v12 = vadd.f32 %v14801_v10, %v11215_v14  ;;  %v3031_v17 = vsel %vm379_vm0, %v3007_v49, -inf }
0x14fc   :  { %v14797_v13 = vadd.f32 %v14794_v23, %v3001_v38  ;;  %v3025_v39 = vsel %vm379_vm0, %v2999_v4, -inf }
0x14fd   :  { %3026 = vmax.xlane.f32.xlu0 %v3025_v39  ;;  %v3034_v53 = vsel %vm379_vm0, %v3010_v12, -inf }
0x14fe   :  { %v3028_v0 = vsel %vm379_vm0, %v14797_v13, -inf }
0x14ff   :  { %3029 = vmax.xlane.f32.xlu1 %v3028_v0 }
0x1501   :  { %3032 = vmax.xlane.f32.xlu0 %v3031_v17 }
0x1503   :  { %3035 = vmax.xlane.f32.xlu1 %v3034_v53 }
0x1582   :  { %v3015_v2 = vpop.xlane.xlu0 %3014 }
0x1583   :  { %v3037_v29 = vsub.f32 %v2983_v11, %v3015_v2 }
0x1584   :  { %v3018_v58 = vpop.xlane.xlu1 %3017 }
0x1585   :  { %v3038_v56 = vsub.f32 %v2986_v43, %v3018_v58  ;;  %v3045_v51 = vmul.f32 1.442695, %v3037_v29 }
0x1586   :  { %v3021_v19 = vpop.xlane.xlu0 %3020 }
0x1587   :  { %v3039_v62 = vsub.f32 %v2991_v16, %v3021_v19  ;;  %v3047_v35 = vmul.f32 1.442695, %v3038_v56 }
0x1588   :  { %v3024_v8 = vpop.xlane.xlu1 %3023 }
0x1589   :  { %v3049_v46 = vmul.f32 1.442695, %v3039_v62  ;;  %v3040_v15 = vsub.f32 %v2994_v57, %v3024_v8 }
0x158a   :  { %v3027_v47 = vpop.xlane.xlu0 %3026 }
0x158b   :  { %12621 = vpow2.f32 %v3049_v46  ;;  %v3051_v40 = vmul.f32 1.442695, %v3040_v15  ;;  %v3041_v41 = vsub.f32 %v2999_v4, %v3027_v47 }
0x158c   :  { %12623 = vpow2.f32 %v3045_v51  ;;  %v3030_v39 = vpop.xlane.xlu1 %3029 }
0x158d   :  { %12625 = vpow2.f32 %v3051_v40  ;;  %v3053_v45 = vmul.f32 1.442695, %v3041_v41  ;;  %v3042_v53 = vsub.f32 %v14797_v13, %v3030_v39 }
0x158e   :  { %v3033_v60 = vpop.xlane.xlu0 %3032  ;;  %12627 = vpow2.f32 %v3047_v35 }
0x158f   :  { %v3043_v48 = vsub.f32 %v3007_v49, %v3033_v60  ;;  %v3055_v29 = vmul.f32 1.442695, %v3042_v53 }
0x1590   :  { %v3036_v0 = vpop.xlane.xlu1 %3035 }
0x1591   :  { %v3057_v11 = vmul.f32 1.442695, %v3043_v48  ;;  %v3044_v17 = vsub.f32 %v3010_v12, %v3036_v0 }
0x1593   :  { %12629 = vpow2.f32 %v3057_v11  ;;  %v3059_v2 = vmul.f32 1.442695, %v3044_v17 }
0x1594   :  { %12631 = vpow2.f32 %v3053_v45 }
0x1595   :  { %v12622_v7 = vpop.eup %12621  ;;  %12633 = vpow2.f32 %v3059_v2 }
0x1596   :  { %v12624_v16 = vpop.eup %12623  ;;  %v3067_v43 = vsel %vm379_vm0, %v12622_v7, 0.0  ;;  %12635 = vpow2.f32 %v3055_v29 }
0x1597   :  { %v12626_v1 = vpop.eup %12625  ;;  %3068 = vadd.xlane.f32.xlu0 %v3067_v43  ;;  %v3061_v24 = vsel %vm379_vm0, %v12624_v16, 0.0 }
0x1598   :  { %v3070_v57 = vsel %vm379_vm0, %v12626_v1, 0.0  ;;  %v12628_v21 = vpop.eup %12627 }
0x1599   :  { %3071 = vadd.xlane.f32.xlu1 %v3070_v57  ;;  %v3064_v4 = vsel %vm379_vm0, %v12628_v21, 0.0 }
0x159b   :  { %3062 = vadd.xlane.f32.xlu0 %v3061_v24 }
0x159d   :  { %v14812_v14 = vpop.eup %12629  ;;  %3065 = vadd.xlane.f32.xlu1 %v3064_v4 }
0x159e   :  { %v3079_v25 = vsel %vm379_vm0, %v14812_v14, 0.0  ;;  %v14816_v38 = vpop.eup %12631 }
0x159f   :  { %3080 = vadd.xlane.f32.xlu0 %v3079_v25  ;;  %v3073_v49 = vsel %vm379_vm0, %v14816_v38, 0.0  ;;  %v12634_v58 = vpop.eup %12633 }
0x15a0   :  { %v3082_v19 = vsel %vm379_vm0, %v12634_v58, 0.0  ;;  %v12636_v56 = vpop.eup %12635 }
0x15a1   :  { %v3076_v62 = vsel %vm379_vm0, %v12636_v56, 0.0 }
0x15a3   :  { %3074 = vadd.xlane.f32.xlu0 %v3073_v49 }
0x15ae   :  { %3200 = vrot.lane.b32.xlu1 %v14711_v28, %s13594_s14 }
0x15b2   :  { %3202 = vrot.lane.b32.xlu1 %v14731_v36, %s13594_s14 }
0x15b9   :  { %3198 = vrot.lane.b32.xlu0 %v14715_v34, %s13594_s14 }
0x15bd   :  { %3186 = vrot.lane.b32.xlu0 %v14713_v52, %s13594_s14 }
0x15c1   :  { %3190 = vrot.lane.b32.xlu0 %v14729_v22, %s13594_s14 }
0x15d6   :  { %3083 = vadd.xlane.f32.xlu1 %v3082_v19 }
0x15da   :  { %3077 = vadd.xlane.f32.xlu1 %v3076_v62 }
0x15eb   :  { %3204 = vrot.lane.b32.xlu1 %v14727_v27, %s13594_s14 }
0x15ef   :  { %3188 = vrot.lane.b32.xlu1 %v14709_v3, %s13594_s14 }
0x15f3   :  { %3192 = vrot.lane.b32.xlu1 %v14725_v55, %s13594_s14 }
0x1624   :  { %v3069_v13 = vpop.xlane.xlu0 %3068 }
0x1626   :  { %v3072_v12 = vpop.xlane.xlu1 %3071 }
0x1627   :  { %12637 = vrcp.f32 %v3072_v12 }
0x1628   :  { %v3063_v51 = vpop.xlane.xlu0 %3062 }
0x1629   :  { %12639 = vrcp.f32 %v3063_v51 }
0x162a   :  { %12641 = vrcp.f32 %v3069_v13  ;;  %v3066_v8 = vpop.xlane.xlu1 %3065 }
0x162b   :  { %12643 = vrcp.f32 %v3066_v8 }
0x162c   :  { %v3081_v46 = vpop.xlane.xlu0 %3080 }
0x162e   :  { %v3201_v25 = vpop.permute.xlu1 %3200 }
0x162f   :  { %v3222_v49 = vsel %vm786_vm2, %v3201_v25, 0 }
0x1630   :  { %v3075_v15 = vpop.xlane.xlu0 %3074 }
0x1631   :  { %v12638_v47 = vpop.eup %12637 }
0x1632   :  { %v3096_v48 = vmul.f32 %v12638_v47, %v12626_v1  ;;  %v3203_v1 = vpop.permute.xlu1 %3202 }
0x1633   :  { %v12640_v35 = vpop.eup %12639 }
0x1634   :  { %v12642_v40 = vpop.eup %12641  ;;  %v3199_v41 = vpop.permute.xlu0 %3198  ;;  %v3093_v45 = vmul.f32 %v12640_v35, %v12624_v16 }
0x1635   :  { %v12644_v60 = vpop.eup %12643  ;;  %12038 = vmatprep.subr.msk.bf16.mxu0 %vm786_vm2, %v3199_v41  ;;  %v3095_v43 = vmul.f32 %v12642_v40, %v12622_v7  ;;  %v3219_v4 = vsel %vm786_vm2, %v3199_v41, 0  ;;  %v3225_v7 = vsel %vm786_vm2, %v3203_v1, 0 }
0x1636   :  { %v3094_v11 = vmul.f32 %v12644_v60, %v12628_v21 }
0x1637   :  { %v3102_v24 = vpack.c.bf16 %v3096_v48, %v3095_v43 }
0x1638   :  { %v3101_v57 = vpack.c.bf16 %v3094_v11, %v3093_v45 }
0x163a   :  { %11224 = vmatprep.mubr.msk.bf16.mxu0 %vm379_vm0, %v3101_v57 }
0x163b   :  { %11225 = vmatmul.mubr.msk.bf16.vlgmr.msra.gmra.mrb[72].mxu0 %vm379_vm0, %v3102_v24 }
0x163c   :  { %11233 = vmatpush3.bf16.xpose.msra.mxu0 %v3219_v4 }
0x163d   :  { %12039 = vmatprep.subr.msk.bf16.mxu0 %vm786_vm2, %v3201_v25 }
0x1644   :  { %11235 = vmatpush3.bf16.xpose.msra.mxu0 %v3222_v49 }
0x1645   :  { %12040 = vmatprep.subr.msk.bf16.mxu0 %vm786_vm2, %v3203_v1 }
0x164c   :  { %11237 = vmatpush3.bf16.xpose.msra.mxu0 %v3225_v7 }
0x1663   :  { %v3084_v16 = vpop.xlane.xlu1 %3083 }
0x1664   :  { %12645 = vrcp.f32 %v3084_v16 }
0x1665   :  { %12647 = vrcp.f32 %v3075_v15 }
0x1666   :  { %12649 = vrcp.f32 %v3081_v46  ;;  %v3187_v46 = vpop.permute.xlu0 %3186 }
0x1667   :  { %v3078_v21 = vpop.xlane.xlu1 %3077 }
0x1668   :  { %12651 = vrcp.f32 %v3078_v21 }
0x166a   :  { %v3191_v47 = vpop.permute.xlu0 %3190 }
0x166b   :  { %v3205_v39 = vpop.permute.xlu1 %3204 }
0x166c   :  { %12041 = vmatprep.subr.msk.bf16.mxu0 %vm786_vm2, %v3205_v39  ;;  %v3228_v0 = vsel %vm786_vm2, %v3205_v39, 0 }
0x166d   :  { %11239 = vmatpush3.bf16.xpose.msra.mxu0 %v3228_v0 }
0x166e   :  { %v12646_v17 = vpop.eup %12645 }
0x166f   :  { %v12648_v53 = vpop.eup %12647  ;;  %v3100_v19 = vmul.f32 %v12646_v17, %v12634_v58  ;;  %v3189_v15 = vpop.permute.xlu1 %3188 }
0x1670   :  { %v12650_v2 = vpop.eup %12649  ;;  %v3097_v62 = vmul.f32 %v12648_v53, %v14816_v38 }
0x1671   :  { %v3099_v12 = vmul.f32 %v12650_v2, %v14812_v14 }
0x1672   :  { %v12652_v29 = vpop.eup %12651 }
0x1673   :  { %v3098_v13 = vmul.f32 %v12652_v29, %v12636_v56  ;;  %v3104_v8 = vpack.c.bf16 %v3100_v19, %v3099_v12  ;;  %v3193_v58 = vpop.permute.xlu1 %3192 }
0x1675   :  { %v3103_v51 = vpack.c.bf16 %v3098_v13, %v3097_v62 }
0x1677   :  { %11228 = vmatprep.mubr.msk.bf16.mxu0 %vm379_vm0, %v3103_v51 }
0x1678   :  { %11229 = vmatmul.mubr.msk.bf16.gmra.mrb[76].mxu0 %vm379_vm0, %v3104_v8 }
0x1679   :  { %11240 = vmatprep.mubr.msk.bf16.mxu0 %vm786_vm2, %v3187_v46 }
0x1680   :  { %11241 = vmatmul.mubr.msk.bf16.vlgmr.msra.gmra.mrb[80].mxu0 %vm786_vm2, %v3189_v15 }
0x1681   :  { %11244 = vmatprep.mubr.msk.bf16.mxu0 %vm786_vm2, %v3191_v47 }
0x1688   :  { %11245 = vmatmul.mubr.msk.bf16.gmra.mrb[84].mxu0 %vm786_vm2, %v3193_v58 }
0x170e   :  { %v14857_v38 = vpop.f32.mrb[72].mxu0 }
0x170f   :  { %v14859_v14 = vpop.f32.mrb[73].mxu0 }
0x1710   :  { %v14861_v56 = vpop.f32.mrb[74].mxu0 }
0x1711   :  { %v14863_v35 = vpop.f32.mrb[75].mxu0 }
0x174b   :  { %v14865_v40 = vpop.f32.mrb[76].mxu0 }
0x174c   :  { %v14867_v41 = vpop.f32.mrb[77].mxu0 }
0x174d   :  { %v14869_v60 = vpop.f32.mrb[78].mxu0 }
0x174e   :  { %v14871_v48 = vpop.f32.mrb[79].mxu0 }
0x1753   :  { %v11242_v45 = vpop.f32.mrb[80].mxu0 }
0x1754   :  { %v3273_v11 = vadd.f32 %v14770_v42, %v11242_v45  ;;  %v3264_v43 = vpop.f32.mrb[81].mxu0 }
0x1755   :  { %v11243_v57 = vpop.f32.mrb[82].mxu0  ;;  %v3265_v24 = vadd.f32 %v14766_v9, %v3264_v43 }
0x1756   :  { %v3267_v4 = vpop.f32.mrb[83].mxu0  ;;  %v3301_v25 = vsel %vm379_vm0, %v3273_v11, -inf  ;;  %v3276_v7 = vadd.f32 %v14779_v5, %v11243_v57 }
0x1757   :  { %v3268_v49 = vadd.f32 %v14774_v37, %v3267_v4  ;;  %3302 = vmax.xlane.f32.xlu0 %v3301_v25  ;;  %v3295_v16 = vsel %vm379_vm0, %v3265_v24, -inf }
0x1758   :  { %v3304_v2 = vsel %vm379_vm0, %v3276_v7, -inf }
0x1759   :  { %v3298_v1 = vsel %vm379_vm0, %v3268_v49, -inf }
0x175a   :  { %3299 = vmax.xlane.f32.xlu1 %v3298_v1 }
0x175b   :  { %3296 = vmax.xlane.f32.xlu0 %v3295_v16  ;;  %v11246_v21 = vpop.f32.mrb[84].mxu0 }
0x175c   :  { %v3280_v39 = vpop.f32.mrb[85].mxu0  ;;  %v3289_v17 = vadd.f32 %v14790_v50, %v11246_v21 }
0x175d   :  { %v11247_v0 = vpop.f32.mrb[86].mxu0  ;;  %v3281_v29 = vadd.f32 %v14785_v26, %v3280_v39 }
0x175e   :  { %v3283_v53 = vpop.f32.mrb[87].mxu0  ;;  %v3313_v19 = vsel %vm379_vm0, %v3289_v17, -inf  ;;  %v3292_v13 = vadd.f32 %v14801_v10, %v11247_v0 }
0x175f   :  { %3305 = vmax.xlane.f32.xlu0 %v3304_v2  ;;  %v3307_v62 = vsel %vm379_vm0, %v3281_v29, -inf  ;;  %v14893_v12 = vadd.f32 %v14794_v23, %v3283_v53 }
0x1760   :  { %v3316_v51 = vsel %vm379_vm0, %v3292_v13, -inf }
0x1761   :  { %v3310_v8 = vsel %vm379_vm0, %v14893_v12, -inf }
0x1763   :  { %3314 = vmax.xlane.f32.xlu0 %v3313_v19 }
0x1767   :  { %3308 = vmax.xlane.f32.xlu0 %v3307_v62 }
0x176b   :  { %3393 = vrot.lane.b32.xlu1 %v14737_v32, %s13594_s14 }
0x176f   :  { %3395 = vrot.lane.b32.xlu1 %v14751_v44, %s13594_s14 }
0x177d   :  { %3391 = vrot.lane.b32.xlu0 %v14739_v20, %s13594_s14 }
0x1793   :  { %3317 = vmax.xlane.f32.xlu1 %v3316_v51 }
0x1797   :  { %3311 = vmax.xlane.f32.xlu1 %v3310_v8 }
0x17a8   :  { %3397 = vrot.lane.b32.xlu1 %v14748_v54, %s13594_s14 }
0x17e4   :  { %v3303_v46 = vpop.xlane.xlu0 %3302 }
0x17e5   :  { %v3321_v15 = vsub.f32 %v3273_v11, %v3303_v46 }
0x17e7   :  { %v3331_v47 = vmul.f32 1.442695, %v3321_v15  ;;  %v3300_v58 = vpop.xlane.xlu1 %3299 }
0x17e8   :  { %v3297_v45 = vpop.xlane.xlu0 %3296  ;;  %v3320_v57 = vsub.f32 %v3268_v49, %v3300_v58 }
0x17e9   :  { %12653 = vpow2.f32 %v3331_v47  ;;  %v3319_v43 = vsub.f32 %v3265_v24, %v3297_v45 }
0x17ea   :  { %v3329_v16 = vmul.f32 1.442695, %v3320_v57 }
0x17eb   :  { %v3327_v4 = vmul.f32 1.442695, %v3319_v43 }
0x17ec   :  { %v3306_v25 = vpop.xlane.xlu0 %3305 }
0x17ed   :  { %12655 = vpow2.f32 %v3327_v4  ;;  %v3322_v1 = vsub.f32 %v3276_v7, %v3306_v25  ;;  %v3394_v7 = vpop.permute.xlu1 %3393 }
0x17ef   :  { %v3333_v21 = vmul.f32 1.442695, %v3322_v1 }
0x17f0   :  { %v3315_v39 = vpop.xlane.xlu0 %3314 }
0x17f1   :  { %12657 = vpow2.f32 %v3333_v21  ;;  %v3325_v0 = vsub.f32 %v3289_v17, %v3315_v39 }
0x17f2   :  { %12659 = vpow2.f32 %v3329_v16 }
0x17f3   :  { %v14900_v53 = vpop.eup %12653  ;;  %v3339_v2 = vmul.f32 1.442695, %v3325_v0 }
0x17f4   :  { %v3309_v11 = vpop.xlane.xlu0 %3308  ;;  %v3349_v19 = vsel %vm379_vm0, %v14900_v53, 0.0 }
0x17f5   :  { %12661 = vpow2.f32 %v3339_v2  ;;  %v3323_v24 = vsub.f32 %v3281_v29, %v3309_v11  ;;  %3350 = vadd.xlane.f32.xlu0 %v3349_v19  ;;  %v3396_v29 = vpop.permute.xlu1 %3395 }
0x17f7   :  { %v14904_v49 = vpop.eup %12655  ;;  %v3335_v62 = vmul.f32 1.442695, %v3323_v24 }
0x17f8   :  { %v3392_v51 = vpop.permute.xlu0 %3391  ;;  %v3343_v8 = vsel %vm379_vm0, %v14904_v49, 0.0 }
0x17f9   :  { %12663 = vpow2.f32 %v3335_v62  ;;  %3344 = vadd.xlane.f32.xlu0 %v3343_v8  ;;  %11248 = vmatprep.subr.bf16.mxu1 %v3392_v51 }
0x17fa   :  { %11249 = vmatpush3.bf16.msra.mxu1 %v3392_v51 }
0x17fb   :  { %v12658_v17 = vpop.eup %12657  ;;  %11250 = vmatprep.subr.bf16.mxu1 %v3394_v7 }
0x17fc   :  { %v3352_v46 = vsel %vm379_vm0, %v12658_v17, 0.0  ;;  %v12660_v15 = vpop.eup %12659 }
0x17fd   :  { %3353 = vadd.xlane.f32.xlu1 %v3352_v46  ;;  %v3346_v58 = vsel %vm379_vm0, %v12660_v15, 0.0 }
0x17fe   :  { %11251 = vmatpush3.bf16.msra.mxu1 %v3394_v7 }
0x17ff   :  { %v14909_v47 = vpop.eup %12661  ;;  %11252 = vmatprep.subr.bf16.mxu1 %v3396_v29 }
0x1800   :  { %v3361_v45 = vsel %vm379_vm0, %v14909_v47, 0.0 }
0x1801   :  { %3347 = vadd.xlane.f32.xlu1 %v3346_v58  ;;  %3362 = vadd.xlane.f32.xlu0 %v3361_v45 }
0x1802   :  { %11253 = vmatpush3.bf16.msra.mxu1 %v3396_v29 }
0x1803   :  { %v14914_v43 = vpop.eup %12663 }
0x1804   :  { %v3355_v57 = vsel %vm379_vm0, %v14914_v43, 0.0 }
0x1805   :  { %3356 = vadd.xlane.f32.xlu0 %v3355_v57 }
0x1812   :  { %3490 = vrot.lane.b32.xlu1 %v14711_v28, %s13595_s8 }
0x1816   :  { %3492 = vrot.lane.b32.xlu1 %v14731_v36, %s13595_s8 }
0x1820   :  { %v3318_v4 = vpop.xlane.xlu1 %3317 }
0x1821   :  { %v3326_v25 = vsub.f32 %v3292_v13, %v3318_v4 }
0x1823   :  { %v3341_v1 = vmul.f32 1.442695, %v3326_v25 }
0x1824   :  { %v3312_v16 = vpop.xlane.xlu1 %3311 }
0x1825   :  { %12665 = vpow2.f32 %v3341_v1  ;;  %v3324_v21 = vsub.f32 %v14893_v12, %v3312_v16 }
0x1827   :  { %v3337_v39 = vmul.f32 1.442695, %v3324_v21 }
0x1828   :  { %v3398_v0 = vpop.permute.xlu1 %3397 }
0x1829   :  { %11254 = vmatprep.subr.bf16.mxu1 %v3398_v0  ;;  %12667 = vpow2.f32 %v3337_v39 }
0x182a   :  { %11255 = vmatpush3.bf16.msra.mxu1 %v3398_v0 }
0x182f   :  { %v12666_v2 = vpop.eup %12665 }
0x1830   :  { %v3364_v11 = vsel %vm379_vm0, %v12666_v2, 0.0 }
0x1831   :  { %3365 = vadd.xlane.f32.xlu0 %v3364_v11 }
0x1833   :  { %v12668_v19 = vpop.eup %12667 }
0x1834   :  { %v3358_v24 = vsel %vm379_vm0, %v12668_v19, 0.0 }
0x183a   :  { %3359 = vadd.xlane.f32.xlu1 %v3358_v24 }
0x1847   :  { %3488 = vrot.lane.b32.xlu0 %v14715_v34, %s13595_s8 }
0x184b   :  { %3494 = vrot.lane.b32.xlu1 %v14727_v27, %s13595_s8  ;;  %3480 = vrot.lane.b32.xlu0 %v14713_v52, %s13595_s8 }
0x184f   :  { %3482 = vrot.lane.b32.xlu1 %v14709_v3, %s13595_s8  ;;  %3484 = vrot.lane.b32.xlu0 %v14729_v22, %s13595_s8 }
0x1853   :  { %3486 = vrot.lane.b32.xlu1 %v14725_v55, %s13595_s8 }
0x1882   :  { %v3351_v13 = vpop.xlane.xlu0 %3350 }
0x1886   :  { %v3345_v12 = vpop.xlane.xlu0 %3344 }
0x188a   :  { %v3354_v62 = vpop.xlane.xlu1 %3353 }
0x188b   :  { %12669 = vrcp.f32 %v3354_v62 }
0x188c   :  { %12671 = vrcp.f32 %v3345_v12 }
0x188d   :  { %12673 = vrcp.f32 %v3351_v13 }
0x188e   :  { %v3348_v7 = vpop.xlane.xlu1 %3347  ;;  %v3363_v16 = vpop.xlane.xlu0 %3362 }
0x188f   :  { %12675 = vrcp.f32 %v3348_v7 }
0x1892   :  { %v3357_v21 = vpop.xlane.xlu0 %3356  ;;  %v3491_v39 = vpop.permute.xlu1 %3490 }
0x1895   :  { %v12670_v51 = vpop.eup %12669 }
0x1896   :  { %v12672_v8 = vpop.eup %12671  ;;  %v3378_v58 = vmul.f32 %v12670_v51, %v12658_v17  ;;  %v3493_v24 = vpop.permute.xlu1 %3492 }
0x1897   :  { %v12674_v46 = vpop.eup %12673  ;;  %v3375_v45 = vmul.f32 %v12672_v8, %v14904_v49  ;;  %v3512_v49 = vsel %vm786_vm2, %v3491_v39, 0  ;;  %v3515_v51 = vsel %vm786_vm2, %v3493_v24, 0 }
0x1898   :  { %v3377_v4 = vmul.f32 %v12674_v46, %v14900_v53 }
0x1899   :  { %v12676_v29 = vpop.eup %12675 }
0x189a   :  { %v3376_v57 = vmul.f32 %v12676_v29, %v12660_v15  ;;  %v3384_v1 = vpack.c.bf16 %v3378_v58, %v3377_v4 }
0x189c   :  { %v3383_v25 = vpack.c.bf16 %v3376_v57, %v3375_v45 }
0x189e   :  { %11256 = vmatprep.mubr.msk.bf16.mxu1 %vm379_vm0, %v3383_v25 }
0x189f   :  { %11257 = vmatmul.mubr.msk.bf16.vlgmr.msra.gmra.mrb[80].mxu1 %vm379_vm0, %v3384_v1 }
0x18be   :  { %v3366_v0 = vpop.xlane.xlu0 %3365 }
0x18bf   :  { %12677 = vrcp.f32 %v3366_v0 }
0x18c0   :  { %12679 = vrcp.f32 %v3357_v21 }
0x18c1   :  { %12681 = vrcp.f32 %v3363_v16 }
0x18c2   :  { %v3489_v11 = vpop.permute.xlu0 %3488 }
0x18c3   :  { %12042 = vmatprep.subr.msk.bf16.mxu1 %vm786_vm2, %v3489_v11  ;;  %v3509_v17 = vsel %vm786_vm2, %v3489_v11, 0 }
0x18c4   :  { %11265 = vmatpush3.bf16.xpose.msra.mxu1 %v3509_v17 }
0x18c5   :  { %12043 = vmatprep.subr.msk.bf16.mxu1 %vm786_vm2, %v3491_v39 }
0x18c6   :  { %v3481_v4 = vpop.permute.xlu0 %3480 }
0x18c7   :  { %v3360_v53 = vpop.xlane.xlu1 %3359 }
0x18c8   :  { %12683 = vrcp.f32 %v3360_v53 }
0x18c9   :  { %v12678_v15 = vpop.eup %12677 }
0x18ca   :  { %v12680_v13 = vpop.eup %12679  ;;  %v3382_v7 = vmul.f32 %v12678_v15, %v12666_v2 }
0x18cb   :  { %v12682_v12 = vpop.eup %12681  ;;  %v3379_v8 = vmul.f32 %v12680_v13, %v14914_v43  ;;  %v3495_v29 = vpop.permute.xlu1 %3494 }
0x18cc   :  { %11267 = vmatpush3.bf16.xpose.msra.mxu1 %v3512_v49  ;;  %v3381_v58 = vmul.f32 %v12682_v12, %v14909_v47  ;;  %v3518_v2 = vsel %vm786_vm2, %v3495_v29, 0 }
0x18cd   :  { %12044 = vmatprep.subr.msk.bf16.mxu1 %vm786_vm2, %v3493_v24 }
0x18ce   :  { %v3386_v57 = vpack.c.bf16 %v3382_v7, %v3381_v58 }
0x18cf   :  { %v3483_v43 = vpop.permute.xlu1 %3482 }
0x18d2   :  { %v12684_v62 = vpop.eup %12683 }
0x18d3   :  { %v3380_v46 = vmul.f32 %v12684_v62, %v12668_v19  ;;  %v3485_v19 = vpop.permute.xlu0 %3484  ;;  %v3487_v47 = vpop.permute.xlu1 %3486 }
0x18d4   :  { %11269 = vmatpush3.bf16.xpose.msra.mxu1 %v3515_v51 }
0x18d5   :  { %12045 = vmatprep.subr.msk.bf16.mxu1 %vm786_vm2, %v3495_v29  ;;  %v3385_v45 = vpack.c.bf16 %v3380_v46, %v3379_v8 }
0x18d7   :  { %11260 = vmatprep.mubr.msk.bf16.mxu1 %vm379_vm0, %v3385_v45 }
0x18d8   :  { %11261 = vmatmul.mubr.msk.bf16.gmra.mrb[84].mxu1 %vm379_vm0, %v3386_v57 }
0x18d9   :  { %11272 = vmatprep.mubr.msk.bf16.mxu1 %vm786_vm2, %v3481_v4 }
0x18dc   :  { %11271 = vmatpush3.bf16.xpose.msra.mxu1 %v3518_v2 }
0x18e3   :  { %11273 = vmatmul.mubr.msk.bf16.vlgmr.msra.gmra.mrb[88].mxu1 %vm786_vm2, %v3483_v43 }
0x18e4   :  { %11276 = vmatprep.mubr.msk.bf16.mxu1 %vm786_vm2, %v3485_v19 }
0x18eb   :  { %11277 = vmatmul.mubr.msk.bf16.gmra.mrb[92].mxu1 %vm786_vm2, %v3487_v47 }
0x1972   :  { %v14957_v25 = vpop.f32.mrb[80].mxu1 }
0x1973   :  { %v14959_v1 = vpop.f32.mrb[81].mxu1 }
0x1974   :  { %v14961_v16 = vpop.f32.mrb[82].mxu1 }
0x1975   :  { %v12209_v21 = vpack.i.bf16 %v14961_v16, %v14957_v25  ;;  %v14965_v39 = vpop.f32.mrb[83].mxu1 }
0x1976   :  { %v12204_v0 = vpack.i.bf16 %v14965_v39, %v14959_v1 }
0x19ab   :  { %v14969_v11 = vpop.f32.mrb[84].mxu1 }
0x19ac   :  { %v14971_v24 = vpop.f32.mrb[85].mxu1 }
0x19ad   :  { %v14973_v17 = vpop.f32.mrb[86].mxu1 }
0x19ae   :  { %v14977_v49 = vpop.f32.mrb[87].mxu1 }
0x19b6   :  { %v11274_v13 = vpop.f32.mrb[88].mxu1 }
0x19b7   :  { %v3563_v12 = vadd.f32 %v14770_v42, %v11274_v13  ;;  %v3554_v62 = vpop.f32.mrb[89].mxu1 }
0x19b8   :  { %v11275_v7 = vpop.f32.mrb[90].mxu1  ;;  %v3555_v51 = vadd.f32 %v14766_v9, %v3554_v62 }
0x19b9   :  { %v3557_v8 = vpop.f32.mrb[91].mxu1  ;;  %v3591_v46 = vsel %vm379_vm0, %v3563_v12, -inf  ;;  %v3566_v45 = vadd.f32 %v14779_v5, %v11275_v7 }
0x19ba   :  { %v3558_v29 = vadd.f32 %v14774_v37, %v3557_v8  ;;  %3592 = vmax.xlane.f32.xlu0 %v3591_v46  ;;  %v3585_v57 = vsel %vm379_vm0, %v3555_v51, -inf }
0x19bb   :  { %v3594_v19 = vsel %vm379_vm0, %v3566_v45, -inf }
0x19bc   :  { %v3588_v58 = vsel %vm379_vm0, %v3558_v29, -inf }
0x19bd   :  { %3589 = vmax.xlane.f32.xlu1 %v3588_v58 }
0x19be   :  { %3586 = vmax.xlane.f32.xlu0 %v3585_v57  ;;  %v11278_v4 = vpop.f32.mrb[92].mxu1 }
0x19bf   :  { %v3570_v42 = vpop.f32.mrb[93].mxu1  ;;  %v3579_v43 = vadd.f32 %v14790_v50, %v11278_v4 }
0x19c0   :  { %v11279_v2 = vpop.f32.mrb[94].mxu1  ;;  %v3571_v37 = vadd.f32 %v14785_v26, %v3570_v42 }
0x19c1   :  { %v3573_v9 = vpop.f32.mrb[95].mxu1  ;;  %v3603_v47 = vsel %vm379_vm0, %v3579_v43, -inf  ;;  %v3582_v50 = vadd.f32 %v14801_v10, %v11279_v2 }
0x19c2   :  { %3595 = vmax.xlane.f32.xlu0 %v3594_v19  ;;  %v3597_v5 = vsel %vm379_vm0, %v3571_v37, -inf  ;;  %v15001_v13 = vadd.f32 %v14794_v23, %v3573_v9 }
0x19c3   :  { %v3606_v26 = vsel %vm379_vm0, %v3582_v50, -inf }
0x19c4   :  { %v3600_v62 = vsel %vm379_vm0, %v15001_v13, -inf }
0x19c6   :  { %3604 = vmax.xlane.f32.xlu0 %v3603_v47 }
0x19ca   :  { %3598 = vmax.xlane.f32.xlu0 %v3597_v5 }
0x19ce   :  { %3679 = vrot.lane.b32.xlu1 %v14737_v32, %s13595_s8 }
0x19d2   :  { %3681 = vrot.lane.b32.xlu1 %v14751_v44, %s13595_s8 }
0x19e0   :  { %3677 = vrot.lane.b32.xlu0 %v14739_v20, %s13595_s8 }
0x19f6   :  { %3607 = vmax.xlane.f32.xlu1 %v3606_v26 }
0x19fa   :  { %3601 = vmax.xlane.f32.xlu1 %v3600_v62 }
0x1a0b   :  { %3683 = vrot.lane.b32.xlu1 %v14748_v54, %s13595_s8 }
0x1a47   :  { %v3593_v7 = vpop.xlane.xlu0 %3592 }
0x1a48   :  { %v3611_v8 = vsub.f32 %v3563_v12, %v3593_v7 }
0x1a4a   :  { %v3621_v46 = vmul.f32 1.442695, %v3611_v8  ;;  %v3590_v58 = vpop.xlane.xlu1 %3589 }
0x1a4b   :  { %v3587_v57 = vpop.xlane.xlu0 %3586  ;;  %v3610_v4 = vsub.f32 %v3558_v29, %v3590_v58 }
0x1a4c   :  { %12685 = vpow2.f32 %v3621_v46  ;;  %v3609_v10 = vsub.f32 %v3555_v51, %v3587_v57 }
0x1a4d   :  { %v3619_v9 = vmul.f32 1.442695, %v3610_v4 }
0x1a4e   :  { %v3617_v23 = vmul.f32 1.442695, %v3609_v10 }
0x1a4f   :  { %v3596_v42 = vpop.xlane.xlu0 %3595 }
0x1a50   :  { %12687 = vpow2.f32 %v3617_v23  ;;  %v3612_v2 = vsub.f32 %v3566_v45, %v3596_v42  ;;  %v3680_v45 = vpop.permute.xlu1 %3679 }
0x1a52   :  { %v3623_v19 = vmul.f32 1.442695, %v3612_v2 }
0x1a53   :  { %v3605_v47 = vpop.xlane.xlu0 %3604 }
0x1a54   :  { %12689 = vpow2.f32 %v3623_v19  ;;  %v3615_v5 = vsub.f32 %v3579_v43, %v3605_v47 }
0x1a55   :  { %12691 = vpow2.f32 %v3619_v9 }
0x1a56   :  { %v15008_v26 = vpop.eup %12685  ;;  %v3629_v62 = vmul.f32 1.442695, %v3615_v5 }
0x1a57   :  { %v3599_v12 = vpop.xlane.xlu0 %3598  ;;  %v3639_v7 = vsel %vm379_vm0, %v15008_v26, 0.0 }
0x1a58   :  { %12693 = vpow2.f32 %v3629_v62  ;;  %v3613_v51 = vsub.f32 %v3571_v37, %v3599_v12  ;;  %3640 = vadd.xlane.f32.xlu0 %v3639_v7  ;;  %v3682_v37 = vpop.permute.xlu1 %3681 }
0x1a5a   :  { %v15012_v29 = vpop.eup %12687  ;;  %v3625_v8 = vmul.f32 1.442695, %v3613_v51 }
0x1a5b   :  { %v3678_v46 = vpop.permute.xlu0 %3677  ;;  %v3633_v58 = vsel %vm379_vm0, %v15012_v29, 0.0 }
0x1a5c   :  { %12695 = vpow2.f32 %v3625_v8  ;;  %3634 = vadd.xlane.f32.xlu0 %v3633_v58  ;;  %11280 = vmatprep.subr.bf16.mxu0 %v3678_v46 }
0x1a5d   :  { %11281 = vmatpush3.bf16.msra.mxu0 %v3678_v46 }
0x1a5e   :  { %v12690_v43 = vpop.eup %12689  ;;  %11282 = vmatprep.subr.bf16.mxu0 %v3680_v45 }
0x1a5f   :  { %v3642_v57 = vsel %vm379_vm0, %v12690_v43, 0.0  ;;  %v12692_v10 = vpop.eup %12691 }
0x1a60   :  { %3643 = vadd.xlane.f32.xlu1 %v3642_v57  ;;  %v3636_v23 = vsel %vm379_vm0, %v12692_v10, 0.0 }
0x1a61   :  { %11283 = vmatpush3.bf16.msra.mxu0 %v3680_v45 }
0x1a62   :  { %v15017_v4 = vpop.eup %12693  ;;  %11284 = vmatprep.subr.bf16.mxu0 %v3682_v37 }
0x1a63   :  { %v3651_v42 = vsel %vm379_vm0, %v15017_v4, 0.0 }
0x1a64   :  { %3637 = vadd.xlane.f32.xlu1 %v3636_v23  ;;  %3652 = vadd.xlane.f32.xlu0 %v3651_v42 }
0x1a65   :  { %11285 = vmatpush3.bf16.msra.mxu0 %v3682_v37 }
0x1a66   :  { %v15022_v2 = vpop.eup %12695 }
0x1a67   :  { %v3645_v9 = vsel %vm379_vm0, %v15022_v2, 0.0 }
0x1a68   :  { %3646 = vadd.xlane.f32.xlu0 %v3645_v9 }
0x1a75   :  { %3776 = vrot.lane.b32.xlu1 %v14711_v28, %s13596_s7 }
0x1a79   :  { %3778 = vrot.lane.b32.xlu1 %v14731_v36, %s13596_s7 }
0x1a83   :  { %v3608_v19 = vpop.xlane.xlu1 %3607 }
0x1a84   :  { %v3616_v47 = vsub.f32 %v3582_v50, %v3608_v19 }
0x1a86   :  { %v3631_v5 = vmul.f32 1.442695, %v3616_v47 }
0x1a87   :  { %v3602_v62 = vpop.xlane.xlu1 %3601 }
0x1a88   :  { %12697 = vpow2.f32 %v3631_v5  ;;  %v3614_v12 = vsub.f32 %v15001_v13, %v3602_v62 }
0x1a8a   :  { %v3627_v7 = vmul.f32 1.442695, %v3614_v12 }
0x1a8b   :  { %v3684_v51 = vpop.permute.xlu1 %3683 }
0x1a8c   :  { %11286 = vmatprep.subr.bf16.mxu0 %v3684_v51  ;;  %12699 = vpow2.f32 %v3627_v7 }
0x1a8d   :  { %11287 = vmatpush3.bf16.msra.mxu0 %v3684_v51 }
0x1a92   :  { %v12698_v8 = vpop.eup %12697 }
0x1a93   :  { %v3654_v45 = vsel %vm379_vm0, %v12698_v8, 0.0 }
0x1a94   :  { %3655 = vadd.xlane.f32.xlu0 %v3654_v45 }
0x1a96   :  { %v12700_v28 = vpop.eup %12699 }
0x1a97   :  { %v3648_v46 = vsel %vm379_vm0, %v12700_v28, 0.0 }
0x1a9d   :  { %3649 = vadd.xlane.f32.xlu1 %v3648_v46 }
0x1aaa   :  { %3774 = vrot.lane.b32.xlu0 %v14715_v34, %s13596_s7 }
0x1aae   :  { %3780 = vrot.lane.b32.xlu1 %v14727_v27, %s13596_s7  ;;  %3766 = vrot.lane.b32.xlu0 %v14713_v52, %s13596_s7 }
0x1ab2   :  { %3768 = vrot.lane.b32.xlu1 %v14709_v3, %s13596_s7  ;;  %3770 = vrot.lane.b32.xlu0 %v14729_v22, %s13596_s7 }
0x1ab6   :  { %3772 = vrot.lane.b32.xlu1 %v14725_v55, %s13596_s7 }
0x1ae5   :  { %v3641_v36 = vpop.xlane.xlu0 %3640 }
0x1ae9   :  { %v3635_v50 = vpop.xlane.xlu0 %3634 }
0x1aed   :  { %v3644_v13 = vpop.xlane.xlu1 %3643 }
0x1aee   :  { %12701 = vrcp.f32 %v3644_v13 }
0x1aef   :  { %12703 = vrcp.f32 %v3635_v50 }
0x1af0   :  { %12705 = vrcp.f32 %v3641_v36 }
0x1af1   :  { %v3638_v34 = vpop.xlane.xlu1 %3637  ;;  %v3653_v9 = vpop.xlane.xlu0 %3652 }
0x1af2   :  { %12707 = vrcp.f32 %v3638_v34 }
0x1af5   :  { %v3647_v19 = vpop.xlane.xlu0 %3646  ;;  %v3777_v47 = vpop.permute.xlu1 %3776 }
0x1af8   :  { %v12702_v27 = vpop.eup %12701 }
0x1af9   :  { %v12704_v58 = vpop.eup %12703  ;;  %v3668_v37 = vmul.f32 %v12702_v27, %v12690_v43  ;;  %v3779_v12 = vpop.permute.xlu1 %3778 }
0x1afa   :  { %v12706_v52 = vpop.eup %12705  ;;  %v3665_v3 = vmul.f32 %v12704_v58, %v15012_v29  ;;  %v3798_v29 = vsel %vm786_vm2, %v3777_v47, 0  ;;  %v3801_v36 = vsel %vm786_vm2, %v3779_v12, 0 }
0x1afb   :  { %v3667_v22 = vmul.f32 %v12706_v52, %v15008_v26 }
0x1afc   :  { %v12708_v57 = vpop.eup %12707 }
0x1afd   :  { %v3666_v23 = vmul.f32 %v12708_v57, %v12692_v10  ;;  %v3674_v55 = vpack.c.bf16 %v3668_v37, %v3667_v22 }
0x1aff   :  { %v3673_v42 = vpack.c.bf16 %v3666_v23, %v3665_v3 }
0x1b01   :  { %11288 = vmatprep.mubr.msk.bf16.mxu0 %vm379_vm0, %v3673_v42 }
0x1b02   :  { %11289 = vmatmul.mubr.msk.bf16.vlgmr.msra.gmra.mrb[88].mxu0 %vm379_vm0, %v3674_v55 }
0x1b21   :  { %v3656_v5 = vpop.xlane.xlu0 %3655 }
0x1b22   :  { %12709 = vrcp.f32 %v3656_v5 }
0x1b23   :  { %12711 = vrcp.f32 %v3647_v19 }
0x1b24   :  { %12713 = vrcp.f32 %v3653_v9 }
0x1b25   :  { %v3775_v62 = vpop.permute.xlu0 %3774 }
0x1b26   :  { %12046 = vmatprep.subr.msk.bf16.mxu0 %vm786_vm2, %v3775_v62  ;;  %v3795_v43 = vsel %vm786_vm2, %v3775_v62, 0 }
0x1b27   :  { %11297 = vmatpush3.bf16.xpose.msra.mxu0 %v3795_v43 }
0x1b28   :  { %12047 = vmatprep.subr.msk.bf16.mxu0 %vm786_vm2, %v3777_v47 }
0x1b29   :  { %v3767_v57 = vpop.permute.xlu0 %3766 }
0x1b2a   :  { %v3650_v26 = vpop.xlane.xlu1 %3649 }
0x1b2b   :  { %12715 = vrcp.f32 %v3650_v26 }
0x1b2c   :  { %v12710_v10 = vpop.eup %12709 }
0x1b2d   :  { %v12712_v7 = vpop.eup %12711  ;;  %v3672_v46 = vmul.f32 %v12710_v10, %v12698_v8 }
0x1b2e   :  { %v12714_v51 = vpop.eup %12713  ;;  %v3669_v50 = vmul.f32 %v12712_v7, %v15022_v2  ;;  %v3781_v34 = vpop.permute.xlu1 %3780 }
0x1b2f   :  { %11299 = vmatpush3.bf16.xpose.msra.mxu0 %v3798_v29  ;;  %v3671_v27 = vmul.f32 %v12714_v51, %v15017_v4  ;;  %v3804_v8 = vsel %vm786_vm2, %v3781_v34, 0  ;;  %v13117_v29 = vld [vmem:[%s16924_s15] sm:$0xff] }
0x1b30   :  { %12048 = vmatprep.subr.msk.bf16.mxu0 %vm786_vm2, %v3779_v12 }
0x1b31   :  { %v3676_v52 = vpack.c.bf16 %v3672_v46, %v3671_v27  ;;  %v13120_v27 = vld [vmem:[%s16924_s15 + $0x18] sm:$0xff] }
0x1b32   :  { %v3769_v2 = vpop.permute.xlu1 %3768 }
0x1b35   :  { %v12716_v45 = vpop.eup %12715 }
0x1b36   :  { %v3670_v13 = vmul.f32 %v12716_v45, %v12700_v28  ;;  %v3771_v28 = vpop.permute.xlu0 %3770  ;;  %v3773_v4 = vpop.permute.xlu1 %3772  ;;  %v13118_v45 = vld [vmem:[%s16924_s15 + $0x10] sm:$0xff] }
0x1b37   :  { %11301 = vmatpush3.bf16.xpose.msra.mxu0 %v3801_v36  ;;  %v13119_v36 = vld [vmem:[%s16924_s15 + $0x8] sm:$0xff] }
0x1b38   :  { %12049 = vmatprep.subr.msk.bf16.mxu0 %vm786_vm2, %v3781_v34  ;;  %v3675_v58 = vpack.c.bf16 %v3670_v13, %v3669_v50 }
0x1b3a   :  { %11292 = vmatprep.mubr.msk.bf16.mxu0 %vm379_vm0, %v3675_v58 }
0x1b3b   :  { %11293 = vmatmul.mubr.msk.bf16.gmra.mrb[92].mxu0 %vm379_vm0, %v3676_v52 }
0x1b3c   :  { %11304 = vmatprep.mubr.msk.bf16.mxu0 %vm786_vm2, %v3767_v57 }
0x1b3f   :  { %11303 = vmatpush3.bf16.xpose.msra.mxu0 %v3804_v8 }
0x1b46   :  { %11305 = vmatmul.mubr.msk.bf16.vlgmr.msra.gmra.mrb[96].mxu0 %vm786_vm2, %v3769_v2 }
0x1b47   :  { %11308 = vmatprep.mubr.msk.bf16.mxu0 %vm786_vm2, %v3771_v28 }
0x1b4e   :  { %11309 = vmatmul.mubr.msk.bf16.gmra.mrb[100].mxu0 %vm786_vm2, %v3773_v4  ;;  %v13121_v4 = vld [vmem:[%s16924_s15 + $0x20] sm:$0xff] }
0x1bd5   :  { %v15065_v37 = vpop.f32.mrb[88].mxu0 }
0x1bd6   :  { %v15067_v3 = vpop.f32.mrb[89].mxu0 }
0x1bd7   :  { %v15069_v23 = vpop.f32.mrb[90].mxu0 }
0x1bd8   :  { %v12219_v22 = vpack.i.bf16 %v15069_v23, %v15065_v37  ;;  %v15073_v42 = vpop.f32.mrb[91].mxu0 }
0x1bd9   :  { %v12214_v55 = vpack.i.bf16 %v15073_v42, %v15067_v3 }
0x1c0e   :  { %v15077_v9 = vpop.f32.mrb[92].mxu0 }
0x1c0f   :  { %v15079_v19 = vpop.f32.mrb[93].mxu0 }
0x1c10   :  { %v15081_v47 = vpop.f32.mrb[94].mxu0 }
0x1c11   :  { %v15085_v62 = vpop.f32.mrb[95].mxu0 }
0x1c19   :  { %v11306_v43 = vpop.f32.mrb[96].mxu0 }
0x1c1a   :  { %v3840_v26 = vpop.f32.mrb[97].mxu0  ;;  %v3849_v46 = vadd.f32 %v13118_v45, %v11306_v43  ;;  %v13123_v45 = vld [vmem:[%s16924_s15 + $0x38] sm:$0xff] }
0x1c1b   :  { %v3841_v10 = vadd.f32 %v13117_v29, %v3840_v26  ;;  %v11307_v7 = vpop.f32.mrb[98].mxu0  ;;  %v13122_v26 = vld [vmem:[%s16924_s15 + $0x28] sm:$0xff] }
0x1c1c   :  { %v3843_v51 = vpop.f32.mrb[99].mxu0  ;;  %v3852_v58 = vadd.f32 %v13120_v27, %v11307_v7  ;;  %v3877_v57 = vsel %vm379_vm0, %v3849_v46, -inf  ;;  %v13124_v7 = vld [vmem:[%s16924_s15 + $0x30] sm:$0xff] }
0x1c1d   :  { %v3844_v50 = vadd.f32 %v13119_v36, %v3843_v51  ;;  %v3871_v13 = vsel %vm379_vm0, %v3841_v10, -inf }
0x1c1e   :  { %3872 = vmax.xlane.f32.xlu0 %v3871_v13  ;;  %v3880_v51 = vsel %vm379_vm0, %v3852_v58, -inf }
0x1c1f   :  { %v3874_v34 = vsel %vm379_vm0, %v3844_v50, -inf }
0x1c20   :  { %3875 = vmax.xlane.f32.xlu1 %v3874_v34 }
0x1c21   :  { %v11310_v52 = vpop.f32.mrb[100].mxu0 }
0x1c22   :  { %3878 = vmax.xlane.f32.xlu0 %v3877_v57  ;;  %v3856_v8 = vpop.f32.mrb[101].mxu0  ;;  %v3865_v34 = vadd.f32 %v13124_v7, %v11310_v52 }
0x1c23   :  { %v11311_v2 = vpop.f32.mrb[102].mxu0  ;;  %v3857_v43 = vadd.f32 %v13121_v4, %v3856_v8 }
0x1c24   :  { %v3859_v28 = vpop.f32.mrb[103].mxu0  ;;  %v3868_v36 = vadd.f32 %v13123_v45, %v11311_v2  ;;  %v3889_v8 = vsel %vm379_vm0, %v3865_v34, -inf }
0x1c25   :  { %v3860_v29 = vadd.f32 %v13122_v26, %v3859_v28  ;;  %v3883_v27 = vsel %vm379_vm0, %v3857_v43, -inf }
0x1c26   :  { %3881 = vmax.xlane.f32.xlu0 %v3880_v51  ;;  %v3892_v57 = vsel %vm379_vm0, %v3868_v36, -inf }
0x1c27   :  { %v3886_v13 = vsel %vm379_vm0, %v3860_v29, -inf }
0x1c28   :  { %3887 = vmax.xlane.f32.xlu1 %v3886_v13 }
0x1c2a   :  { %3884 = vmax.xlane.f32.xlu0 %v3883_v27 }
0x1c2c   :  { %3893 = vmax.xlane.f32.xlu1 %v3892_v57 }
0x1c2e   :  { %3890 = vmax.xlane.f32.xlu0 %v3889_v8 }
0x1c44   :  { %3963 = vrot.lane.b32.xlu0 %v14739_v20, %s13596_s7 }
0x1cab   :  { %v3873_v28 = vpop.xlane.xlu0 %3872 }
0x1cac   :  { %v3895_v4 = vsub.f32 %v3841_v10, %v3873_v28 }
0x1cad   :  { %v3876_v2 = vpop.xlane.xlu1 %3875 }
0x1cae   :  { %v3903_v45 = vmul.f32 1.442695, %v3895_v4  ;;  %v3896_v13 = vsub.f32 %v3844_v50, %v3876_v2 }
0x1caf   :  { %v3879_v26 = vpop.xlane.xlu0 %3878 }
0x1cb0   :  { %v3897_v51 = vsub.f32 %v3849_v46, %v3879_v26  ;;  %v3905_v57 = vmul.f32 1.442695, %v3896_v13 }
0x1cb2   :  { %v3907_v52 = vmul.f32 1.442695, %v3897_v51 }
0x1cb3   :  { %v3882_v7 = vpop.xlane.xlu0 %3881 }
0x1cb4   :  { %12717 = vpow2.f32 %v3907_v52  ;;  %v3898_v27 = vsub.f32 %v3852_v58, %v3882_v7 }
0x1cb5   :  { %v3888_v12 = vpop.xlane.xlu1 %3887  ;;  %12719 = vpow2.f32 %v3903_v45 }
0x1cb6   :  { %v3909_v5 = vmul.f32 1.442695, %v3898_v27 }
0x1cb7   :  { %v3885_v15 = vpop.xlane.xlu0 %3884 }
0x1cb8   :  { %12721 = vpow2.f32 %v3909_v5  ;;  %v3899_v8 = vsub.f32 %v3857_v43, %v3885_v15  ;;  %v3900_v15 = vsub.f32 %v3860_v29, %v3888_v12 }
0x1cb9   :  { %12723 = vpow2.f32 %v3905_v57  ;;  %v3894_v20 = vpop.xlane.xlu1 %3893 }
0x1cba   :  { %v3911_v46 = vmul.f32 1.442695, %v3899_v8  ;;  %v3902_v4 = vsub.f32 %v3868_v36, %v3894_v20  ;;  %v3913_v51 = vmul.f32 1.442695, %v3900_v15 }
0x1cbb   :  { %v3891_v53 = vpop.xlane.xlu0 %3890 }
0x1cbc   :  { %v3901_v10 = vsub.f32 %v3865_v34, %v3891_v53  ;;  %v3917_v43 = vmul.f32 1.442695, %v3902_v4 }
0x1cbe   :  { %v15107_v28 = vpop.eup %12717  ;;  %v3915_v50 = vmul.f32 1.442695, %v3901_v10 }
0x1cbf   :  { %v3964_v2 = vpop.permute.xlu0 %3963  ;;  %v3925_v58 = vsel %vm379_vm0, %v15107_v28, 0.0  ;;  %v12720_v26 = vpop.eup %12719 }
0x1cc0   :  { %12725 = vpow2.f32 %v3915_v50  ;;  %3926 = vadd.xlane.f32.xlu0 %v3925_v58  ;;  %11312 = vmatprep.subr.bf16.mxu1 %v3964_v2  ;;  %v3919_v53 = vsel %vm379_vm0, %v12720_v26, 0.0 }
0x1cc1   :  { %11313 = vmatpush3.bf16.msra.mxu1 %v3964_v2  ;;  %12727 = vpow2.f32 %v3911_v46 }
0x1cc2   :  { %v15111_v5 = vpop.eup %12721  ;;  %12729 = vpow2.f32 %v3917_v43 }
0x1cc3   :  { %v3928_v36 = vsel %vm379_vm0, %v15111_v5, 0.0  ;;  %v12724_v34 = vpop.eup %12723  ;;  %12731 = vpow2.f32 %v3913_v51 }
0x1cc4   :  { %3920 = vadd.xlane.f32.xlu0 %v3919_v53  ;;  %3929 = vadd.xlane.f32.xlu1 %v3928_v36  ;;  %v3922_v45 = vsel %vm379_vm0, %v12724_v34, 0.0 }
0x1cc8   :  { %3923 = vadd.xlane.f32.xlu1 %v3922_v45 }
0x1cca   :  { %v15117_v13 = vpop.eup %12725 }
0x1ccb   :  { %v3937_v12 = vsel %vm379_vm0, %v15117_v13, 0.0  ;;  %v12728_v29 = vpop.eup %12727 }
0x1ccc   :  { %3938 = vadd.xlane.f32.xlu1 %v3937_v12  ;;  %v3931_v52 = vsel %vm379_vm0, %v12728_v29, 0.0  ;;  %v12730_v7 = vpop.eup %12729  ;;  %v12412_v12 = vld [vmem:[%s16925_s25 + $0x10] sm:$0xff]  }
0x1ccd   :  { %v3940_v27 = vsel %vm379_vm0, %v12730_v7, 0.0  ;;  %v12732_v57 = vpop.eup %12731 }
0x1cce   :  { %v3934_v8 = vsel %vm379_vm0, %v12732_v57, 0.0 }
0x1cd0   :  { %3932 = vadd.xlane.f32.xlu1 %v3931_v52  ;;  %v12413_v52 = vld [vmem:[%s16925_s25 + $0x18] sm:$0xff]  }
0x1cd4   :  { %3941 = vadd.xlane.f32.xlu1 %v3940_v27 }
0x1cd8   :  { %3935 = vadd.xlane.f32.xlu1 %v3934_v8 }
0x1cda   :  { %3967 = vrot.lane.b32.xlu0 %v14751_v44, %s13596_s7 }
0x1cde   :  { %3969 = vrot.lane.b32.xlu0 %v14748_v54, %s13596_s7 }
0x1ce2   :  { %12205 = vrot.lane.b32.xlu0 %v12204_v0, %s13597_s19 }
0x1ce6   :  { %12215 = vrot.lane.b32.xlu0 %v12214_v55, %s13577_s22 }
0x1ce9   :  { %3965 = vrot.lane.b32.xlu1 %v14737_v32, %s13596_s7 }
0x1ced   :  { %12210 = vrot.lane.b32.xlu1 %v12209_v21, %s13597_s19 }
0x1cf1   :  { %12220 = vrot.lane.b32.xlu1 %v12219_v22, %s13577_s22 }
0x1d4d   :  { %v3927_v54 = vpop.xlane.xlu0 %3926 }
0x1d51   :  { %v3930_v44 = vpop.xlane.xlu1 %3929  ;;  %v3921_v1 = vpop.xlane.xlu0 %3920 }
0x1d52   :  { %12733 = vrcp.f32 %v3921_v1  ;;  %v16932_v1 = vpack.i.bf16 %v14977_v49, %v14971_v24 }
0x1d55   :  { %v3924_v39 = vpop.xlane.xlu1 %3923  ;;  %v3968_v21 = vpop.permute.xlu0 %3967 }
0x1d56   :  { %12735 = vrcp.f32 %v3924_v39 }
0x1d57   :  { %12737 = vrcp.f32 %v3930_v44 }
0x1d58   :  { %12739 = vrcp.f32 %v3927_v54 }
0x1d59   :  { %v3939_v0 = vpop.xlane.xlu1 %3938  ;;  %v3970_v4 = vpop.permute.xlu0 %3969 }
0x1d5c   :  { %v12734_v42 = vpop.eup %12733 }
0x1d5d   :  { %v3933_v3 = vpop.xlane.xlu1 %3932  ;;  %v3951_v20 = vmul.f32 %v12734_v42, %v12720_v26 }
0x1d5e   :  { %12741 = vrcp.f32 %v3933_v3 }
0x1d60   :  { %v12736_v32 = vpop.eup %12735 }
0x1d61   :  { %v3942_v55 = vpop.xlane.xlu1 %3941  ;;  %v3952_v10 = vmul.f32 %v12736_v32, %v12724_v34  ;;  %v12738_v23 = vpop.eup %12737  ;;  %v16933_v32 = vpack.i.bf16 %v15081_v47, %v15077_v9 }
0x1d62   :  { %v12740_v22 = vpop.eup %12739  ;;  %v3954_v2 = vmul.f32 %v12738_v23, %v15111_v5 }
0x1d63   :  { %v3959_v25 = vpack.c.bf16 %v3952_v10, %v3951_v20  ;;  %v3953_v26 = vmul.f32 %v12740_v22, %v15107_v28 }
0x1d65   :  { %v3936_v16 = vpop.xlane.xlu1 %3935  ;;  %11320 = vmatprep.mubr.msk.bf16.mxu1 %vm379_vm0, %v3959_v25  ;;  %v3960_v43 = vpack.c.bf16 %v3954_v2, %v3953_v26 }
0x1d66   :  { %12743 = vrcp.f32 %v3936_v16 }
0x1d67   :  { %12745 = vrcp.f32 %v3942_v55 }
0x1d68   :  { %12747 = vrcp.f32 %v3939_v0  ;;  %v12742_v46 = vpop.eup %12741 }
0x1d69   :  { %v3966_v37 = vpop.permute.xlu1 %3965  ;;  %v3955_v15 = vmul.f32 %v12742_v46, %v12728_v29 }
0x1d6a   :  { %11314 = vmatprep.subr.bf16.mxu1 %v3966_v37 }
0x1d6b   :  { %11315 = vmatpush3.bf16.msra.mxu1 %v3966_v37 }
0x1d6c   :  { %11316 = vmatprep.subr.bf16.mxu1 %v3968_v21 }
0x1d6d   :  { %v12211_v24 = vpop.permute.xlu1 %12210 }
0x1d6e   :  { %v12213_v25 = vunpack.i.h.bf16 %v12211_v24  ;;  %v12212_v16 = vunpack.i.l.bf16 %v12211_v24 }
0x1d6f   :  { %11317 = vmatpush3.bf16.msra.mxu1 %v3968_v21 }
0x1d70   :  { %v12744_v50 = vpop.eup %12743  ;;  %11318 = vmatprep.subr.bf16.mxu1 %v3970_v4  ;;  %v4151_v22 = vsel %vm786_vm2, %v14861_v56, %v12213_v25  ;;  %v4150_v46 = vsel %vm786_vm2, %v14857_v38, %v12212_v16 }
0x1d71   :  { %v3956_v58 = vmul.f32 %v12744_v50, %v12732_v57  ;;  %v12746_v53 = vpop.eup %12745  ;;  %v12221_v49 = vpop.permute.xlu1 %12220 }
0x1d72   :  { %v12748_v34 = vpop.eup %12747  ;;  %v3958_v51 = vmul.f32 %v12746_v53, %v12730_v7  ;;  %v16931_v7 = vpack.i.bf16 %v14973_v17, %v14969_v11  ;;  %v16934_v11 = vpack.i.bf16 %v15085_v62, %v15079_v19  ;;  %v12206_v17 = vpop.permute.xlu0 %12205  ;;  %v12223_v21 = vunpack.i.h.bf16 %v12221_v49 }
0x1d73   :  { %11319 = vmatpush3.bf16.msra.mxu1 %v3970_v4  ;;  %v3961_v36 = vpack.c.bf16 %v3956_v58, %v3955_v15  ;;  %v3957_v45 = vmul.f32 %v12748_v34, %v15117_v13  ;;  %v12208_v55 = vunpack.i.h.bf16 %v12206_v17  ;;  %v12207_v20 = vunpack.i.l.bf16 %v12206_v17 }
0x1d74   :  { %11328 = vmatprep.subr.bf16.mxu1 %v12412_v12  ;;  %v12222_v9 = vunpack.i.l.bf16 %v12221_v49  ;;  %v4159_v26 = vsel %vm536_vm1, %v4151_v22, %v12223_v21  ;;  %v10196_v21 = vld [vmem:[#allocation14 + $0x1] ss:$0 sm:$0xff] }
0x1d75   :  { %v3962_v5 = vpack.c.bf16 %v3958_v51, %v3957_v45  ;;  %v4149_v19 = vsel %vm786_vm2, %v14863_v35, %v12208_v55  ;;  %v4148_v62 = vsel %vm786_vm2, %v14859_v14, %v12207_v20 }
0x1d76   :  { %11321 = vmatmul.mubr.msk.bf16.vlgmr.msra.gmra.mrb[96].mxu1 %vm379_vm0, %v3960_v43  ;;  %v12216_v10 = vpop.permute.xlu0 %12215  ;;  %v4158_v58 = vsel %vm536_vm1, %v4150_v46, %v12222_v9 }
0x1d77   :  { %11324 = vmatprep.mubr.msk.bf16.mxu1 %vm379_vm0, %v3961_v36  ;;  %11329 = vmatpush3.bf16.msra.mxu1 %v12412_v12  ;;  %v12218_v47 = vunpack.i.h.bf16 %v12216_v10  ;;  %v12217_v37 = vunpack.i.l.bf16 %v12216_v10 }
0x1d78   :  { %11330 = vmatprep.subr.bf16.mxu1 %v12413_v52 }
0x1d79   :  { %v4156_v35 = vsel %vm536_vm1, %v4148_v62, %v12217_v37  ;;  %v4157_v14 = vsel %vm536_vm1, %v4149_v19, %v12218_v47 }
0x1d7b   :  { %11331 = vmatpush3.bf16.msra.mxu1 %v12413_v52 }
0x1d7e   :  { %11325 = vmatmul.mubr.msk.bf16.gmra.mrb[100].mxu1 %vm379_vm0, %v3962_v5 }
0x1e49   :  { %v11322_v28 = vpop.f32.mrb[96].mxu1 }
0x1e4a   :  { %v4021_v29 = vpop.f32.mrb[97].mxu1 }
0x1e4b   :  { %v11323_v27 = vpop.f32.mrb[98].mxu1 }
0x1e4c   :  { %v12229_v57 = vpack.i.bf16 %v11323_v27, %v11322_v28  ;;  %v4024_v8 = vpop.f32.mrb[99].mxu1 }
0x1e4d   :  { %v12224_v54 = vpack.i.bf16 %v4024_v8, %v4021_v29 }
0x1e4e   :  { %12230 = vrot.lane.b32.xlu1 %v12229_v57, %s13598_s24 }
0x1e4f   :  { %12225 = vrot.lane.b32.xlu0 %v12224_v54, %s13598_s24 }
0x1e51   :  { %v11326_v13 = vpop.f32.mrb[100].mxu1 }
0x1e52   :  { %12240 = vrot.lane.b32.xlu1 %v16931_v7, %s13597_s19  ;;  %v4037_v44 = vpop.f32.mrb[101].mxu1 }
0x1e53   :  { %12235 = vrot.lane.b32.xlu0 %v16932_v1, %s13597_s19  ;;  %v11327_v39 = vpop.f32.mrb[102].mxu1 }
0x1e54   :  { %v12259_v0 = vpack.i.bf16 %v11327_v39, %v11326_v13  ;;  %v4040_v3 = vpop.f32.mrb[103].mxu1 }
0x1e55   :  { %v12254_v42 = vpack.i.bf16 %v4040_v3, %v4037_v44 }
0x1e56   :  { %12250 = vrot.lane.b32.xlu1 %v16933_v32, %s13577_s22 }
0x1e57   :  { %12245 = vrot.lane.b32.xlu0 %v16934_v11, %s13577_s22 }
0x1e5a   :  { %12260 = vrot.lane.b32.xlu1 %v12259_v0, %s13598_s24 }
0x1e5b   :  { %12255 = vrot.lane.b32.xlu0 %v12254_v42, %s13598_s24 }
0x1ec0   :  { %v12231_v23 = vpop.permute.xlu1 %12230 }
0x1ec1   :  { %v12233_v4 = vunpack.i.h.bf16 %v12231_v23  ;;  %v12232_v50 = vunpack.i.l.bf16 %v12231_v23  ;;  %v12226_v2 = vpop.permute.xlu0 %12225 }
0x1ec2   :  { %v12228_v15 = vunpack.i.h.bf16 %v12226_v2  ;;  %v12227_v43 = vunpack.i.l.bf16 %v12226_v2 }
0x1ec3   :  { %v4167_v53 = vsel %vm2027_vm3, %v4159_v26, %v12233_v4  ;;  %v4166_v56 = vsel %vm2027_vm3, %v4158_v58, %v12232_v50 }
0x1ec4   :  { %v4173_v36 = vpack.c.bf16 %v4167_v53, %v4166_v56  ;;  %v4164_v38 = vsel %vm2027_vm3, %v4156_v35, %v12227_v43  ;;  %v4165_v34 = vsel %vm2027_vm3, %v4157_v14, %v12228_v15  ;;  %v12241_v51 = vpop.permute.xlu1 %12240 }
0x1ec5   :  { %v12236_v45 = vpop.permute.xlu0 %12235  ;;  %v4172_v5 = vpack.c.bf16 %v4165_v34, %v4164_v38  ;;  %v12243_v12 = vunpack.i.h.bf16 %v12241_v51  ;;  %v12242_v52 = vunpack.i.l.bf16 %v12241_v51 }
0x1ec6   :  { %v12238_v29 = vunpack.i.h.bf16 %v12236_v45  ;;  %v12237_v27 = vunpack.i.l.bf16 %v12236_v45 }
0x1ec7   :  { %11332 = vmatprep.mubr.msk.bf16.mxu1 %vm2063_vm4, %v4172_v5  ;;  %v4155_v44 = vsel %vm786_vm2, %v14869_v60, %v12243_v12  ;;  %v4154_v1 = vsel %vm786_vm2, %v14865_v40, %v12242_v52 }
0x1ec8   :  { %v12251_v28 = vpop.permute.xlu1 %12250  ;;  %11333 = vmatmul.mubr.msk.bf16.vlgmr.msra.gmra.mrb[104].mxu1 %vm2063_vm4, %v4173_v36  ;;  %v4153_v0 = vsel %vm786_vm2, %v14871_v48, %v12238_v29  ;;  %v4152_v3 = vsel %vm786_vm2, %v14867_v41, %v12237_v27 }
0x1ec9   :  { %v12246_v57 = vpop.permute.xlu0 %12245  ;;  %v12253_v8 = vunpack.i.h.bf16 %v12251_v28  ;;  %v12252_v54 = vunpack.i.l.bf16 %v12251_v28 }
0x1eca   :  { %v12248_v13 = vunpack.i.h.bf16 %v12246_v57  ;;  %v12247_v7 = vunpack.i.l.bf16 %v12246_v57 }
0x1ecb   :  { %v4162_v24 = vsel %vm536_vm1, %v4154_v1, %v12252_v54  ;;  %v4163_v17 = vsel %vm536_vm1, %v4155_v44, %v12253_v8 }
0x1ecc   :  { %v12261_v39 = vpop.permute.xlu1 %12260  ;;  %v4160_v60 = vsel %vm536_vm1, %v4152_v3, %v12247_v7  ;;  %v4161_v40 = vsel %vm536_vm1, %v4153_v0, %v12248_v13 }
0x1ecd   :  { %v12263_v42 = vunpack.i.h.bf16 %v12261_v39  ;;  %v12262_v32 = vunpack.i.l.bf16 %v12261_v39  ;;  %v12256_v11 = vpop.permute.xlu0 %12255 }
0x1ece   :  { %v12258_v49 = vunpack.i.h.bf16 %v12256_v11  ;;  %v12257_v55 = vunpack.i.l.bf16 %v12256_v11 }
0x1ecf   :  { %v4171_v20 = vsel %vm2027_vm3, %v4163_v17, %v12263_v42  ;;  %v4170_v48 = vsel %vm2027_vm3, %v4162_v24, %v12262_v32 }
0x1ed0   :  { %v4168_v10 = vsel %vm2027_vm3, %v4160_v60, %v12257_v55  ;;  %v4169_v41 = vsel %vm2027_vm3, %v4161_v40, %v12258_v49  ;;  %v4175_v25 = vpack.c.bf16 %v4171_v20, %v4170_v48 }
0x1ed1   :  { %v4174_v16 = vpack.c.bf16 %v4169_v41, %v4168_v10 }
0x1ed3   :  { %11336 = vmatprep.mubr.msk.bf16.mxu1 %vm2063_vm4, %v4174_v16 }
0x1ed4   :  { %11337 = vmatmul.mubr.msk.bf16.gmra.mrb[108].mxu1 %vm2063_vm4, %v4175_v25 }
0x1f9b   :  { %v11334_v9 = vpop.f32.mrb[104].mxu1 }
0x1f9c   :  { %v4247_v47 = vpop.f32.mrb[105].mxu1  ;;  %v4256_v37 = vadd.f32 %v11334_v9, %v10196_v21 }
0x1f9d   :  { %v4248_v19 = vadd.f32 %v10196_v21, %v4247_v47  ;;  %v11335_v62 = vpop.f32.mrb[106].mxu1 }
0x1f9e   :  { %v4250_v23 = vpop.f32.mrb[107].mxu1  ;;  %v4280_v4 = vadd.f32 %v4256_v37, %v14674_v31  ;;  %v4259_v50 = vadd.f32 %v11335_v62, %v10196_v21 }
0x1f9f   :  { %v4278_v22 = vadd.f32 %v4248_v19, %v14668_v6  ;;  %v4251_v46 = vadd.f32 %v10196_v21, %v4250_v23 }
0x1fa0   :  { %v4281_v15 = vadd.f32 %v4259_v50, %v14676_v30  ;;  %v4296_v43 = vsel %vm536_vm1, %v4280_v4, 0.0  ;;  %v12415_v50 = vld [vmem:[%s16930_s10 + $0x20] sm:$0xff]  }
0x1fa1   :  { %v4279_v2 = vadd.f32 %v4251_v46, %v14670_v18  ;;  %v4290_v58 = vsel %vm536_vm1, %v4278_v22, 0.0  ;;  %11350 = vmatprep.subr.bf16.mxu1 %v12415_v50 }
0x1fa2   :  { %4291 = vadd.xlane.f32.xlu0 %v4290_v58  ;;  %v4299_v31 = vsel %vm536_vm1, %v4281_v15, 0.0  ;;  %11351 = vmatpush3.bf16.msra.mxu1 %v12415_v50 }
0x1fa3   :  { %v4293_v26 = vsel %vm536_vm1, %v4279_v2, 0.0 }
0x1fa4   :  { %4294 = vadd.xlane.f32.xlu1 %v4293_v26 }
0x1fa6   :  { %4297 = vadd.xlane.f32.xlu0 %v4296_v43 }
0x1fa7   :  { %v11338_v35 = vpop.f32.mrb[108].mxu1 }
0x1fa8   :  { %v4263_v14 = vpop.f32.mrb[109].mxu1  ;;  %v4272_v6 = vadd.f32 %v11338_v35, %v10196_v21 }
0x1fa9   :  { %v4264_v53 = vadd.f32 %v10196_v21, %v4263_v14  ;;  %v11339_v56 = vpop.f32.mrb[110].mxu1 }
0x1faa   :  { %v4266_v36 = vpop.f32.mrb[111].mxu1  ;;  %4300 = vadd.xlane.f32.xlu0 %v4299_v31  ;;  %v4275_v38 = vadd.f32 %v11339_v56, %v10196_v21  ;;  %v4284_v51 = vadd.f32 %v4272_v6, %v14697_v59 }
0x1fab   :  { %v4282_v18 = vadd.f32 %v4264_v53, %v14688_v63  ;;  %v4267_v34 = vadd.f32 %v10196_v21, %v4266_v36 }
0x1fac   :  { %v4285_v5 = vadd.f32 %v4275_v38, %v14699_v61  ;;  %v4308_v52 = vsel %vm536_vm1, %v4284_v51, 0.0 }
0x1fad   :  { %v4283_v30 = vadd.f32 %v4267_v34, %v14690_v33  ;;  %v4302_v45 = vsel %vm536_vm1, %v4282_v18, 0.0 }
0x1fae   :  { %4303 = vadd.xlane.f32.xlu0 %v4302_v45  ;;  %v4311_v28 = vsel %vm536_vm1, %v4285_v5, 0.0  ;;  %v10203_v45 = vld [vmem:[#allocation20 + $0x1] ss:$0 sm:$0xff] }
0x1faf   :  { %v4305_v12 = vsel %vm536_vm1, %v4283_v30, 0.0 }
0x1fb0   :  { %4306 = vadd.xlane.f32.xlu1 %v4305_v12 }
0x1fb2   :  { %4309 = vadd.xlane.f32.xlu0 %v4308_v52 }
0x1fb4   :  { %4312 = vadd.xlane.f32.xlu1 %v4311_v28 }
0x202f   :  { %v4292_v63 = vpop.xlane.xlu0 %4291 }
0x2030   :  { %v4314_v29 = vmul.f32 0.0625, %v4292_v63 }
0x2031   :  { %v4295_v27 = vpop.xlane.xlu1 %4294 }
0x2032   :  { %v15227_v59 = vsub.f32 %v4278_v22, %v4314_v29  ;;  %v4315_v33 = vmul.f32 0.0625, %v4295_v27 }
0x2033   :  { %v4298_v57 = vpop.xlane.xlu0 %4297 }
0x2034   :  { %v15229_v8 = vsub.f32 %v4279_v2, %v4315_v33  ;;  %v4316_v54 = vmul.f32 0.0625, %v4298_v57  ;;  %v4330_v61 = vmul.f32 %v15227_v59, %v15227_v59  ;;  %v12416_v2 = vld [vmem:[%s16930_s10 + $0x28] sm:$0xff]  }
0x2035   :  { %11352 = vmatprep.subr.bf16.mxu1 %v12416_v2 }
0x2036   :  { %v15233_v13 = vsub.f32 %v4280_v4, %v4316_v54  ;;  %v4338_v7 = vsel %vm536_vm1, %v4330_v61, 0.0  ;;  %v4331_v44 = vmul.f32 %v15229_v8, %v15229_v8  ;;  %v12414_v4 = vld [vmem:[#allocation15 + $0x8] sm:$0xff]   ;;  %11353 = vmatpush3.bf16.msra.mxu1 %v12416_v2  ;;  %v12417_v2 = vld [vmem:[%s16930_s10 + $0x30] sm:$0xff]  }
0x2037   :  { %4339 = vadd.xlane.f32.xlu0 %v4338_v7  ;;  %v4301_v1 = vpop.xlane.xlu0 %4300  ;;  %11340 = vmatprep.subr.bf16.mxu0 %v12414_v4  ;;  %v10204_v7 = vld [vmem:[#allocation21 + $0x1] ss:$0 sm:$0xff] }
0x2038   :  { %v4317_v39 = vmul.f32 0.0625, %v4301_v1  ;;  %v4341_v0 = vsel %vm536_vm1, %v4331_v44, 0.0  ;;  %v4332_v3 = vmul.f32 %v15233_v13, %v15233_v13  ;;  %11341 = vmatpush3.bf16.msra.mxu0 %v12414_v4  ;;  %11354 = vmatprep.subr.bf16.mxu1 %v12417_v2 }
0x2039   :  { %4342 = vadd.xlane.f32.xlu1 %v4341_v0 }
0x203a   :  { %v15241_v42 = vsub.f32 %v4281_v15, %v4317_v39  ;;  %v4344_v32 = vsel %vm536_vm1, %v4332_v3, 0.0  ;;  %11355 = vmatpush3.bf16.msra.mxu1 %v12417_v2 }
0x203b   :  { %4345 = vadd.xlane.f32.xlu0 %v4344_v32  ;;  %v4304_v11 = vpop.xlane.xlu0 %4303 }
0x203c   :  { %v4318_v24 = vmul.f32 0.0625, %v4304_v11  ;;  %v4333_v17 = vmul.f32 %v15241_v42, %v15241_v42 }
0x203d   :  { %v4307_v49 = vpop.xlane.xlu1 %4306 }
0x203e   :  { %v15246_v55 = vsub.f32 %v4282_v18, %v4318_v24  ;;  %v4319_v60 = vmul.f32 0.0625, %v4307_v49  ;;  %v4347_v40 = vsel %vm536_vm1, %v4333_v17, 0.0 }
0x203f   :  { %4348 = vadd.xlane.f32.xlu1 %v4347_v40  ;;  %v4310_v20 = vpop.xlane.xlu0 %4309 }
0x2040   :  { %v15249_v48 = vsub.f32 %v4283_v30, %v4319_v60  ;;  %v4320_v10 = vmul.f32 0.0625, %v4310_v20  ;;  %v4334_v41 = vmul.f32 %v15246_v55, %v15246_v55 }
0x2041   :  { %v4313_v25 = vpop.xlane.xlu1 %4312 }
0x2042   :  { %v15253_v16 = vsub.f32 %v4284_v51, %v4320_v10  ;;  %v4321_v21 = vmul.f32 0.0625, %v4313_v25  ;;  %v4350_v9 = vsel %vm536_vm1, %v4334_v41, 0.0  ;;  %v4335_v47 = vmul.f32 %v15249_v48, %v15249_v48 }
0x2043   :  { %4351 = vadd.xlane.f32.xlu0 %v4350_v9 }
0x2044   :  { %v15258_v37 = vsub.f32 %v4285_v5, %v4321_v21  ;;  %v4353_v19 = vsel %vm536_vm1, %v4335_v47, 0.0  ;;  %v4336_v62 = vmul.f32 %v15253_v16, %v15253_v16 }
0x2045   :  { %4354 = vadd.xlane.f32.xlu1 %v4353_v19 }
0x2046   :  { %v4356_v23 = vsel %vm536_vm1, %v4336_v62, 0.0  ;;  %v4337_v22 = vmul.f32 %v15258_v37, %v15258_v37 }
0x2047   :  { %4357 = vadd.xlane.f32.xlu0 %v4356_v23 }
0x2048   :  { %v4359_v46 = vsel %vm536_vm1, %v4337_v22, 0.0 }
0x2049   :  { %4360 = vadd.xlane.f32.xlu1 %v4359_v46 }
0x20c4   :  { %v4340_v58 = vpop.xlane.xlu0 %4339 }
0x20c5   :  { %v4362_v26 = vmul.f32 0.0625, %v4340_v58  ;;  %v10205_v58 = vld [vmem:[#allocation17 + $0x1] ss:$0 sm:$0xff] }
0x20c6   :  { %v4343_v15 = vpop.xlane.xlu1 %4342 }
0x20c7   :  { %v4370_v43 = vadd.f32 1e-05, %v4362_v26  ;;  %v4363_v35 = vmul.f32 0.0625, %v4343_v15 }
0x20c8   :  { %v4346_v14 = vpop.xlane.xlu0 %4345 }
0x20c9   :  { %12749 = vrsqrt.f32 %v4370_v43  ;;  %v4371_v6 = vadd.f32 1e-05, %v4363_v35  ;;  %v4364_v53 = vmul.f32 0.0625, %v4346_v14 }
0x20cb   :  { %12751 = vrsqrt.f32 %v4371_v6  ;;  %v4372_v56 = vadd.f32 1e-05, %v4364_v53 }
0x20cc   :  { %v4349_v31 = vpop.xlane.xlu1 %4348 }
0x20cd   :  { %12753 = vrsqrt.f32 %v4372_v56  ;;  %v4365_v36 = vmul.f32 0.0625, %v4349_v31 }
0x20cf   :  { %v4373_v18 = vadd.f32 1e-05, %v4365_v36 }
0x20d0   :  { %v4352_v38 = vpop.xlane.xlu0 %4351 }
0x20d1   :  { %12755 = vrsqrt.f32 %v4373_v18  ;;  %v4366_v34 = vmul.f32 0.0625, %v4352_v38 }
0x20d2   :  { %v4355_v51 = vpop.xlane.xlu1 %4354 }
0x20d3   :  { %v12750_v30 = vpop.eup %12749  ;;  %v4374_v5 = vadd.f32 1e-05, %v4366_v34  ;;  %v4367_v12 = vmul.f32 0.0625, %v4355_v51 }
0x20d4   :  { %v4358_v52 = vpop.xlane.xlu0 %4357  ;;  %v4386_v28 = vmul.f32 %v12750_v30, %v15227_v59 }
0x20d5   :  { %v12752_v63 = vpop.eup %12751  ;;  %12757 = vrsqrt.f32 %v4374_v5  ;;  %v4375_v29 = vadd.f32 1e-05, %v4367_v12  ;;  %v4368_v27 = vmul.f32 0.0625, %v4358_v52 }
0x20d6   :  { %v4361_v33 = vpop.xlane.xlu1 %4360  ;;  %v4387_v57 = vmul.f32 %v12752_v63, %v15229_v8  ;;  %v4400_v54 = vmul.f32 %v10203_v45, %v4386_v28 }
0x20d7   :  { %v12754_v61 = vpop.eup %12753  ;;  %12759 = vrsqrt.f32 %v4375_v29  ;;  %v4376_v44 = vadd.f32 1e-05, %v4368_v27  ;;  %v4369_v1 = vmul.f32 0.0625, %v4361_v33 }
0x20d8   :  { %v4388_v39 = vmul.f32 %v12754_v61, %v15233_v13  ;;  %v4401_v0 = vmul.f32 %v10203_v45, %v4387_v57  ;;  %v15272_v32 = vadd.f32 %v10204_v7, %v4400_v54 }
0x20d9   :  { %12761 = vrsqrt.f32 %v4376_v44  ;;  %v4377_v3 = vadd.f32 1e-05, %v4369_v1  ;;  %v10219_v44 = vld [vmem:[#allocation18 + $0x1] ss:$0 sm:$0xff] }
0x20da   :  { %v15274_v59 = vadd.f32 %v10204_v7, %v4401_v0  ;;  %v4402_v24 = vmul.f32 %v10203_v45, %v4388_v39 }
0x20db   :  { %v12756_v11 = vpop.eup %12755  ;;  %12763 = vrsqrt.f32 %v4377_v3 }
0x20dc   :  { %v4389_v8 = vmul.f32 %v12756_v11, %v15241_v42  ;;  %v4422_v17 = vpack.c.bf16 %v15274_v59, %v15272_v32  ;;  %v15280_v13 = vadd.f32 %v10204_v7, %v4402_v24 }
0x20de   :  { %v4403_v49 = vmul.f32 %v10203_v45, %v4389_v8  ;;  %11342 = vmatprep.mubr.msk.bf16.mxu0 %vm536_vm1, %v4422_v17 }
0x20df   :  { %v12758_v60 = vpop.eup %12757 }
0x20e0   :  { %v15282_v40 = vadd.f32 %v10204_v7, %v4403_v49  ;;  %v4390_v20 = vmul.f32 %v12758_v60, %v15246_v55 }
0x20e1   :  { %v12760_v10 = vpop.eup %12759 }
0x20e2   :  { %v4423_v41 = vpack.c.bf16 %v15282_v40, %v15280_v13  ;;  %v4391_v25 = vmul.f32 %v12760_v10, %v15249_v48  ;;  %v4404_v42 = vmul.f32 %v10203_v45, %v4390_v20 }
0x20e3   :  { %v12762_v21 = vpop.eup %12761 }
0x20e4   :  { %11343 = vmatmul.mubr.msk.bf16.vlgmr.msra.gmra.mrb[104].mxu0 %vm536_vm1, %v4423_v41  ;;  %v4405_v9 = vmul.f32 %v10203_v45, %v4391_v25  ;;  %v4392_v47 = vmul.f32 %v12762_v21, %v15253_v16  ;;  %v15290_v62 = vadd.f32 %v10204_v7, %v4404_v42 }
0x20e5   :  { %v12764_v19 = vpop.eup %12763 }
0x20e6   :  { %v15292_v23 = vadd.f32 %v10204_v7, %v4405_v9  ;;  %v4393_v55 = vmul.f32 %v12764_v19, %v15258_v37  ;;  %v4406_v22 = vmul.f32 %v10203_v45, %v4392_v47  ;;  %v12418_v37 = vld [vmem:[%s16930_s10 + $0x38] sm:$0xff]  }
0x20e7   :  { %11356 = vmatprep.subr.bf16.mxu1 %v12418_v37 }
0x20e8   :  { %v4424_v48 = vpack.c.bf16 %v15292_v23, %v15290_v62  ;;  %v4407_v46 = vmul.f32 %v10203_v45, %v4393_v55  ;;  %v15298_v4 = vadd.f32 %v10204_v7, %v4406_v22  ;;  %11357 = vmatpush3.bf16.msra.mxu1 %v12418_v37 }
0x20ea   :  { %11346 = vmatprep.mubr.msk.bf16.mxu0 %vm536_vm1, %v4424_v48  ;;  %v15300_v50 = vadd.f32 %v10204_v7, %v4407_v46 }
0x20ec   :  { %v4425_v16 = vpack.c.bf16 %v15300_v50, %v15298_v4 }
0x20ee   :  { %11347 = vmatmul.mubr.msk.bf16.gmra.mrb[108].mxu0 %vm536_vm1, %v4425_v16 }
0x21b7   :  { %v11344_v26 = vpop.f32.mrb[104].mxu0 }
0x21b8   :  { %v4498_v15 = vadd.f32 %v11344_v26, %v10205_v58  ;;  %v4489_v43 = vpop.f32.mrb[105].mxu0 }
0x21b9   :  { %v4490_v35 = vadd.f32 %v10205_v58, %v4489_v43  ;;  %v11345_v14 = vpop.f32.mrb[106].mxu0 }
0x21ba   :  { %v4501_v6 = vadd.f32 %v11345_v14, %v10205_v58  ;;  %v4492_v53 = vpop.f32.mrb[107].mxu0  ;;  %v4522_v31 = vmax.f32 %v4498_v15, 0.0 }
0x21bb   :  { %v4493_v56 = vadd.f32 %v10205_v58, %v4492_v53  ;;  %v4520_v18 = vmax.f32 %v4490_v35, 0.0 }
0x21bc   :  { %v4523_v36 = vmax.f32 %v4501_v6, 0.0 }
0x21bd   :  { %v4521_v38 = vmax.f32 %v4493_v56, 0.0 }
0x21be   :  { %v4529_v34 = vpack.c.bf16 %v4523_v36, %v4522_v31 }
0x21bf   :  { %v4528_v51 = vpack.c.bf16 %v4521_v38, %v4520_v18 }
0x21c1   :  { %v11348_v30 = vpop.f32.mrb[108].mxu0  ;;  %11358 = vmatprep.mubr.msk.bf16.mxu1 %vm379_vm0, %v4528_v51 }
0x21c2   :  { %v4514_v45 = vadd.f32 %v11348_v30, %v10205_v58  ;;  %v4505_v5 = vpop.f32.mrb[109].mxu0  ;;  %11359 = vmatmul.mubr.msk.bf16.vlgmr.msra.gmra.mrb[112].mxu1 %vm379_vm0, %v4529_v34 }
0x21c3   :  { %v4506_v12 = vadd.f32 %v10205_v58, %v4505_v5  ;;  %v11349_v52 = vpop.f32.mrb[110].mxu0 }
0x21c4   :  { %v4517_v28 = vadd.f32 %v11349_v52, %v10205_v58  ;;  %v4508_v63 = vpop.f32.mrb[111].mxu0  ;;  %v4526_v27 = vmax.f32 %v4514_v45, 0.0 }
0x21c5   :  { %v4509_v29 = vadd.f32 %v10205_v58, %v4508_v63  ;;  %v4524_v57 = vmax.f32 %v4506_v12, 0.0 }
0x21c6   :  { %v4527_v33 = vmax.f32 %v4517_v28, 0.0 }
0x21c7   :  { %v4525_v54 = vmax.f32 %v4509_v29, 0.0 }
0x21c8   :  { %v4531_v61 = vpack.c.bf16 %v4527_v33, %v4526_v27 }
0x21c9   :  { %v4530_v7 = vpack.c.bf16 %v4525_v54, %v4524_v57 }
0x21cb   :  { %11362 = vmatprep.mubr.msk.bf16.mxu1 %vm379_vm0, %v4530_v7 }
0x21cc   :  { %11363 = vmatmul.mubr.msk.bf16.gmra.mrb[116].mxu1 %vm379_vm0, %v4531_v61 }
0x2295   :  { %v11360_v1 = vpop.f32.mrb[112].mxu1 }
0x2296   :  { %v4619_v39 = vpop.f32.mrb[113].mxu1  ;;  %v4628_v0 = vadd.f32 %v11360_v1, %v10219_v44 }
0x2297   :  { %v4620_v3 = vadd.f32 %v10219_v44, %v4619_v39  ;;  %v11361_v11 = vpop.f32.mrb[114].mxu1 }
0x2298   :  { %v4622_v24 = vpop.f32.mrb[115].mxu1  ;;  %v4631_v17 = vadd.f32 %v11361_v11, %v10219_v44  ;;  %v4652_v60 = vadd.f32 %v4628_v0, %v15280_v13 }
0x2299   :  { %v4650_v8 = vadd.f32 %v4620_v3, %v15272_v32  ;;  %v4623_v49 = vadd.f32 %v10219_v44, %v4622_v24 }
0x229a   :  { %v4653_v41 = vadd.f32 %v4631_v17, %v15282_v40  ;;  %v4668_v21 = vsel %vm536_vm1, %v4652_v60, 0.0 }
0x229b   :  { %v4651_v20 = vadd.f32 %v4623_v49, %v15274_v59  ;;  %v4662_v10 = vsel %vm536_vm1, %v4650_v8, 0.0  ;;  %v12419_v49 = vld [vmem:[#allocation6 + $0x10] sm:$0xff]  }
0x229c   :  { %4663 = vadd.xlane.f32.xlu0 %v4662_v10  ;;  %v4671_v13 = vsel %vm536_vm1, %v4653_v41, 0.0  ;;  %11376 = vmatprep.subr.bf16.mxu1 %v12419_v49 }
0x229d   :  { %v4665_v25 = vsel %vm536_vm1, %v4651_v20, 0.0  ;;  %11377 = vmatpush3.bf16.msra.mxu1 %v12419_v49 }
0x229e   :  { %4666 = vadd.xlane.f32.xlu1 %v4665_v25 }
0x229f   :  { %v11364_v42 = vpop.f32.mrb[116].mxu1 }
0x22a0   :  { %4669 = vadd.xlane.f32.xlu0 %v4668_v21  ;;  %v4635_v9 = vpop.f32.mrb[117].mxu1  ;;  %v4644_v32 = vadd.f32 %v11364_v42, %v10219_v44 }
0x22a1   :  { %v4636_v47 = vadd.f32 %v10219_v44, %v4635_v9  ;;  %v11365_v19 = vpop.f32.mrb[118].mxu1 }
0x22a2   :  { %4672 = vadd.xlane.f32.xlu1 %v4671_v13  ;;  %v4638_v59 = vpop.f32.mrb[119].mxu1  ;;  %v4647_v22 = vadd.f32 %v11365_v19, %v10219_v44  ;;  %v4656_v40 = vadd.f32 %v4644_v32, %v15298_v4 }
0x22a3   :  { %v4654_v55 = vadd.f32 %v4636_v47, %v15290_v62  ;;  %v4639_v48 = vadd.f32 %v10219_v44, %v4638_v59 }
0x22a4   :  { %v4657_v2 = vadd.f32 %v4647_v22, %v15300_v50  ;;  %v4680_v58 = vsel %vm536_vm1, %v4656_v40, 0.0 }
0x22a5   :  { %v4655_v46 = vadd.f32 %v4639_v48, %v15292_v23  ;;  %v4674_v16 = vsel %vm536_vm1, %v4654_v55, 0.0 }
0x22a6   :  { %4675 = vadd.xlane.f32.xlu0 %v4674_v16  ;;  %v4683_v26 = vsel %vm536_vm1, %v4657_v2, 0.0 }
0x22a7   :  { %v4677_v37 = vsel %vm536_vm1, %v4655_v46, 0.0 }
0x22a8   :  { %4678 = vadd.xlane.f32.xlu1 %v4677_v37 }
0x22aa   :  { %4681 = vadd.xlane.f32.xlu0 %v4680_v58  ;;  %v10228_v58 = vld [vmem:[#allocation23 + $0x1] ss:$0 sm:$0xff] }
0x22ac   :  { %4684 = vadd.xlane.f32.xlu1 %v4683_v26 }
0x2329   :  { %v4664_v62 = vpop.xlane.xlu0 %4663 }
0x232a   :  { %v4686_v15 = vmul.f32 0.0625, %v4664_v62 }
0x232b   :  { %v4667_v43 = vpop.xlane.xlu1 %4666 }
0x232c   :  { %v15327_v4 = vsub.f32 %v4650_v8, %v4686_v15  ;;  %v4687_v23 = vmul.f32 0.0625, %v4667_v43 }
0x232d   :  { %v4670_v35 = vpop.xlane.xlu0 %4669 }
0x232e   :  { %v15329_v14 = vsub.f32 %v4651_v20, %v4687_v23  ;;  %v4688_v6 = vmul.f32 0.0625, %v4670_v35  ;;  %v4702_v50 = vmul.f32 %v15327_v4, %v15327_v4  ;;  %v15367_v20 = vld [vmem:[#allocation8 + $0x10] sm:$0xff]  }
0x232f   :  { %v4673_v53 = vpop.xlane.xlu1 %4672 }
0x2330   :  { %v15333_v56 = vsub.f32 %v4652_v60, %v4688_v6  ;;  %v4689_v31 = vmul.f32 0.0625, %v4673_v53  ;;  %v4710_v36 = vsel %vm536_vm1, %v4702_v50, 0.0  ;;  %v4703_v18 = vmul.f32 %v15329_v14, %v15329_v14  ;;  %v12420_v60 = vld [vmem:[#allocation4 + $0x10] sm:$0xff]  }
0x2331   :  { %4711 = vadd.xlane.f32.xlu0 %v4710_v36  ;;  %11366 = vmatprep.subr.bf16.mxu0 %v12420_v60  ;;  %v10229_v36 = vld [vmem:[#allocation24 + $0x1] ss:$0 sm:$0xff] }
0x2332   :  { %v15338_v38 = vsub.f32 %v4653_v41, %v4689_v31  ;;  %v4713_v34 = vsel %vm536_vm1, %v4703_v18, 0.0  ;;  %v4704_v51 = vmul.f32 %v15333_v56, %v15333_v56  ;;  %11367 = vmatpush3.bf16.msra.mxu0 %v12420_v60 }
0x2333   :  { %4714 = vadd.xlane.f32.xlu1 %v4713_v34  ;;  %v4676_v30 = vpop.xlane.xlu0 %4675  ;;  %11386 = vmatprep.subr.bf16.mxu0 %v15367_v20 }
0x2334   :  { %v4690_v45 = vmul.f32 0.0625, %v4676_v30  ;;  %v4716_v5 = vsel %vm536_vm1, %v4704_v51, 0.0  ;;  %v4705_v12 = vmul.f32 %v15338_v38, %v15338_v38 }
0x2335   :  { %v4679_v52 = vpop.xlane.xlu1 %4678  ;;  %4717 = vadd.xlane.f32.xlu0 %v4716_v5 }
0x2336   :  { %v15346_v28 = vsub.f32 %v4654_v55, %v4690_v45  ;;  %v4691_v63 = vmul.f32 0.0625, %v4679_v52  ;;  %v4719_v29 = vsel %vm536_vm1, %v4705_v12, 0.0 }
0x2337   :  { %4720 = vadd.xlane.f32.xlu1 %v4719_v29  ;;  %v4682_v27 = vpop.xlane.xlu0 %4681 }
0x2338   :  { %v15349_v33 = vsub.f32 %v4655_v46, %v4691_v63  ;;  %v4692_v57 = vmul.f32 0.0625, %v4682_v27  ;;  %v4706_v54 = vmul.f32 %v15346_v28, %v15346_v28 }
0x2339   :  { %v4685_v61 = vpop.xlane.xlu1 %4684 }
0x233a   :  { %v15353_v7 = vsub.f32 %v4656_v40, %v4692_v57  ;;  %v4693_v44 = vmul.f32 0.0625, %v4685_v61  ;;  %v4722_v1 = vsel %vm536_vm1, %v4706_v54, 0.0  ;;  %v4707_v39 = vmul.f32 %v15349_v33, %v15349_v33 }
0x233b   :  { %4723 = vadd.xlane.f32.xlu0 %v4722_v1 }
0x233c   :  { %v15358_v0 = vsub.f32 %v4657_v2, %v4693_v44  ;;  %v4725_v3 = vsel %vm536_vm1, %v4707_v39, 0.0  ;;  %v4708_v11 = vmul.f32 %v15353_v7, %v15353_v7 }
0x233d   :  { %4726 = vadd.xlane.f32.xlu1 %v4725_v3 }
0x233e   :  { %v4728_v24 = vsel %vm536_vm1, %v4708_v11, 0.0  ;;  %v4709_v8 = vmul.f32 %v15358_v0, %v15358_v0 }
0x233f   :  { %4729 = vadd.xlane.f32.xlu0 %v4728_v24 }
0x2340   :  { %v4731_v17 = vsel %vm536_vm1, %v4709_v8, 0.0 }
0x2341   :  { %4732 = vadd.xlane.f32.xlu1 %v4731_v17 }
0x23be   :  { %v4712_v10 = vpop.xlane.xlu0 %4711 }
0x23bf   :  { %v4734_v41 = vmul.f32 0.0625, %v4712_v10 }
0x23c0   :  { %v4715_v25 = vpop.xlane.xlu1 %4714 }
0x23c1   :  { %v4742_v42 = vadd.f32 1e-05, %v4734_v41  ;;  %v4735_v21 = vmul.f32 0.0625, %v4715_v25  ;;  %v10236_v41 = vld [vmem:[#allocation11 + $0x2] ss:$0 sm:$0xff] }
0x23c2   :  { %v4718_v9 = vpop.xlane.xlu0 %4717 }
0x23c3   :  { %12765 = vrsqrt.f32 %v4742_v42  ;;  %v4743_v32 = vadd.f32 1e-05, %v4735_v21  ;;  %v4736_v47 = vmul.f32 0.0625, %v4718_v9 }
0x23c4   :  { %v4721_v19 = vpop.xlane.xlu1 %4720 }
0x23c5   :  { %12767 = vrsqrt.f32 %v4743_v32  ;;  %v4744_v13 = vadd.f32 1e-05, %v4736_v47  ;;  %v4737_v59 = vmul.f32 0.0625, %v4721_v19 }
0x23c7   :  { %12769 = vrsqrt.f32 %v4744_v13  ;;  %v4745_v55 = vadd.f32 1e-05, %v4737_v59 }
0x23c8   :  { %v4724_v22 = vpop.xlane.xlu0 %4723 }
0x23c9   :  { %12771 = vrsqrt.f32 %v4745_v55  ;;  %v4738_v48 = vmul.f32 0.0625, %v4724_v22 }
0x23ca   :  { %v4727_v40 = vpop.xlane.xlu1 %4726 }
0x23cb   :  { %v4746_v46 = vadd.f32 1e-05, %v4738_v48  ;;  %v4739_v16 = vmul.f32 0.0625, %v4727_v40 }
0x23cc   :  { %v4730_v2 = vpop.xlane.xlu0 %4729 }
0x23cd   :  { %v12766_v37 = vpop.eup %12765  ;;  %12773 = vrsqrt.f32 %v4746_v46  ;;  %v4747_v26 = vadd.f32 1e-05, %v4739_v16  ;;  %v4740_v62 = vmul.f32 0.0625, %v4730_v2 }
0x23ce   :  { %v4733_v15 = vpop.xlane.xlu1 %4732  ;;  %v4758_v43 = vmul.f32 %v12766_v37, %v15327_v4 }
0x23cf   :  { %v12768_v23 = vpop.eup %12767  ;;  %12775 = vrsqrt.f32 %v4747_v26  ;;  %v4748_v35 = vadd.f32 1e-05, %v4740_v62  ;;  %v4741_v6 = vmul.f32 0.0625, %v4733_v15 }
0x23d0   :  { %v4759_v50 = vmul.f32 %v12768_v23, %v15329_v14  ;;  %v4772_v53 = vmul.f32 %v10228_v58, %v4758_v43 }
0x23d1   :  { %v12770_v31 = vpop.eup %12769  ;;  %12777 = vrsqrt.f32 %v4748_v35  ;;  %v4749_v18 = vadd.f32 1e-05, %v4741_v6 }
0x23d2   :  { %v4760_v34 = vmul.f32 %v12770_v31, %v15333_v56  ;;  %v4773_v51 = vmul.f32 %v10228_v58, %v4759_v50  ;;  %v15374_v4 = vadd.f32 %v10229_v36, %v4772_v53 }
0x23d3   :  { %v12772_v30 = vpop.eup %12771  ;;  %12779 = vrsqrt.f32 %v4749_v18 }
0x23d4   :  { %v4774_v45 = vmul.f32 %v10228_v58, %v4760_v34  ;;  %v4761_v5 = vmul.f32 %v12772_v30, %v15338_v38  ;;  %v15376_v12 = vadd.f32 %v10229_v36, %v4773_v51 }
0x23d6   :  { %v4775_v52 = vmul.f32 %v10228_v58, %v4761_v5  ;;  %v4794_v14 = vpack.c.bf16 %v15376_v12, %v15374_v4  ;;  %v15380_v29 = vadd.f32 %v10229_v36, %v4774_v45 }
0x23d7   :  { %v12774_v63 = vpop.eup %12773 }
0x23d8   :  { %v15382_v27 = vadd.f32 %v10229_v36, %v4775_v52  ;;  %11368 = vmatprep.mubr.msk.bf16.mxu0 %vm536_vm1, %v4794_v14  ;;  %11378 = vmatprep.mubr.msk.bf16.mxu1 %vm536_vm1, %v4794_v14  ;;  %v4762_v56 = vmul.f32 %v12774_v63, %v15346_v28 }
0x23d9   :  { %v12776_v38 = vpop.eup %12775 }
0x23da   :  { %v4795_v57 = vpack.c.bf16 %v15382_v27, %v15380_v29  ;;  %v4763_v54 = vmul.f32 %v12776_v38, %v15349_v33  ;;  %v4776_v61 = vmul.f32 %v10228_v58, %v4762_v56 }
0x23db   :  { %v12778_v44 = vpop.eup %12777 }
0x23dc   :  { %11369 = vmatmul.mubr.msk.bf16.vlgmr.msra.gmra.mrb[112].mxu0 %vm536_vm1, %v4795_v57  ;;  %11379 = vmatmul.mubr.msk.bf16.vlgmr.msra.gmra.mrb[120].mxu1 %vm536_vm1, %v4795_v57  ;;  %v4777_v1 = vmul.f32 %v10228_v58, %v4763_v54  ;;  %v4764_v39 = vmul.f32 %v12778_v44, %v15353_v7  ;;  %v15394_v11 = vadd.f32 %v10229_v36, %v4776_v61  ;;  %v10242_v54 = vld [vmem:[#allocation12 + $0x2] ss:$0 sm:$0xff] }
0x23dd   :  { %v12780_v3 = vpop.eup %12779  ;;  %11387 = vmatpush3.bf16.msra.mxu0 %v15367_v20  ;;  %v10230_v20 = vld [vmem:[#allocation9 + $0x2] ss:$0 sm:$0xff] }
0x23de   :  { %v15396_v28 = vadd.f32 %v10229_v36, %v4777_v1  ;;  %v4765_v24 = vmul.f32 %v12780_v3, %v15358_v0  ;;  %v4778_v8 = vmul.f32 %v10228_v58, %v4764_v39 }
0x23e0   :  { %v4796_v33 = vpack.c.bf16 %v15396_v28, %v15394_v11  ;;  %v4779_v17 = vmul.f32 %v10228_v58, %v4765_v24  ;;  %v15403_v49 = vadd.f32 %v10229_v36, %v4778_v8 }
0x23e2   :  { %11372 = vmatprep.mubr.msk.bf16.mxu0 %vm536_vm1, %v4796_v33  ;;  %11382 = vmatprep.mubr.msk.bf16.mxu1 %vm536_vm1, %v4796_v33  ;;  %v15405_v7 = vadd.f32 %v10229_v36, %v4779_v17 }
0x23e4   :  { %v4797_v60 = vpack.c.bf16 %v15405_v7, %v15403_v49 }
0x23e6   :  { %11373 = vmatmul.mubr.msk.bf16.gmra.mrb[116].mxu0 %vm536_vm1, %v4797_v60  ;;  %11383 = vmatmul.mubr.msk.bf16.gmra.mrb[124].mxu1 %vm536_vm1, %v4797_v60 }
0x23e7   :  { %11388 = vmatprep.mubr.msk.bf16.mxu0 %vm536_vm1, %v4794_v14 }
0x23ee   :  { %11389 = vmatmul.mubr.msk.bf16.vlgmr.msra.gmra.mrb[120].mxu0 %vm536_vm1, %v4795_v57 }
0x23ef   :  { %11392 = vmatprep.mubr.msk.bf16.mxu0 %vm536_vm1, %v4796_v33 }
0x23f6   :  { %11393 = vmatmul.mubr.msk.bf16.gmra.mrb[124].mxu0 %vm536_vm1, %v4797_v60 }
0x24af   :  { %v11370_v0 = vpop.f32.mrb[112].mxu0  ;;  %v11380_v10 = vpop.f32.mrb[120].mxu1 }
0x24b0   :  { %v4861_v25 = vpop.f32.mrb[113].mxu0  ;;  %v4943_v42 = vpop.f32.mrb[121].mxu1  ;;  %v4870_v32 = vadd.f32 %v11370_v0, %v10230_v20  ;;  %v4952_v47 = vadd.f32 %v11380_v10, %v10236_v41 }
0x24b1   :  { %v11371_v21 = vpop.f32.mrb[114].mxu0  ;;  %v11381_v9 = vpop.f32.mrb[122].mxu1  ;;  %v4862_v22 = vadd.f32 %v10230_v20, %v4861_v25  ;;  %v4944_v48 = vadd.f32 %v10236_v41, %v4943_v42 }
0x24b2   :  { %v4873_v19 = vadd.f32 %v11371_v21, %v10230_v20  ;;  %v4955_v13 = vadd.f32 %v11381_v9, %v10236_v41  ;;  %v4864_v59 = vpop.f32.mrb[115].mxu0  ;;  %v4946_v55 = vpop.f32.mrb[123].mxu1 }
0x24b3   :  { %v4865_v40 = vadd.f32 %v10230_v20, %v4864_v59  ;;  %v4947_v46 = vadd.f32 %v10236_v41, %v4946_v55  ;;  %v15472_v55 = vld [vmem:[%s16924_s15] sm:$0xff] }
0x24b4   :  { %v15415_v16 = vpack.c.bf16 %v4873_v19, %v4870_v32  ;;  %v15417_v2 = vpack.c.bf16 %v4955_v13, %v4952_v47 }
0x24b5   :  { %v15419_v37 = vpack.c.bf16 %v4865_v40, %v4862_v22  ;;  %v15421_v58 = vpack.c.bf16 %v4947_v46, %v4944_v48  ;;  %v15476_v46 = vld [vmem:[%s16924_s15 + $0x10] sm:$0xff] }
0x24b6   :  { %v5084_v38 = vsel %vm786_vm2, %v15417_v2, 0 }
0x24b7   :  { %12050 = vmatprep.subr.msk.bf16.mxu1 %vm786_vm2, %v15421_v58  ;;  %11404 = vmatprep.mubr.msk.bf16.mxu1 %vm786_vm2, %v15419_v37  ;;  %v5081_v26 = vsel %vm786_vm2, %v15421_v58, 0 }
0x24b8   :  { %11397 = vmatpush3.bf16.xpose.msra.mxu1 %v5081_v26 }
0x24b9   :  { %v11374_v62 = vpop.f32.mrb[116].mxu0  ;;  %v11384_v15 = vpop.f32.mrb[124].mxu1  ;;  %12051 = vmatprep.subr.msk.bf16.mxu1 %vm786_vm2, %v15417_v2 }
0x24ba   :  { %v4877_v43 = vpop.f32.mrb[117].mxu0  ;;  %v4959_v23 = vpop.f32.mrb[125].mxu1  ;;  %v4886_v50 = vadd.f32 %v11374_v62, %v10230_v20  ;;  %v4968_v53 = vadd.f32 %v11384_v15, %v10236_v41  ;;  %v15480_v62 = vld [vmem:[%s16924_s15 + $0x8] sm:$0xff] }
0x24bb   :  { %v11375_v35 = vpop.f32.mrb[118].mxu0  ;;  %v11385_v6 = vpop.f32.mrb[126].mxu1  ;;  %v4878_v51 = vadd.f32 %v10230_v20, %v4877_v43  ;;  %v4960_v30 = vadd.f32 %v10236_v41, %v4959_v23  ;;  %v15485_v23 = vld [vmem:[%s16924_s15 + $0x18] sm:$0xff] }
0x24bc   :  { %v4889_v31 = vadd.f32 %v11375_v35, %v10230_v20  ;;  %v4971_v36 = vadd.f32 %v11385_v6, %v10236_v41  ;;  %v4880_v18 = vpop.f32.mrb[119].mxu0  ;;  %v4962_v34 = vpop.f32.mrb[127].mxu1 }
0x24bd   :  { %v4881_v45 = vadd.f32 %v10230_v20, %v4880_v18  ;;  %v4963_v5 = vadd.f32 %v10236_v41, %v4962_v34 }
0x24be   :  { %v15431_v52 = vpack.c.bf16 %v4889_v31, %v4886_v50  ;;  %v15433_v14 = vpack.c.bf16 %v4971_v36, %v4968_v53  ;;  %v15491_v36 = vld [vmem:[%s16924_s15 + $0x20] sm:$0xff] }
0x24bf   :  { %v15435_v63 = vpack.c.bf16 %v4881_v45, %v4878_v51  ;;  %v15437_v56 = vpack.c.bf16 %v4963_v5, %v4960_v30  ;;  %v15496_v45 = vld [vmem:[%s16924_s15 + $0x30] sm:$0xff] }
0x24c0   :  { %11399 = vmatpush3.bf16.xpose.msra.mxu1 %v5084_v38  ;;  %v5090_v19 = vsel %vm786_vm2, %v15433_v14, 0  ;;  %v15500_v38 = vld [vmem:[%s16924_s15 + $0x28] sm:$0xff] }
0x24c1   :  { %v11390_v57 = vpop.f32.mrb[120].mxu0  ;;  %12052 = vmatprep.subr.msk.bf16.mxu1 %vm786_vm2, %v15437_v56  ;;  %v5087_v60 = vsel %vm786_vm2, %v15437_v56, 0 }
0x24c2   :  { %v5025_v61 = vpop.f32.mrb[121].mxu0  ;;  %v5034_v1 = vadd.f32 %v11390_v57, %v10242_v54 }
0x24c3   :  { %v11391_v44 = vpop.f32.mrb[122].mxu0  ;;  %v5026_v24 = vadd.f32 %v10242_v54, %v5025_v61  ;;  %v15507_v61 = vld [vmem:[%s16924_s15 + $0x38] sm:$0xff] }
0x24c4   :  { %v5037_v39 = vadd.f32 %v11391_v44, %v10242_v54  ;;  %v5028_v3 = vpop.f32.mrb[123].mxu0 }
0x24c5   :  { %v5029_v8 = vadd.f32 %v10242_v54, %v5028_v3 }
0x24c6   :  { %v15443_v33 = vpack.c.bf16 %v5037_v39, %v5034_v1 }
0x24c7   :  { %v15445_v17 = vpack.c.bf16 %v5029_v8, %v5026_v24 }
0x24c8   :  { %11401 = vmatpush3.bf16.xpose.msra.mxu1 %v5087_v60 }
0x24c9   :  { %v11394_v0 = vpop.f32.mrb[124].mxu0  ;;  %12053 = vmatprep.subr.msk.bf16.mxu1 %vm786_vm2, %v15433_v14  ;;  %11412 = vmatprep.subr.bf16.mxu0 %v15445_v17 }
0x24ca   :  { %v5041_v20 = vpop.f32.mrb[125].mxu0  ;;  %11413 = vmatpush3.bf16.msra.mxu0 %v15445_v17  ;;  %v5050_v41 = vadd.f32 %v11394_v0, %v10242_v54 }
0x24cb   :  { %v11395_v10 = vpop.f32.mrb[126].mxu0  ;;  %11414 = vmatprep.subr.bf16.mxu0 %v15443_v33  ;;  %v5042_v21 = vadd.f32 %v10242_v54, %v5041_v20 }
0x24cc   :  { %v5053_v25 = vadd.f32 %v11395_v10, %v10242_v54  ;;  %v5044_v42 = vpop.f32.mrb[127].mxu0 }
0x24cd   :  { %v5045_v9 = vadd.f32 %v10242_v54, %v5044_v42 }
0x24ce   :  { %v15454_v32 = vpack.c.bf16 %v5053_v25, %v5050_v41  ;;  %11415 = vmatpush3.bf16.msra.mxu0 %v15443_v33 }
0x24cf   :  { %v15457_v47 = vpack.c.bf16 %v5045_v9, %v5042_v21 }
0x24d0   :  { %11403 = vmatpush3.bf16.xpose.msra.mxu1 %v5090_v19 }
0x24d1   :  { %11416 = vmatprep.subr.bf16.mxu0 %v15457_v47 }
0x24d2   :  { %11417 = vmatpush3.bf16.msra.mxu0 %v15457_v47 }
0x24d3   :  { %11418 = vmatprep.subr.bf16.mxu0 %v15454_v32 }
0x24d6   :  { %11419 = vmatpush3.bf16.msra.mxu0 %v15454_v32 }
0x24d7   :  { %11405 = vmatmul.mubr.msk.bf16.vlgmr.msra.gmra.mrb[128].mxu1 %vm786_vm2, %v15415_v16 }
0x24d8   :  { %11408 = vmatprep.mubr.msk.bf16.mxu1 %vm786_vm2, %v15435_v63 }
0x24df   :  { %11409 = vmatmul.mubr.msk.bf16.gmra.mrb[132].mxu1 %vm786_vm2, %v15431_v52 }
0x25aa   :  { %v11406_v13 = vpop.f32.mrb[128].mxu1 }
0x25ab   :  { %v5126_v59 = vpop.f32.mrb[129].mxu1  ;;  %v5135_v26 = vadd.f32 %v15476_v46, %v11406_v13 }
0x25ac   :  { %v5127_v22 = vadd.f32 %v15472_v55, %v5126_v59  ;;  %v11407_v48 = vpop.f32.mrb[130].mxu1 }
0x25ad   :  { %v5129_v40 = vpop.f32.mrb[131].mxu1  ;;  %v5138_v35 = vadd.f32 %v15485_v23, %v11407_v48  ;;  %v5163_v53 = vsel %vm379_vm0, %v5135_v26, -inf }
0x25ae   :  { %v5130_v15 = vadd.f32 %v15480_v62, %v5129_v40  ;;  %v5157_v43 = vsel %vm379_vm0, %v5127_v22, -inf }
0x25af   :  { %5158 = vmax.xlane.f32.xlu0 %v5157_v43  ;;  %v5166_v51 = vsel %vm379_vm0, %v5138_v35, -inf }
0x25b0   :  { %v5160_v6 = vsel %vm379_vm0, %v5130_v15, -inf }
0x25b1   :  { %5161 = vmax.xlane.f32.xlu1 %v5160_v6 }
0x25b2   :  { %v11410_v50 = vpop.f32.mrb[132].mxu1 }
0x25b3   :  { %5164 = vmax.xlane.f32.xlu0 %v5163_v53  ;;  %v5142_v31 = vpop.f32.mrb[133].mxu1  ;;  %v5151_v5 = vadd.f32 %v15496_v45, %v11410_v50 }
0x25b4   :  { %v5143_v18 = vadd.f32 %v15491_v36, %v5142_v31  ;;  %v11411_v34 = vpop.f32.mrb[134].mxu1 }
0x25b5   :  { %5167 = vmax.xlane.f32.xlu1 %v5166_v51  ;;  %v5145_v30 = vpop.f32.mrb[135].mxu1  ;;  %v5154_v44 = vadd.f32 %v15507_v61, %v11411_v34  ;;  %v5175_v39 = vsel %vm379_vm0, %v5151_v5, -inf }
0x25b6   :  { %v15503_v57 = vadd.f32 %v15500_v38, %v5145_v30  ;;  %v5169_v54 = vsel %vm379_vm0, %v5143_v18, -inf }
0x25b7   :  { %5170 = vmax.xlane.f32.xlu0 %v5169_v54  ;;  %v5178_v3 = vsel %vm379_vm0, %v5154_v44, -inf }
0x25b8   :  { %v5172_v1 = vsel %vm379_vm0, %v15503_v57, -inf }
0x25b9   :  { %5173 = vmax.xlane.f32.xlu1 %v5172_v1 }
0x25bb   :  { %5176 = vmax.xlane.f32.xlu0 %v5175_v39 }
0x25bd   :  { %5179 = vmax.xlane.f32.xlu1 %v5178_v3 }
0x263c   :  { %v5159_v24 = vpop.xlane.xlu0 %5158 }
0x263d   :  { %v5181_v8 = vsub.f32 %v5127_v22, %v5159_v24 }
0x263e   :  { %v5162_v60 = vpop.xlane.xlu1 %5161 }
0x263f   :  { %v5182_v20 = vsub.f32 %v5130_v15, %v5162_v60  ;;  %v5189_v41 = vmul.f32 1.442695, %v5181_v8 }
0x2640   :  { %v5165_v0 = vpop.xlane.xlu0 %5164 }
0x2641   :  { %v5183_v10 = vsub.f32 %v5135_v26, %v5165_v0  ;;  %v5191_v19 = vmul.f32 1.442695, %v5182_v20 }
0x2642   :  { %v5168_v25 = vpop.xlane.xlu1 %5167 }
0x2643   :  { %v5193_v42 = vmul.f32 1.442695, %v5183_v10  ;;  %v5184_v21 = vsub.f32 %v5138_v35, %v5168_v25 }
0x2644   :  { %v5171_v9 = vpop.xlane.xlu0 %5170 }
0x2645   :  { %12781 = vpow2.f32 %v5193_v42  ;;  %v5195_v13 = vmul.f32 1.442695, %v5184_v21  ;;  %v5185_v59 = vsub.f32 %v5143_v18, %v5171_v9 }
0x2646   :  { %12783 = vpow2.f32 %v5189_v41  ;;  %v5174_v54 = vpop.xlane.xlu1 %5173 }
0x2647   :  { %12785 = vpow2.f32 %v5195_v13  ;;  %v5197_v43 = vmul.f32 1.442695, %v5185_v59  ;;  %v5186_v3 = vsub.f32 %v15503_v57, %v5174_v54 }
0x2648   :  { %v5177_v48 = vpop.xlane.xlu0 %5176  ;;  %12787 = vpow2.f32 %v5191_v19 }
0x2649   :  { %v5187_v40 = vsub.f32 %v5151_v5, %v5177_v48  ;;  %v5199_v8 = vmul.f32 1.442695, %v5186_v3 }
0x264a   :  { %v5180_v1 = vpop.xlane.xlu1 %5179 }
0x264b   :  { %v5201_v22 = vmul.f32 1.442695, %v5187_v40  ;;  %v5188_v39 = vsub.f32 %v5154_v44, %v5180_v1 }
0x264d   :  { %12789 = vpow2.f32 %v5201_v22  ;;  %v5203_v24 = vmul.f32 1.442695, %v5188_v39 }
0x264e   :  { %12791 = vpow2.f32 %v5197_v43 }
0x264f   :  { %v12782_v6 = vpop.eup %12781  ;;  %12793 = vpow2.f32 %v5203_v24 }
0x2650   :  { %v12784_v26 = vpop.eup %12783  ;;  %v5211_v15 = vsel %vm379_vm0, %v12782_v6, 0.0  ;;  %12795 = vpow2.f32 %v5199_v8 }
0x2651   :  { %v12786_v50 = vpop.eup %12785  ;;  %5212 = vadd.xlane.f32.xlu0 %v5211_v15  ;;  %v5205_v31 = vsel %vm379_vm0, %v12784_v26, 0.0 }
0x2652   :  { %v5214_v35 = vsel %vm379_vm0, %v12786_v50, 0.0  ;;  %v12788_v53 = vpop.eup %12787 }
0x2653   :  { %5215 = vadd.xlane.f32.xlu1 %v5214_v35  ;;  %v5208_v18 = vsel %vm379_vm0, %v12788_v53, 0.0 }
0x2655   :  { %5206 = vadd.xlane.f32.xlu0 %v5205_v31 }
0x2657   :  { %v15518_v34 = vpop.eup %12789  ;;  %5209 = vadd.xlane.f32.xlu1 %v5208_v18 }
0x2658   :  { %v5223_v51 = vsel %vm379_vm0, %v15518_v34, 0.0  ;;  %v15522_v30 = vpop.eup %12791 }
0x2659   :  { %5224 = vadd.xlane.f32.xlu0 %v5223_v51  ;;  %v5217_v5 = vsel %vm379_vm0, %v15522_v30, 0.0  ;;  %v12794_v60 = vpop.eup %12793 }
0x265a   :  { %v5226_v0 = vsel %vm379_vm0, %v12794_v60, 0.0  ;;  %v12796_v20 = vpop.eup %12795 }
0x265b   :  { %v5220_v10 = vsel %vm379_vm0, %v12796_v20, 0.0 }
0x265d   :  { %5218 = vadd.xlane.f32.xlu0 %v5217_v5 }
0x2668   :  { %5344 = vrot.lane.b32.xlu1 %v15417_v2, %s13594_s14 }
0x266c   :  { %5346 = vrot.lane.b32.xlu1 %v15437_v56, %s13594_s14 }
0x2673   :  { %5342 = vrot.lane.b32.xlu0 %v15421_v58, %s13594_s14 }
0x2677   :  { %5330 = vrot.lane.b32.xlu0 %v15419_v37, %s13594_s14 }
0x267b   :  { %5334 = vrot.lane.b32.xlu0 %v15435_v63, %s13594_s14 }
0x2690   :  { %5227 = vadd.xlane.f32.xlu1 %v5226_v0 }
0x2694   :  { %5221 = vadd.xlane.f32.xlu1 %v5220_v10 }
0x26a5   :  { %5348 = vrot.lane.b32.xlu1 %v15433_v14, %s13594_s14 }
0x26a9   :  { %5332 = vrot.lane.b32.xlu1 %v15415_v16, %s13594_s14 }
0x26ad   :  { %5336 = vrot.lane.b32.xlu1 %v15431_v52, %s13594_s14 }
0x26de   :  { %v5213_v57 = vpop.xlane.xlu0 %5212 }
0x26e0   :  { %v5216_v44 = vpop.xlane.xlu1 %5215 }
0x26e1   :  { %12797 = vrcp.f32 %v5216_v44 }
0x26e2   :  { %v5207_v41 = vpop.xlane.xlu0 %5206 }
0x26e3   :  { %12799 = vrcp.f32 %v5207_v41 }
0x26e4   :  { %12801 = vrcp.f32 %v5213_v57  ;;  %v5210_v25 = vpop.xlane.xlu1 %5209 }
0x26e5   :  { %12803 = vrcp.f32 %v5210_v25 }
0x26e6   :  { %v5225_v42 = vpop.xlane.xlu0 %5224 }
0x26e8   :  { %v5345_v51 = vpop.permute.xlu1 %5344 }
0x26e9   :  { %v5366_v5 = vsel %vm786_vm2, %v5345_v51, 0 }
0x26ea   :  { %v5219_v21 = vpop.xlane.xlu0 %5218 }
0x26eb   :  { %v12798_v9 = vpop.eup %12797 }
0x26ec   :  { %v5240_v40 = vmul.f32 %v12798_v9, %v12786_v50  ;;  %v5347_v50 = vpop.permute.xlu1 %5346 }
0x26ed   :  { %v12800_v19 = vpop.eup %12799 }
0x26ee   :  { %v12802_v13 = vpop.eup %12801  ;;  %v5343_v59 = vpop.permute.xlu0 %5342  ;;  %v5237_v43 = vmul.f32 %v12800_v19, %v12784_v26 }
0x26ef   :  { %v12804_v48 = vpop.eup %12803  ;;  %12054 = vmatprep.subr.msk.bf16.mxu0 %vm786_vm2, %v5343_v59  ;;  %v5239_v15 = vmul.f32 %v12802_v13, %v12782_v6  ;;  %v5363_v18 = vsel %vm786_vm2, %v5343_v59, 0  ;;  %v5369_v6 = vsel %vm786_vm2, %v5347_v50, 0 }
0x26f0   :  { %v5238_v22 = vmul.f32 %v12804_v48, %v12788_v53 }
0x26f1   :  { %v5246_v31 = vpack.c.bf16 %v5240_v40, %v5239_v15 }
0x26f2   :  { %v5245_v35 = vpack.c.bf16 %v5238_v22, %v5237_v43 }
0x26f4   :  { %11420 = vmatprep.mubr.msk.bf16.mxu0 %vm379_vm0, %v5245_v35 }
0x26f5   :  { %11421 = vmatmul.mubr.msk.bf16.vlgmr.msra.gmra.mrb[128].mxu0 %vm379_vm0, %v5246_v31 }
0x26f6   :  { %11429 = vmatpush3.bf16.xpose.msra.mxu0 %v5363_v18 }
0x26f7   :  { %12055 = vmatprep.subr.msk.bf16.mxu0 %vm786_vm2, %v5345_v51 }
0x26fe   :  { %11431 = vmatpush3.bf16.xpose.msra.mxu0 %v5366_v5 }
0x26ff   :  { %12056 = vmatprep.subr.msk.bf16.mxu0 %vm786_vm2, %v5347_v50 }
0x2706   :  { %11433 = vmatpush3.bf16.xpose.msra.mxu0 %v5369_v6 }
0x271d   :  { %v5228_v26 = vpop.xlane.xlu1 %5227 }
0x271e   :  { %12805 = vrcp.f32 %v5228_v26 }
0x271f   :  { %12807 = vrcp.f32 %v5219_v21 }
0x2720   :  { %12809 = vrcp.f32 %v5225_v42  ;;  %v5331_v42 = vpop.permute.xlu0 %5330 }
0x2721   :  { %v5222_v53 = vpop.xlane.xlu1 %5221 }
0x2722   :  { %12811 = vrcp.f32 %v5222_v53 }
0x2724   :  { %v5335_v9 = vpop.permute.xlu0 %5334 }
0x2725   :  { %v5349_v54 = vpop.permute.xlu1 %5348 }
0x2726   :  { %12057 = vmatprep.subr.msk.bf16.mxu0 %vm786_vm2, %v5349_v54  ;;  %v5372_v1 = vsel %vm786_vm2, %v5349_v54, 0 }
0x2727   :  { %11435 = vmatpush3.bf16.xpose.msra.mxu0 %v5372_v1 }
0x2728   :  { %v12806_v39 = vpop.eup %12805 }
0x2729   :  { %v12808_v3 = vpop.eup %12807  ;;  %v5244_v0 = vmul.f32 %v12806_v39, %v12794_v60  ;;  %v5333_v21 = vpop.permute.xlu1 %5332 }
0x272a   :  { %v12810_v24 = vpop.eup %12809  ;;  %v5241_v10 = vmul.f32 %v12808_v3, %v15522_v30 }
0x272b   :  { %v5243_v44 = vmul.f32 %v12810_v24, %v15518_v34 }
0x272c   :  { %v12812_v8 = vpop.eup %12811 }
0x272d   :  { %v5242_v57 = vmul.f32 %v12812_v8, %v12796_v20  ;;  %v5248_v25 = vpack.c.bf16 %v5244_v0, %v5243_v44  ;;  %v5337_v60 = vpop.permute.xlu1 %5336 }
0x272f   :  { %v5247_v41 = vpack.c.bf16 %v5242_v57, %v5241_v10 }
0x2731   :  { %11424 = vmatprep.mubr.msk.bf16.mxu0 %vm379_vm0, %v5247_v41 }
0x2732   :  { %11425 = vmatmul.mubr.msk.bf16.gmra.mrb[132].mxu0 %vm379_vm0, %v5248_v25 }
0x2733   :  { %11436 = vmatprep.mubr.msk.bf16.mxu0 %vm786_vm2, %v5331_v42 }
0x273a   :  { %11437 = vmatmul.mubr.msk.bf16.vlgmr.msra.gmra.mrb[136].mxu0 %vm786_vm2, %v5333_v21 }
0x273b   :  { %11440 = vmatprep.mubr.msk.bf16.mxu0 %vm786_vm2, %v5335_v9 }
0x2742   :  { %11441 = vmatmul.mubr.msk.bf16.gmra.mrb[140].mxu0 %vm786_vm2, %v5337_v60 }
0x27c8   :  { %v15563_v30 = vpop.f32.mrb[128].mxu0 }
0x27c9   :  { %v15565_v34 = vpop.f32.mrb[129].mxu0 }
0x27ca   :  { %v15567_v20 = vpop.f32.mrb[130].mxu0 }
0x27cb   :  { %v15569_v19 = vpop.f32.mrb[131].mxu0 }
0x2805   :  { %v15571_v13 = vpop.f32.mrb[132].mxu0 }
0x2806   :  { %v15573_v59 = vpop.f32.mrb[133].mxu0 }
0x2807   :  { %v15575_v48 = vpop.f32.mrb[134].mxu0 }
0x2808   :  { %v15577_v40 = vpop.f32.mrb[135].mxu0 }
0x280d   :  { %v11438_v43 = vpop.f32.mrb[136].mxu0 }
0x280e   :  { %v5417_v22 = vadd.f32 %v15476_v46, %v11438_v43  ;;  %v5408_v15 = vpop.f32.mrb[137].mxu0 }
0x280f   :  { %v11439_v35 = vpop.f32.mrb[138].mxu0  ;;  %v5409_v31 = vadd.f32 %v15472_v55, %v5408_v15 }
0x2810   :  { %v5411_v18 = vpop.f32.mrb[139].mxu0  ;;  %v5445_v51 = vsel %vm379_vm0, %v5417_v22, -inf  ;;  %v5420_v6 = vadd.f32 %v15485_v23, %v11439_v35 }
0x2811   :  { %v5412_v5 = vadd.f32 %v15480_v62, %v5411_v18  ;;  %5446 = vmax.xlane.f32.xlu0 %v5445_v51  ;;  %v5439_v26 = vsel %vm379_vm0, %v5409_v31, -inf }
0x2812   :  { %v5448_v24 = vsel %vm379_vm0, %v5420_v6, -inf }
0x2813   :  { %v5442_v50 = vsel %vm379_vm0, %v5412_v5, -inf }
0x2814   :  { %5443 = vmax.xlane.f32.xlu1 %v5442_v50 }
0x2815   :  { %5440 = vmax.xlane.f32.xlu0 %v5439_v26  ;;  %v11442_v53 = vpop.f32.mrb[140].mxu0 }
0x2816   :  { %v5424_v54 = vpop.f32.mrb[141].mxu0  ;;  %v5433_v39 = vadd.f32 %v15496_v45, %v11442_v53 }
0x2817   :  { %v11443_v1 = vpop.f32.mrb[142].mxu0  ;;  %v5425_v8 = vadd.f32 %v15491_v36, %v5424_v54 }
0x2818   :  { %v5427_v3 = vpop.f32.mrb[143].mxu0  ;;  %v5457_v0 = vsel %vm379_vm0, %v5433_v39, -inf  ;;  %v5436_v57 = vadd.f32 %v15507_v61, %v11443_v1 }
0x2819   :  { %5449 = vmax.xlane.f32.xlu0 %v5448_v24  ;;  %v5451_v10 = vsel %vm379_vm0, %v5425_v8, -inf  ;;  %v15599_v44 = vadd.f32 %v15500_v38, %v5427_v3 }
0x281a   :  { %v5460_v41 = vsel %vm379_vm0, %v5436_v57, -inf }
0x281b   :  { %v5454_v25 = vsel %vm379_vm0, %v15599_v44, -inf }
0x281d   :  { %5458 = vmax.xlane.f32.xlu0 %v5457_v0 }
0x2821   :  { %5452 = vmax.xlane.f32.xlu0 %v5451_v10 }
0x2825   :  { %5537 = vrot.lane.b32.xlu1 %v15443_v33, %s13594_s14 }
0x2829   :  { %5539 = vrot.lane.b32.xlu1 %v15457_v47, %s13594_s14 }
0x2837   :  { %5535 = vrot.lane.b32.xlu0 %v15445_v17, %s13594_s14 }
0x284d   :  { %5461 = vmax.xlane.f32.xlu1 %v5460_v41 }
0x2851   :  { %5455 = vmax.xlane.f32.xlu1 %v5454_v25 }
0x2862   :  { %5541 = vrot.lane.b32.xlu1 %v15454_v32, %s13594_s14 }
0x289e   :  { %v5447_v42 = vpop.xlane.xlu0 %5446 }
0x289f   :  { %v5465_v21 = vsub.f32 %v5417_v22, %v5447_v42 }
0x28a1   :  { %v5475_v9 = vmul.f32 1.442695, %v5465_v21  ;;  %v5444_v60 = vpop.xlane.xlu1 %5443 }
0x28a2   :  { %v5441_v43 = vpop.xlane.xlu0 %5440  ;;  %v5464_v35 = vsub.f32 %v5412_v5, %v5444_v60 }
0x28a3   :  { %12813 = vpow2.f32 %v5475_v9  ;;  %v5463_v15 = vsub.f32 %v5409_v31, %v5441_v43 }
0x28a4   :  { %v5473_v26 = vmul.f32 1.442695, %v5464_v35 }
0x28a5   :  { %v5471_v18 = vmul.f32 1.442695, %v5463_v15 }
0x28a6   :  { %v5450_v51 = vpop.xlane.xlu0 %5449 }
0x28a7   :  { %12815 = vpow2.f32 %v5471_v18  ;;  %v5466_v50 = vsub.f32 %v5420_v6, %v5450_v51  ;;  %v5538_v6 = vpop.permute.xlu1 %5537 }
0x28a9   :  { %v5477_v53 = vmul.f32 1.442695, %v5466_v50 }
0x28aa   :  { %v5459_v54 = vpop.xlane.xlu0 %5458 }
0x28ab   :  { %12817 = vpow2.f32 %v5477_v53  ;;  %v5469_v1 = vsub.f32 %v5433_v39, %v5459_v54 }
0x28ac   :  { %12819 = vpow2.f32 %v5473_v26 }
0x28ad   :  { %v15606_v3 = vpop.eup %12813  ;;  %v5483_v24 = vmul.f32 1.442695, %v5469_v1 }
0x28ae   :  { %v5453_v22 = vpop.xlane.xlu0 %5452  ;;  %v5493_v0 = vsel %vm379_vm0, %v15606_v3, 0.0 }
0x28af   :  { %12821 = vpow2.f32 %v5483_v24  ;;  %v5467_v31 = vsub.f32 %v5425_v8, %v5453_v22  ;;  %5494 = vadd.xlane.f32.xlu0 %v5493_v0  ;;  %v5540_v8 = vpop.permute.xlu1 %5539 }
0x28b1   :  { %v15610_v5 = vpop.eup %12815  ;;  %v5479_v10 = vmul.f32 1.442695, %v5467_v31 }
0x28b2   :  { %v5536_v41 = vpop.permute.xlu0 %5535  ;;  %v5487_v25 = vsel %vm379_vm0, %v15610_v5, 0.0 }
0x28b3   :  { %12823 = vpow2.f32 %v5479_v10  ;;  %5488 = vadd.xlane.f32.xlu0 %v5487_v25  ;;  %11444 = vmatprep.subr.bf16.mxu1 %v5536_v41 }
0x28b4   :  { %11445 = vmatpush3.bf16.msra.mxu1 %v5536_v41 }
0x28b5   :  { %v12818_v39 = vpop.eup %12817  ;;  %11446 = vmatprep.subr.bf16.mxu1 %v5538_v6 }
0x28b6   :  { %v5496_v42 = vsel %vm379_vm0, %v12818_v39, 0.0  ;;  %v12820_v21 = vpop.eup %12819 }
0x28b7   :  { %5497 = vadd.xlane.f32.xlu1 %v5496_v42  ;;  %v5490_v60 = vsel %vm379_vm0, %v12820_v21, 0.0 }
0x28b8   :  { %11447 = vmatpush3.bf16.msra.mxu1 %v5538_v6 }
0x28b9   :  { %v15615_v9 = vpop.eup %12821  ;;  %11448 = vmatprep.subr.bf16.mxu1 %v5540_v8 }
0x28ba   :  { %v5505_v43 = vsel %vm379_vm0, %v15615_v9, 0.0 }
0x28bb   :  { %5491 = vadd.xlane.f32.xlu1 %v5490_v60  ;;  %5506 = vadd.xlane.f32.xlu0 %v5505_v43 }
0x28bc   :  { %11449 = vmatpush3.bf16.msra.mxu1 %v5540_v8 }
0x28bd   :  { %v15620_v15 = vpop.eup %12823 }
0x28be   :  { %v5499_v35 = vsel %vm379_vm0, %v15620_v15, 0.0 }
0x28bf   :  { %5500 = vadd.xlane.f32.xlu0 %v5499_v35 }
0x28cc   :  { %5634 = vrot.lane.b32.xlu1 %v15417_v2, %s13595_s8 }
0x28d0   :  { %5636 = vrot.lane.b32.xlu1 %v15437_v56, %s13595_s8 }
0x28da   :  { %v5462_v18 = vpop.xlane.xlu1 %5461 }
0x28db   :  { %v5470_v51 = vsub.f32 %v5436_v57, %v5462_v18 }
0x28dd   :  { %v5485_v50 = vmul.f32 1.442695, %v5470_v51 }
0x28de   :  { %v5456_v26 = vpop.xlane.xlu1 %5455 }
0x28df   :  { %12825 = vpow2.f32 %v5485_v50  ;;  %v5468_v53 = vsub.f32 %v15599_v44, %v5456_v26 }
0x28e1   :  { %v5481_v54 = vmul.f32 1.442695, %v5468_v53 }
0x28e2   :  { %v5542_v1 = vpop.permute.xlu1 %5541 }
0x28e3   :  { %11450 = vmatprep.subr.bf16.mxu1 %v5542_v1  ;;  %12827 = vpow2.f32 %v5481_v54 }
0x28e4   :  { %11451 = vmatpush3.bf16.msra.mxu1 %v5542_v1 }
0x28e9   :  { %v12826_v24 = vpop.eup %12825 }
0x28ea   :  { %v5508_v22 = vsel %vm379_vm0, %v12826_v24, 0.0 }
0x28eb   :  { %5509 = vadd.xlane.f32.xlu0 %v5508_v22 }
0x28ed   :  { %v12828_v0 = vpop.eup %12827 }
0x28ee   :  { %v5502_v31 = vsel %vm379_vm0, %v12828_v0, 0.0 }
0x28f4   :  { %5503 = vadd.xlane.f32.xlu1 %v5502_v31 }
0x2901   :  { %5632 = vrot.lane.b32.xlu0 %v15421_v58, %s13595_s8 }
0x2905   :  { %5638 = vrot.lane.b32.xlu1 %v15433_v14, %s13595_s8  ;;  %5624 = vrot.lane.b32.xlu0 %v15419_v37, %s13595_s8 }
0x2909   :  { %5626 = vrot.lane.b32.xlu1 %v15415_v16, %s13595_s8  ;;  %5628 = vrot.lane.b32.xlu0 %v15435_v63, %s13595_s8 }
0x290d   :  { %5630 = vrot.lane.b32.xlu1 %v15431_v52, %s13595_s8 }
0x293c   :  { %v5495_v57 = vpop.xlane.xlu0 %5494 }
0x2940   :  { %v5489_v44 = vpop.xlane.xlu0 %5488 }
0x2944   :  { %v5498_v10 = vpop.xlane.xlu1 %5497 }
0x2945   :  { %12829 = vrcp.f32 %v5498_v10 }
0x2946   :  { %12831 = vrcp.f32 %v5489_v44 }
0x2947   :  { %12833 = vrcp.f32 %v5495_v57 }
0x2948   :  { %v5492_v6 = vpop.xlane.xlu1 %5491  ;;  %v5507_v26 = vpop.xlane.xlu0 %5506 }
0x2949   :  { %12835 = vrcp.f32 %v5492_v6 }
0x294c   :  { %v5501_v53 = vpop.xlane.xlu0 %5500  ;;  %v5635_v54 = vpop.permute.xlu1 %5634 }
0x294f   :  { %v12830_v41 = vpop.eup %12829 }
0x2950   :  { %v12832_v25 = vpop.eup %12831  ;;  %v5522_v60 = vmul.f32 %v12830_v41, %v12818_v39  ;;  %v5637_v31 = vpop.permute.xlu1 %5636 }
0x2951   :  { %v12834_v42 = vpop.eup %12833  ;;  %v5519_v43 = vmul.f32 %v12832_v25, %v15610_v5  ;;  %v5656_v5 = vsel %vm786_vm2, %v5635_v54, 0  ;;  %v5659_v41 = vsel %vm786_vm2, %v5637_v31, 0 }
0x2952   :  { %v5521_v18 = vmul.f32 %v12834_v42, %v15606_v3 }
0x2953   :  { %v12836_v8 = vpop.eup %12835 }
0x2954   :  { %v5520_v35 = vmul.f32 %v12836_v8, %v12820_v21  ;;  %v5528_v50 = vpack.c.bf16 %v5522_v60, %v5521_v18 }
0x2956   :  { %v5527_v51 = vpack.c.bf16 %v5520_v35, %v5519_v43 }
0x2958   :  { %11452 = vmatprep.mubr.msk.bf16.mxu1 %vm379_vm0, %v5527_v51 }
0x2959   :  { %11453 = vmatmul.mubr.msk.bf16.vlgmr.msra.gmra.mrb[136].mxu1 %vm379_vm0, %v5528_v50 }
0x2978   :  { %v5510_v1 = vpop.xlane.xlu0 %5509 }
0x2979   :  { %12837 = vrcp.f32 %v5510_v1 }
0x297a   :  { %12839 = vrcp.f32 %v5501_v53 }
0x297b   :  { %12841 = vrcp.f32 %v5507_v26 }
0x297c   :  { %v5633_v22 = vpop.permute.xlu0 %5632 }
0x297d   :  { %12058 = vmatprep.subr.msk.bf16.mxu1 %vm786_vm2, %v5633_v22  ;;  %v5653_v39 = vsel %vm786_vm2, %v5633_v22, 0 }
0x297e   :  { %11461 = vmatpush3.bf16.xpose.msra.mxu1 %v5653_v39 }
0x297f   :  { %12059 = vmatprep.subr.msk.bf16.mxu1 %vm786_vm2, %v5635_v54 }
0x2980   :  { %v5625_v18 = vpop.permute.xlu0 %5624 }
0x2981   :  { %v5504_v3 = vpop.xlane.xlu1 %5503 }
0x2982   :  { %12843 = vrcp.f32 %v5504_v3 }
0x2983   :  { %v12838_v21 = vpop.eup %12837 }
0x2984   :  { %v12840_v57 = vpop.eup %12839  ;;  %v5526_v6 = vmul.f32 %v12838_v21, %v12826_v24 }
0x2985   :  { %v12842_v44 = vpop.eup %12841  ;;  %v5523_v25 = vmul.f32 %v12840_v57, %v15620_v15  ;;  %v5639_v8 = vpop.permute.xlu1 %5638 }
0x2986   :  { %11463 = vmatpush3.bf16.xpose.msra.mxu1 %v5656_v5  ;;  %v5525_v60 = vmul.f32 %v12842_v44, %v15615_v9  ;;  %v5662_v24 = vsel %vm786_vm2, %v5639_v8, 0 }
0x2987   :  { %12060 = vmatprep.subr.msk.bf16.mxu1 %vm786_vm2, %v5637_v31 }
0x2988   :  { %v5530_v35 = vpack.c.bf16 %v5526_v6, %v5525_v60 }
0x2989   :  { %v5627_v15 = vpop.permute.xlu1 %5626 }
0x298c   :  { %v12844_v10 = vpop.eup %12843 }
0x298d   :  { %v5524_v42 = vmul.f32 %v12844_v10, %v12828_v0  ;;  %v5629_v0 = vpop.permute.xlu0 %5628  ;;  %v5631_v9 = vpop.permute.xlu1 %5630 }
0x298e   :  { %11465 = vmatpush3.bf16.xpose.msra.mxu1 %v5659_v41 }
0x298f   :  { %12061 = vmatprep.subr.msk.bf16.mxu1 %vm786_vm2, %v5639_v8  ;;  %v5529_v43 = vpack.c.bf16 %v5524_v42, %v5523_v25 }
0x2991   :  { %11456 = vmatprep.mubr.msk.bf16.mxu1 %vm379_vm0, %v5529_v43 }
0x2992   :  { %11457 = vmatmul.mubr.msk.bf16.gmra.mrb[140].mxu1 %vm379_vm0, %v5530_v35 }
0x2993   :  { %11468 = vmatprep.mubr.msk.bf16.mxu1 %vm786_vm2, %v5625_v18 }
0x2996   :  { %11467 = vmatpush3.bf16.xpose.msra.mxu1 %v5662_v24 }
0x299d   :  { %11469 = vmatmul.mubr.msk.bf16.vlgmr.msra.gmra.mrb[144].mxu1 %vm786_vm2, %v5627_v15 }
0x299e   :  { %11472 = vmatprep.mubr.msk.bf16.mxu1 %vm786_vm2, %v5629_v0 }
0x29a5   :  { %11473 = vmatmul.mubr.msk.bf16.gmra.mrb[148].mxu1 %vm786_vm2, %v5631_v9 }
0x2a2c   :  { %v15663_v51 = vpop.f32.mrb[136].mxu1 }
0x2a2d   :  { %v15665_v50 = vpop.f32.mrb[137].mxu1 }
0x2a2e   :  { %v15667_v26 = vpop.f32.mrb[138].mxu1 }
0x2a2f   :  { %v15671_v54 = vpop.f32.mrb[139].mxu1 }
0x2a30   :  { %v12264_v1 = vpack.i.bf16 %v15671_v54, %v15665_v50 }
0x2a65   :  { %v15675_v22 = vpop.f32.mrb[140].mxu1 }
0x2a66   :  { %v15677_v31 = vpop.f32.mrb[141].mxu1 }
0x2a67   :  { %v15679_v39 = vpop.f32.mrb[142].mxu1 }
0x2a68   :  { %v15683_v5 = vpop.f32.mrb[143].mxu1 }
0x2a69   :  { %v12284_v21 = vpack.i.bf16 %v15683_v5, %v15677_v31  ;;  %v16937_v5 = vpack.i.bf16 %v15679_v39, %v15675_v22 }
0x2a70   :  { %v11470_v57 = vpop.f32.mrb[144].mxu1 }
0x2a71   :  { %v5707_v44 = vadd.f32 %v15476_v46, %v11470_v57  ;;  %v5698_v10 = vpop.f32.mrb[145].mxu1 }
0x2a72   :  { %v11471_v6 = vpop.f32.mrb[146].mxu1  ;;  %v5699_v41 = vadd.f32 %v15472_v55, %v5698_v10 }
0x2a73   :  { %v5701_v25 = vpop.f32.mrb[147].mxu1  ;;  %v5735_v42 = vsel %vm379_vm0, %v5707_v44, -inf  ;;  %v5710_v43 = vadd.f32 %v15485_v23, %v11471_v6 }
0x2a74   :  { %v5702_v8 = vadd.f32 %v15480_v62, %v5701_v25  ;;  %5736 = vmax.xlane.f32.xlu0 %v5735_v42  ;;  %v5729_v35 = vsel %vm379_vm0, %v5699_v41, -inf }
0x2a75   :  { %v5738_v0 = vsel %vm379_vm0, %v5710_v43, -inf }
0x2a76   :  { %v5732_v60 = vsel %vm379_vm0, %v5702_v8, -inf }
0x2a77   :  { %5733 = vmax.xlane.f32.xlu1 %v5732_v60 }
0x2a78   :  { %5730 = vmax.xlane.f32.xlu0 %v5729_v35  ;;  %v11474_v18 = vpop.f32.mrb[148].mxu1 }
0x2a79   :  { %v5714_v46 = vpop.f32.mrb[149].mxu1  ;;  %v5723_v15 = vadd.f32 %v15496_v45, %v11474_v18 }
0x2a7a   :  { %v11475_v24 = vpop.f32.mrb[150].mxu1  ;;  %v5715_v62 = vadd.f32 %v15491_v36, %v5714_v46 }
0x2a7b   :  { %v5717_v55 = vpop.f32.mrb[151].mxu1  ;;  %v5747_v9 = vsel %vm379_vm0, %v5723_v15, -inf  ;;  %v5726_v45 = vadd.f32 %v15507_v61, %v11475_v24 }
0x2a7c   :  { %5739 = vmax.xlane.f32.xlu0 %v5738_v0  ;;  %v5741_v23 = vsel %vm379_vm0, %v5715_v62, -inf  ;;  %v15707_v57 = vadd.f32 %v15500_v38, %v5717_v55 }
0x2a7d   :  { %v5750_v36 = vsel %vm379_vm0, %v5726_v45, -inf }
0x2a7e   :  { %v5744_v10 = vsel %vm379_vm0, %v15707_v57, -inf }
0x2a80   :  { %5748 = vmax.xlane.f32.xlu0 %v5747_v9 }
0x2a84   :  { %5742 = vmax.xlane.f32.xlu0 %v5741_v23 }
0x2a88   :  { %5823 = vrot.lane.b32.xlu1 %v15443_v33, %s13595_s8 }
0x2a8c   :  { %5825 = vrot.lane.b32.xlu1 %v15457_v47, %s13595_s8 }
0x2a9a   :  { %5821 = vrot.lane.b32.xlu0 %v15445_v17, %s13595_s8 }
0x2ab0   :  { %5751 = vmax.xlane.f32.xlu1 %v5750_v36 }
0x2ab4   :  { %5745 = vmax.xlane.f32.xlu1 %v5744_v10 }
0x2ac5   :  { %5827 = vrot.lane.b32.xlu1 %v15454_v32, %s13595_s8 }
0x2b01   :  { %v5737_v6 = vpop.xlane.xlu0 %5736 }
0x2b02   :  { %v5755_v25 = vsub.f32 %v5707_v44, %v5737_v6 }
0x2b04   :  { %v5765_v42 = vmul.f32 1.442695, %v5755_v25  ;;  %v5734_v60 = vpop.xlane.xlu1 %5733 }
0x2b05   :  { %v5731_v35 = vpop.xlane.xlu0 %5730  ;;  %v5754_v18 = vsub.f32 %v5702_v8, %v5734_v60 }
0x2b06   :  { %12845 = vpow2.f32 %v5765_v42  ;;  %v5753_v61 = vsub.f32 %v5699_v41, %v5731_v35 }
0x2b07   :  { %v5763_v55 = vmul.f32 1.442695, %v5754_v18 }
0x2b08   :  { %v5761_v38 = vmul.f32 1.442695, %v5753_v61 }
0x2b09   :  { %v5740_v46 = vpop.xlane.xlu0 %5739 }
0x2b0a   :  { %12847 = vpow2.f32 %v5761_v38  ;;  %v5756_v24 = vsub.f32 %v5710_v43, %v5740_v46  ;;  %v5824_v43 = vpop.permute.xlu1 %5823 }
0x2b0c   :  { %v5767_v0 = vmul.f32 1.442695, %v5756_v24 }
0x2b0d   :  { %v5749_v9 = vpop.xlane.xlu0 %5748 }
0x2b0e   :  { %12849 = vpow2.f32 %v5767_v0  ;;  %v5759_v23 = vsub.f32 %v5723_v15, %v5749_v9 }
0x2b0f   :  { %12851 = vpow2.f32 %v5763_v55 }
0x2b10   :  { %v15714_v36 = vpop.eup %12845  ;;  %v5773_v10 = vmul.f32 1.442695, %v5759_v23 }
0x2b11   :  { %v5743_v44 = vpop.xlane.xlu0 %5742  ;;  %v5783_v6 = vsel %vm379_vm0, %v15714_v36, 0.0 }
0x2b12   :  { %12853 = vpow2.f32 %v5773_v10  ;;  %v5757_v41 = vsub.f32 %v5715_v62, %v5743_v44  ;;  %5784 = vadd.xlane.f32.xlu0 %v5783_v6  ;;  %v5826_v62 = vpop.permute.xlu1 %5825 }
0x2b14   :  { %v15718_v8 = vpop.eup %12847  ;;  %v5769_v25 = vmul.f32 1.442695, %v5757_v41 }
0x2b15   :  { %v5822_v42 = vpop.permute.xlu0 %5821  ;;  %v5777_v60 = vsel %vm379_vm0, %v15718_v8, 0.0 }
0x2b16   :  { %12855 = vpow2.f32 %v5769_v25  ;;  %5778 = vadd.xlane.f32.xlu0 %v5777_v60  ;;  %11476 = vmatprep.subr.bf16.mxu0 %v5822_v42 }
0x2b17   :  { %11477 = vmatpush3.bf16.msra.mxu0 %v5822_v42 }
0x2b18   :  { %v12850_v15 = vpop.eup %12849  ;;  %11478 = vmatprep.subr.bf16.mxu0 %v5824_v43 }
0x2b19   :  { %v5786_v35 = vsel %vm379_vm0, %v12850_v15, 0.0  ;;  %v12852_v61 = vpop.eup %12851 }
0x2b1a   :  { %5787 = vadd.xlane.f32.xlu1 %v5786_v35  ;;  %v5780_v38 = vsel %vm379_vm0, %v12852_v61, 0.0 }
0x2b1b   :  { %11479 = vmatpush3.bf16.msra.mxu0 %v5824_v43 }
0x2b1c   :  { %v15723_v18 = vpop.eup %12853  ;;  %11480 = vmatprep.subr.bf16.mxu0 %v5826_v62 }
0x2b1d   :  { %v5795_v46 = vsel %vm379_vm0, %v15723_v18, 0.0 }
0x2b1e   :  { %5781 = vadd.xlane.f32.xlu1 %v5780_v38  ;;  %5796 = vadd.xlane.f32.xlu0 %v5795_v46 }
0x2b1f   :  { %11481 = vmatpush3.bf16.msra.mxu0 %v5826_v62 }
0x2b20   :  { %v15728_v24 = vpop.eup %12855 }
0x2b21   :  { %v5789_v55 = vsel %vm379_vm0, %v15728_v24, 0.0 }
0x2b22   :  { %5790 = vadd.xlane.f32.xlu0 %v5789_v55 }
0x2b2f   :  { %5920 = vrot.lane.b32.xlu1 %v15417_v2, %s13596_s7 }
0x2b33   :  { %5922 = vrot.lane.b32.xlu1 %v15437_v56, %s13596_s7 }
0x2b3d   :  { %v5752_v0 = vpop.xlane.xlu1 %5751 }
0x2b3e   :  { %v5760_v9 = vsub.f32 %v5726_v45, %v5752_v0 }
0x2b40   :  { %v5775_v23 = vmul.f32 1.442695, %v5760_v9 }
0x2b41   :  { %v5746_v10 = vpop.xlane.xlu1 %5745 }
0x2b42   :  { %12857 = vpow2.f32 %v5775_v23  ;;  %v5758_v44 = vsub.f32 %v15707_v57, %v5746_v10 }
0x2b44   :  { %v5771_v6 = vmul.f32 1.442695, %v5758_v44 }
0x2b45   :  { %v5828_v41 = vpop.permute.xlu1 %5827 }
0x2b46   :  { %11482 = vmatprep.subr.bf16.mxu0 %v5828_v41  ;;  %12859 = vpow2.f32 %v5771_v6 }
0x2b47   :  { %11483 = vmatpush3.bf16.msra.mxu0 %v5828_v41 }
0x2b4c   :  { %v12858_v25 = vpop.eup %12857 }
0x2b4d   :  { %v5798_v43 = vsel %vm379_vm0, %v12858_v25, 0.0 }
0x2b4e   :  { %5799 = vadd.xlane.f32.xlu0 %v5798_v43 }
0x2b50   :  { %v12860_v2 = vpop.eup %12859 }
0x2b51   :  { %v5792_v42 = vsel %vm379_vm0, %v12860_v2, 0.0 }
0x2b57   :  { %5793 = vadd.xlane.f32.xlu1 %v5792_v42 }
0x2b64   :  { %5918 = vrot.lane.b32.xlu0 %v15421_v58, %s13596_s7 }
0x2b68   :  { %5924 = vrot.lane.b32.xlu1 %v15433_v14, %s13596_s7  ;;  %5910 = vrot.lane.b32.xlu0 %v15419_v37, %s13596_s7 }
0x2b6c   :  { %5912 = vrot.lane.b32.xlu1 %v15415_v16, %s13596_s7  ;;  %5914 = vrot.lane.b32.xlu0 %v15435_v63, %s13596_s7 }
0x2b70   :  { %5916 = vrot.lane.b32.xlu1 %v15431_v52, %s13596_s7 }
0x2b9f   :  { %v5785_v56 = vpop.xlane.xlu0 %5784 }
0x2ba3   :  { %v5779_v45 = vpop.xlane.xlu0 %5778 }
0x2ba7   :  { %v5788_v57 = vpop.xlane.xlu1 %5787 }
0x2ba8   :  { %12861 = vrcp.f32 %v5788_v57 }
0x2ba9   :  { %12863 = vrcp.f32 %v5779_v45 }
0x2baa   :  { %12865 = vrcp.f32 %v5785_v56 }
0x2bab   :  { %v5782_v58 = vpop.xlane.xlu1 %5781  ;;  %v5797_v55 = vpop.xlane.xlu0 %5796 }
0x2bac   :  { %12867 = vrcp.f32 %v5782_v58 }
0x2baf   :  { %v5791_v0 = vpop.xlane.xlu0 %5790  ;;  %v5921_v9 = vpop.permute.xlu1 %5920 }
0x2bb2   :  { %v12862_v14 = vpop.eup %12861 }
0x2bb3   :  { %v12864_v60 = vpop.eup %12863  ;;  %v5812_v62 = vmul.f32 %v12862_v14, %v12850_v15  ;;  %v5923_v44 = vpop.permute.xlu1 %5922 }
0x2bb4   :  { %v12866_v37 = vpop.eup %12865  ;;  %v5809_v16 = vmul.f32 %v12864_v60, %v15718_v8  ;;  %v5942_v8 = vsel %vm786_vm2, %v5921_v9, 0  ;;  %v5945_v56 = vsel %vm786_vm2, %v5923_v44, 0 }
0x2bb5   :  { %v5811_v63 = vmul.f32 %v12866_v37, %v15714_v36 }
0x2bb6   :  { %v12868_v35 = vpop.eup %12867 }
0x2bb7   :  { %v5810_v38 = vmul.f32 %v12868_v35, %v12852_v61  ;;  %v5818_v52 = vpack.c.bf16 %v5812_v62, %v5811_v63 }
0x2bb9   :  { %v5817_v46 = vpack.c.bf16 %v5810_v38, %v5809_v16 }
0x2bbb   :  { %11484 = vmatprep.mubr.msk.bf16.mxu0 %vm379_vm0, %v5817_v46 }
0x2bbc   :  { %11485 = vmatmul.mubr.msk.bf16.vlgmr.msra.gmra.mrb[144].mxu0 %vm379_vm0, %v5818_v52 }
0x2bdb   :  { %v5800_v23 = vpop.xlane.xlu0 %5799 }
0x2bdc   :  { %12869 = vrcp.f32 %v5800_v23 }
0x2bdd   :  { %12871 = vrcp.f32 %v5791_v0 }
0x2bde   :  { %12873 = vrcp.f32 %v5797_v55 }
0x2bdf   :  { %v5919_v10 = vpop.permute.xlu0 %5918 }
0x2be0   :  { %12062 = vmatprep.subr.msk.bf16.mxu0 %vm786_vm2, %v5919_v10  ;;  %v5939_v15 = vsel %vm786_vm2, %v5919_v10, 0 }
0x2be1   :  { %11493 = vmatpush3.bf16.xpose.msra.mxu0 %v5939_v15 }
0x2be2   :  { %12063 = vmatprep.subr.msk.bf16.mxu0 %vm786_vm2, %v5921_v9 }
0x2be3   :  { %v5911_v35 = vpop.permute.xlu0 %5910 }
0x2be4   :  { %v5794_v36 = vpop.xlane.xlu1 %5793 }
0x2be5   :  { %12875 = vrcp.f32 %v5794_v36 }
0x2be6   :  { %v12870_v61 = vpop.eup %12869 }
0x2be7   :  { %v12872_v6 = vpop.eup %12871  ;;  %v5816_v42 = vmul.f32 %v12870_v61, %v12858_v25 }
0x2be8   :  { %v12874_v41 = vpop.eup %12873  ;;  %v5813_v45 = vmul.f32 %v12872_v6, %v15728_v24  ;;  %v5925_v58 = vpop.permute.xlu1 %5924 }
0x2be9   :  { %11495 = vmatpush3.bf16.xpose.msra.mxu0 %v5942_v8  ;;  %v5815_v14 = vmul.f32 %v12874_v41, %v15723_v18  ;;  %v5948_v25 = vsel %vm786_vm2, %v5925_v58, 0  ;;  %v13133_v8 = vld [vmem:[%s16924_s15] sm:$0xff] }
0x2bea   :  { %12064 = vmatprep.subr.msk.bf16.mxu0 %vm786_vm2, %v5923_v44 }
0x2beb   :  { %v5820_v37 = vpack.c.bf16 %v5816_v42, %v5815_v14  ;;  %v13136_v14 = vld [vmem:[%s16924_s15 + $0x18] sm:$0xff] }
0x2bec   :  { %v5913_v24 = vpop.permute.xlu1 %5912 }
0x2bef   :  { %v12876_v43 = vpop.eup %12875 }
0x2bf0   :  { %v5814_v57 = vmul.f32 %v12876_v43, %v12860_v2  ;;  %v5915_v2 = vpop.permute.xlu0 %5914  ;;  %v5917_v18 = vpop.permute.xlu1 %5916  ;;  %v13134_v43 = vld [vmem:[%s16924_s15 + $0x10] sm:$0xff] }
0x2bf1   :  { %11497 = vmatpush3.bf16.xpose.msra.mxu0 %v5945_v56  ;;  %v13135_v56 = vld [vmem:[%s16924_s15 + $0x8] sm:$0xff] }
0x2bf2   :  { %12065 = vmatprep.subr.msk.bf16.mxu0 %vm786_vm2, %v5925_v58  ;;  %v5819_v60 = vpack.c.bf16 %v5814_v57, %v5813_v45 }
0x2bf4   :  { %11488 = vmatprep.mubr.msk.bf16.mxu0 %vm379_vm0, %v5819_v60 }
0x2bf5   :  { %11489 = vmatmul.mubr.msk.bf16.gmra.mrb[148].mxu0 %vm379_vm0, %v5820_v37 }
0x2bf6   :  { %11500 = vmatprep.mubr.msk.bf16.mxu0 %vm786_vm2, %v5911_v35 }
0x2bf9   :  { %11499 = vmatpush3.bf16.xpose.msra.mxu0 %v5948_v25 }
0x2c00   :  { %11501 = vmatmul.mubr.msk.bf16.vlgmr.msra.gmra.mrb[152].mxu0 %vm786_vm2, %v5913_v24 }
0x2c01   :  { %11504 = vmatprep.mubr.msk.bf16.mxu0 %vm786_vm2, %v5915_v2 }
0x2c08   :  { %11505 = vmatmul.mubr.msk.bf16.gmra.mrb[156].mxu0 %vm786_vm2, %v5917_v18  ;;  %v13137_v18 = vld [vmem:[%s16924_s15 + $0x20] sm:$0xff] }
0x2c8f   :  { %v15771_v62 = vpop.f32.mrb[144].mxu0 }
0x2c90   :  { %v15773_v16 = vpop.f32.mrb[145].mxu0 }
0x2c91   :  { %v15775_v38 = vpop.f32.mrb[146].mxu0 }
0x2c92   :  { %v15779_v46 = vpop.f32.mrb[147].mxu0  ;;  %v16936_v31 = vpack.i.bf16 %v15775_v38, %v15771_v62 }
0x2c93   :  { %v12274_v52 = vpack.i.bf16 %v15779_v46, %v15773_v16  ;;  %v16935_v16 = vpack.i.bf16 %v15667_v26, %v15663_v51 }
0x2cc8   :  { %v15783_v55 = vpop.f32.mrb[148].mxu0 }
0x2cc9   :  { %v15785_v0 = vpop.f32.mrb[149].mxu0 }
0x2cca   :  { %v15787_v9 = vpop.f32.mrb[150].mxu0 }
0x2ccb   :  { %v15791_v10 = vpop.f32.mrb[151].mxu0 }
0x2cd3   :  { %v11502_v15 = vpop.f32.mrb[152].mxu0 }
0x2cd4   :  { %v5984_v36 = vpop.f32.mrb[153].mxu0  ;;  %v5993_v42 = vadd.f32 %v13134_v43, %v11502_v15  ;;  %v13139_v43 = vld [vmem:[%s16924_s15 + $0x38] sm:$0xff] }
0x2cd5   :  { %v5985_v61 = vadd.f32 %v13133_v8, %v5984_v36  ;;  %v11503_v6 = vpop.f32.mrb[154].mxu0  ;;  %v13138_v36 = vld [vmem:[%s16924_s15 + $0x28] sm:$0xff] }
0x2cd6   :  { %v5987_v41 = vpop.f32.mrb[155].mxu0  ;;  %v5996_v60 = vadd.f32 %v13136_v14, %v11503_v6  ;;  %v6021_v35 = vsel %vm379_vm0, %v5993_v42, -inf }
0x2cd7   :  { %v5988_v45 = vadd.f32 %v13135_v56, %v5987_v41  ;;  %v6015_v57 = vsel %vm379_vm0, %v5985_v61, -inf }
0x2cd8   :  { %6016 = vmax.xlane.f32.xlu0 %v6015_v57  ;;  %v6024_v41 = vsel %vm379_vm0, %v5996_v60, -inf  ;;  %v13140_v57 = vld [vmem:[%s16924_s15 + $0x30] sm:$0xff] }
0x2cd9   :  { %v6018_v58 = vsel %vm379_vm0, %v5988_v45, -inf }
0x2cda   :  { %6019 = vmax.xlane.f32.xlu1 %v6018_v58 }
0x2cdb   :  { %v11506_v37 = vpop.f32.mrb[156].mxu0 }
0x2cdc   :  { %6022 = vmax.xlane.f32.xlu0 %v6021_v35  ;;  %v6000_v25 = vpop.f32.mrb[157].mxu0  ;;  %v6009_v58 = vadd.f32 %v13140_v57, %v11506_v37 }
0x2cdd   :  { %v11507_v24 = vpop.f32.mrb[158].mxu0  ;;  %v6001_v15 = vadd.f32 %v13137_v18, %v6000_v25 }
0x2cde   :  { %v6003_v2 = vpop.f32.mrb[159].mxu0  ;;  %v6012_v56 = vadd.f32 %v13139_v43, %v11507_v24  ;;  %v6033_v25 = vsel %vm379_vm0, %v6009_v58, -inf }
0x2cdf   :  { %v15804_v8 = vadd.f32 %v13138_v36, %v6003_v2  ;;  %v6027_v14 = vsel %vm379_vm0, %v6001_v15, -inf }
0x2ce0   :  { %6025 = vmax.xlane.f32.xlu0 %v6024_v41  ;;  %v6036_v35 = vsel %vm379_vm0, %v6012_v56, -inf }
0x2ce1   :  { %v6030_v6 = vsel %vm379_vm0, %v15804_v8, -inf }
0x2ce2   :  { %6031 = vmax.xlane.f32.xlu1 %v6030_v6 }
0x2ce4   :  { %6028 = vmax.xlane.f32.xlu0 %v6027_v14 }
0x2ce6   :  { %6037 = vmax.xlane.f32.xlu1 %v6036_v35 }
0x2ce8   :  { %6034 = vmax.xlane.f32.xlu0 %v6033_v25 }
0x2d65   :  { %v6017_v2 = vpop.xlane.xlu0 %6016 }
0x2d66   :  { %v6039_v18 = vsub.f32 %v5985_v61, %v6017_v2 }
0x2d67   :  { %v6020_v36 = vpop.xlane.xlu1 %6019 }
0x2d68   :  { %v6047_v43 = vmul.f32 1.442695, %v6039_v18  ;;  %v6040_v44 = vsub.f32 %v5988_v45, %v6020_v36 }
0x2d69   :  { %v6023_v41 = vpop.xlane.xlu0 %6022 }
0x2d6a   :  { %v6041_v24 = vsub.f32 %v5993_v42, %v6023_v41  ;;  %v6049_v57 = vmul.f32 1.442695, %v6040_v44 }
0x2d6c   :  { %v6051_v23 = vmul.f32 1.442695, %v6041_v24 }
0x2d6d   :  { %v6026_v6 = vpop.xlane.xlu0 %6025 }
0x2d6e   :  { %12877 = vpow2.f32 %v6051_v23  ;;  %v6042_v37 = vsub.f32 %v5996_v60, %v6026_v6 }
0x2d6f   :  { %12879 = vpow2.f32 %v6047_v43  ;;  %v6032_v41 = vpop.xlane.xlu1 %6031 }
0x2d70   :  { %v6053_v14 = vmul.f32 1.442695, %v6042_v37 }
0x2d71   :  { %v6029_v3 = vpop.xlane.xlu0 %6028 }
0x2d72   :  { %12881 = vpow2.f32 %v6053_v14  ;;  %v6043_v35 = vsub.f32 %v6001_v15, %v6029_v3 }
0x2d73   :  { %12883 = vpow2.f32 %v6049_v57  ;;  %v6038_v24 = vpop.xlane.xlu1 %6037 }
0x2d74   :  { %v6055_v61 = vmul.f32 1.442695, %v6043_v35  ;;  %v6046_v43 = vsub.f32 %v6012_v56, %v6038_v24 }
0x2d75   :  { %v6035_v63 = vpop.xlane.xlu0 %6034 }
0x2d76   :  { %v6045_v25 = vsub.f32 %v6009_v58, %v6035_v63  ;;  %v6061_v6 = vmul.f32 1.442695, %v6046_v43 }
0x2d78   :  { %v15814_v53 = vpop.eup %12877  ;;  %v6059_v2 = vmul.f32 1.442695, %v6045_v25 }
0x2d79   :  { %v6069_v42 = vsel %vm379_vm0, %v15814_v53, 0.0  ;;  %v12880_v45 = vpop.eup %12879 }
0x2d7a   :  { %12885 = vpow2.f32 %v6059_v2  ;;  %6070 = vadd.xlane.f32.xlu0 %v6069_v42  ;;  %v6063_v44 = vsel %vm379_vm0, %v12880_v45, 0.0 }
0x2d7b   :  { %12887 = vpow2.f32 %v6055_v61 }
0x2d7c   :  { %v15818_v23 = vpop.eup %12881  ;;  %12889 = vpow2.f32 %v6061_v6  ;;  %v12423_v6 = vld [vmem:[%s16925_s25 + $0x28] sm:$0xff]  }
0x2d7d   :  { %v6072_v3 = vsel %vm379_vm0, %v15818_v23, 0.0  ;;  %v12884_v60 = vpop.eup %12883 }
0x2d7e   :  { %6064 = vadd.xlane.f32.xlu0 %v6063_v44  ;;  %6073 = vadd.xlane.f32.xlu1 %v6072_v3  ;;  %v6066_v63 = vsel %vm379_vm0, %v12884_v60, 0.0 }
0x2d82   :  { %6067 = vadd.xlane.f32.xlu1 %v6066_v63 }
0x2d84   :  { %v15824_v15 = vpop.eup %12885 }
0x2d85   :  { %v6081_v58 = vsel %vm379_vm0, %v15824_v15, 0.0  ;;  %v15828_v18 = vpop.eup %12887 }
0x2d86   :  { %6082 = vadd.xlane.f32.xlu0 %v6081_v58  ;;  %v6075_v36 = vsel %vm379_vm0, %v15828_v18, 0.0 }
0x2d8a   :  { %6076 = vadd.xlane.f32.xlu0 %v6075_v36 }
0x2d93   :  { %6109 = vrot.lane.b32.xlu1 %v15443_v33, %s13596_s7  ;;  %v6044_v33 = vsub.f32 %v15804_v8, %v6032_v41 }
0x2d97   :  { %6111 = vrot.lane.b32.xlu1 %v15457_v47, %s13596_s7  ;;  %v12890_v47 = vpop.eup %12889 }
0x2d98   :  { %v6084_v50 = vsel %vm379_vm0, %v12890_v47, 0.0 }
0x2da0   :  { %6107 = vrot.lane.b32.xlu0 %v15445_v17, %s13596_s7  ;;  %v6057_v17 = vmul.f32 1.442695, %v6044_v33 }
0x2da2   :  { %12891 = vpow2.f32 %v6057_v17 }
0x2da4   :  { %12265 = vrot.lane.b32.xlu0 %v12264_v1, %s13597_s19 }
0x2da8   :  { %12275 = vrot.lane.b32.xlu0 %v12274_v52, %s13577_s22 }
0x2dac   :  { %12285 = vrot.lane.b32.xlu0 %v12284_v21, %s13597_s19  ;;  %v12892_v54 = vpop.eup %12891 }
0x2dad   :  { %v6078_v1 = vsel %vm379_vm0, %v12892_v54, 0.0 }
0x2dbb   :  { %6085 = vadd.xlane.f32.xlu1 %v6084_v50 }
0x2dbf   :  { %6079 = vadd.xlane.f32.xlu1 %v6078_v1 }
0x2dd0   :  { %6113 = vrot.lane.b32.xlu1 %v15454_v32, %s13596_s7 }
0x2dd4   :  { %12270 = vrot.lane.b32.xlu1 %v16935_v16, %s13597_s19  ;;  %v16938_v16 = vpack.i.bf16 %v15787_v9, %v15783_v55 }
0x2dd8   :  { %12280 = vrot.lane.b32.xlu1 %v16936_v31, %s13577_s22 }
0x2ddc   :  { %12290 = vrot.lane.b32.xlu1 %v16937_v5, %s13597_s19  ;;  %v16939_v5 = vpack.i.bf16 %v15791_v10, %v15785_v0 }
0x2e07   :  { %v6071_v21 = vpop.xlane.xlu0 %6070 }
0x2e0b   :  { %v6074_v46 = vpop.xlane.xlu1 %6073  ;;  %v6065_v52 = vpop.xlane.xlu0 %6064 }
0x2e0c   :  { %12893 = vrcp.f32 %v6065_v52 }
0x2e0f   :  { %v6068_v32 = vpop.xlane.xlu1 %6067 }
0x2e10   :  { %12895 = vrcp.f32 %v6068_v32 }
0x2e11   :  { %12897 = vrcp.f32 %v6074_v46 }
0x2e12   :  { %12899 = vrcp.f32 %v6071_v21 }
0x2e13   :  { %v6083_v8 = vpop.xlane.xlu0 %6082  ;;  %v6110_v37 = vpop.permute.xlu1 %6109 }
0x2e16   :  { %v12894_v51 = vpop.eup %12893 }
0x2e17   :  { %v6077_v56 = vpop.xlane.xlu0 %6076  ;;  %v6095_v14 = vmul.f32 %v12894_v51, %v12880_v45  ;;  %v6112_v22 = vpop.permute.xlu1 %6111 }
0x2e1a   :  { %v12896_v26 = vpop.eup %12895 }
0x2e1b   :  { %v6108_v57 = vpop.permute.xlu0 %6107  ;;  %v6096_v62 = vmul.f32 %v12896_v26, %v12884_v60  ;;  %v12898_v35 = vpop.eup %12897 }
0x2e1c   :  { %11508 = vmatprep.subr.bf16.mxu1 %v6108_v57  ;;  %v12900_v61 = vpop.eup %12899  ;;  %v6098_v2 = vmul.f32 %v12898_v35, %v15818_v23 }
0x2e1d   :  { %11509 = vmatpush3.bf16.msra.mxu1 %v6108_v57  ;;  %v6103_v38 = vpack.c.bf16 %v6096_v62, %v6095_v14  ;;  %v6097_v45 = vmul.f32 %v12900_v61, %v15814_v53  ;;  %v12422_v53 = vld [vmem:[%s16925_s25 + $0x20] sm:$0xff]  }
0x2e1e   :  { %11510 = vmatprep.subr.bf16.mxu1 %v6110_v37 }
0x2e1f   :  { %11516 = vmatprep.mubr.msk.bf16.mxu1 %vm379_vm0, %v6103_v38  ;;  %v6104_v44 = vpack.c.bf16 %v6098_v2, %v6097_v45 }
0x2e21   :  { %11511 = vmatpush3.bf16.msra.mxu1 %v6110_v37 }
0x2e22   :  { %11512 = vmatprep.subr.bf16.mxu1 %v6112_v22 }
0x2e25   :  { %11513 = vmatpush3.bf16.msra.mxu1 %v6112_v22 }
0x2e48   :  { %v6086_v39 = vpop.xlane.xlu1 %6085 }
0x2e49   :  { %12901 = vrcp.f32 %v6086_v39 }
0x2e4a   :  { %12903 = vrcp.f32 %v6077_v56  ;;  %v12266_v56 = vpop.permute.xlu0 %12265 }
0x2e4b   :  { %12905 = vrcp.f32 %v6083_v8  ;;  %v12267_v55 = vunpack.i.l.bf16 %v12266_v56  ;;  %v12268_v9 = vunpack.i.h.bf16 %v12266_v56 }
0x2e4c   :  { %v6080_v25 = vpop.xlane.xlu1 %6079 }
0x2e4d   :  { %12907 = vrcp.f32 %v6080_v25  ;;  %v6292_v22 = vsel %vm786_vm2, %v15565_v34, %v12267_v55  ;;  %v6293_v35 = vsel %vm786_vm2, %v15569_v19, %v12268_v9 }
0x2e4e   :  { %v12276_v26 = vpop.permute.xlu0 %12275 }
0x2e4f   :  { %v12277_v37 = vunpack.i.l.bf16 %v12276_v26  ;;  %v12278_v39 = vunpack.i.h.bf16 %v12276_v26 }
0x2e50   :  { %v6114_v42 = vpop.permute.xlu1 %6113 }
0x2e51   :  { %11514 = vmatprep.subr.bf16.mxu1 %v6114_v42  ;;  %v6300_v25 = vsel %vm536_vm1, %v6292_v22, %v12277_v37  ;;  %v6301_v19 = vsel %vm536_vm1, %v6293_v35, %v12278_v39 }
0x2e52   :  { %11515 = vmatpush3.bf16.msra.mxu1 %v6114_v42  ;;  %v12286_v14 = vpop.permute.xlu0 %12285 }
0x2e53   :  { %v12902_v3 = vpop.eup %12901  ;;  %11524 = vmatprep.subr.bf16.mxu1 %v12422_v53 }
0x2e54   :  { %v12904_v60 = vpop.eup %12903  ;;  %v6102_v36 = vmul.f32 %v12902_v3, %v12890_v47  ;;  %v12271_v8 = vpop.permute.xlu1 %12270 }
0x2e55   :  { %11517 = vmatmul.mubr.msk.bf16.vlgmr.msra.gmra.mrb[152].mxu1 %vm379_vm0, %v6104_v44  ;;  %v12906_v63 = vpop.eup %12905  ;;  %v6099_v41 = vmul.f32 %v12904_v60, %v15828_v18  ;;  %v12273_v62 = vunpack.i.h.bf16 %v12271_v8  ;;  %v12272_v0 = vunpack.i.l.bf16 %v12271_v8 }
0x2e56   :  { %v6101_v23 = vmul.f32 %v12906_v63, %v15824_v15  ;;  %11525 = vmatpush3.bf16.msra.mxu1 %v12422_v53 }
0x2e57   :  { %v12908_v58 = vpop.eup %12907  ;;  %11526 = vmatprep.subr.bf16.mxu1 %v12423_v6  ;;  %v6295_v2 = vsel %vm786_vm2, %v15567_v20, %v12273_v62  ;;  %v6294_v42 = vsel %vm786_vm2, %v15563_v30, %v12272_v0  ;;  %v12287_v20 = vunpack.i.l.bf16 %v12286_v14 }
0x2e58   :  { %v6100_v24 = vmul.f32 %v12908_v58, %v12892_v54  ;;  %v6106_v33 = vpack.c.bf16 %v6102_v36, %v6101_v23  ;;  %v12281_v51 = vpop.permute.xlu1 %12280  ;;  %v12288_v36 = vunpack.i.h.bf16 %v12286_v14  ;;  %v10284_v14 = vld [vmem:[#allocation14 + $0x2] ss:$0 sm:$0xff] }
0x2e59   :  { %v12283_v10 = vunpack.i.h.bf16 %v12281_v51  ;;  %v12282_v38 = vunpack.i.l.bf16 %v12281_v51 }
0x2e5a   :  { %v6105_v43 = vpack.c.bf16 %v6100_v24, %v6099_v41  ;;  %11527 = vmatpush3.bf16.msra.mxu1 %v12423_v6 }
0x2e5b   :  { %v6302_v60 = vsel %vm536_vm1, %v6294_v42, %v12282_v38  ;;  %v6303_v34 = vsel %vm536_vm1, %v6295_v2, %v12283_v10 }
0x2e5c   :  { %11520 = vmatprep.mubr.msk.bf16.mxu1 %vm379_vm0, %v6105_v43  ;;  %v12291_v57 = vpop.permute.xlu1 %12290 }
0x2e5d   :  { %11521 = vmatmul.mubr.msk.bf16.gmra.mrb[156].mxu1 %vm379_vm0, %v6106_v33  ;;  %v12293_v53 = vunpack.i.h.bf16 %v12291_v57  ;;  %v12292_v6 = vunpack.i.l.bf16 %v12291_v57 }
0x2f28   :  { %v11518_v17 = vpop.f32.mrb[152].mxu1 }
0x2f29   :  { %v6165_v50 = vpop.f32.mrb[153].mxu1 }
0x2f2a   :  { %v11519_v47 = vpop.f32.mrb[154].mxu1 }
0x2f2b   :  { %v12294_v1 = vpack.i.bf16 %v11519_v47, %v11518_v17  ;;  %v6168_v18 = vpop.f32.mrb[155].mxu1 }
0x2f2c   :  { %v12299_v54 = vpack.i.bf16 %v6168_v18, %v6165_v50 }
0x2f2d   :  { %12295 = vrot.lane.b32.xlu1 %v12294_v1, %s13598_s24 }
0x2f2e   :  { %12300 = vrot.lane.b32.xlu0 %v12299_v54, %s13598_s24 }
0x2f30   :  { %v11522_v15 = vpop.f32.mrb[156].mxu1 }
0x2f31   :  { %12310 = vrot.lane.b32.xlu1 %v16938_v16, %s13577_s22  ;;  %v6181_v31 = vpop.f32.mrb[157].mxu1  ;;  %v6296_v16 = vsel %vm786_vm2, %v15573_v59, %v12287_v20 }
0x2f32   :  { %12305 = vrot.lane.b32.xlu0 %v16939_v5, %s13577_s22  ;;  %v11523_v21 = vpop.f32.mrb[158].mxu1  ;;  %v6299_v5 = vsel %vm786_vm2, %v15575_v48, %v12293_v53 }
0x2f33   :  { %v12319_v46 = vpack.i.bf16 %v11523_v21, %v11522_v15  ;;  %v6184_v52 = vpop.f32.mrb[159].mxu1  ;;  %v6297_v15 = vsel %vm786_vm2, %v15577_v40, %v12288_v36  ;;  %v6298_v21 = vsel %vm786_vm2, %v15571_v13, %v12292_v6 }
0x2f34   :  { %v12314_v32 = vpack.i.bf16 %v6184_v52, %v6181_v31 }
0x2f35   :  { %12320 = vrot.lane.b32.xlu1 %v12319_v46, %s13598_s24 }
0x2f36   :  { %12315 = vrot.lane.b32.xlu0 %v12314_v32, %s13598_s24 }
0x2f9f   :  { %v12296_v61 = vpop.permute.xlu1 %12295 }
0x2fa0   :  { %v12298_v45 = vunpack.i.h.bf16 %v12296_v61  ;;  %v12297_v44 = vunpack.i.l.bf16 %v12296_v61  ;;  %v12301_v3 = vpop.permute.xlu0 %12300 }
0x2fa1   :  { %v12303_v63 = vunpack.i.h.bf16 %v12301_v3  ;;  %v12302_v58 = vunpack.i.l.bf16 %v12301_v3 }
0x2fa2   :  { %v6311_v41 = vsel %vm2027_vm3, %v6303_v34, %v12298_v45  ;;  %v6310_v24 = vsel %vm2027_vm3, %v6302_v60, %v12297_v44 }
0x2fa3   :  { %v6317_v23 = vpack.c.bf16 %v6311_v41, %v6310_v24  ;;  %v6308_v30 = vsel %vm2027_vm3, %v6300_v25, %v12302_v58  ;;  %v6309_v43 = vsel %vm2027_vm3, %v6301_v19, %v12303_v63  ;;  %v12311_v33 = vpop.permute.xlu1 %12310 }
0x2fa4   :  { %v12306_v17 = vpop.permute.xlu0 %12305  ;;  %v6316_v50 = vpack.c.bf16 %v6309_v43, %v6308_v30  ;;  %v12313_v47 = vunpack.i.h.bf16 %v12311_v33  ;;  %v12312_v1 = vunpack.i.l.bf16 %v12311_v33 }
0x2fa5   :  { %v12308_v18 = vunpack.i.h.bf16 %v12306_v17  ;;  %v12307_v54 = vunpack.i.l.bf16 %v12306_v17 }
0x2fa6   :  { %11528 = vmatprep.mubr.msk.bf16.mxu1 %vm2063_vm4, %v6316_v50  ;;  %v6307_v8 = vsel %vm536_vm1, %v6299_v5, %v12313_v47  ;;  %v6306_v56 = vsel %vm536_vm1, %v6298_v21, %v12312_v1 }
0x2fa7   :  { %v12321_v31 = vpop.permute.xlu1 %12320  ;;  %11529 = vmatmul.mubr.msk.bf16.vlgmr.msra.gmra.mrb[160].mxu1 %vm2063_vm4, %v6317_v23  ;;  %v6304_v59 = vsel %vm536_vm1, %v6296_v16, %v12307_v54  ;;  %v6305_v26 = vsel %vm536_vm1, %v6297_v15, %v12308_v18 }
0x2fa8   :  { %v12323_v46 = vunpack.i.h.bf16 %v12321_v31  ;;  %v12322_v52 = vunpack.i.l.bf16 %v12321_v31  ;;  %v12316_v32 = vpop.permute.xlu0 %12315 }
0x2fa9   :  { %v12318_v40 = vunpack.i.h.bf16 %v12316_v32  ;;  %v12317_v51 = vunpack.i.l.bf16 %v12316_v32 }
0x2faa   :  { %v6315_v55 = vsel %vm2027_vm3, %v6307_v8, %v12323_v46  ;;  %v6314_v48 = vsel %vm2027_vm3, %v6306_v56, %v12322_v52 }
0x2fab   :  { %v6312_v9 = vsel %vm2027_vm3, %v6304_v59, %v12317_v51  ;;  %v6313_v13 = vsel %vm2027_vm3, %v6305_v26, %v12318_v40  ;;  %v6319_v37 = vpack.c.bf16 %v6315_v55, %v6314_v48 }
0x2fac   :  { %v6318_v57 = vpack.c.bf16 %v6313_v13, %v6312_v9 }
0x2fae   :  { %11532 = vmatprep.mubr.msk.bf16.mxu1 %vm2063_vm4, %v6318_v57 }
0x2faf   :  { %11533 = vmatmul.mubr.msk.bf16.gmra.mrb[164].mxu1 %vm2063_vm4, %v6319_v37 }
0x307a   :  { %v11530_v62 = vpop.f32.mrb[160].mxu1 }
0x307b   :  { %v6391_v0 = vpop.f32.mrb[161].mxu1  ;;  %v6400_v10 = vadd.f32 %v11530_v62, %v10284_v14 }
0x307c   :  { %v6392_v38 = vadd.f32 %v10284_v14, %v6391_v0  ;;  %v11531_v22 = vpop.f32.mrb[162].mxu1 }
0x307d   :  { %v6394_v39 = vpop.f32.mrb[163].mxu1  ;;  %v6424_v61 = vadd.f32 %v6400_v10, %v15380_v29  ;;  %v6403_v2 = vadd.f32 %v11531_v22, %v10284_v14 }
0x307e   :  { %v6422_v35 = vadd.f32 %v6392_v38, %v15374_v4  ;;  %v6395_v25 = vadd.f32 %v10284_v14, %v6394_v39 }
0x307f   :  { %v6425_v34 = vadd.f32 %v6403_v2, %v15382_v27  ;;  %v6440_v4 = vsel %vm536_vm1, %v6424_v61, 0.0  ;;  %v12425_v2 = vld [vmem:[%s16930_s10 + $0x40] sm:$0xff]  }
0x3080   :  { %v6423_v42 = vadd.f32 %v6395_v25, %v15376_v12  ;;  %v6434_v45 = vsel %vm536_vm1, %v6422_v35, 0.0  ;;  %11546 = vmatprep.subr.bf16.mxu1 %v12425_v2 }
0x3081   :  { %6435 = vadd.xlane.f32.xlu0 %v6434_v45  ;;  %v6443_v20 = vsel %vm536_vm1, %v6425_v34, 0.0  ;;  %11547 = vmatpush3.bf16.msra.mxu1 %v12425_v2 }
0x3082   :  { %v11534_v44 = vpop.f32.mrb[164].mxu1  ;;  %v6437_v3 = vsel %vm536_vm1, %v6423_v42, 0.0 }
0x3083   :  { %v6407_v60 = vpop.f32.mrb[165].mxu1  ;;  %6438 = vadd.xlane.f32.xlu1 %v6437_v3  ;;  %v6416_v41 = vadd.f32 %v11534_v44, %v10284_v14 }
0x3084   :  { %v6408_v63 = vadd.f32 %v10284_v14, %v6407_v60  ;;  %v11535_v58 = vpop.f32.mrb[166].mxu1 }
0x3085   :  { %v6410_v19 = vpop.f32.mrb[167].mxu1  ;;  %6441 = vadd.xlane.f32.xlu0 %v6440_v4  ;;  %v6419_v29 = vadd.f32 %v11535_v58, %v10284_v14  ;;  %v6428_v30 = vadd.f32 %v6416_v41, %v15403_v49 }
0x3086   :  { %v6411_v36 = vadd.f32 %v10284_v14, %v6410_v19  ;;  %v6426_v12 = vadd.f32 %v6408_v63, %v15394_v11 }
0x3087   :  { %v6429_v23 = vadd.f32 %v6419_v29, %v15405_v7  ;;  %v6452_v11 = vsel %vm536_vm1, %v6428_v30, 0.0 }
0x3088   :  { %v6427_v24 = vadd.f32 %v6411_v36, %v15396_v28  ;;  %v6446_v43 = vsel %vm536_vm1, %v6426_v12, 0.0 }
0x3089   :  { %6444 = vadd.xlane.f32.xlu0 %v6443_v20  ;;  %v6455_v33 = vsel %vm536_vm1, %v6429_v23, 0.0 }
0x308a   :  { %v6449_v27 = vsel %vm536_vm1, %v6427_v24, 0.0 }
0x308b   :  { %6450 = vadd.xlane.f32.xlu1 %v6449_v27 }
0x308d   :  { %6447 = vadd.xlane.f32.xlu0 %v6446_v43 }
0x308f   :  { %6456 = vadd.xlane.f32.xlu1 %v6455_v33 }
0x3091   :  { %6453 = vadd.xlane.f32.xlu0 %v6452_v11 }
0x310e   :  { %v6436_v28 = vpop.xlane.xlu0 %6435 }
0x310f   :  { %v6458_v53 = vmul.f32 0.0625, %v6436_v28 }
0x3110   :  { %v6439_v6 = vpop.xlane.xlu1 %6438 }
0x3111   :  { %v15941_v17 = vsub.f32 %v6422_v35, %v6458_v53  ;;  %v6459_v7 = vmul.f32 0.0625, %v6439_v6 }
0x3112   :  { %v6442_v50 = vpop.xlane.xlu0 %6441 }
0x3113   :  { %v15943_v47 = vsub.f32 %v6423_v42, %v6459_v7  ;;  %v6460_v1 = vmul.f32 0.0625, %v6442_v50  ;;  %v6474_v49 = vmul.f32 %v15941_v17, %v15941_v17  ;;  %v12426_v42 = vld [vmem:[%s16930_s10 + $0x48] sm:$0xff]  }
0x3114   :  { %11548 = vmatprep.subr.bf16.mxu1 %v12426_v42 }
0x3115   :  { %v15947_v18 = vsub.f32 %v6424_v61, %v6460_v1  ;;  %v6482_v54 = vsel %vm536_vm1, %v6474_v49, 0.0  ;;  %v6475_v15 = vmul.f32 %v15943_v47, %v15943_v47  ;;  %v12424_v61 = vld [vmem:[#allocation15 + $0x10] sm:$0xff]   ;;  %11549 = vmatpush3.bf16.msra.mxu1 %v12426_v42 }
0x3116   :  { %6483 = vadd.xlane.f32.xlu0 %v6482_v54  ;;  %v6445_v16 = vpop.xlane.xlu0 %6444  ;;  %11536 = vmatprep.subr.bf16.mxu0 %v12424_v61 }
0x3117   :  { %v6461_v31 = vmul.f32 0.0625, %v6445_v16  ;;  %v6485_v5 = vsel %vm536_vm1, %v6475_v15, 0.0  ;;  %v6476_v21 = vmul.f32 %v15947_v18, %v15947_v18  ;;  %11537 = vmatpush3.bf16.msra.mxu0 %v12424_v61  ;;  %v10292_v15 = vld [vmem:[#allocation21 + $0x2] ss:$0 sm:$0xff] }
0x3118   :  { %6486 = vadd.xlane.f32.xlu1 %v6485_v5  ;;  %v6451_v46 = vpop.xlane.xlu1 %6450 }
0x3119   :  { %v15955_v52 = vsub.f32 %v6425_v34, %v6461_v31  ;;  %v6463_v32 = vmul.f32 0.0625, %v6451_v46  ;;  %v6488_v8 = vsel %vm536_vm1, %v6476_v21, 0.0 }
0x311a   :  { %6489 = vadd.xlane.f32.xlu0 %v6488_v8  ;;  %v6448_v56 = vpop.xlane.xlu0 %6447 }
0x311b   :  { %v15958_v40 = vsub.f32 %v6427_v24, %v6463_v32  ;;  %v6462_v51 = vmul.f32 0.0625, %v6448_v56  ;;  %v6477_v59 = vmul.f32 %v15955_v52, %v15955_v52 }
0x311c   :  { %v6457_v26 = vpop.xlane.xlu1 %6456 }
0x311d   :  { %v15962_v55 = vsub.f32 %v6426_v12, %v6462_v51  ;;  %v6465_v48 = vmul.f32 0.0625, %v6457_v26  ;;  %v6491_v9 = vsel %vm536_vm1, %v6477_v59, 0.0  ;;  %v6479_v13 = vmul.f32 %v15958_v40, %v15958_v40 }
0x311e   :  { %6492 = vadd.xlane.f32.xlu1 %v6491_v9  ;;  %v6454_v37 = vpop.xlane.xlu0 %6453 }
0x311f   :  { %v15967_v57 = vsub.f32 %v6429_v23, %v6465_v48  ;;  %v6464_v14 = vmul.f32 0.0625, %v6454_v37  ;;  %v6478_v62 = vmul.f32 %v15962_v55, %v15962_v55  ;;  %v6497_v10 = vsel %vm536_vm1, %v6479_v13, 0.0 }
0x3121   :  { %v15971_v0 = vsub.f32 %v6428_v30, %v6464_v14  ;;  %v6494_v38 = vsel %vm536_vm1, %v6478_v62, 0.0  ;;  %v6481_v22 = vmul.f32 %v15967_v57, %v15967_v57  ;;  %v10291_v30 = vld [vmem:[#allocation20 + $0x2] ss:$0 sm:$0xff] }
0x3122   :  { %6498 = vadd.xlane.f32.xlu1 %v6497_v10  ;;  %6495 = vadd.xlane.f32.xlu0 %v6494_v38 }
0x3123   :  { %v6480_v39 = vmul.f32 %v15971_v0, %v15971_v0  ;;  %v6503_v35 = vsel %vm536_vm1, %v6481_v22, 0.0 }
0x3125   :  { %v6500_v25 = vsel %vm536_vm1, %v6480_v39, 0.0 }
0x3126   :  { %6504 = vadd.xlane.f32.xlu1 %v6503_v35  ;;  %6501 = vadd.xlane.f32.xlu0 %v6500_v25 }
0x31a3   :  { %v6484_v45 = vpop.xlane.xlu0 %6483 }
0x31a4   :  { %v6506_v44 = vmul.f32 0.0625, %v6484_v45  ;;  %v10293_v45 = vld [vmem:[#allocation17 + $0x2] ss:$0 sm:$0xff] }
0x31a5   :  { %v6487_v3 = vpop.xlane.xlu1 %6486 }
0x31a6   :  { %v6514_v60 = vadd.f32 1e-05, %v6506_v44  ;;  %v6507_v34 = vmul.f32 0.0625, %v6487_v3 }
0x31a7   :  { %v6490_v63 = vpop.xlane.xlu0 %6489 }
0x31a8   :  { %12909 = vrsqrt.f32 %v6514_v60  ;;  %v6515_v58 = vadd.f32 1e-05, %v6507_v34  ;;  %v6508_v4 = vmul.f32 0.0625, %v6490_v63 }
0x31aa   :  { %12911 = vrsqrt.f32 %v6515_v58  ;;  %v6516_v19 = vadd.f32 1e-05, %v6508_v4 }
0x31ab   :  { %v6493_v29 = vpop.xlane.xlu1 %6492 }
0x31ac   :  { %12913 = vrsqrt.f32 %v6516_v19  ;;  %v6509_v36 = vmul.f32 0.0625, %v6493_v29 }
0x31ae   :  { %v6517_v41 = vadd.f32 1e-05, %v6509_v36 }
0x31af   :  { %v6499_v12 = vpop.xlane.xlu1 %6498  ;;  %v6496_v24 = vpop.xlane.xlu0 %6495 }
0x31b0   :  { %12915 = vrsqrt.f32 %v6517_v41  ;;  %v6511_v20 = vmul.f32 0.0625, %v6499_v12  ;;  %v6510_v23 = vmul.f32 0.0625, %v6496_v24 }
0x31b2   :  { %v12910_v27 = vpop.eup %12909  ;;  %v6519_v43 = vadd.f32 1e-05, %v6511_v20  ;;  %v6518_v33 = vadd.f32 1e-05, %v6510_v23 }
0x31b3   :  { %v6505_v11 = vpop.xlane.xlu1 %6504  ;;  %v6502_v28 = vpop.xlane.xlu0 %6501  ;;  %v6530_v53 = vmul.f32 %v12910_v27, %v15941_v17 }
0x31b4   :  { %v12912_v6 = vpop.eup %12911  ;;  %12917 = vrsqrt.f32 %v6519_v43  ;;  %v6513_v7 = vmul.f32 0.0625, %v6505_v11  ;;  %v6512_v50 = vmul.f32 0.0625, %v6502_v28 }
0x31b5   :  { %12919 = vrsqrt.f32 %v6518_v33  ;;  %v6531_v1 = vmul.f32 %v12912_v6, %v15943_v47  ;;  %v6544_v49 = vmul.f32 %v10291_v30, %v6530_v53 }
0x31b6   :  { %v12914_v54 = vpop.eup %12913  ;;  %v6521_v16 = vadd.f32 1e-05, %v6513_v7  ;;  %v6520_v31 = vadd.f32 1e-05, %v6512_v50 }
0x31b7   :  { %v6532_v5 = vmul.f32 %v12914_v54, %v15947_v18  ;;  %v6545_v21 = vmul.f32 %v10291_v30, %v6531_v1  ;;  %v15986_v46 = vadd.f32 %v10292_v15, %v6544_v49 }
0x31b8   :  { %12921 = vrsqrt.f32 %v6521_v16 }
0x31b9   :  { %12923 = vrsqrt.f32 %v6520_v31  ;;  %v15988_v17 = vadd.f32 %v10292_v15, %v6545_v21  ;;  %v6546_v8 = vmul.f32 %v10291_v30, %v6532_v5 }
0x31ba   :  { %v12916_v32 = vpop.eup %12915 }
0x31bb   :  { %v6533_v56 = vmul.f32 %v12916_v32, %v15955_v52  ;;  %v6566_v47 = vpack.c.bf16 %v15988_v17, %v15986_v46  ;;  %v15994_v18 = vadd.f32 %v10292_v15, %v6546_v8 }
0x31bd   :  { %v6547_v51 = vmul.f32 %v10291_v30, %v6533_v56  ;;  %11538 = vmatprep.mubr.msk.bf16.mxu0 %vm536_vm1, %v6566_v47 }
0x31be   :  { %v12918_v59 = vpop.eup %12917 }
0x31bf   :  { %v12920_v26 = vpop.eup %12919  ;;  %v15996_v48 = vadd.f32 %v10292_v15, %v6547_v51  ;;  %v6535_v9 = vmul.f32 %v12918_v59, %v15958_v40 }
0x31c0   :  { %v6534_v13 = vmul.f32 %v12920_v26, %v15962_v55 }
0x31c1   :  { %v6567_v37 = vpack.c.bf16 %v15996_v48, %v15994_v18  ;;  %v6549_v52 = vmul.f32 %v10291_v30, %v6535_v9 }
0x31c2   :  { %v12922_v14 = vpop.eup %12921  ;;  %v6548_v62 = vmul.f32 %v10291_v30, %v6534_v13 }
0x31c3   :  { %v12924_v10 = vpop.eup %12923  ;;  %11539 = vmatmul.mubr.msk.bf16.vlgmr.msra.gmra.mrb[160].mxu0 %vm536_vm1, %v6567_v37  ;;  %v16003_v38 = vadd.f32 %v10292_v15, %v6549_v52  ;;  %v6537_v22 = vmul.f32 %v12922_v14, %v15967_v57  ;;  %v12427_v57 = vld [vmem:[%s16930_s10 + $0x50] sm:$0xff]  }
0x31c4   :  { %v16006_v39 = vadd.f32 %v10292_v15, %v6548_v62  ;;  %v6536_v40 = vmul.f32 %v12924_v10, %v15971_v0  ;;  %11550 = vmatprep.subr.bf16.mxu1 %v12427_v57  ;;  %v12428_v0 = vld [vmem:[%s16930_s10 + $0x58] sm:$0xff]  }
0x31c5   :  { %v6551_v55 = vmul.f32 %v10291_v30, %v6537_v22  ;;  %11551 = vmatpush3.bf16.msra.mxu1 %v12427_v57 }
0x31c6   :  { %v6568_v35 = vpack.c.bf16 %v16003_v38, %v16006_v39  ;;  %v6550_v25 = vmul.f32 %v10291_v30, %v6536_v40  ;;  %11552 = vmatprep.subr.bf16.mxu1 %v12428_v0 }
0x31c7   :  { %v16011_v61 = vadd.f32 %v10292_v15, %v6551_v55 }
0x31c8   :  { %11542 = vmatprep.mubr.msk.bf16.mxu0 %vm536_vm1, %v6568_v35  ;;  %v16014_v2 = vadd.f32 %v10292_v15, %v6550_v25  ;;  %v10307_v15 = vld [vmem:[#allocation18 + $0x2] ss:$0 sm:$0xff] }
0x31c9   :  { %11553 = vmatpush3.bf16.msra.mxu1 %v12428_v0 }
0x31ca   :  { %v6569_v42 = vpack.c.bf16 %v16011_v61, %v16014_v2 }
0x31cc   :  { %11543 = vmatmul.mubr.msk.bf16.gmra.mrb[164].mxu0 %vm536_vm1, %v6569_v42 }
0x3296   :  { %v11540_v44 = vpop.f32.mrb[160].mxu0 }
0x3297   :  { %v6642_v3 = vadd.f32 %v11540_v44, %v10293_v45  ;;  %v6633_v60 = vpop.f32.mrb[161].mxu0 }
0x3298   :  { %v6634_v34 = vadd.f32 %v10293_v45, %v6633_v60  ;;  %v11541_v63 = vpop.f32.mrb[162].mxu0 }
0x3299   :  { %v6645_v58 = vadd.f32 %v11541_v63, %v10293_v45  ;;  %v6636_v4 = vpop.f32.mrb[163].mxu0  ;;  %v6666_v29 = vmax.f32 %v6642_v3, 0.0 }
0x329a   :  { %v6637_v19 = vadd.f32 %v10293_v45, %v6636_v4  ;;  %v6664_v41 = vmax.f32 %v6634_v34, 0.0 }
0x329b   :  { %v6667_v36 = vmax.f32 %v6645_v58, 0.0 }
0x329c   :  { %v6665_v12 = vmax.f32 %v6637_v19, 0.0 }
0x329d   :  { %v6673_v24 = vpack.c.bf16 %v6667_v36, %v6666_v29 }
0x329e   :  { %v6672_v20 = vpack.c.bf16 %v6665_v12, %v6664_v41 }
0x329f   :  { %v11544_v23 = vpop.f32.mrb[164].mxu0 }
0x32a0   :  { %v6658_v27 = vadd.f32 %v11544_v23, %v10293_v45  ;;  %v6649_v30 = vpop.f32.mrb[165].mxu0  ;;  %11554 = vmatprep.mubr.msk.bf16.mxu1 %vm379_vm0, %v6672_v20 }
0x32a1   :  { %v6650_v43 = vadd.f32 %v10293_v45, %v6649_v30  ;;  %v11545_v33 = vpop.f32.mrb[166].mxu0  ;;  %11555 = vmatmul.mubr.msk.bf16.vlgmr.msra.gmra.mrb[168].mxu1 %vm379_vm0, %v6673_v24 }
0x32a2   :  { %v6661_v11 = vadd.f32 %v11545_v33, %v10293_v45  ;;  %v6652_v28 = vpop.f32.mrb[167].mxu0  ;;  %v6670_v6 = vmax.f32 %v6658_v27, 0.0 }
0x32a3   :  { %v6653_v53 = vadd.f32 %v10293_v45, %v6652_v28  ;;  %v6668_v50 = vmax.f32 %v6650_v43, 0.0 }
0x32a4   :  { %v6671_v7 = vmax.f32 %v6661_v11, 0.0 }
0x32a5   :  { %v6669_v1 = vmax.f32 %v6653_v53, 0.0 }
0x32a6   :  { %v6675_v49 = vpack.c.bf16 %v6671_v7, %v6670_v6 }
0x32a7   :  { %v6674_v54 = vpack.c.bf16 %v6669_v1, %v6668_v50 }
0x32a9   :  { %11558 = vmatprep.mubr.msk.bf16.mxu1 %vm379_vm0, %v6674_v54 }
0x32aa   :  { %11559 = vmatmul.mubr.msk.bf16.gmra.mrb[172].mxu1 %vm379_vm0, %v6675_v49 }
0x3374   :  { %v11556_v16 = vpop.f32.mrb[168].mxu1 }
0x3375   :  { %v6763_v31 = vpop.f32.mrb[169].mxu1  ;;  %v6772_v5 = vadd.f32 %v11556_v16, %v10307_v15 }
0x3376   :  { %v6764_v21 = vadd.f32 %v10307_v15, %v6763_v31  ;;  %v11557_v32 = vpop.f32.mrb[170].mxu1 }
0x3377   :  { %v6766_v8 = vpop.f32.mrb[171].mxu1  ;;  %v6775_v47 = vadd.f32 %v11557_v32, %v10307_v15  ;;  %v6796_v59 = vadd.f32 %v6772_v5, %v15994_v18 }
0x3378   :  { %v6794_v56 = vadd.f32 %v6764_v21, %v15986_v46  ;;  %v6767_v51 = vadd.f32 %v10307_v15, %v6766_v8 }
0x3379   :  { %v6797_v13 = vadd.f32 %v6775_v47, %v15996_v48  ;;  %v6812_v62 = vsel %vm536_vm1, %v6796_v59, 0.0 }
0x337a   :  { %v6795_v26 = vadd.f32 %v6767_v51, %v15988_v17  ;;  %v6806_v9 = vsel %vm536_vm1, %v6794_v56, 0.0  ;;  %v6938_v51 = vld [vmem:[%s16940_s16] sm:$0xff] }
0x337b   :  { %6807 = vadd.xlane.f32.xlu0 %v6806_v9  ;;  %v6815_v18 = vsel %vm536_vm1, %v6797_v13, 0.0  ;;  %11578 = vmatprep.mubr.msk.f32.mxu0 %vm379_vm0, %v6938_v51  ;;  %v12429_v51 = vld [vmem:[#allocation6 + $0x18] sm:$0xff]  }
0x337c   :  { %v6809_v37 = vsel %vm536_vm1, %v6795_v26, 0.0 }
0x337d   :  { %v11560_v52 = vpop.f32.mrb[172].mxu1  ;;  %6810 = vadd.xlane.f32.xlu1 %v6809_v37 }
0x337e   :  { %v6779_v14 = vpop.f32.mrb[173].mxu1  ;;  %v6788_v10 = vadd.f32 %v11560_v52, %v10307_v15 }
0x337f   :  { %v6780_v46 = vadd.f32 %v10307_v15, %v6779_v14  ;;  %v11561_v22 = vpop.f32.mrb[174].mxu1  ;;  %6813 = vadd.xlane.f32.xlu0 %v6812_v62 }
0x3380   :  { %v6782_v40 = vpop.f32.mrb[175].mxu1  ;;  %v6791_v55 = vadd.f32 %v11561_v22, %v10307_v15  ;;  %v6800_v48 = vadd.f32 %v6788_v10, %v16014_v2 }
0x3381   :  { %v6798_v17 = vadd.f32 %v6780_v46, %v16006_v39  ;;  %v6783_v35 = vadd.f32 %v10307_v15, %v6782_v40  ;;  %6816 = vadd.xlane.f32.xlu1 %v6815_v18 }
0x3382   :  { %v6801_v57 = vadd.f32 %v6791_v55, %v16011_v61  ;;  %v6824_v45 = vsel %vm536_vm1, %v6800_v48, 0.0 }
0x3383   :  { %v6799_v25 = vadd.f32 %v6783_v35, %v16003_v38  ;;  %v6818_v42 = vsel %vm536_vm1, %v6798_v17, 0.0 }
0x3384   :  { %6819 = vadd.xlane.f32.xlu0 %v6818_v42  ;;  %v6827_v39 = vsel %vm536_vm1, %v6801_v57, 0.0 }
0x3385   :  { %v6821_v0 = vsel %vm536_vm1, %v6799_v25, 0.0 }
0x3386   :  { %6822 = vadd.xlane.f32.xlu1 %v6821_v0 }
0x3388   :  { %6825 = vadd.xlane.f32.xlu0 %v6824_v45 }
0x338a   :  { %6828 = vadd.xlane.f32.xlu1 %v6827_v39  ;;  %v10316_v39 = vld [vmem:[#allocation23 + $0x2] ss:$0 sm:$0xff] }
0x3408   :  { %v6808_v44 = vpop.xlane.xlu0 %6807 }
0x3409   :  { %v6830_v3 = vmul.f32 0.0625, %v6808_v44 }
0x340a   :  { %v6811_v60 = vpop.xlane.xlu1 %6810 }
0x340b   :  { %v16041_v2 = vsub.f32 %v6794_v56, %v6830_v3  ;;  %v6831_v38 = vmul.f32 0.0625, %v6811_v60 }
0x340c   :  { %v6814_v34 = vpop.xlane.xlu0 %6813 }
0x340d   :  { %v16043_v63 = vsub.f32 %v6795_v26, %v6831_v38  ;;  %v6832_v58 = vmul.f32 0.0625, %v6814_v34  ;;  %v6846_v61 = vmul.f32 %v16041_v2, %v16041_v2 }
0x340e   :  { %v6817_v4 = vpop.xlane.xlu1 %6816 }
0x340f   :  { %v16047_v19 = vsub.f32 %v6796_v59, %v6832_v58  ;;  %v6833_v29 = vmul.f32 0.0625, %v6817_v4  ;;  %v6854_v36 = vsel %vm536_vm1, %v6846_v61, 0.0  ;;  %v6847_v41 = vmul.f32 %v16043_v63, %v16043_v63 }
0x3410   :  { %6855 = vadd.xlane.f32.xlu0 %v6854_v36 }
0x3411   :  { %v16052_v12 = vsub.f32 %v6797_v13, %v6833_v29  ;;  %v6820_v24 = vpop.xlane.xlu0 %6819  ;;  %v6857_v20 = vsel %vm536_vm1, %v6847_v41, 0.0  ;;  %v6848_v23 = vmul.f32 %v16047_v19, %v16047_v19  ;;  %v10317_v29 = vld [vmem:[#allocation24 + $0x2] ss:$0 sm:$0xff] }
0x3412   :  { %v6834_v27 = vmul.f32 0.0625, %v6820_v24  ;;  %6858 = vadd.xlane.f32.xlu1 %v6857_v20 }
0x3413   :  { %v6823_v30 = vpop.xlane.xlu1 %6822  ;;  %v6860_v43 = vsel %vm536_vm1, %v6848_v23, 0.0  ;;  %v6849_v33 = vmul.f32 %v16052_v12, %v16052_v12 }
0x3414   :  { %v16060_v11 = vsub.f32 %v6798_v17, %v6834_v27  ;;  %v6835_v28 = vmul.f32 0.0625, %v6823_v30  ;;  %6861 = vadd.xlane.f32.xlu0 %v6860_v43 }
0x3415   :  { %v6826_v53 = vpop.xlane.xlu0 %6825  ;;  %v6863_v6 = vsel %vm536_vm1, %v6849_v33, 0.0 }
0x3416   :  { %v16063_v7 = vsub.f32 %v6799_v25, %v6835_v28  ;;  %v6836_v50 = vmul.f32 0.0625, %v6826_v53  ;;  %6864 = vadd.xlane.f32.xlu1 %v6863_v6  ;;  %v6850_v1 = vmul.f32 %v16060_v11, %v16060_v11 }
0x3417   :  { %v6829_v49 = vpop.xlane.xlu1 %6828 }
0x3418   :  { %v16067_v54 = vsub.f32 %v6800_v48, %v6836_v50  ;;  %v6837_v15 = vmul.f32 0.0625, %v6829_v49  ;;  %v6866_v16 = vsel %vm536_vm1, %v6850_v1, 0.0  ;;  %v6851_v31 = vmul.f32 %v16063_v7, %v16063_v7 }
0x3419   :  { %6867 = vadd.xlane.f32.xlu0 %v6866_v16 }
0x341a   :  { %v16072_v5 = vsub.f32 %v6801_v57, %v6837_v15  ;;  %v6869_v21 = vsel %vm536_vm1, %v6851_v31, 0.0  ;;  %v6852_v32 = vmul.f32 %v16067_v54, %v16067_v54 }
0x341b   :  { %6870 = vadd.xlane.f32.xlu1 %v6869_v21 }
0x341c   :  { %v6872_v8 = vsel %vm536_vm1, %v6852_v32, 0.0  ;;  %v6853_v56 = vmul.f32 %v16072_v5, %v16072_v5 }
0x341d   :  { %6873 = vadd.xlane.f32.xlu0 %v6872_v8 }
0x341e   :  { %v6875_v47 = vsel %vm536_vm1, %v6853_v56, 0.0 }
0x341f   :  { %6876 = vadd.xlane.f32.xlu1 %v6875_v47 }
0x349d   :  { %v6856_v59 = vpop.xlane.xlu0 %6855 }
0x349e   :  { %v6878_v26 = vmul.f32 0.0625, %v6856_v59  ;;  %v6939_v59 = vld [vmem:[%s16940_s16 + $0x8] sm:$0xff] }
0x349f   :  { %v6859_v9 = vpop.xlane.xlu1 %6858 }
0x34a0   :  { %v6886_v13 = vadd.f32 1e-05, %v6878_v26  ;;  %v6879_v37 = vmul.f32 0.0625, %v6859_v9  ;;  %v6940_v26 = vld [vmem:[%s16940_s16 + $0x10] sm:$0xff]  ;;  %v6942_v9 = vld [vmem:[%s16940_s16 + $0x20] sm:$0xff] }
0x34a1   :  { %v6862_v52 = vpop.xlane.xlu0 %6861 }
0x34a2   :  { %12925 = vrsqrt.f32 %v6886_v13  ;;  %v6887_v14 = vadd.f32 1e-05, %v6879_v37  ;;  %v6880_v62 = vmul.f32 0.0625, %v6862_v52  ;;  %v6943_v13 = vld [vmem:[%s16940_s16 + $0x28] sm:$0xff]  ;;  %v6944_v37 = vld [vmem:[%s16940_s16 + $0x30] sm:$0xff]  ;;  %v6945_v52 = vld [vmem:[%s16940_s16 + $0x38] sm:$0xff] }
0x34a3   :  { %v6865_v10 = vpop.xlane.xlu1 %6864 }
0x34a4   :  { %12927 = vrsqrt.f32 %v6887_v14  ;;  %v6888_v46 = vadd.f32 1e-05, %v6880_v62  ;;  %v6881_v22 = vmul.f32 0.0625, %v6865_v10  ;;  %v12430_v14 = vld [vmem:[#allocation4 + $0x18] sm:$0xff]  }
0x34a5   :  { %11590 = vmatprep.subr.bf16.mxu1 %v12430_v14  ;;  %v12431_v62 = vld [vmem:[#allocation8 + $0x18] sm:$0xff]  }
0x34a6   :  { %12929 = vrsqrt.f32 %v6888_v46  ;;  %v6889_v40 = vadd.f32 1e-05, %v6881_v22  ;;  %v6868_v18 = vpop.xlane.xlu0 %6867  ;;  %11591 = vmatpush3.bf16.msra.mxu1 %v12430_v14 }
0x34a7   :  { %v6882_v17 = vmul.f32 0.0625, %v6868_v18  ;;  %11610 = vmatprep.subr.bf16.mxu1 %v12431_v62 }
0x34a8   :  { %12931 = vrsqrt.f32 %v6889_v40  ;;  %v6871_v55 = vpop.xlane.xlu1 %6870 }
0x34a9   :  { %v6890_v35 = vadd.f32 1e-05, %v6882_v17  ;;  %v6883_v48 = vmul.f32 0.0625, %v6871_v55 }
0x34aa   :  { %v6874_v25 = vpop.xlane.xlu0 %6873 }
0x34ab   :  { %12933 = vrsqrt.f32 %v6890_v35  ;;  %v6891_v42 = vadd.f32 1e-05, %v6883_v48  ;;  %v6884_v57 = vmul.f32 0.0625, %v6874_v25 }
0x34ac   :  { %v12926_v0 = vpop.eup %12925  ;;  %v6877_v45 = vpop.xlane.xlu1 %6876 }
0x34ad   :  { %12935 = vrsqrt.f32 %v6891_v42  ;;  %v6892_v44 = vadd.f32 1e-05, %v6884_v57  ;;  %v6885_v3 = vmul.f32 0.0625, %v6877_v45  ;;  %v6902_v60 = vmul.f32 %v12926_v0, %v16041_v2  ;;  %v10326_v45 = vld [vmem:[#allocation9 + $0x3] ss:$0 sm:$0xff] }
0x34ae   :  { %v12928_v38 = vpop.eup %12927 }
0x34af   :  { %12937 = vrsqrt.f32 %v6892_v44  ;;  %v6893_v34 = vadd.f32 1e-05, %v6885_v3  ;;  %v6903_v58 = vmul.f32 %v12928_v38, %v16043_v63  ;;  %v6916_v61 = vmul.f32 %v10316_v39, %v6902_v60  ;;  %v10332_v44 = vld [vmem:[#allocation11 + $0x3] ss:$0 sm:$0xff] }
0x34b0   :  { %v12930_v4 = vpop.eup %12929 }
0x34b1   :  { %12939 = vrsqrt.f32 %v6893_v34  ;;  %v6917_v36 = vmul.f32 %v10316_v39, %v6903_v58  ;;  %v6904_v41 = vmul.f32 %v12930_v4, %v16047_v19  ;;  %v6930_v20 = vadd.f32 %v10317_v29, %v6916_v61 }
0x34b2   :  { %v12932_v24 = vpop.eup %12931 }
0x34b3   :  { %v6931_v23 = vadd.f32 %v10317_v29, %v6917_v36  ;;  %v6905_v27 = vmul.f32 %v12932_v24, %v16052_v12  ;;  %v6918_v30 = vmul.f32 %v10316_v39, %v6904_v41 }
0x34b5   :  { %v12934_v43 = vpop.eup %12933  ;;  %v11938_v2 = vpack.c.bf16 %v6931_v23, %v6930_v20  ;;  %v6919_v33 = vmul.f32 %v10316_v39, %v6905_v27  ;;  %v6932_v63 = vadd.f32 %v10317_v29, %v6918_v30 }
0x34b6   :  { %v6906_v28 = vmul.f32 %v12934_v43, %v16060_v11 }
0x34b7   :  { %v12936_v53 = vpop.eup %12935  ;;  %11939 = vmatprep.subr.bf16.mxu0 %v11938_v2  ;;  %v6933_v6 = vadd.f32 %v10317_v29, %v6919_v33 }
0x34b8   :  { %11941 = vmatpush3.bf16.msra.mxu0 %v11938_v2  ;;  %v6907_v50 = vmul.f32 %v12936_v53, %v16063_v7  ;;  %v6920_v1 = vmul.f32 %v10316_v39, %v6906_v28 }
0x34b9   :  { %v12938_v19 = vpop.eup %12937  ;;  %v11942_v49 = vpack.c.bf16 %v6933_v6, %v6932_v63 }
0x34ba   :  { %v6921_v15 = vmul.f32 %v10316_v39, %v6907_v50  ;;  %v6908_v16 = vmul.f32 %v12938_v19, %v16067_v54  ;;  %v6934_v31 = vadd.f32 %v10317_v29, %v6920_v1 }
0x34bb   :  { %v12940_v12 = vpop.eup %12939  ;;  %11943 = vmatprep.subr.bf16.mxu0 %v11942_v49 }
0x34bc   :  { %11945 = vmatpush3.bf16.msra.mxu0 %v11942_v49  ;;  %v6935_v11 = vadd.f32 %v10317_v29, %v6921_v15  ;;  %v6909_v21 = vmul.f32 %v12940_v12, %v16072_v5  ;;  %v6922_v32 = vmul.f32 %v10316_v39, %v6908_v16  ;;  %v6941_v5 = vld [vmem:[%s16940_s16 + $0x18] sm:$0xff] }
0x34be   :  { %v11946_v8 = vpack.c.bf16 %v6935_v11, %v6934_v31  ;;  %v6923_v56 = vmul.f32 %v10316_v39, %v6909_v21  ;;  %v6936_v7 = vadd.f32 %v10317_v29, %v6922_v32 }
0x34c0   :  { %11947 = vmatprep.subr.bf16.mxu0 %v11946_v8  ;;  %v6937_v47 = vadd.f32 %v10317_v29, %v6923_v56 }
0x34c1   :  { %11949 = vmatpush3.bf16.msra.mxu0 %v11946_v8 }
0x34c2   :  { %v11950_v54 = vpack.c.bf16 %v6937_v47, %v6936_v7 }
0x34c4   :  { %11951 = vmatprep.subr.bf16.mxu0 %v11950_v54 }
0x34c5   :  { %11953 = vmatpush3.bf16.msra.mxu0 %v11950_v54 }
0x34c6   :  { %11600 = vmatprep.subr.bf16.mxu0 %v12429_v51 }
0x34c8   :  { %11579 = vmatmul.mubr.msk.f32.vlgmr.msra.gmra.mrb[168].mxu0 %vm379_vm0, %v6939_v59 }
0x34c9   :  { %11581 = vmatprep.mubr.msk.f32.mxu0 %vm379_vm0, %v6940_v26  ;;  %11601 = vmatpush3.bf16.msra.mxu0 %v12429_v51  ;;  %v10338_v26 = vld [vmem:[#allocation12 + $0x3] ss:$0 sm:$0xff] }
0x34cc   :  { %11582 = vmatmul.mubr.msk.f32.gmra.mrb[170].mxu0 %vm379_vm0, %v6941_v5 }
0x34cd   :  { %11584 = vmatprep.mubr.msk.f32.mxu0 %vm379_vm0, %v6942_v9 }
0x34d0   :  { %11585 = vmatmul.mubr.msk.f32.gmra.mrb[172].mxu0 %vm379_vm0, %v6943_v13 }
0x34d1   :  { %11587 = vmatprep.mubr.msk.f32.mxu0 %vm379_vm0, %v6944_v37 }
0x34d4   :  { %11588 = vmatmul.mubr.msk.f32.gmra.mrb[174].mxu0 %vm379_vm0, %v6945_v52 }
0x359b   :  { %v16105_v10 = vpop.f32.mrb[168].mxu0 }
0x359c   :  { %v16107_v46 = vpop.f32.mrb[169].mxu0 }
0x359d   :  { %v7083_v22 = vpack.c.bf16 %v16105_v10, %v16107_v46 }
0x359f   :  { %v16111_v40 = vpop.f32.mrb[170].mxu0  ;;  %11592 = vmatprep.mubr.msk.bf16.mxu1 %vm536_vm1, %v7083_v22  ;;  %11602 = vmatprep.mubr.msk.bf16.mxu0 %vm536_vm1, %v7083_v22 }
0x35a0   :  { %v16115_v18 = vpop.f32.mrb[171].mxu0 }
0x35a1   :  { %v7084_v17 = vpack.c.bf16 %v16111_v40, %v16115_v18 }
0x35a3   :  { %11593 = vmatmul.mubr.msk.bf16.vlgmr.msra.gmra.mrb[176].mxu1 %vm536_vm1, %v7084_v17  ;;  %11603 = vmatmul.mubr.msk.bf16.vlgmr.msra.gmra.mrb[176].mxu0 %vm536_vm1, %v7084_v17  ;;  %v16121_v55 = vpop.f32.mrb[172].mxu0 }
0x35a4   :  { %v16123_v35 = vpop.f32.mrb[173].mxu0  ;;  %11611 = vmatpush3.bf16.msra.mxu1 %v12431_v62 }
0x35a5   :  { %v7085_v48 = vpack.c.bf16 %v16121_v55, %v16123_v35 }
0x35a7   :  { %v16127_v25 = vpop.f32.mrb[174].mxu0  ;;  %11596 = vmatprep.mubr.msk.bf16.mxu1 %vm536_vm1, %v7085_v48  ;;  %11606 = vmatprep.mubr.msk.bf16.mxu0 %vm536_vm1, %v7085_v48 }
0x35a8   :  { %v16131_v42 = vpop.f32.mrb[175].mxu0 }
0x35a9   :  { %v7086_v57 = vpack.c.bf16 %v16127_v25, %v16131_v42 }
0x35ab   :  { %11597 = vmatmul.mubr.msk.bf16.gmra.mrb[180].mxu1 %vm536_vm1, %v7086_v57  ;;  %11607 = vmatmul.mubr.msk.bf16.gmra.mrb[180].mxu0 %vm536_vm1, %v7086_v57 }
0x35ac   :  { %11612 = vmatprep.mubr.msk.bf16.mxu1 %vm536_vm1, %v7083_v22 }
0x35b3   :  { %11613 = vmatmul.mubr.msk.bf16.vlgmr.msra.gmra.mrb[184].mxu1 %vm536_vm1, %v7084_v17 }
0x35b4   :  { %11616 = vmatprep.mubr.msk.bf16.mxu1 %vm536_vm1, %v7085_v48 }
0x35bb   :  { %11617 = vmatmul.mubr.msk.bf16.gmra.mrb[188].mxu1 %vm536_vm1, %v7086_v57 }
0x3676   :  { %v11594_v0 = vpop.f32.mrb[176].mxu1  ;;  %v11604_v39 = vpop.f32.mrb[176].mxu0 }
0x3677   :  { %v7150_v3 = vpop.f32.mrb[177].mxu1  ;;  %v7232_v60 = vpop.f32.mrb[177].mxu0  ;;  %v7159_v58 = vadd.f32 %v11594_v0, %v10326_v45  ;;  %v7241_v61 = vadd.f32 %v11604_v39, %v10332_v44 }
0x3678   :  { %v11595_v38 = vpop.f32.mrb[178].mxu1  ;;  %v11605_v34 = vpop.f32.mrb[178].mxu0  ;;  %v7151_v24 = vadd.f32 %v10326_v45, %v7150_v3  ;;  %v7233_v20 = vadd.f32 %v10332_v44, %v7232_v60 }
0x3679   :  { %v7162_v4 = vadd.f32 %v11595_v38, %v10326_v45  ;;  %v7244_v29 = vadd.f32 %v11605_v34, %v10332_v44  ;;  %v7153_v36 = vpop.f32.mrb[179].mxu1  ;;  %v7235_v41 = vpop.f32.mrb[179].mxu0 }
0x367a   :  { %v7154_v23 = vadd.f32 %v10326_v45, %v7153_v36  ;;  %v7236_v27 = vadd.f32 %v10332_v44, %v7235_v41  ;;  %v16201_v41 = vld [vmem:[%s16941_s27 + $0x10] sm:$0xff] }
0x367b   :  { %v16141_v30 = vpack.c.bf16 %v7162_v4, %v7159_v58  ;;  %v16143_v43 = vpack.c.bf16 %v7244_v29, %v7241_v61  ;;  %v16198_v29 = vld [vmem:[%s16941_s27] sm:$0xff] }
0x367c   :  { %v16145_v2 = vpack.c.bf16 %v7154_v23, %v7151_v24  ;;  %v16147_v33 = vpack.c.bf16 %v7236_v27, %v7233_v20  ;;  %v16204_v20 = vld [vmem:[%s16941_s27 + $0x8] sm:$0xff] }
0x367d   :  { %v7373_v5 = vsel %vm786_vm2, %v16143_v43, 0 }
0x367e   :  { %12066 = vmatprep.subr.msk.bf16.mxu0 %vm786_vm2, %v16147_v33  ;;  %11628 = vmatprep.mubr.msk.bf16.mxu0 %vm786_vm2, %v16145_v2  ;;  %v7370_v28 = vsel %vm786_vm2, %v16147_v33, 0  ;;  %v11598_v53 = vpop.f32.mrb[180].mxu1  ;;  %v11608_v63 = vpop.f32.mrb[180].mxu0 }
0x367f   :  { %11621 = vmatpush3.bf16.xpose.msra.mxu0 %v7370_v28  ;;  %v7175_v6 = vadd.f32 %v11598_v53, %v10326_v45  ;;  %v7257_v50 = vadd.f32 %v11608_v63, %v10332_v44  ;;  %v7166_v1 = vpop.f32.mrb[181].mxu1  ;;  %v7248_v19 = vpop.f32.mrb[181].mxu0  ;;  %v16208_v28 = vld [vmem:[%s16941_s27 + $0x18] sm:$0xff] }
0x3680   :  { %12067 = vmatprep.subr.msk.bf16.mxu0 %vm786_vm2, %v16143_v43  ;;  %v7167_v49 = vadd.f32 %v10326_v45, %v7166_v1  ;;  %v7249_v15 = vadd.f32 %v10332_v44, %v7248_v19  ;;  %v11599_v16 = vpop.f32.mrb[182].mxu1  ;;  %v11609_v12 = vpop.f32.mrb[182].mxu0 }
0x3681   :  { %v7178_v31 = vadd.f32 %v11599_v16, %v10326_v45  ;;  %v7260_v11 = vadd.f32 %v11609_v12, %v10332_v44  ;;  %v7169_v21 = vpop.f32.mrb[183].mxu1  ;;  %v7251_v32 = vpop.f32.mrb[183].mxu0  ;;  %v16220_v12 = vld [vmem:[%s16941_s27 + $0x30] sm:$0xff] }
0x3682   :  { %v7170_v8 = vadd.f32 %v10326_v45, %v7169_v21  ;;  %v7252_v56 = vadd.f32 %v10332_v44, %v7251_v32 }
0x3683   :  { %v16157_v7 = vpack.c.bf16 %v7178_v31, %v7175_v6  ;;  %v16159_v47 = vpack.c.bf16 %v7260_v11, %v7257_v50  ;;  %v16223_v11 = vld [vmem:[%s16941_s27 + $0x28] sm:$0xff] }
0x3684   :  { %v16161_v54 = vpack.c.bf16 %v7170_v8, %v7167_v49  ;;  %v16163_v51 = vpack.c.bf16 %v7252_v56, %v7249_v15  ;;  %v16216_v49 = vld [vmem:[%s16941_s27 + $0x20] sm:$0xff]  ;;  %v16228_v56 = vld [vmem:[%s16941_s27 + $0x38] sm:$0xff] }
0x3685   :  { %v7379_v4 = vsel %vm786_vm2, %v16159_v47, 0 }
0x3686   :  { %v11614_v59 = vpop.f32.mrb[184].mxu1  ;;  %v7376_v0 = vsel %vm786_vm2, %v16163_v51, 0 }
0x3687   :  { %v7314_v9 = vpop.f32.mrb[185].mxu1  ;;  %11623 = vmatpush3.bf16.xpose.msra.mxu0 %v7373_v5  ;;  %v7323_v37 = vadd.f32 %v11614_v59, %v10338_v26 }
0x3688   :  { %v11615_v13 = vpop.f32.mrb[186].mxu1  ;;  %12068 = vmatprep.subr.msk.bf16.mxu0 %vm786_vm2, %v16163_v51  ;;  %v7315_v62 = vadd.f32 %v10338_v26, %v7314_v9 }
0x3689   :  { %v7326_v52 = vadd.f32 %v11615_v13, %v10338_v26  ;;  %v7317_v14 = vpop.f32.mrb[187].mxu1 }
0x368a   :  { %v7318_v22 = vadd.f32 %v10338_v26, %v7317_v14 }
0x368b   :  { %v16169_v17 = vpack.c.bf16 %v7326_v52, %v7323_v37 }
0x368c   :  { %v16171_v48 = vpack.c.bf16 %v7318_v22, %v7315_v62 }
0x368e   :  { %v11618_v57 = vpop.f32.mrb[188].mxu1  ;;  %11636 = vmatprep.subr.bf16.mxu1 %v16171_v48 }
0x368f   :  { %v7330_v45 = vpop.f32.mrb[189].mxu1  ;;  %11625 = vmatpush3.bf16.xpose.msra.mxu0 %v7376_v0  ;;  %11637 = vmatpush3.bf16.msra.mxu1 %v16171_v48  ;;  %v7339_v44 = vadd.f32 %v11618_v57, %v10338_v26 }
0x3690   :  { %v11619_v39 = vpop.f32.mrb[190].mxu1  ;;  %12069 = vmatprep.subr.msk.bf16.mxu0 %vm786_vm2, %v16159_v47  ;;  %11638 = vmatprep.subr.bf16.mxu1 %v16169_v17  ;;  %v7331_v38 = vadd.f32 %v10338_v26, %v7330_v45 }
0x3691   :  { %v7342_v3 = vadd.f32 %v11619_v39, %v10338_v26  ;;  %v7333_v60 = vpop.f32.mrb[191].mxu1 }
0x3692   :  { %v7334_v34 = vadd.f32 %v10338_v26, %v7333_v60 }
0x3693   :  { %v16180_v58 = vpack.c.bf16 %v7342_v3, %v7339_v44  ;;  %11639 = vmatpush3.bf16.msra.mxu1 %v16169_v17 }
0x3694   :  { %v16183_v61 = vpack.c.bf16 %v7334_v34, %v7331_v38 }
0x3696   :  { %11640 = vmatprep.subr.bf16.mxu1 %v16183_v61 }
0x3697   :  { %11627 = vmatpush3.bf16.xpose.msra.mxu0 %v7379_v4  ;;  %11641 = vmatpush3.bf16.msra.mxu1 %v16183_v61 }
0x3698   :  { %11642 = vmatprep.subr.bf16.mxu1 %v16180_v58 }
0x369b   :  { %11643 = vmatpush3.bf16.msra.mxu1 %v16180_v58 }
0x369e   :  { %11629 = vmatmul.mubr.msk.bf16.vlgmr.msra.gmra.mrb[184].mxu0 %vm786_vm2, %v16141_v30 }
0x369f   :  { %11632 = vmatprep.mubr.msk.bf16.mxu0 %vm786_vm2, %v16161_v54 }
0x36a6   :  { %11633 = vmatmul.mubr.msk.bf16.gmra.mrb[188].mxu0 %vm786_vm2, %v16157_v7 }
0x3771   :  { %v11630_v36 = vpop.f32.mrb[184].mxu0 }
0x3772   :  { %v7415_v24 = vpop.f32.mrb[185].mxu0  ;;  %v7424_v63 = vadd.f32 %v11630_v36, %v16201_v41 }
0x3773   :  { %v7416_v23 = vadd.f32 %v7415_v24, %v16198_v29  ;;  %v11631_v27 = vpop.f32.mrb[186].mxu0 }
0x3774   :  { %v7418_v53 = vpop.f32.mrb[187].mxu0  ;;  %v7427_v1 = vadd.f32 %v11631_v27, %v16208_v28  ;;  %v7452_v16 = vsel %vm379_vm0, %v7424_v63, -inf }
0x3775   :  { %v7419_v6 = vadd.f32 %v7418_v53, %v16204_v20  ;;  %v7446_v50 = vsel %vm379_vm0, %v7416_v23, -inf }
0x3776   :  { %7447 = vmax.xlane.f32.xlu0 %v7446_v50  ;;  %v7455_v8 = vsel %vm379_vm0, %v7427_v1, -inf }
0x3777   :  { %v7449_v19 = vsel %vm379_vm0, %v7419_v6, -inf }
0x3778   :  { %7450 = vmax.xlane.f32.xlu1 %v7449_v19 }
0x3779   :  { %v11634_v15 = vpop.f32.mrb[188].mxu0 }
0x377a   :  { %7453 = vmax.xlane.f32.xlu0 %v7452_v16  ;;  %v7431_v31 = vpop.f32.mrb[189].mxu0  ;;  %v7440_v26 = vadd.f32 %v11634_v15, %v16220_v12 }
0x377b   :  { %v7432_v21 = vadd.f32 %v7431_v31, %v16216_v49  ;;  %v11635_v32 = vpop.f32.mrb[190].mxu0 }
0x377c   :  { %7456 = vmax.xlane.f32.xlu1 %v7455_v8  ;;  %v7434_v59 = vpop.f32.mrb[191].mxu0  ;;  %v7443_v13 = vadd.f32 %v11635_v32, %v16228_v56  ;;  %v7464_v52 = vsel %vm379_vm0, %v7440_v26, -inf }
0x377d   :  { %v7435_v5 = vadd.f32 %v7434_v59, %v16223_v11  ;;  %v7458_v9 = vsel %vm379_vm0, %v7432_v21, -inf }
0x377e   :  { %7459 = vmax.xlane.f32.xlu0 %v7458_v9  ;;  %v7467_v14 = vsel %vm379_vm0, %v7443_v13, -inf }
0x377f   :  { %v7461_v37 = vsel %vm379_vm0, %v7435_v5, -inf }
0x3780   :  { %7462 = vmax.xlane.f32.xlu1 %v7461_v37 }
0x3782   :  { %7465 = vmax.xlane.f32.xlu0 %v7464_v52 }
0x3784   :  { %7468 = vmax.xlane.f32.xlu1 %v7467_v14 }
0x3803   :  { %v7448_v62 = vpop.xlane.xlu0 %7447 }
0x3804   :  { %v7470_v22 = vsub.f32 %v7416_v23, %v7448_v62 }
0x3805   :  { %v7451_v57 = vpop.xlane.xlu1 %7450 }
0x3806   :  { %v7471_v45 = vsub.f32 %v7419_v6, %v7451_v57  ;;  %v7478_v44 = vmul.f32 1.442695, %v7470_v22 }
0x3807   :  { %v7454_v0 = vpop.xlane.xlu0 %7453 }
0x3808   :  { %v7472_v39 = vsub.f32 %v7424_v63, %v7454_v0  ;;  %v7480_v4 = vmul.f32 1.442695, %v7471_v45 }
0x3809   :  { %v7457_v3 = vpop.xlane.xlu1 %7456 }
0x380a   :  { %v7482_v60 = vmul.f32 1.442695, %v7472_v39  ;;  %v7473_v38 = vsub.f32 %v7427_v1, %v7457_v3 }
0x380b   :  { %v7460_v34 = vpop.xlane.xlu0 %7459 }
0x380c   :  { %12941 = vpow2.f32 %v7482_v60  ;;  %v7484_v36 = vmul.f32 1.442695, %v7473_v38  ;;  %v7474_v24 = vsub.f32 %v7432_v21, %v7460_v34 }
0x380d   :  { %12943 = vpow2.f32 %v7478_v44  ;;  %v7463_v9 = vpop.xlane.xlu1 %7462 }
0x380e   :  { %12945 = vpow2.f32 %v7484_v36  ;;  %v7486_v50 = vmul.f32 1.442695, %v7474_v24  ;;  %v7475_v14 = vsub.f32 %v7435_v5, %v7463_v9 }
0x380f   :  { %v7466_v27 = vpop.xlane.xlu0 %7465  ;;  %12947 = vpow2.f32 %v7480_v4 }
0x3810   :  { %v7476_v53 = vsub.f32 %v7440_v26, %v7466_v27  ;;  %v7488_v22 = vmul.f32 1.442695, %v7475_v14 }
0x3811   :  { %v7469_v37 = vpop.xlane.xlu1 %7468 }
0x3812   :  { %v7490_v23 = vmul.f32 1.442695, %v7476_v53  ;;  %v7477_v52 = vsub.f32 %v7443_v13, %v7469_v37 }
0x3814   :  { %12949 = vpow2.f32 %v7490_v23  ;;  %v7492_v62 = vmul.f32 1.442695, %v7477_v52 }
0x3815   :  { %12951 = vpow2.f32 %v7486_v50 }
0x3816   :  { %v12942_v19 = vpop.eup %12941  ;;  %12953 = vpow2.f32 %v7492_v62 }
0x3817   :  { %v12944_v63 = vpop.eup %12943  ;;  %v7500_v6 = vsel %vm379_vm0, %v12942_v19, 0.0  ;;  %12955 = vpow2.f32 %v7488_v22 }
0x3818   :  { %v12946_v15 = vpop.eup %12945  ;;  %7501 = vadd.xlane.f32.xlu0 %v7500_v6  ;;  %v7494_v31 = vsel %vm379_vm0, %v12944_v63, 0.0 }
0x3819   :  { %v7503_v1 = vsel %vm379_vm0, %v12946_v15, 0.0  ;;  %v12948_v16 = vpop.eup %12947 }
0x381a   :  { %7504 = vadd.xlane.f32.xlu1 %v7503_v1  ;;  %v7497_v21 = vsel %vm379_vm0, %v12948_v16, 0.0 }
0x381c   :  { %7495 = vadd.xlane.f32.xlu0 %v7494_v31 }
0x381e   :  { %v16241_v32 = vpop.eup %12949  ;;  %7498 = vadd.xlane.f32.xlu1 %v7497_v21 }
0x381f   :  { %v7512_v8 = vsel %vm379_vm0, %v16241_v32, 0.0  ;;  %v16245_v59 = vpop.eup %12951 }
0x3820   :  { %7513 = vadd.xlane.f32.xlu0 %v7512_v8  ;;  %v7506_v26 = vsel %vm379_vm0, %v16245_v59, 0.0  ;;  %v12954_v57 = vpop.eup %12953 }
0x3821   :  { %v7515_v0 = vsel %vm379_vm0, %v12954_v57, 0.0  ;;  %v12956_v45 = vpop.eup %12955 }
0x3822   :  { %v7509_v39 = vsel %vm379_vm0, %v12956_v45, 0.0 }
0x3824   :  { %7507 = vadd.xlane.f32.xlu0 %v7506_v26 }
0x382f   :  { %7633 = vrot.lane.b32.xlu1 %v16143_v43, %s13594_s14 }
0x3833   :  { %7635 = vrot.lane.b32.xlu1 %v16163_v51, %s13594_s14 }
0x383a   :  { %7631 = vrot.lane.b32.xlu0 %v16147_v33, %s13594_s14 }
0x383e   :  { %7619 = vrot.lane.b32.xlu0 %v16145_v2, %s13594_s14 }
0x3842   :  { %7623 = vrot.lane.b32.xlu0 %v16161_v54, %s13594_s14 }
0x3857   :  { %7516 = vadd.xlane.f32.xlu1 %v7515_v0 }
0x385b   :  { %7510 = vadd.xlane.f32.xlu1 %v7509_v39 }
0x386c   :  { %7637 = vrot.lane.b32.xlu1 %v16159_v47, %s13594_s14 }
0x3870   :  { %7621 = vrot.lane.b32.xlu1 %v16141_v30, %s13594_s14 }
0x3874   :  { %7625 = vrot.lane.b32.xlu1 %v16157_v7, %s13594_s14 }
0x38a5   :  { %v7502_v5 = vpop.xlane.xlu0 %7501 }
0x38a7   :  { %v7505_v13 = vpop.xlane.xlu1 %7504 }
0x38a8   :  { %12957 = vrcp.f32 %v7505_v13 }
0x38a9   :  { %v7496_v44 = vpop.xlane.xlu0 %7495 }
0x38aa   :  { %12959 = vrcp.f32 %v7496_v44 }
0x38ab   :  { %12961 = vrcp.f32 %v7502_v5  ;;  %v7499_v3 = vpop.xlane.xlu1 %7498 }
0x38ac   :  { %12963 = vrcp.f32 %v7499_v3 }
0x38ad   :  { %v7514_v60 = vpop.xlane.xlu0 %7513 }
0x38af   :  { %v7634_v8 = vpop.permute.xlu1 %7633 }
0x38b0   :  { %v7655_v26 = vsel %vm786_vm2, %v7634_v8, 0 }
0x38b1   :  { %v7508_v38 = vpop.xlane.xlu0 %7507 }
0x38b2   :  { %v12958_v34 = vpop.eup %12957 }
0x38b3   :  { %v7529_v53 = vmul.f32 %v12958_v34, %v12946_v15  ;;  %v7636_v15 = vpop.permute.xlu1 %7635 }
0x38b4   :  { %v12960_v4 = vpop.eup %12959 }
0x38b5   :  { %v12962_v36 = vpop.eup %12961  ;;  %v7632_v24 = vpop.permute.xlu0 %7631  ;;  %v7526_v50 = vmul.f32 %v12960_v4, %v12944_v63 }
0x38b6   :  { %v12964_v27 = vpop.eup %12963  ;;  %12070 = vmatprep.subr.msk.bf16.mxu1 %vm786_vm2, %v7632_v24  ;;  %v7528_v6 = vmul.f32 %v12962_v36, %v12942_v19  ;;  %v7652_v21 = vsel %vm786_vm2, %v7632_v24, 0  ;;  %v7658_v19 = vsel %vm786_vm2, %v7636_v15, 0 }
0x38b7   :  { %v7527_v23 = vmul.f32 %v12964_v27, %v12948_v16 }
0x38b8   :  { %v7535_v31 = vpack.c.bf16 %v7529_v53, %v7528_v6 }
0x38b9   :  { %v7534_v1 = vpack.c.bf16 %v7527_v23, %v7526_v50 }
0x38bb   :  { %11644 = vmatprep.mubr.msk.bf16.mxu1 %vm379_vm0, %v7534_v1 }
0x38bc   :  { %11645 = vmatmul.mubr.msk.bf16.vlgmr.msra.gmra.mrb[192].mxu1 %vm379_vm0, %v7535_v31 }
0x38bd   :  { %11653 = vmatpush3.bf16.xpose.msra.mxu1 %v7652_v21 }
0x38be   :  { %12071 = vmatprep.subr.msk.bf16.mxu1 %vm786_vm2, %v7634_v8 }
0x38c5   :  { %11655 = vmatpush3.bf16.xpose.msra.mxu1 %v7655_v26 }
0x38c6   :  { %12072 = vmatprep.subr.msk.bf16.mxu1 %vm786_vm2, %v7636_v15 }
0x38cd   :  { %11657 = vmatpush3.bf16.xpose.msra.mxu1 %v7658_v19 }
0x38e4   :  { %v7517_v63 = vpop.xlane.xlu1 %7516 }
0x38e5   :  { %12965 = vrcp.f32 %v7517_v63 }
0x38e6   :  { %12967 = vrcp.f32 %v7508_v38 }
0x38e7   :  { %12969 = vrcp.f32 %v7514_v60  ;;  %v7620_v60 = vpop.permute.xlu0 %7619 }
0x38e8   :  { %v7511_v16 = vpop.xlane.xlu1 %7510 }
0x38e9   :  { %12971 = vrcp.f32 %v7511_v16 }
0x38eb   :  { %v7624_v34 = vpop.permute.xlu0 %7623 }
0x38ec   :  { %v7638_v9 = vpop.permute.xlu1 %7637 }
0x38ed   :  { %12073 = vmatprep.subr.msk.bf16.mxu1 %vm786_vm2, %v7638_v9  ;;  %v7661_v37 = vsel %vm786_vm2, %v7638_v9, 0 }
0x38ee   :  { %11659 = vmatpush3.bf16.xpose.msra.mxu1 %v7661_v37 }
0x38ef   :  { %v12966_v52 = vpop.eup %12965 }
0x38f0   :  { %v12968_v14 = vpop.eup %12967  ;;  %v7533_v0 = vmul.f32 %v12966_v52, %v12954_v57  ;;  %v7622_v38 = vpop.permute.xlu1 %7621 }
0x38f1   :  { %v12970_v62 = vpop.eup %12969  ;;  %v7530_v39 = vmul.f32 %v12968_v14, %v16245_v59 }
0x38f2   :  { %v7532_v13 = vmul.f32 %v12970_v62, %v16241_v32 }
0x38f3   :  { %v12972_v22 = vpop.eup %12971 }
0x38f4   :  { %v7531_v5 = vmul.f32 %v12972_v22, %v12956_v45  ;;  %v7537_v3 = vpack.c.bf16 %v7533_v0, %v7532_v13  ;;  %v7626_v57 = vpop.permute.xlu1 %7625 }
0x38f6   :  { %v7536_v44 = vpack.c.bf16 %v7531_v5, %v7530_v39 }
0x38f8   :  { %11648 = vmatprep.mubr.msk.bf16.mxu1 %vm379_vm0, %v7536_v44 }
0x38f9   :  { %11649 = vmatmul.mubr.msk.bf16.gmra.mrb[196].mxu1 %vm379_vm0, %v7537_v3 }
0x38fa   :  { %11660 = vmatprep.mubr.msk.bf16.mxu1 %vm786_vm2, %v7620_v60 }
0x3901   :  { %11661 = vmatmul.mubr.msk.bf16.vlgmr.msra.gmra.mrb[200].mxu1 %vm786_vm2, %v7622_v38 }
0x3902   :  { %11664 = vmatprep.mubr.msk.bf16.mxu1 %vm786_vm2, %v7624_v34 }
0x3909   :  { %11665 = vmatmul.mubr.msk.bf16.gmra.mrb[204].mxu1 %vm786_vm2, %v7626_v57 }
0x398f   :  { %v16285_v59 = vpop.f32.mrb[192].mxu1 }
0x3990   :  { %v16287_v32 = vpop.f32.mrb[193].mxu1 }
0x3991   :  { %v16289_v45 = vpop.f32.mrb[194].mxu1 }
0x3992   :  { %v16291_v4 = vpop.f32.mrb[195].mxu1 }
0x39cc   :  { %v16293_v36 = vpop.f32.mrb[196].mxu1 }
0x39cd   :  { %v16295_v24 = vpop.f32.mrb[197].mxu1 }
0x39ce   :  { %v16297_v27 = vpop.f32.mrb[198].mxu1 }
0x39cf   :  { %v16299_v53 = vpop.f32.mrb[199].mxu1 }
0x39d4   :  { %v11662_v50 = vpop.f32.mrb[200].mxu1 }
0x39d5   :  { %v7706_v23 = vadd.f32 %v11662_v50, %v16201_v41  ;;  %v7697_v6 = vpop.f32.mrb[201].mxu1 }
0x39d6   :  { %v11663_v1 = vpop.f32.mrb[202].mxu1  ;;  %v7698_v31 = vadd.f32 %v7697_v6, %v16198_v29 }
0x39d7   :  { %v7700_v21 = vpop.f32.mrb[203].mxu1  ;;  %v7734_v8 = vsel %vm379_vm0, %v7706_v23, -inf  ;;  %v7709_v19 = vadd.f32 %v11663_v1, %v16208_v28 }
0x39d8   :  { %v7701_v26 = vadd.f32 %v7700_v21, %v16204_v20  ;;  %7735 = vmax.xlane.f32.xlu0 %v7734_v8  ;;  %v7728_v63 = vsel %vm379_vm0, %v7698_v31, -inf }
0x39d9   :  { %v7737_v62 = vsel %vm379_vm0, %v7709_v19, -inf }
0x39da   :  { %v7731_v15 = vsel %vm379_vm0, %v7701_v26, -inf }
0x39db   :  { %7732 = vmax.xlane.f32.xlu1 %v7731_v15 }
0x39dc   :  { %7729 = vmax.xlane.f32.xlu0 %v7728_v63  ;;  %v11666_v16 = vpop.f32.mrb[204].mxu1 }
0x39dd   :  { %v7713_v9 = vpop.f32.mrb[205].mxu1  ;;  %v7722_v52 = vadd.f32 %v11666_v16, %v16220_v12 }
0x39de   :  { %v11667_v37 = vpop.f32.mrb[206].mxu1  ;;  %v7714_v22 = vadd.f32 %v7713_v9, %v16216_v49 }
0x39df   :  { %v7716_v14 = vpop.f32.mrb[207].mxu1  ;;  %v7746_v0 = vsel %vm379_vm0, %v7722_v52, -inf  ;;  %v7725_v5 = vadd.f32 %v11667_v37, %v16228_v56 }
0x39e0   :  { %7738 = vmax.xlane.f32.xlu0 %v7737_v62  ;;  %v7740_v39 = vsel %vm379_vm0, %v7714_v22, -inf  ;;  %v16321_v13 = vadd.f32 %v7716_v14, %v16223_v11 }
0x39e1   :  { %v7749_v44 = vsel %vm379_vm0, %v7725_v5, -inf }
0x39e2   :  { %v7743_v3 = vsel %vm379_vm0, %v16321_v13, -inf }
0x39e4   :  { %7747 = vmax.xlane.f32.xlu0 %v7746_v0 }
0x39e8   :  { %7741 = vmax.xlane.f32.xlu0 %v7740_v39 }
0x39ec   :  { %7826 = vrot.lane.b32.xlu1 %v16169_v17, %s13594_s14 }
0x39f0   :  { %7828 = vrot.lane.b32.xlu1 %v16183_v61, %s13594_s14 }
0x39fe   :  { %7824 = vrot.lane.b32.xlu0 %v16171_v48, %s13594_s14 }
0x3a14   :  { %7750 = vmax.xlane.f32.xlu1 %v7749_v44 }
0x3a18   :  { %7744 = vmax.xlane.f32.xlu1 %v7743_v3 }
0x3a29   :  { %7830 = vrot.lane.b32.xlu1 %v16180_v58, %s13594_s14 }
0x3a65   :  { %v7736_v60 = vpop.xlane.xlu0 %7735 }
0x3a66   :  { %v7754_v38 = vsub.f32 %v7706_v23, %v7736_v60 }
0x3a68   :  { %v7764_v34 = vmul.f32 1.442695, %v7754_v38  ;;  %v7733_v57 = vpop.xlane.xlu1 %7732 }
0x3a69   :  { %v7730_v50 = vpop.xlane.xlu0 %7729  ;;  %v7753_v1 = vsub.f32 %v7701_v26, %v7733_v57 }
0x3a6a   :  { %12973 = vpow2.f32 %v7764_v34  ;;  %v7752_v6 = vsub.f32 %v7698_v31, %v7730_v50 }
0x3a6b   :  { %v7762_v63 = vmul.f32 1.442695, %v7753_v1 }
0x3a6c   :  { %v7760_v21 = vmul.f32 1.442695, %v7752_v6 }
0x3a6d   :  { %v7739_v8 = vpop.xlane.xlu0 %7738 }
0x3a6e   :  { %12975 = vpow2.f32 %v7760_v21  ;;  %v7755_v15 = vsub.f32 %v7709_v19, %v7739_v8  ;;  %v7827_v19 = vpop.permute.xlu1 %7826 }
0x3a70   :  { %v7766_v16 = vmul.f32 1.442695, %v7755_v15 }
0x3a71   :  { %v7748_v9 = vpop.xlane.xlu0 %7747 }
0x3a72   :  { %12977 = vpow2.f32 %v7766_v16  ;;  %v7758_v37 = vsub.f32 %v7722_v52, %v7748_v9 }
0x3a73   :  { %12979 = vpow2.f32 %v7762_v63 }
0x3a74   :  { %v16328_v14 = vpop.eup %12973  ;;  %v7772_v62 = vmul.f32 1.442695, %v7758_v37 }
0x3a75   :  { %v7742_v23 = vpop.xlane.xlu0 %7741  ;;  %v7782_v0 = vsel %vm379_vm0, %v16328_v14, 0.0 }
0x3a76   :  { %12981 = vpow2.f32 %v7772_v62  ;;  %v7756_v31 = vsub.f32 %v7714_v22, %v7742_v23  ;;  %7783 = vadd.xlane.f32.xlu0 %v7782_v0  ;;  %v7829_v22 = vpop.permute.xlu1 %7828 }
0x3a78   :  { %v16332_v26 = vpop.eup %12975  ;;  %v7768_v39 = vmul.f32 1.442695, %v7756_v31 }
0x3a79   :  { %v7825_v44 = vpop.permute.xlu0 %7824  ;;  %v7776_v3 = vsel %vm379_vm0, %v16332_v26, 0.0 }
0x3a7a   :  { %12983 = vpow2.f32 %v7768_v39  ;;  %7777 = vadd.xlane.f32.xlu0 %v7776_v3  ;;  %11668 = vmatprep.subr.bf16.mxu0 %v7825_v44 }
0x3a7b   :  { %11669 = vmatpush3.bf16.msra.mxu0 %v7825_v44 }
0x3a7c   :  { %v12978_v52 = vpop.eup %12977  ;;  %11670 = vmatprep.subr.bf16.mxu0 %v7827_v19 }
0x3a7d   :  { %v7785_v60 = vsel %vm379_vm0, %v12978_v52, 0.0  ;;  %v12980_v38 = vpop.eup %12979 }
0x3a7e   :  { %7786 = vadd.xlane.f32.xlu1 %v7785_v60  ;;  %v7779_v57 = vsel %vm379_vm0, %v12980_v38, 0.0 }
0x3a7f   :  { %11671 = vmatpush3.bf16.msra.mxu0 %v7827_v19 }
0x3a80   :  { %v16337_v34 = vpop.eup %12981  ;;  %11672 = vmatprep.subr.bf16.mxu0 %v7829_v22 }
0x3a81   :  { %v7794_v50 = vsel %vm379_vm0, %v16337_v34, 0.0 }
0x3a82   :  { %7780 = vadd.xlane.f32.xlu1 %v7779_v57  ;;  %7795 = vadd.xlane.f32.xlu0 %v7794_v50 }
0x3a83   :  { %11673 = vmatpush3.bf16.msra.mxu0 %v7829_v22 }
0x3a84   :  { %v16342_v6 = vpop.eup %12983 }
0x3a85   :  { %v7788_v1 = vsel %vm379_vm0, %v16342_v6, 0.0 }
0x3a86   :  { %7789 = vadd.xlane.f32.xlu0 %v7788_v1 }
0x3a93   :  { %7923 = vrot.lane.b32.xlu1 %v16143_v43, %s13595_s8 }
0x3a97   :  { %7925 = vrot.lane.b32.xlu1 %v16163_v51, %s13595_s8 }
0x3aa1   :  { %v7751_v21 = vpop.xlane.xlu1 %7750 }
0x3aa2   :  { %v7759_v8 = vsub.f32 %v7725_v5, %v7751_v21 }
0x3aa4   :  { %v7774_v15 = vmul.f32 1.442695, %v7759_v8 }
0x3aa5   :  { %v7745_v63 = vpop.xlane.xlu1 %7744 }
0x3aa6   :  { %12985 = vpow2.f32 %v7774_v15  ;;  %v7757_v16 = vsub.f32 %v16321_v13, %v7745_v63 }
0x3aa8   :  { %v7770_v9 = vmul.f32 1.442695, %v7757_v16 }
0x3aa9   :  { %v7831_v37 = vpop.permute.xlu1 %7830 }
0x3aaa   :  { %11674 = vmatprep.subr.bf16.mxu0 %v7831_v37  ;;  %12987 = vpow2.f32 %v7770_v9 }
0x3aab   :  { %11675 = vmatpush3.bf16.msra.mxu0 %v7831_v37 }
0x3ab0   :  { %v12986_v62 = vpop.eup %12985 }
0x3ab1   :  { %v7797_v23 = vsel %vm379_vm0, %v12986_v62, 0.0 }
0x3ab2   :  { %7798 = vadd.xlane.f32.xlu0 %v7797_v23 }
0x3ab4   :  { %v12988_v0 = vpop.eup %12987 }
0x3ab5   :  { %v7791_v31 = vsel %vm379_vm0, %v12988_v0, 0.0 }
0x3abb   :  { %7792 = vadd.xlane.f32.xlu1 %v7791_v31 }
0x3ac8   :  { %7921 = vrot.lane.b32.xlu0 %v16147_v33, %s13595_s8 }
0x3acc   :  { %7927 = vrot.lane.b32.xlu1 %v16159_v47, %s13595_s8  ;;  %7913 = vrot.lane.b32.xlu0 %v16145_v2, %s13595_s8 }
0x3ad0   :  { %7915 = vrot.lane.b32.xlu1 %v16141_v30, %s13595_s8  ;;  %7917 = vrot.lane.b32.xlu0 %v16161_v54, %s13595_s8 }
0x3ad4   :  { %7919 = vrot.lane.b32.xlu1 %v16157_v7, %s13595_s8 }
0x3b03   :  { %v7784_v5 = vpop.xlane.xlu0 %7783 }
0x3b07   :  { %v7778_v13 = vpop.xlane.xlu0 %7777 }
0x3b0b   :  { %v7787_v39 = vpop.xlane.xlu1 %7786 }
0x3b0c   :  { %12989 = vrcp.f32 %v7787_v39 }
0x3b0d   :  { %12991 = vrcp.f32 %v7778_v13 }
0x3b0e   :  { %12993 = vrcp.f32 %v7784_v5 }
0x3b0f   :  { %v7781_v19 = vpop.xlane.xlu1 %7780  ;;  %v7796_v63 = vpop.xlane.xlu0 %7795 }
0x3b10   :  { %12995 = vrcp.f32 %v7781_v19 }
0x3b13   :  { %v7790_v16 = vpop.xlane.xlu0 %7789  ;;  %v7924_v9 = vpop.permute.xlu1 %7923 }
0x3b16   :  { %v12990_v44 = vpop.eup %12989 }
0x3b17   :  { %v12992_v3 = vpop.eup %12991  ;;  %v7811_v57 = vmul.f32 %v12990_v44, %v12978_v52  ;;  %v7926_v31 = vpop.permute.xlu1 %7925 }
0x3b18   :  { %v12994_v60 = vpop.eup %12993  ;;  %v7808_v50 = vmul.f32 %v12992_v3, %v16332_v26  ;;  %v7945_v26 = vsel %vm786_vm2, %v7924_v9, 0  ;;  %v7948_v44 = vsel %vm786_vm2, %v7926_v31, 0 }
0x3b19   :  { %v7810_v21 = vmul.f32 %v12994_v60, %v16328_v14 }
0x3b1a   :  { %v12996_v22 = vpop.eup %12995 }
0x3b1b   :  { %v7809_v1 = vmul.f32 %v12996_v22, %v12980_v38  ;;  %v7817_v15 = vpack.c.bf16 %v7811_v57, %v7810_v21 }
0x3b1d   :  { %v7816_v8 = vpack.c.bf16 %v7809_v1, %v7808_v50 }
0x3b1f   :  { %11676 = vmatprep.mubr.msk.bf16.mxu0 %vm379_vm0, %v7816_v8 }
0x3b20   :  { %11677 = vmatmul.mubr.msk.bf16.vlgmr.msra.gmra.mrb[192].mxu0 %vm379_vm0, %v7817_v15 }
0x3b3f   :  { %v7799_v37 = vpop.xlane.xlu0 %7798 }
0x3b40   :  { %12997 = vrcp.f32 %v7799_v37 }
0x3b41   :  { %12999 = vrcp.f32 %v7790_v16 }
0x3b42   :  { %13001 = vrcp.f32 %v7796_v63 }
0x3b43   :  { %v7922_v23 = vpop.permute.xlu0 %7921 }
0x3b44   :  { %12074 = vmatprep.subr.msk.bf16.mxu0 %vm786_vm2, %v7922_v23  ;;  %v7942_v52 = vsel %vm786_vm2, %v7922_v23, 0 }
0x3b45   :  { %11685 = vmatpush3.bf16.xpose.msra.mxu0 %v7942_v52 }
0x3b46   :  { %12075 = vmatprep.subr.msk.bf16.mxu0 %vm786_vm2, %v7924_v9 }
0x3b47   :  { %v7914_v21 = vpop.permute.xlu0 %7913 }
0x3b48   :  { %v7793_v14 = vpop.xlane.xlu1 %7792 }
0x3b49   :  { %13003 = vrcp.f32 %v7793_v14 }
0x3b4a   :  { %v12998_v38 = vpop.eup %12997 }
0x3b4b   :  { %v13000_v5 = vpop.eup %12999  ;;  %v7815_v19 = vmul.f32 %v12998_v38, %v12986_v62 }
0x3b4c   :  { %v13002_v13 = vpop.eup %13001  ;;  %v7812_v3 = vmul.f32 %v13000_v5, %v16342_v6  ;;  %v7928_v22 = vpop.permute.xlu1 %7927 }
0x3b4d   :  { %11687 = vmatpush3.bf16.xpose.msra.mxu0 %v7945_v26  ;;  %v7814_v57 = vmul.f32 %v13002_v13, %v16337_v34  ;;  %v7951_v62 = vsel %vm786_vm2, %v7928_v22, 0 }
0x3b4e   :  { %12076 = vmatprep.subr.msk.bf16.mxu0 %vm786_vm2, %v7926_v31 }
0x3b4f   :  { %v7819_v1 = vpack.c.bf16 %v7815_v19, %v7814_v57 }
0x3b50   :  { %v7916_v6 = vpop.permute.xlu1 %7915 }
0x3b53   :  { %v13004_v39 = vpop.eup %13003 }
0x3b54   :  { %v7813_v60 = vmul.f32 %v13004_v39, %v12988_v0  ;;  %v7918_v0 = vpop.permute.xlu0 %7917  ;;  %v7920_v34 = vpop.permute.xlu1 %7919 }
0x3b55   :  { %11689 = vmatpush3.bf16.xpose.msra.mxu0 %v7948_v44 }
0x3b56   :  { %12077 = vmatprep.subr.msk.bf16.mxu0 %vm786_vm2, %v7928_v22  ;;  %v7818_v50 = vpack.c.bf16 %v7813_v60, %v7812_v3 }
0x3b58   :  { %11680 = vmatprep.mubr.msk.bf16.mxu0 %vm379_vm0, %v7818_v50 }
0x3b59   :  { %11681 = vmatmul.mubr.msk.bf16.gmra.mrb[196].mxu0 %vm379_vm0, %v7819_v1 }
0x3b5a   :  { %11692 = vmatprep.mubr.msk.bf16.mxu0 %vm786_vm2, %v7914_v21 }
0x3b5d   :  { %11691 = vmatpush3.bf16.xpose.msra.mxu0 %v7951_v62 }
0x3b64   :  { %11693 = vmatmul.mubr.msk.bf16.vlgmr.msra.gmra.mrb[200].mxu0 %vm786_vm2, %v7916_v6 }
0x3b65   :  { %11696 = vmatprep.mubr.msk.bf16.mxu0 %vm786_vm2, %v7918_v0 }
0x3b6c   :  { %11697 = vmatmul.mubr.msk.bf16.gmra.mrb[204].mxu0 %vm786_vm2, %v7920_v34 }
0x3bf3   :  { %v16385_v8 = vpop.f32.mrb[192].mxu0 }
0x3bf4   :  { %v16387_v15 = vpop.f32.mrb[193].mxu0 }
0x3bf5   :  { %v16389_v63 = vpop.f32.mrb[194].mxu0 }
0x3bf6   :  { %v16393_v9 = vpop.f32.mrb[195].mxu0 }
0x3bf7   :  { %v12324_v37 = vpack.i.bf16 %v16393_v9, %v16387_v15 }
0x3c2c   :  { %v16397_v23 = vpop.f32.mrb[196].mxu0 }
0x3c2d   :  { %v16399_v31 = vpop.f32.mrb[197].mxu0 }
0x3c2e   :  { %v16401_v52 = vpop.f32.mrb[198].mxu0 }
0x3c2f   :  { %v16405_v26 = vpop.f32.mrb[199].mxu0 }
0x3c30   :  { %v12344_v38 = vpack.i.bf16 %v16405_v26, %v16399_v31  ;;  %v16944_v26 = vpack.i.bf16 %v16401_v52, %v16397_v23 }
0x3c37   :  { %v11694_v5 = vpop.f32.mrb[200].mxu0 }
0x3c38   :  { %v7996_v13 = vadd.f32 %v11694_v5, %v16201_v41  ;;  %v7987_v39 = vpop.f32.mrb[201].mxu0 }
0x3c39   :  { %v11695_v19 = vpop.f32.mrb[202].mxu0  ;;  %v7988_v44 = vadd.f32 %v7987_v39, %v16198_v29 }
0x3c3a   :  { %v7990_v3 = vpop.f32.mrb[203].mxu0  ;;  %v8024_v60 = vsel %vm379_vm0, %v7996_v13, -inf  ;;  %v7999_v50 = vadd.f32 %v11695_v19, %v16208_v28 }
0x3c3b   :  { %v7991_v22 = vadd.f32 %v7990_v3, %v16204_v20  ;;  %8025 = vmax.xlane.f32.xlu0 %v8024_v60  ;;  %v8018_v1 = vsel %vm379_vm0, %v7988_v44, -inf }
0x3c3c   :  { %v8027_v0 = vsel %vm379_vm0, %v7999_v50, -inf }
0x3c3d   :  { %v8021_v57 = vsel %vm379_vm0, %v7991_v22, -inf }
0x3c3e   :  { %8022 = vmax.xlane.f32.xlu1 %v8021_v57 }
0x3c3f   :  { %8019 = vmax.xlane.f32.xlu0 %v8018_v1  ;;  %v11698_v21 = vpop.f32.mrb[204].mxu0 }
0x3c40   :  { %v8003_v41 = vpop.f32.mrb[205].mxu0  ;;  %v8012_v6 = vadd.f32 %v11698_v21, %v16220_v12 }
0x3c41   :  { %v11699_v62 = vpop.f32.mrb[206].mxu0  ;;  %v8004_v20 = vadd.f32 %v8003_v41, %v16216_v49 }
0x3c42   :  { %v8006_v29 = vpop.f32.mrb[207].mxu0  ;;  %v8036_v34 = vsel %vm379_vm0, %v8012_v6, -inf  ;;  %v8015_v12 = vadd.f32 %v11699_v62, %v16228_v56 }
0x3c43   :  { %8028 = vmax.xlane.f32.xlu0 %v8027_v0  ;;  %v8030_v28 = vsel %vm379_vm0, %v8004_v20, -inf  ;;  %v16429_v5 = vadd.f32 %v8006_v29, %v16223_v11 }
0x3c44   :  { %v8039_v49 = vsel %vm379_vm0, %v8015_v12, -inf }
0x3c45   :  { %v8033_v39 = vsel %vm379_vm0, %v16429_v5, -inf }
0x3c47   :  { %8037 = vmax.xlane.f32.xlu0 %v8036_v34 }
0x3c4b   :  { %8031 = vmax.xlane.f32.xlu0 %v8030_v28 }
0x3c4f   :  { %8112 = vrot.lane.b32.xlu1 %v16169_v17, %s13595_s8 }
0x3c53   :  { %8114 = vrot.lane.b32.xlu1 %v16183_v61, %s13595_s8 }
0x3c61   :  { %8110 = vrot.lane.b32.xlu0 %v16171_v48, %s13595_s8 }
0x3c77   :  { %8040 = vmax.xlane.f32.xlu1 %v8039_v49 }
0x3c7b   :  { %8034 = vmax.xlane.f32.xlu1 %v8033_v39 }
0x3c8c   :  { %8116 = vrot.lane.b32.xlu1 %v16180_v58, %s13595_s8 }
0x3cc8   :  { %v8026_v19 = vpop.xlane.xlu0 %8025 }
0x3cc9   :  { %v8044_v3 = vsub.f32 %v7996_v13, %v8026_v19 }
0x3ccb   :  { %v8054_v60 = vmul.f32 1.442695, %v8044_v3  ;;  %v8023_v57 = vpop.xlane.xlu1 %8022 }
0x3ccc   :  { %v8020_v1 = vpop.xlane.xlu0 %8019  ;;  %v8043_v21 = vsub.f32 %v7991_v22, %v8023_v57 }
0x3ccd   :  { %13005 = vpow2.f32 %v8054_v60  ;;  %v8042_v56 = vsub.f32 %v7988_v44, %v8020_v1 }
0x3cce   :  { %v8052_v29 = vmul.f32 1.442695, %v8043_v21 }
0x3ccf   :  { %v8050_v11 = vmul.f32 1.442695, %v8042_v56 }
0x3cd0   :  { %v8029_v41 = vpop.xlane.xlu0 %8028 }
0x3cd1   :  { %13007 = vpow2.f32 %v8050_v11  ;;  %v8045_v62 = vsub.f32 %v7999_v50, %v8029_v41  ;;  %v8113_v50 = vpop.permute.xlu1 %8112 }
0x3cd3   :  { %v8056_v0 = vmul.f32 1.442695, %v8045_v62 }
0x3cd4   :  { %v8038_v34 = vpop.xlane.xlu0 %8037 }
0x3cd5   :  { %13009 = vpow2.f32 %v8056_v0  ;;  %v8048_v28 = vsub.f32 %v8012_v6, %v8038_v34 }
0x3cd6   :  { %13011 = vpow2.f32 %v8052_v29 }
0x3cd7   :  { %v16436_v49 = vpop.eup %13005  ;;  %v8062_v39 = vmul.f32 1.442695, %v8048_v28 }
0x3cd8   :  { %v8032_v13 = vpop.xlane.xlu0 %8031  ;;  %v8072_v19 = vsel %vm379_vm0, %v16436_v49, 0.0 }
0x3cd9   :  { %13013 = vpow2.f32 %v8062_v39  ;;  %v8046_v44 = vsub.f32 %v8004_v20, %v8032_v13  ;;  %8073 = vadd.xlane.f32.xlu0 %v8072_v19  ;;  %v8115_v20 = vpop.permute.xlu1 %8114 }
0x3cdb   :  { %v16440_v22 = vpop.eup %13007  ;;  %v8058_v3 = vmul.f32 1.442695, %v8046_v44 }
0x3cdc   :  { %v8111_v60 = vpop.permute.xlu0 %8110  ;;  %v8066_v57 = vsel %vm379_vm0, %v16440_v22, 0.0 }
0x3cdd   :  { %13015 = vpow2.f32 %v8058_v3  ;;  %8067 = vadd.xlane.f32.xlu0 %v8066_v57  ;;  %11700 = vmatprep.subr.bf16.mxu1 %v8111_v60 }
0x3cde   :  { %11701 = vmatpush3.bf16.msra.mxu1 %v8111_v60 }
0x3cdf   :  { %v13010_v6 = vpop.eup %13009  ;;  %11702 = vmatprep.subr.bf16.mxu1 %v8113_v50 }
0x3ce0   :  { %v8075_v1 = vsel %vm379_vm0, %v13010_v6, 0.0  ;;  %v13012_v56 = vpop.eup %13011 }
0x3ce1   :  { %8076 = vadd.xlane.f32.xlu1 %v8075_v1  ;;  %v8069_v11 = vsel %vm379_vm0, %v13012_v56, 0.0 }
0x3ce2   :  { %11703 = vmatpush3.bf16.msra.mxu1 %v8113_v50 }
0x3ce3   :  { %v16445_v21 = vpop.eup %13013  ;;  %11704 = vmatprep.subr.bf16.mxu1 %v8115_v20 }
0x3ce4   :  { %v8084_v41 = vsel %vm379_vm0, %v16445_v21, 0.0 }
0x3ce5   :  { %8070 = vadd.xlane.f32.xlu1 %v8069_v11  ;;  %8085 = vadd.xlane.f32.xlu0 %v8084_v41 }
0x3ce6   :  { %11705 = vmatpush3.bf16.msra.mxu1 %v8115_v20 }
0x3ce7   :  { %v16450_v62 = vpop.eup %13015 }
0x3ce8   :  { %v8078_v29 = vsel %vm379_vm0, %v16450_v62, 0.0 }
0x3ce9   :  { %8079 = vadd.xlane.f32.xlu0 %v8078_v29 }
0x3cf6   :  { %8209 = vrot.lane.b32.xlu1 %v16143_v43, %s13596_s7 }
0x3cfa   :  { %8211 = vrot.lane.b32.xlu1 %v16163_v51, %s13596_s7 }
0x3d04   :  { %v8041_v0 = vpop.xlane.xlu1 %8040 }
0x3d05   :  { %v8049_v34 = vsub.f32 %v8015_v12, %v8041_v0 }
0x3d07   :  { %v8064_v28 = vmul.f32 1.442695, %v8049_v34 }
0x3d08   :  { %v8035_v39 = vpop.xlane.xlu1 %8034 }
0x3d09   :  { %13017 = vpow2.f32 %v8064_v28  ;;  %v8047_v13 = vsub.f32 %v16429_v5, %v8035_v39 }
0x3d0b   :  { %v8060_v19 = vmul.f32 1.442695, %v8047_v13 }
0x3d0c   :  { %v8117_v44 = vpop.permute.xlu1 %8116 }
0x3d0d   :  { %11706 = vmatprep.subr.bf16.mxu1 %v8117_v44  ;;  %13019 = vpow2.f32 %v8060_v19 }
0x3d0e   :  { %11707 = vmatpush3.bf16.msra.mxu1 %v8117_v44 }
0x3d13   :  { %v13018_v3 = vpop.eup %13017 }
0x3d14   :  { %v8087_v50 = vsel %vm379_vm0, %v13018_v3, 0.0 }
0x3d15   :  { %8088 = vadd.xlane.f32.xlu0 %v8087_v50 }
0x3d17   :  { %v13020_v43 = vpop.eup %13019 }
0x3d18   :  { %v8081_v60 = vsel %vm379_vm0, %v13020_v43, 0.0 }
0x3d1e   :  { %8082 = vadd.xlane.f32.xlu1 %v8081_v60 }
0x3d2b   :  { %8207 = vrot.lane.b32.xlu0 %v16147_v33, %s13596_s7 }
0x3d2f   :  { %8213 = vrot.lane.b32.xlu1 %v16159_v47, %s13596_s7  ;;  %8199 = vrot.lane.b32.xlu0 %v16145_v2, %s13596_s7 }
0x3d33   :  { %8201 = vrot.lane.b32.xlu1 %v16141_v30, %s13596_s7  ;;  %8203 = vrot.lane.b32.xlu0 %v16161_v54, %s13596_s7 }
0x3d37   :  { %8205 = vrot.lane.b32.xlu1 %v16157_v7, %s13596_s7 }
0x3d66   :  { %v8074_v51 = vpop.xlane.xlu0 %8073 }
0x3d6a   :  { %v8068_v12 = vpop.xlane.xlu0 %8067 }
0x3d6e   :  { %v8077_v5 = vpop.xlane.xlu1 %8076 }
0x3d6f   :  { %13021 = vrcp.f32 %v8077_v5 }
0x3d70   :  { %13023 = vrcp.f32 %v8068_v12 }
0x3d71   :  { %13025 = vrcp.f32 %v8074_v51 }
0x3d72   :  { %v8071_v33 = vpop.xlane.xlu1 %8070  ;;  %v8086_v29 = vpop.xlane.xlu0 %8085 }
0x3d73   :  { %13027 = vrcp.f32 %v8071_v33 }
0x3d76   :  { %v8080_v0 = vpop.xlane.xlu0 %8079  ;;  %v8210_v34 = vpop.permute.xlu1 %8209 }
0x3d79   :  { %v13022_v47 = vpop.eup %13021 }
0x3d7a   :  { %v13024_v57 = vpop.eup %13023  ;;  %v8101_v20 = vmul.f32 %v13022_v47, %v13010_v6  ;;  %v8212_v13 = vpop.permute.xlu1 %8211 }
0x3d7b   :  { %v13026_v2 = vpop.eup %13025  ;;  %v8098_v30 = vmul.f32 %v13024_v57, %v16440_v22  ;;  %v8231_v22 = vsel %vm786_vm2, %v8210_v34, 0  ;;  %v8234_v51 = vsel %vm786_vm2, %v8212_v13, 0 }
0x3d7c   :  { %v8100_v54 = vmul.f32 %v13026_v2, %v16436_v49 }
0x3d7d   :  { %v13028_v1 = vpop.eup %13027 }
0x3d7e   :  { %v8099_v11 = vmul.f32 %v13028_v1, %v13012_v56  ;;  %v8107_v7 = vpack.c.bf16 %v8101_v20, %v8100_v54 }
0x3d80   :  { %v8106_v41 = vpack.c.bf16 %v8099_v11, %v8098_v30 }
0x3d82   :  { %11708 = vmatprep.mubr.msk.bf16.mxu1 %vm379_vm0, %v8106_v41 }
0x3d83   :  { %11709 = vmatmul.mubr.msk.bf16.vlgmr.msra.gmra.mrb[208].mxu1 %vm379_vm0, %v8107_v7 }
0x3da2   :  { %v8089_v28 = vpop.xlane.xlu0 %8088 }
0x3da3   :  { %13029 = vrcp.f32 %v8089_v28 }
0x3da4   :  { %13031 = vrcp.f32 %v8080_v0 }
0x3da5   :  { %13033 = vrcp.f32 %v8086_v29 }
0x3da6   :  { %v8208_v39 = vpop.permute.xlu0 %8207 }
0x3da7   :  { %v8228_v19 = vsel %vm786_vm2, %v8208_v39, 0  ;;  %12078 = vmatprep.subr.msk.bf16.mxu1 %vm786_vm2, %v8208_v39 }
0x3da8   :  { %11717 = vmatpush3.bf16.xpose.msra.mxu1 %v8228_v19 }
0x3da9   :  { %12079 = vmatprep.subr.msk.bf16.mxu1 %vm786_vm2, %v8210_v34 }
0x3daa   :  { %v8200_v1 = vpop.permute.xlu0 %8199 }
0x3dab   :  { %v8083_v49 = vpop.xlane.xlu1 %8082 }
0x3dac   :  { %13035 = vrcp.f32 %v8083_v49 }
0x3dad   :  { %v13030_v6 = vpop.eup %13029 }
0x3dae   :  { %v13032_v56 = vpop.eup %13031  ;;  %v8105_v60 = vmul.f32 %v13030_v6, %v13018_v3 }
0x3daf   :  { %v13034_v44 = vpop.eup %13033  ;;  %v8102_v12 = vmul.f32 %v13032_v56, %v16450_v62  ;;  %v8214_v33 = vpop.permute.xlu1 %8213 }
0x3db0   :  { %11719 = vmatpush3.bf16.xpose.msra.mxu1 %v8231_v22  ;;  %v8104_v47 = vmul.f32 %v13034_v44, %v16445_v21  ;;  %v8237_v3 = vsel %vm786_vm2, %v8214_v33, 0  ;;  %v13141_v22 = vld [vmem:[%s16941_s27] sm:$0xff] }
0x3db1   :  { %12080 = vmatprep.subr.msk.bf16.mxu1 %vm786_vm2, %v8212_v13 }
0x3db2   :  { %v8109_v2 = vpack.c.bf16 %v8105_v60, %v8104_v47  ;;  %v13144_v47 = vld [vmem:[%s16941_s27 + $0x18] sm:$0xff] }
0x3db3   :  { %v8202_v62 = vpop.permute.xlu1 %8201 }
0x3db6   :  { %v13036_v50 = vpop.eup %13035 }
0x3db7   :  { %v8103_v5 = vmul.f32 %v13036_v50, %v13020_v43  ;;  %v8204_v43 = vpop.permute.xlu0 %8203  ;;  %v8206_v21 = vpop.permute.xlu1 %8205  ;;  %v13142_v50 = vld [vmem:[%s16941_s27 + $0x10] sm:$0xff] }
0x3db8   :  { %11721 = vmatpush3.bf16.xpose.msra.mxu1 %v8234_v51  ;;  %v13143_v51 = vld [vmem:[%s16941_s27 + $0x8] sm:$0xff] }
0x3db9   :  { %12081 = vmatprep.subr.msk.bf16.mxu1 %vm786_vm2, %v8214_v33  ;;  %v8108_v57 = vpack.c.bf16 %v8103_v5, %v8102_v12 }
0x3dbb   :  { %11712 = vmatprep.mubr.msk.bf16.mxu1 %vm379_vm0, %v8108_v57 }
0x3dbc   :  { %11713 = vmatmul.mubr.msk.bf16.gmra.mrb[212].mxu1 %vm379_vm0, %v8109_v2 }
0x3dbd   :  { %11724 = vmatprep.mubr.msk.bf16.mxu1 %vm786_vm2, %v8200_v1 }
0x3dc0   :  { %11723 = vmatpush3.bf16.xpose.msra.mxu1 %v8237_v3 }
0x3dc7   :  { %11725 = vmatmul.mubr.msk.bf16.vlgmr.msra.gmra.mrb[216].mxu1 %vm786_vm2, %v8202_v62 }
0x3dc8   :  { %11728 = vmatprep.mubr.msk.bf16.mxu1 %vm786_vm2, %v8204_v43 }
0x3dcf   :  { %11729 = vmatmul.mubr.msk.bf16.gmra.mrb[220].mxu1 %vm786_vm2, %v8206_v21  ;;  %v13145_v21 = vld [vmem:[%s16941_s27 + $0x20] sm:$0xff] }
0x3e56   :  { %v16493_v20 = vpop.f32.mrb[208].mxu1 }
0x3e57   :  { %v16495_v30 = vpop.f32.mrb[209].mxu1 }
0x3e58   :  { %v16497_v11 = vpop.f32.mrb[210].mxu1 }
0x3e59   :  { %v16501_v41 = vpop.f32.mrb[211].mxu1  ;;  %v16943_v31 = vpack.i.bf16 %v16497_v11, %v16493_v20 }
0x3e5a   :  { %v12334_v7 = vpack.i.bf16 %v16501_v41, %v16495_v30  ;;  %v16942_v30 = vpack.i.bf16 %v16389_v63, %v16385_v8 }
0x3e8f   :  { %v16505_v29 = vpop.f32.mrb[212].mxu1 }
0x3e90   :  { %v16507_v0 = vpop.f32.mrb[213].mxu1 }
0x3e91   :  { %v16509_v34 = vpop.f32.mrb[214].mxu1 }
0x3e92   :  { %v16513_v39 = vpop.f32.mrb[215].mxu1 }
0x3e9a   :  { %v11726_v19 = vpop.f32.mrb[216].mxu1 }
0x3e9b   :  { %v8273_v49 = vpop.f32.mrb[217].mxu1  ;;  %v8282_v60 = vadd.f32 %v13142_v50, %v11726_v19  ;;  %v13147_v50 = vld [vmem:[%s16941_s27 + $0x38] sm:$0xff] }
0x3e9c   :  { %v8274_v6 = vadd.f32 %v13141_v22, %v8273_v49  ;;  %v11727_v56 = vpop.f32.mrb[218].mxu1  ;;  %v13146_v49 = vld [vmem:[%s16941_s27 + $0x28] sm:$0xff] }
0x3e9d   :  { %v8276_v44 = vpop.f32.mrb[219].mxu1  ;;  %v8285_v57 = vadd.f32 %v13144_v47, %v11727_v56  ;;  %v8310_v1 = vsel %vm379_vm0, %v8282_v60, -inf }
0x3e9e   :  { %v8277_v12 = vadd.f32 %v13143_v51, %v8276_v44  ;;  %v8304_v5 = vsel %vm379_vm0, %v8274_v6, -inf }
0x3e9f   :  { %8305 = vmax.xlane.f32.xlu0 %v8304_v5  ;;  %v8313_v44 = vsel %vm379_vm0, %v8285_v57, -inf  ;;  %v13148_v5 = vld [vmem:[%s16941_s27 + $0x30] sm:$0xff] }
0x3ea0   :  { %v8307_v33 = vsel %vm379_vm0, %v8277_v12, -inf }
0x3ea1   :  { %8308 = vmax.xlane.f32.xlu1 %v8307_v33 }
0x3ea2   :  { %v11730_v2 = vpop.f32.mrb[220].mxu1 }
0x3ea3   :  { %8311 = vmax.xlane.f32.xlu0 %v8310_v1  ;;  %v8289_v3 = vpop.f32.mrb[221].mxu1  ;;  %v8298_v33 = vadd.f32 %v13148_v5, %v11730_v2 }
0x3ea4   :  { %v11731_v62 = vpop.f32.mrb[222].mxu1  ;;  %v8290_v19 = vadd.f32 %v13145_v21, %v8289_v3 }
0x3ea5   :  { %v8292_v43 = vpop.f32.mrb[223].mxu1  ;;  %v8301_v51 = vadd.f32 %v13147_v50, %v11731_v62  ;;  %v8322_v3 = vsel %vm379_vm0, %v8298_v33, -inf }
0x3ea6   :  { %v16526_v22 = vadd.f32 %v13146_v49, %v8292_v43  ;;  %v8316_v47 = vsel %vm379_vm0, %v8290_v19, -inf }
0x3ea7   :  { %8314 = vmax.xlane.f32.xlu0 %v8313_v44  ;;  %v8325_v1 = vsel %vm379_vm0, %v8301_v51, -inf }
0x3ea8   :  { %v8319_v56 = vsel %vm379_vm0, %v16526_v22, -inf }
0x3ea9   :  { %8320 = vmax.xlane.f32.xlu1 %v8319_v56 }
0x3eab   :  { %8317 = vmax.xlane.f32.xlu0 %v8316_v47 }
0x3ead   :  { %8326 = vmax.xlane.f32.xlu1 %v8325_v1 }
0x3eaf   :  { %8323 = vmax.xlane.f32.xlu0 %v8322_v3 }
0x3f2c   :  { %v8306_v43 = vpop.xlane.xlu0 %8305 }
0x3f2d   :  { %v8328_v21 = vsub.f32 %v8274_v6, %v8306_v43 }
0x3f2e   :  { %v8309_v49 = vpop.xlane.xlu1 %8308 }
0x3f2f   :  { %v8336_v50 = vmul.f32 1.442695, %v8328_v21  ;;  %v8329_v13 = vsub.f32 %v8277_v12, %v8309_v49 }
0x3f30   :  { %v8312_v44 = vpop.xlane.xlu0 %8311 }
0x3f31   :  { %v8330_v62 = vsub.f32 %v8282_v60, %v8312_v44  ;;  %v8338_v5 = vmul.f32 1.442695, %v8329_v13 }
0x3f33   :  { %v8340_v28 = vmul.f32 1.442695, %v8330_v62 }
0x3f34   :  { %v8315_v56 = vpop.xlane.xlu0 %8314 }
0x3f35   :  { %13037 = vpow2.f32 %v8340_v28  ;;  %v8331_v2 = vsub.f32 %v8285_v57, %v8315_v56 }
0x3f36   :  { %13039 = vpow2.f32 %v8336_v50  ;;  %v8321_v44 = vpop.xlane.xlu1 %8320 }
0x3f37   :  { %v8342_v47 = vmul.f32 1.442695, %v8331_v2 }
0x3f38   :  { %v8318_v14 = vpop.xlane.xlu0 %8317 }
0x3f39   :  { %13041 = vpow2.f32 %v8342_v47  ;;  %v8332_v1 = vsub.f32 %v8290_v19, %v8318_v14 }
0x3f3a   :  { %13043 = vpow2.f32 %v8338_v5  ;;  %v8327_v62 = vpop.xlane.xlu1 %8326 }
0x3f3b   :  { %v8344_v6 = vmul.f32 1.442695, %v8332_v1  ;;  %v8335_v50 = vsub.f32 %v8301_v51, %v8327_v62 }
0x3f3c   :  { %v8324_v54 = vpop.xlane.xlu0 %8323 }
0x3f3d   :  { %v8334_v3 = vsub.f32 %v8298_v33, %v8324_v54  ;;  %v8350_v56 = vmul.f32 1.442695, %v8335_v50 }
0x3f3f   :  { %v16536_v16 = vpop.eup %13037  ;;  %v8348_v43 = vmul.f32 1.442695, %v8334_v3 }
0x3f40   :  { %v8358_v60 = vsel %vm379_vm0, %v16536_v16, 0.0  ;;  %v13040_v12 = vpop.eup %13039 }
0x3f41   :  { %13045 = vpow2.f32 %v8348_v43  ;;  %8359 = vadd.xlane.f32.xlu0 %v8358_v60  ;;  %v8352_v13 = vsel %vm379_vm0, %v13040_v12, 0.0 }
0x3f42   :  { %13047 = vpow2.f32 %v8344_v6 }
0x3f43   :  { %v16540_v28 = vpop.eup %13041  ;;  %13049 = vpow2.f32 %v8350_v56  ;;  %v12433_v56 = vld [vmem:[%s16925_s25 + $0x38] sm:$0xff]  }
0x3f44   :  { %v8361_v14 = vsel %vm379_vm0, %v16540_v28, 0.0  ;;  %v13044_v57 = vpop.eup %13043 }
0x3f45   :  { %8353 = vadd.xlane.f32.xlu0 %v8352_v13  ;;  %8362 = vadd.xlane.f32.xlu1 %v8361_v14  ;;  %v8355_v54 = vsel %vm379_vm0, %v13044_v57, 0.0 }
0x3f49   :  { %8356 = vadd.xlane.f32.xlu1 %v8355_v54 }
0x3f4b   :  { %v16546_v19 = vpop.eup %13045 }
0x3f4c   :  { %v8370_v33 = vsel %vm379_vm0, %v16546_v19, 0.0  ;;  %v16550_v21 = vpop.eup %13047 }
0x3f4d   :  { %8371 = vadd.xlane.f32.xlu0 %v8370_v33  ;;  %v8364_v49 = vsel %vm379_vm0, %v16550_v21, 0.0 }
0x3f51   :  { %8365 = vadd.xlane.f32.xlu0 %v8364_v49 }
0x3f5a   :  { %8398 = vrot.lane.b32.xlu1 %v16169_v17, %s13596_s7  ;;  %v8333_v17 = vsub.f32 %v16526_v22, %v8321_v44 }
0x3f5e   :  { %8400 = vrot.lane.b32.xlu1 %v16183_v61, %s13596_s7  ;;  %v13050_v61 = vpop.eup %13049 }
0x3f5f   :  { %v8373_v15 = vsel %vm379_vm0, %v13050_v61, 0.0 }
0x3f67   :  { %8396 = vrot.lane.b32.xlu0 %v16171_v48, %s13596_s7  ;;  %v8346_v48 = vmul.f32 1.442695, %v8333_v17 }
0x3f69   :  { %13051 = vpow2.f32 %v8346_v48 }
0x3f6b   :  { %12325 = vrot.lane.b32.xlu0 %v12324_v37, %s13597_s19 }
0x3f6f   :  { %12335 = vrot.lane.b32.xlu0 %v12334_v7, %s13577_s22 }
0x3f73   :  { %12345 = vrot.lane.b32.xlu0 %v12344_v38, %s13597_s19  ;;  %v13052_v9 = vpop.eup %13051 }
0x3f74   :  { %v8367_v37 = vsel %vm379_vm0, %v13052_v9, 0.0 }
0x3f82   :  { %8374 = vadd.xlane.f32.xlu1 %v8373_v15 }
0x3f86   :  { %8368 = vadd.xlane.f32.xlu1 %v8367_v37 }
0x3f97   :  { %8402 = vrot.lane.b32.xlu1 %v16180_v58, %s13596_s7 }
0x3f9b   :  { %12330 = vrot.lane.b32.xlu1 %v16942_v30, %s13597_s19  ;;  %v16945_v30 = vpack.i.bf16 %v16509_v34, %v16505_v29 }
0x3f9f   :  { %12340 = vrot.lane.b32.xlu1 %v16943_v31, %s13577_s22 }
0x3fa3   :  { %12350 = vrot.lane.b32.xlu1 %v16944_v26, %s13597_s19  ;;  %v16946_v26 = vpack.i.bf16 %v16513_v39, %v16507_v0 }
0x3fce   :  { %v8360_v38 = vpop.xlane.xlu0 %8359 }
0x3fd2   :  { %v8363_v41 = vpop.xlane.xlu1 %8362  ;;  %v8354_v7 = vpop.xlane.xlu0 %8353 }
0x3fd3   :  { %13053 = vrcp.f32 %v8354_v7 }
0x3fd6   :  { %v8357_v58 = vpop.xlane.xlu1 %8356 }
0x3fd7   :  { %13055 = vrcp.f32 %v8357_v58 }
0x3fd8   :  { %13057 = vrcp.f32 %v8363_v41 }
0x3fd9   :  { %13059 = vrcp.f32 %v8360_v38 }
0x3fda   :  { %v8372_v22 = vpop.xlane.xlu0 %8371  ;;  %v8399_v2 = vpop.permute.xlu1 %8398 }
0x3fdd   :  { %v13054_v8 = vpop.eup %13053 }
0x3fde   :  { %v8366_v51 = vpop.xlane.xlu0 %8365  ;;  %v8384_v47 = vmul.f32 %v13054_v8, %v13040_v12  ;;  %v8401_v23 = vpop.permute.xlu1 %8400 }
0x3fe1   :  { %v13056_v63 = vpop.eup %13055 }
0x3fe2   :  { %v8397_v5 = vpop.permute.xlu0 %8396  ;;  %v8385_v20 = vmul.f32 %v13056_v63, %v13044_v57  ;;  %v13058_v1 = vpop.eup %13057 }
0x3fe3   :  { %11732 = vmatprep.subr.bf16.mxu0 %v8397_v5  ;;  %v13060_v6 = vpop.eup %13059  ;;  %v8387_v43 = vmul.f32 %v13058_v1, %v16540_v28 }
0x3fe4   :  { %11733 = vmatpush3.bf16.msra.mxu0 %v8397_v5  ;;  %v8392_v11 = vpack.c.bf16 %v8385_v20, %v8384_v47  ;;  %v8386_v12 = vmul.f32 %v13060_v6, %v16536_v16  ;;  %v12432_v16 = vld [vmem:[%s16925_s25 + $0x30] sm:$0xff]  }
0x3fe5   :  { %11734 = vmatprep.subr.bf16.mxu0 %v8399_v2 }
0x3fe6   :  { %11740 = vmatprep.mubr.msk.bf16.mxu0 %vm379_vm0, %v8392_v11  ;;  %v8393_v13 = vpack.c.bf16 %v8387_v43, %v8386_v12 }
0x3fe8   :  { %11735 = vmatpush3.bf16.msra.mxu0 %v8399_v2 }
0x3fe9   :  { %11736 = vmatprep.subr.bf16.mxu0 %v8401_v23 }
0x3fec   :  { %11737 = vmatpush3.bf16.msra.mxu0 %v8401_v23 }
0x400f   :  { %v8375_v52 = vpop.xlane.xlu1 %8374 }
0x4010   :  { %13061 = vrcp.f32 %v8375_v52 }
0x4011   :  { %13063 = vrcp.f32 %v8366_v51  ;;  %v12326_v51 = vpop.permute.xlu0 %12325 }
0x4012   :  { %13065 = vrcp.f32 %v8372_v22  ;;  %v12327_v29 = vunpack.i.l.bf16 %v12326_v51  ;;  %v12328_v34 = vunpack.i.h.bf16 %v12326_v51 }
0x4013   :  { %v8369_v3 = vpop.xlane.xlu1 %8368 }
0x4014   :  { %13067 = vrcp.f32 %v8369_v3  ;;  %v8581_v23 = vsel %vm786_vm2, %v16287_v32, %v12327_v29  ;;  %v8582_v1 = vsel %vm786_vm2, %v16291_v4, %v12328_v34 }
0x4015   :  { %v12336_v63 = vpop.permute.xlu0 %12335 }
0x4016   :  { %v12337_v2 = vunpack.i.l.bf16 %v12336_v63  ;;  %v12338_v52 = vunpack.i.h.bf16 %v12336_v63 }
0x4017   :  { %v8403_v60 = vpop.permute.xlu1 %8402 }
0x4018   :  { %11738 = vmatprep.subr.bf16.mxu0 %v8403_v60  ;;  %v8589_v3 = vsel %vm536_vm1, %v8581_v23, %v12337_v2  ;;  %v8590_v4 = vsel %vm536_vm1, %v8582_v1, %v12338_v52 }
0x4019   :  { %11739 = vmatpush3.bf16.msra.mxu0 %v8403_v60  ;;  %v12346_v47 = vpop.permute.xlu0 %12345 }
0x401a   :  { %v13062_v14 = vpop.eup %13061  ;;  %11748 = vmatprep.subr.bf16.mxu0 %v12432_v16 }
0x401b   :  { %v13064_v57 = vpop.eup %13063  ;;  %v8391_v49 = vmul.f32 %v13062_v14, %v13050_v61  ;;  %v12331_v22 = vpop.permute.xlu1 %12330 }
0x401c   :  { %11741 = vmatmul.mubr.msk.bf16.vlgmr.msra.gmra.mrb[208].mxu0 %vm379_vm0, %v8393_v13  ;;  %v13066_v54 = vpop.eup %13065  ;;  %v8388_v44 = vmul.f32 %v13064_v57, %v16550_v21  ;;  %v12333_v20 = vunpack.i.h.bf16 %v12331_v22  ;;  %v12332_v0 = vunpack.i.l.bf16 %v12331_v22 }
0x401d   :  { %v8390_v28 = vmul.f32 %v13066_v54, %v16546_v19  ;;  %11749 = vmatpush3.bf16.msra.mxu0 %v12432_v16 }
0x401e   :  { %v13068_v33 = vpop.eup %13067  ;;  %11750 = vmatprep.subr.bf16.mxu0 %v12433_v56  ;;  %v8584_v43 = vsel %vm786_vm2, %v16289_v45, %v12333_v20  ;;  %v8583_v60 = vsel %vm786_vm2, %v16285_v59, %v12332_v0  ;;  %v12347_v45 = vunpack.i.l.bf16 %v12346_v47 }
0x401f   :  { %v8389_v62 = vmul.f32 %v13068_v33, %v13052_v9  ;;  %v8395_v17 = vpack.c.bf16 %v8391_v49, %v8390_v28  ;;  %v12341_v8 = vpop.permute.xlu1 %12340  ;;  %v12348_v49 = vunpack.i.h.bf16 %v12346_v47  ;;  %v10380_v47 = vld [vmem:[#allocation14 + $0x3] ss:$0 sm:$0xff] }
0x4020   :  { %v12343_v39 = vunpack.i.h.bf16 %v12341_v8  ;;  %v12342_v11 = vunpack.i.l.bf16 %v12341_v8 }
0x4021   :  { %v8394_v50 = vpack.c.bf16 %v8389_v62, %v8388_v44  ;;  %11751 = vmatpush3.bf16.msra.mxu0 %v12433_v56 }
0x4022   :  { %v8591_v57 = vsel %vm536_vm1, %v8583_v60, %v12342_v11  ;;  %v8592_v32 = vsel %vm536_vm1, %v8584_v43, %v12343_v39 }
0x4023   :  { %11744 = vmatprep.mubr.msk.bf16.mxu0 %vm379_vm0, %v8394_v50  ;;  %v12351_v5 = vpop.permute.xlu1 %12350 }
0x4024   :  { %11745 = vmatmul.mubr.msk.bf16.gmra.mrb[212].mxu0 %vm379_vm0, %v8395_v17  ;;  %v12353_v16 = vunpack.i.h.bf16 %v12351_v5  ;;  %v12352_v56 = vunpack.i.l.bf16 %v12351_v5 }
0x40ef   :  { %v11742_v48 = vpop.f32.mrb[208].mxu0 }
0x40f0   :  { %v8454_v15 = vpop.f32.mrb[209].mxu0 }
0x40f1   :  { %v11743_v61 = vpop.f32.mrb[210].mxu0 }
0x40f2   :  { %v12354_v37 = vpack.i.bf16 %v11743_v61, %v11742_v48  ;;  %v8457_v21 = vpop.f32.mrb[211].mxu0 }
0x40f3   :  { %v12359_v9 = vpack.i.bf16 %v8457_v21, %v8454_v15 }
0x40f4   :  { %12355 = vrot.lane.b32.xlu1 %v12354_v37, %s13598_s24 }
0x40f5   :  { %12360 = vrot.lane.b32.xlu0 %v12359_v9, %s13598_s24 }
0x40f7   :  { %v11746_v19 = vpop.f32.mrb[212].mxu0 }
0x40f8   :  { %12370 = vrot.lane.b32.xlu1 %v16945_v30, %s13577_s22  ;;  %v8470_v31 = vpop.f32.mrb[213].mxu0  ;;  %v8585_v30 = vsel %vm786_vm2, %v16295_v24, %v12347_v45 }
0x40f9   :  { %12365 = vrot.lane.b32.xlu0 %v16946_v26, %s13577_s22  ;;  %v11747_v38 = vpop.f32.mrb[214].mxu0  ;;  %v8588_v26 = vsel %vm786_vm2, %v16297_v27, %v12353_v16 }
0x40fa   :  { %v12379_v41 = vpack.i.bf16 %v11747_v38, %v11746_v19  ;;  %v8473_v7 = vpop.f32.mrb[215].mxu0  ;;  %v8586_v19 = vsel %vm786_vm2, %v16299_v53, %v12348_v49  ;;  %v8587_v38 = vsel %vm786_vm2, %v16293_v36, %v12352_v56 }
0x40fb   :  { %v12374_v58 = vpack.i.bf16 %v8473_v7, %v8470_v31 }
0x40fc   :  { %12380 = vrot.lane.b32.xlu1 %v12379_v41, %s13598_s24 }
0x40fd   :  { %12375 = vrot.lane.b32.xlu0 %v12374_v58, %s13598_s24 }
0x4166   :  { %v12356_v6 = vpop.permute.xlu1 %12355 }
0x4167   :  { %v12358_v12 = vunpack.i.h.bf16 %v12356_v6  ;;  %v12357_v13 = vunpack.i.l.bf16 %v12356_v6  ;;  %v12361_v14 = vpop.permute.xlu0 %12360 }
0x4168   :  { %v12363_v54 = vunpack.i.h.bf16 %v12361_v14  ;;  %v12362_v33 = vunpack.i.l.bf16 %v12361_v14 }
0x4169   :  { %v8600_v44 = vsel %vm2027_vm3, %v8592_v32, %v12358_v12  ;;  %v8599_v62 = vsel %vm2027_vm3, %v8591_v57, %v12357_v13 }
0x416a   :  { %v8606_v28 = vpack.c.bf16 %v8600_v44, %v8599_v62  ;;  %v8597_v59 = vsel %vm2027_vm3, %v8589_v3, %v12362_v33  ;;  %v8598_v50 = vsel %vm2027_vm3, %v8590_v4, %v12363_v54  ;;  %v12371_v17 = vpop.permute.xlu1 %12370 }
0x416b   :  { %v8605_v48 = vpack.c.bf16 %v8598_v50, %v8597_v59  ;;  %v12366_v15 = vpop.permute.xlu0 %12365  ;;  %v12373_v61 = vunpack.i.h.bf16 %v12371_v17  ;;  %v12372_v37 = vunpack.i.l.bf16 %v12371_v17 }
0x416c   :  { %v12368_v21 = vunpack.i.h.bf16 %v12366_v15  ;;  %v12367_v9 = vunpack.i.l.bf16 %v12366_v15 }
0x416d   :  { %11752 = vmatprep.mubr.msk.bf16.mxu0 %vm2063_vm4, %v8605_v48  ;;  %v8596_v22 = vsel %vm536_vm1, %v8588_v26, %v12373_v61  ;;  %v8595_v51 = vsel %vm536_vm1, %v8587_v38, %v12372_v37 }
0x416e   :  { %v12381_v31 = vpop.permute.xlu1 %12380  ;;  %11753 = vmatmul.mubr.msk.bf16.vlgmr.msra.gmra.mrb[216].mxu0 %vm2063_vm4, %v8606_v28  ;;  %v8593_v24 = vsel %vm536_vm1, %v8585_v30, %v12367_v9  ;;  %v8594_v63 = vsel %vm536_vm1, %v8586_v19, %v12368_v21 }
0x416f   :  { %v12383_v41 = vunpack.i.h.bf16 %v12381_v31  ;;  %v12382_v7 = vunpack.i.l.bf16 %v12381_v31  ;;  %v12376_v58 = vpop.permute.xlu0 %12375 }
0x4170   :  { %v12378_v53 = vunpack.i.h.bf16 %v12376_v58  ;;  %v12377_v8 = vunpack.i.l.bf16 %v12376_v58 }
0x4171   :  { %v8604_v29 = vsel %vm2027_vm3, %v8596_v22, %v12383_v41  ;;  %v8603_v27 = vsel %vm2027_vm3, %v8595_v51, %v12382_v7 }
0x4172   :  { %v8608_v34 = vpack.c.bf16 %v8604_v29, %v8603_v27  ;;  %v8601_v36 = vsel %vm2027_vm3, %v8593_v24, %v12377_v8  ;;  %v8602_v2 = vsel %vm2027_vm3, %v8594_v63, %v12378_v53 }
0x4173   :  { %v8607_v5 = vpack.c.bf16 %v8602_v2, %v8601_v36 }
0x4175   :  { %11756 = vmatprep.mubr.msk.bf16.mxu0 %vm2063_vm4, %v8607_v5 }
0x4176   :  { %11757 = vmatmul.mubr.msk.bf16.gmra.mrb[220].mxu0 %vm2063_vm4, %v8608_v34 }
0x4241   :  { %v11754_v20 = vpop.f32.mrb[216].mxu0 }
0x4242   :  { %v8689_v0 = vadd.f32 %v11754_v20, %v10380_v47  ;;  %v8680_v39 = vpop.f32.mrb[217].mxu0 }
0x4243   :  { %v8681_v11 = vadd.f32 %v10380_v47, %v8680_v39  ;;  %v11755_v23 = vpop.f32.mrb[218].mxu0 }
0x4244   :  { %v8713_v52 = vadd.f32 %v8689_v0, %v16115_v18  ;;  %v8692_v1 = vadd.f32 %v11755_v23, %v10380_v47  ;;  %v8683_v3 = vpop.f32.mrb[219].mxu0 }
0x4245   :  { %v8711_v6 = vadd.f32 %v8681_v11, %v16107_v46  ;;  %v8684_v43 = vadd.f32 %v10380_v47, %v8683_v3 }
0x4246   :  { %v8714_v60 = vadd.f32 %v16111_v40, %v8692_v1  ;;  %v8729_v49 = vsel %vm536_vm1, %v8713_v52, 0.0 }
0x4247   :  { %v8712_v12 = vadd.f32 %v16105_v10, %v8684_v43  ;;  %v8723_v13 = vsel %vm536_vm1, %v8711_v6, 0.0 }
0x4248   :  { %8724 = vadd.xlane.f32.xlu0 %v8723_v13  ;;  %v8732_v16 = vsel %vm536_vm1, %v8714_v60, 0.0 }
0x4249   :  { %v11758_v14 = vpop.f32.mrb[220].mxu0  ;;  %v8726_v57 = vsel %vm536_vm1, %v8712_v12, 0.0 }
0x424a   :  { %v8705_v32 = vadd.f32 %v11758_v14, %v10380_v47  ;;  %v8696_v54 = vpop.f32.mrb[221].mxu0  ;;  %8727 = vadd.xlane.f32.xlu1 %v8726_v57 }
0x424b   :  { %v8697_v33 = vadd.f32 %v10380_v47, %v8696_v54  ;;  %v11759_v4 = vpop.f32.mrb[222].mxu0  ;;  %v12434_v54 = vld [vmem:[#allocation15 + $0x18] sm:$0xff]  }
0x424c   :  { %v8717_v44 = vadd.f32 %v8705_v32, %v16131_v42  ;;  %v8708_v62 = vadd.f32 %v11759_v4, %v10380_v47  ;;  %v8699_v45 = vpop.f32.mrb[223].mxu0  ;;  %8730 = vadd.xlane.f32.xlu0 %v8729_v49  ;;  %11760 = vmatprep.subr.bf16.mxu1 %v12434_v54  ;;  %v12436_v4 = vld [vmem:[%s16930_s10 + $0x68] sm:$0xff]  }
0x424d   :  { %v8715_v28 = vadd.f32 %v8697_v33, %v16123_v35  ;;  %v8700_v59 = vadd.f32 %v10380_v47, %v8699_v45  ;;  %11761 = vmatpush3.bf16.msra.mxu1 %v12434_v54  ;;  %v12435_v33 = vld [vmem:[%s16930_s10 + $0x60] sm:$0xff]  }
0x424e   :  { %v8718_v50 = vadd.f32 %v16127_v25, %v8708_v62  ;;  %v8741_v61 = vsel %vm536_vm1, %v8717_v44, 0.0  ;;  %11770 = vmatprep.subr.bf16.mxu0 %v12435_v33 }
0x424f   :  { %v8716_v17 = vadd.f32 %v16121_v55, %v8700_v59  ;;  %v8735_v48 = vsel %vm536_vm1, %v8715_v28, 0.0  ;;  %11771 = vmatpush3.bf16.msra.mxu0 %v12435_v33 }
0x4250   :  { %8733 = vadd.xlane.f32.xlu0 %v8732_v16  ;;  %v8744_v15 = vsel %vm536_vm1, %v8718_v50, 0.0  ;;  %11772 = vmatprep.subr.bf16.mxu0 %v12436_v4 }
0x4251   :  { %v8738_v56 = vsel %vm536_vm1, %v8716_v17, 0.0 }
0x4252   :  { %8739 = vadd.xlane.f32.xlu1 %v8738_v56 }
0x4253   :  { %11773 = vmatpush3.bf16.msra.mxu0 %v12436_v4 }
0x4254   :  { %8736 = vadd.xlane.f32.xlu0 %v8735_v48 }
0x4256   :  { %8745 = vadd.xlane.f32.xlu1 %v8744_v15 }
0x4258   :  { %8742 = vadd.xlane.f32.xlu0 %v8741_v61 }
0x42d5   :  { %v8725_v37 = vpop.xlane.xlu0 %8724 }
0x42d6   :  { %v8747_v21 = vmul.f32 0.0625, %v8725_v37 }
0x42d7   :  { %v8728_v9 = vpop.xlane.xlu1 %8727 }
0x42d8   :  { %v16663_v19 = vsub.f32 %v8711_v6, %v8747_v21  ;;  %v8748_v30 = vmul.f32 0.0625, %v8728_v9 }
0x42d9   :  { %v8731_v31 = vpop.xlane.xlu0 %8730 }
0x42da   :  { %v16665_v26 = vsub.f32 %v8712_v12, %v8748_v30  ;;  %v8749_v38 = vmul.f32 0.0625, %v8731_v31  ;;  %v8763_v41 = vmul.f32 %v16663_v19, %v16663_v19  ;;  %v10387_v31 = vld [vmem:[#allocation20 + $0x3] ss:$0 sm:$0xff] }
0x42dc   :  { %v16669_v7 = vsub.f32 %v8713_v52, %v8749_v38  ;;  %v8771_v58 = vsel %vm536_vm1, %v8763_v41, 0.0  ;;  %v8764_v22 = vmul.f32 %v16665_v26, %v16665_v26 }
0x42dd   :  { %8772 = vadd.xlane.f32.xlu0 %v8771_v58  ;;  %v8734_v51 = vpop.xlane.xlu0 %8733 }
0x42de   :  { %v8750_v53 = vmul.f32 0.0625, %v8734_v51  ;;  %v8774_v8 = vsel %vm536_vm1, %v8764_v22, 0.0  ;;  %v8765_v24 = vmul.f32 %v16669_v7, %v16669_v7 }
0x42df   :  { %8775 = vadd.xlane.f32.xlu1 %v8774_v8  ;;  %v8740_v63 = vpop.xlane.xlu1 %8739 }
0x42e0   :  { %v16677_v29 = vsub.f32 %v8714_v60, %v8750_v53  ;;  %v8752_v27 = vmul.f32 0.0625, %v8740_v63  ;;  %v8777_v34 = vsel %vm536_vm1, %v8765_v24, 0.0 }
0x42e1   :  { %8778 = vadd.xlane.f32.xlu0 %v8777_v34  ;;  %v8737_v36 = vpop.xlane.xlu0 %8736 }
0x42e2   :  { %v16680_v2 = vsub.f32 %v8716_v17, %v8752_v27  ;;  %v8751_v5 = vmul.f32 0.0625, %v8737_v36  ;;  %v8766_v47 = vmul.f32 %v16677_v29, %v16677_v29  ;;  %v10388_v36 = vld [vmem:[#allocation21 + $0x3] ss:$0 sm:$0xff] }
0x42e3   :  { %v8746_v20 = vpop.xlane.xlu1 %8745 }
0x42e4   :  { %v16684_v0 = vsub.f32 %v8715_v28, %v8751_v5  ;;  %v8754_v39 = vmul.f32 0.0625, %v8746_v20  ;;  %v8780_v11 = vsel %vm536_vm1, %v8766_v47, 0.0  ;;  %v8768_v23 = vmul.f32 %v16680_v2, %v16680_v2 }
0x42e5   :  { %8781 = vadd.xlane.f32.xlu1 %v8780_v11  ;;  %v8743_v52 = vpop.xlane.xlu0 %8742 }
0x42e6   :  { %v16689_v1 = vsub.f32 %v8718_v50, %v8754_v39  ;;  %v8753_v3 = vmul.f32 0.0625, %v8743_v52  ;;  %v8767_v6 = vmul.f32 %v16684_v0, %v16684_v0  ;;  %v8786_v60 = vsel %vm536_vm1, %v8768_v23, 0.0 }
0x42e8   :  { %v16693_v43 = vsub.f32 %v8717_v44, %v8753_v3  ;;  %v8783_v12 = vsel %vm536_vm1, %v8767_v6, 0.0  ;;  %v8770_v13 = vmul.f32 %v16689_v1, %v16689_v1 }
0x42e9   :  { %8787 = vadd.xlane.f32.xlu1 %v8786_v60  ;;  %8784 = vadd.xlane.f32.xlu0 %v8783_v12 }
0x42ea   :  { %v8769_v14 = vmul.f32 %v16693_v43, %v16693_v43  ;;  %v8792_v57 = vsel %vm536_vm1, %v8770_v13, 0.0 }
0x42ec   :  { %v8789_v32 = vsel %vm536_vm1, %v8769_v14, 0.0 }
0x42ed   :  { %8793 = vadd.xlane.f32.xlu1 %v8792_v57  ;;  %8790 = vadd.xlane.f32.xlu0 %v8789_v32 }
0x436a   :  { %v8773_v49 = vpop.xlane.xlu0 %8772 }
0x436b   :  { %v8795_v44 = vmul.f32 0.0625, %v8773_v49 }
0x436c   :  { %v8776_v62 = vpop.xlane.xlu1 %8775 }
0x436d   :  { %v8803_v45 = vadd.f32 1e-05, %v8795_v44  ;;  %v8796_v28 = vmul.f32 0.0625, %v8776_v62 }
0x436e   :  { %v8779_v59 = vpop.xlane.xlu0 %8778 }
0x436f   :  { %13069 = vrsqrt.f32 %v8803_v45  ;;  %v8804_v50 = vadd.f32 1e-05, %v8796_v28  ;;  %v8797_v17 = vmul.f32 0.0625, %v8779_v59 }
0x4371   :  { %13071 = vrsqrt.f32 %v8804_v50  ;;  %v8805_v16 = vadd.f32 1e-05, %v8797_v17  ;;  %v12437_v17 = vld [vmem:[%s16930_s10 + $0x70] sm:$0xff]  }
0x4372   :  { %v8782_v56 = vpop.xlane.xlu1 %8781  ;;  %11774 = vmatprep.subr.bf16.mxu0 %v12437_v17 }
0x4373   :  { %13073 = vrsqrt.f32 %v8805_v16  ;;  %v8798_v48 = vmul.f32 0.0625, %v8782_v56  ;;  %11775 = vmatpush3.bf16.msra.mxu0 %v12437_v17  ;;  %v10389_v16 = vld [vmem:[#allocation17 + $0x3] ss:$0 sm:$0xff] }
0x4375   :  { %v8806_v15 = vadd.f32 1e-05, %v8798_v48 }
0x4376   :  { %v8788_v61 = vpop.xlane.xlu1 %8787  ;;  %v8785_v37 = vpop.xlane.xlu0 %8784 }
0x4377   :  { %13075 = vrsqrt.f32 %v8806_v15  ;;  %v8800_v21 = vmul.f32 0.0625, %v8788_v61  ;;  %v8799_v9 = vmul.f32 0.0625, %v8785_v37 }
0x4379   :  { %v13070_v30 = vpop.eup %13069  ;;  %v8808_v38 = vadd.f32 1e-05, %v8800_v21  ;;  %v8807_v41 = vadd.f32 1e-05, %v8799_v9 }
0x437a   :  { %v8819_v58 = vmul.f32 %v13070_v30, %v16663_v19  ;;  %v8794_v22 = vpop.xlane.xlu1 %8793  ;;  %v8791_v51 = vpop.xlane.xlu0 %8790 }
0x437b   :  { %v13072_v53 = vpop.eup %13071  ;;  %13077 = vrsqrt.f32 %v8808_v38  ;;  %v8802_v8 = vmul.f32 0.0625, %v8794_v22  ;;  %v8801_v24 = vmul.f32 0.0625, %v8791_v51 }
0x437c   :  { %v8820_v63 = vmul.f32 %v13072_v53, %v16665_v26  ;;  %13079 = vrsqrt.f32 %v8807_v41  ;;  %v8833_v27 = vmul.f32 %v10387_v31, %v8819_v58 }
0x437d   :  { %v13074_v34 = vpop.eup %13073  ;;  %v8810_v5 = vadd.f32 1e-05, %v8802_v8  ;;  %v8809_v47 = vadd.f32 1e-05, %v8801_v24 }
0x437e   :  { %v8821_v20 = vmul.f32 %v13074_v34, %v16669_v7  ;;  %v8834_v39 = vmul.f32 %v10387_v31, %v8820_v63  ;;  %v16708_v19 = vadd.f32 %v10388_v36, %v8833_v27 }
0x437f   :  { %13081 = vrsqrt.f32 %v8810_v5 }
0x4380   :  { %13083 = vrsqrt.f32 %v8809_v47  ;;  %v16710_v11 = vadd.f32 %v10388_v36, %v8834_v39  ;;  %v8835_v52 = vmul.f32 %v10387_v31, %v8821_v20 }
0x4381   :  { %v13076_v23 = vpop.eup %13075 }
0x4382   :  { %v8822_v3 = vmul.f32 %v13076_v23, %v16677_v29  ;;  %v8855_v26 = vpack.c.bf16 %v16710_v11, %v16708_v19  ;;  %v16716_v7 = vadd.f32 %v10388_v36, %v8835_v52 }
0x4384   :  { %v8836_v6 = vmul.f32 %v10387_v31, %v8822_v3  ;;  %11762 = vmatprep.mubr.msk.bf16.mxu1 %vm536_vm1, %v8855_v26  ;;  %v10403_v26 = vld [vmem:[#allocation18 + $0x3] ss:$0 sm:$0xff] }
0x4385   :  { %v13078_v60 = vpop.eup %13077 }
0x4386   :  { %v13080_v12 = vpop.eup %13079  ;;  %v16718_v13 = vadd.f32 %v10388_v36, %v8836_v6  ;;  %v8824_v14 = vmul.f32 %v13078_v60, %v16680_v2 }
0x4387   :  { %v8823_v57 = vmul.f32 %v13080_v12, %v16684_v0 }
0x4388   :  { %v8856_v32 = vpack.c.bf16 %v16718_v13, %v16716_v7  ;;  %v8838_v29 = vmul.f32 %v10387_v31, %v8824_v14 }
0x4389   :  { %v13082_v54 = vpop.eup %13081  ;;  %v8837_v33 = vmul.f32 %v10387_v31, %v8823_v57 }
0x438a   :  { %v13084_v4 = vpop.eup %13083  ;;  %v8826_v49 = vmul.f32 %v13082_v54, %v16689_v1  ;;  %11763 = vmatmul.mubr.msk.bf16.vlgmr.msra.gmra.mrb[224].mxu1 %vm536_vm1, %v8856_v32  ;;  %v16726_v44 = vadd.f32 %v10388_v36, %v8838_v29 }
0x438b   :  { %v8825_v62 = vmul.f32 %v13084_v4, %v16693_v43  ;;  %v16729_v2 = vadd.f32 %v10388_v36, %v8837_v33  ;;  %v12438_v43 = vld [vmem:[%s16930_s10 + $0x78] sm:$0xff]  }
0x438c   :  { %v8840_v0 = vmul.f32 %v10387_v31, %v8826_v49  ;;  %11776 = vmatprep.subr.bf16.mxu0 %v12438_v43 }
0x438d   :  { %v8857_v45 = vpack.c.bf16 %v16726_v44, %v16729_v2  ;;  %v8839_v28 = vmul.f32 %v10387_v31, %v8825_v62  ;;  %11777 = vmatpush3.bf16.msra.mxu0 %v12438_v43 }
0x438e   :  { %v16733_v59 = vadd.f32 %v10388_v36, %v8840_v0 }
0x438f   :  { %11766 = vmatprep.mubr.msk.bf16.mxu1 %vm536_vm1, %v8857_v45  ;;  %v16736_v50 = vadd.f32 %v10388_v36, %v8839_v28 }
0x4391   :  { %v8858_v1 = vpack.c.bf16 %v16733_v59, %v16736_v50 }
0x4393   :  { %11767 = vmatmul.mubr.msk.bf16.gmra.mrb[228].mxu1 %vm536_vm1, %v8858_v1 }
0x445d   :  { %v11764_v56 = vpop.f32.mrb[224].mxu1 }
0x445e   :  { %v8931_v48 = vadd.f32 %v11764_v56, %v10389_v16  ;;  %v8922_v15 = vpop.f32.mrb[225].mxu1 }
0x445f   :  { %v8923_v61 = vadd.f32 %v10389_v16, %v8922_v15  ;;  %v11765_v37 = vpop.f32.mrb[226].mxu1 }
0x4460   :  { %v8934_v21 = vadd.f32 %v11765_v37, %v10389_v16  ;;  %v8925_v9 = vpop.f32.mrb[227].mxu1  ;;  %v8955_v31 = vmax.f32 %v8931_v48, 0.0 }
0x4461   :  { %v8926_v30 = vadd.f32 %v10389_v16, %v8925_v9  ;;  %v8953_v41 = vmax.f32 %v8923_v61, 0.0 }
0x4462   :  { %v8956_v38 = vmax.f32 %v8934_v21, 0.0 }
0x4463   :  { %v8954_v58 = vmax.f32 %v8926_v30, 0.0 }
0x4464   :  { %v8962_v22 = vpack.c.bf16 %v8956_v38, %v8955_v31 }
0x4465   :  { %v8961_v51 = vpack.c.bf16 %v8954_v58, %v8953_v41 }
0x4466   :  { %v11768_v53 = vpop.f32.mrb[228].mxu1 }
0x4467   :  { %v8947_v8 = vadd.f32 %v11768_v53, %v10389_v16  ;;  %v8938_v24 = vpop.f32.mrb[229].mxu1  ;;  %11778 = vmatprep.mubr.msk.bf16.mxu0 %vm379_vm0, %v8961_v51 }
0x4468   :  { %v8939_v63 = vadd.f32 %v10389_v16, %v8938_v24  ;;  %v11769_v27 = vpop.f32.mrb[230].mxu1  ;;  %11779 = vmatmul.mubr.msk.bf16.vlgmr.msra.gmra.mrb[224].mxu0 %vm379_vm0, %v8962_v22 }
0x4469   :  { %v8950_v34 = vadd.f32 %v11769_v27, %v10389_v16  ;;  %v8941_v36 = vpop.f32.mrb[231].mxu1  ;;  %v8959_v47 = vmax.f32 %v8947_v8, 0.0 }
0x446a   :  { %v8942_v5 = vadd.f32 %v10389_v16, %v8941_v36  ;;  %v8957_v39 = vmax.f32 %v8939_v63, 0.0 }
0x446b   :  { %v8960_v20 = vmax.f32 %v8950_v34, 0.0 }
0x446c   :  { %v8958_v23 = vmax.f32 %v8942_v5, 0.0 }
0x446d   :  { %v8964_v52 = vpack.c.bf16 %v8960_v20, %v8959_v47 }
0x446e   :  { %v8963_v3 = vpack.c.bf16 %v8958_v23, %v8957_v39 }
0x4470   :  { %11782 = vmatprep.mubr.msk.bf16.mxu0 %vm379_vm0, %v8963_v3 }
0x4471   :  { %11783 = vmatmul.mubr.msk.bf16.gmra.mrb[228].mxu0 %vm379_vm0, %v8964_v52 }
0x453b   :  { %v11780_v6 = vpop.f32.mrb[224].mxu0 }
0x453c   :  { %v9052_v60 = vpop.f32.mrb[225].mxu0  ;;  %v9061_v12 = vadd.f32 %v11780_v6, %v10403_v26 }
0x453d   :  { %v9053_v14 = vadd.f32 %v10403_v26, %v9052_v60  ;;  %v11781_v57 = vpop.f32.mrb[226].mxu0 }
0x453e   :  { %v9055_v32 = vpop.f32.mrb[227].mxu0  ;;  %v9064_v54 = vadd.f32 %v11781_v57, %v10403_v26  ;;  %v9085_v4 = vadd.f32 %v9061_v12, %v16716_v7 }
0x453f   :  { %v9083_v29 = vadd.f32 %v9053_v14, %v16708_v19  ;;  %v9056_v33 = vadd.f32 %v10403_v26, %v9055_v32 }
0x4540   :  { %v9086_v0 = vadd.f32 %v9064_v54, %v16718_v13  ;;  %v9101_v17 = vsel %vm536_vm1, %v9085_v4, 0.0 }
0x4541   :  { %v9084_v49 = vadd.f32 %v9056_v33, %v16710_v11  ;;  %v9095_v62 = vsel %vm536_vm1, %v9083_v29, 0.0 }
0x4542   :  { %9096 = vadd.xlane.f32.xlu0 %v9095_v62  ;;  %v9104_v7 = vsel %vm536_vm1, %v9086_v0, 0.0 }
0x4543   :  { %v9098_v45 = vsel %vm536_vm1, %v9084_v49, 0.0 }
0x4544   :  { %v11784_v28 = vpop.f32.mrb[228].mxu0  ;;  %9099 = vadd.xlane.f32.xlu1 %v9098_v45 }
0x4545   :  { %v9068_v1 = vpop.f32.mrb[229].mxu0  ;;  %v9077_v43 = vadd.f32 %v11784_v28, %v10403_v26 }
0x4546   :  { %v9069_v19 = vadd.f32 %v10403_v26, %v9068_v1  ;;  %v11785_v16 = vpop.f32.mrb[230].mxu0  ;;  %9102 = vadd.xlane.f32.xlu0 %v9101_v17  ;;  %v10416_v17 = vld [vmem:[%s16947_s6 + $0x10] sm:$0xff] }
0x4547   :  { %v9071_v56 = vpop.f32.mrb[231].mxu0  ;;  %v9080_v48 = vadd.f32 %v11785_v16, %v10403_v26  ;;  %v9089_v13 = vadd.f32 %v9077_v43, %v16736_v50  ;;  %v9255_v43 = vld [vmem:[%s16947_s6] sm:$0xff]  ;;  %11821 = vmatprep.mubr.msk.f32.mxu0 %vm379_vm0, %v10416_v17 }
0x4548   :  { %v9087_v11 = vadd.f32 %v9069_v19, %v16729_v2  ;;  %v9072_v15 = vadd.f32 %v10403_v26, %v9071_v56  ;;  %9105 = vadd.xlane.f32.xlu1 %v9104_v7  ;;  %11802 = vmatprep.mubr.msk.f32.mxu1 %vm379_vm0, %v9255_v43 }
0x4549   :  { %v9090_v21 = vadd.f32 %v9080_v48, %v16733_v59  ;;  %v9113_v30 = vsel %vm536_vm1, %v9089_v13, 0.0 }
0x454a   :  { %v9088_v61 = vadd.f32 %v9072_v15, %v16726_v44  ;;  %v9107_v37 = vsel %vm536_vm1, %v9087_v11, 0.0 }
0x454b   :  { %9108 = vadd.xlane.f32.xlu0 %v9107_v37  ;;  %v9116_v2 = vsel %vm536_vm1, %v9090_v21, 0.0 }
0x454c   :  { %v9110_v9 = vsel %vm536_vm1, %v9088_v61, 0.0 }
0x454d   :  { %9111 = vadd.xlane.f32.xlu1 %v9110_v9 }
0x454f   :  { %9114 = vadd.xlane.f32.xlu0 %v9113_v30 }
0x4551   :  { %9117 = vadd.xlane.f32.xlu1 %v9116_v2 }
0x45cf   :  { %v9097_v31 = vpop.xlane.xlu0 %9096 }
0x45d0   :  { %v9119_v38 = vmul.f32 0.0625, %v9097_v31 }
0x45d1   :  { %v9100_v41 = vpop.xlane.xlu1 %9099 }
0x45d2   :  { %v16763_v50 = vsub.f32 %v9083_v29, %v9119_v38  ;;  %v9120_v44 = vmul.f32 0.0625, %v9100_v41 }
0x45d3   :  { %v9103_v58 = vpop.xlane.xlu0 %9102 }
0x45d4   :  { %v16765_v22 = vsub.f32 %v9084_v49, %v9120_v44  ;;  %v9121_v51 = vmul.f32 0.0625, %v9103_v58  ;;  %v9135_v59 = vmul.f32 %v16763_v50, %v16763_v50 }
0x45d5   :  { %v9106_v53 = vpop.xlane.xlu1 %9105 }
0x45d6   :  { %v16769_v8 = vsub.f32 %v9085_v4, %v9121_v51  ;;  %v9122_v24 = vmul.f32 0.0625, %v9106_v53  ;;  %v9143_v63 = vsel %vm536_vm1, %v9135_v59, 0.0  ;;  %v9136_v27 = vmul.f32 %v16765_v22, %v16765_v22  ;;  %v10412_v53 = vld [vmem:[#allocation23 + $0x3] ss:$0 sm:$0xff] }
0x45d7   :  { %9144 = vadd.xlane.f32.xlu0 %v9143_v63 }
0x45d8   :  { %v16774_v34 = vsub.f32 %v9086_v0, %v9122_v24  ;;  %v9109_v36 = vpop.xlane.xlu0 %9108  ;;  %v9146_v5 = vsel %vm536_vm1, %v9136_v27, 0.0  ;;  %v9137_v47 = vmul.f32 %v16769_v8, %v16769_v8 }
0x45d9   :  { %v9123_v20 = vmul.f32 0.0625, %v9109_v36  ;;  %9147 = vadd.xlane.f32.xlu1 %v9146_v5 }
0x45da   :  { %v9112_v39 = vpop.xlane.xlu1 %9111  ;;  %v9149_v23 = vsel %vm536_vm1, %v9137_v47, 0.0  ;;  %v9138_v52 = vmul.f32 %v16774_v34, %v16774_v34  ;;  %v10413_v47 = vld [vmem:[#allocation24 + $0x3] ss:$0 sm:$0xff] }
0x45db   :  { %v16782_v3 = vsub.f32 %v9087_v11, %v9123_v20  ;;  %v9124_v26 = vmul.f32 0.0625, %v9112_v39  ;;  %9150 = vadd.xlane.f32.xlu0 %v9149_v23 }
0x45dc   :  { %v9115_v6 = vpop.xlane.xlu0 %9114  ;;  %v9152_v60 = vsel %vm536_vm1, %v9138_v52, 0.0 }
0x45dd   :  { %v16785_v12 = vsub.f32 %v9088_v61, %v9124_v26  ;;  %v9125_v14 = vmul.f32 0.0625, %v9115_v6  ;;  %9153 = vadd.xlane.f32.xlu1 %v9152_v60  ;;  %v9139_v57 = vmul.f32 %v16782_v3, %v16782_v3  ;;  %v9238_v26 = vstv %s16948_s18 }
0x45de   :  { %v9118_v32 = vpop.xlane.xlu1 %9117  ;;  %v9228_v6 = vstv %s16949_s20 }
0x45df   :  { %v16789_v29 = vsub.f32 %v9089_v13, %v9125_v14  ;;  %v9126_v54 = vmul.f32 0.0625, %v9118_v32  ;;  %v9155_v33 = vsel %vm536_vm1, %v9139_v57, 0.0  ;;  %v9140_v4 = vmul.f32 %v16785_v12, %v16785_v12 }
0x45e0   :  { %9156 = vadd.xlane.f32.xlu0 %v9155_v33 }
0x45e1   :  { %v16794_v49 = vsub.f32 %v9090_v21, %v9126_v54  ;;  %v9158_v62 = vsel %vm536_vm1, %v9140_v4, 0.0  ;;  %v9141_v0 = vmul.f32 %v16789_v29, %v16789_v29 }
0x45e2   :  { %9159 = vadd.xlane.f32.xlu1 %v9158_v62  ;;  %v9240_v62 = vmul.f32 %v16105_v10, %v9238_v26  ;;  %v9241_v10 = vmul.f32 %v9238_v26, %v16115_v18 }
0x45e3   :  { %v9161_v45 = vsel %vm536_vm1, %v9141_v0, 0.0  ;;  %v9142_v28 = vmul.f32 %v16794_v49, %v16794_v49 }
0x45e4   :  { %9162 = vadd.xlane.f32.xlu0 %v9161_v45 }
0x45e5   :  { %v9164_v1 = vsel %vm536_vm1, %v9142_v28, 0.0 }
0x45e6   :  { %9165 = vadd.xlane.f32.xlu1 %v9164_v1 }
0x4664   :  { %v9145_v19 = vpop.xlane.xlu0 %9144 }
0x4665   :  { %v9167_v16 = vmul.f32 0.0625, %v9145_v19 }
0x4666   :  { %v9148_v56 = vpop.xlane.xlu1 %9147 }
0x4667   :  { %v9175_v7 = vadd.f32 1e-05, %v9167_v16  ;;  %v9168_v11 = vmul.f32 0.0625, %v9148_v56 }
0x4668   :  { %v9151_v48 = vpop.xlane.xlu0 %9150 }
0x4669   :  { %13085 = vrsqrt.f32 %v9175_v7  ;;  %v9176_v15 = vadd.f32 1e-05, %v9168_v11  ;;  %v9169_v13 = vmul.f32 0.0625, %v9151_v48 }
0x466a   :  { %v9154_v61 = vpop.xlane.xlu1 %9153 }
0x466b   :  { %13087 = vrsqrt.f32 %v9176_v15  ;;  %v9177_v37 = vadd.f32 1e-05, %v9169_v13  ;;  %v9170_v21 = vmul.f32 0.0625, %v9154_v61 }
0x466d   :  { %13089 = vrsqrt.f32 %v9177_v37  ;;  %v9178_v9 = vadd.f32 1e-05, %v9170_v21  ;;  %v9157_v30 = vpop.xlane.xlu0 %9156 }
0x466e   :  { %v9171_v2 = vmul.f32 0.0625, %v9157_v30 }
0x466f   :  { %13091 = vrsqrt.f32 %v9178_v9  ;;  %v9160_v31 = vpop.xlane.xlu1 %9159 }
0x4670   :  { %v9179_v38 = vadd.f32 1e-05, %v9171_v2  ;;  %v9172_v41 = vmul.f32 0.0625, %v9160_v31 }
0x4671   :  { %v9163_v44 = vpop.xlane.xlu0 %9162 }
0x4672   :  { %13093 = vrsqrt.f32 %v9179_v38  ;;  %v9180_v58 = vadd.f32 1e-05, %v9172_v41  ;;  %v9173_v51 = vmul.f32 0.0625, %v9163_v44  ;;  %v9243_v38 = vmul.f32 %v9238_v26, %v16123_v35 }
0x4673   :  { %v13086_v59 = vpop.eup %13085  ;;  %v9166_v24 = vpop.xlane.xlu1 %9165 }
0x4674   :  { %v9191_v63 = vmul.f32 %v13086_v59, %v16763_v50  ;;  %13095 = vrsqrt.f32 %v9180_v58  ;;  %v9181_v27 = vadd.f32 1e-05, %v9173_v51  ;;  %v9174_v36 = vmul.f32 0.0625, %v9166_v24 }
0x4675   :  { %v13088_v5 = vpop.eup %13087 }
0x4676   :  { %v9205_v20 = vmul.f32 %v10412_v53, %v9191_v63  ;;  %v9192_v39 = vmul.f32 %v13088_v5, %v16765_v22  ;;  %13097 = vrsqrt.f32 %v9181_v27  ;;  %v9182_v23 = vadd.f32 1e-05, %v9174_v36  ;;  %v10417_v5 = vld [vmem:[%s16947_s6 + $0x18] sm:$0xff] }
0x4677   :  { %v13090_v52 = vpop.eup %13089  ;;  %v9239_v22 = vmul.f32 %v9238_v26, %v16107_v46 }
0x4678   :  { %v9219_v60 = vadd.f32 %v10413_v47, %v9205_v20  ;;  %v9206_v14 = vmul.f32 %v10412_v53, %v9192_v39  ;;  %v9193_v57 = vmul.f32 %v13090_v52, %v16769_v8  ;;  %13099 = vrsqrt.f32 %v9182_v23  ;;  %v10421_v20 = vld [vmem:[%s16947_s6 + $0x28] sm:$0xff]  ;;  %v10425_v39 = vld [vmem:[%s16947_s6 + $0x38] sm:$0xff]  ;;  %v12439_v23 = vld [vmem:[%s16950_s23] sm:$0xff]  }
0x4679   :  { %v13092_v32 = vpop.eup %13091  ;;  %v13599_v52 = vmov 0.0  }
0x467a   :  { %v9229_v50 = vmul.f32 %v9228_v6, %v9219_v60  ;;  %v9220_v54 = vadd.f32 %v10413_v47, %v9206_v14  ;;  %v9207_v33 = vmul.f32 %v10412_v53, %v9193_v57  ;;  %v9194_v4 = vmul.f32 %v13092_v32, %v16774_v34 }
0x467b   :  { %v9242_v34 = vmul.f32 %v16111_v40, %v9238_v26  ;;  %v9244_v40 = vmul.f32 %v16121_v55, %v9238_v26  ;;  %v9245_v55 = vmul.f32 %v9238_v26, %v16131_v42  ;;  %v10420_v42 = vld [vmem:[%s16947_s6 + $0x20] sm:$0xff] }
0x467c   :  { %v13094_v0 = vpop.eup %13093  ;;  %v9230_v45 = vmul.f32 %v9228_v6, %v9220_v54  ;;  %v9221_v28 = vadd.f32 %v10413_v47, %v9207_v33  ;;  %v9208_v1 = vmul.f32 %v10412_v53, %v9194_v4  ;;  %v9247_v19 = vadd.f32 %v9239_v22, %v9229_v50  ;;  %v12441_v50 = vld [vmem:[%s16950_s23 + $0x10] sm:$0xff]   ;;  %v12442_v54 = vld [vmem:[%s16950_s23 + $0x18] sm:$0xff]  }
0x467d   :  { %v9195_v17 = vmul.f32 %v13094_v0, %v16782_v3 }
0x467e   :  { %v13096_v43 = vpop.eup %13095  ;;  %v9248_v8 = vadd.f32 %v9240_v62, %v9230_v45  ;;  %v9231_v16 = vmul.f32 %v9228_v6, %v9221_v28  ;;  %v9222_v56 = vadd.f32 %v10413_v47, %v9208_v1  ;;  %v12443_v62 = vld [vmem:[#allocation26] sm:$0xff]   ;;  %v12444_v1 = vld [vmem:[#allocation26 + $0x8] sm:$0xff]  }
0x467f   :  { %v9209_v7 = vmul.f32 %v10412_v53, %v9195_v17  ;;  %v9196_v11 = vmul.f32 %v13096_v43, %v16785_v12  ;;  %v12445_v17 = vld [vmem:[#allocation26 + $0x10] sm:$0xff]   ;;  %v12446_v43 = vld [vmem:[#allocation26 + $0x18] sm:$0xff]  }
0x4680   :  { %v13098_v48 = vpop.eup %13097  ;;  %v11954_v15 = vpack.c.bf16 %v9248_v8, %v9247_v19  ;;  %v9232_v46 = vmul.f32 %v9228_v6, %v9222_v56  ;;  %v9249_v21 = vadd.f32 %v9241_v10, %v9231_v16  ;;  %v12447_v19 = vld [vmem:[#allocation26 + $0x20] sm:$0xff]   ;;  %v12448_v8 = vld [vmem:[#allocation26 + $0x28] sm:$0xff]  }
0x4681   :  { %v9223_v13 = vadd.f32 %v10413_v47, %v9209_v7  ;;  %v9210_v61 = vmul.f32 %v10412_v53, %v9196_v11  ;;  %v9197_v37 = vmul.f32 %v13098_v48, %v16789_v29 }
0x4682   :  { %v13100_v3 = vpop.eup %13099  ;;  %v9250_v9 = vadd.f32 %v9242_v34, %v9232_v46  ;;  %11955 = vmatprep.subr.bf16.mxu1 %v11954_v15  ;;  %11971 = vmatprep.subr.bf16.mxu0 %v11954_v15 }
0x4683   :  { %v9233_v30 = vmul.f32 %v9228_v6, %v9223_v13  ;;  %v9224_v2 = vadd.f32 %v10413_v47, %v9210_v61  ;;  %v9211_v31 = vmul.f32 %v10412_v53, %v9197_v37  ;;  %v9198_v12 = vmul.f32 %v13100_v3, %v16794_v49  ;;  %11957 = vmatpush3.bf16.msra.mxu1 %v11954_v15 }
0x4684   :  { %v11958_v18 = vpack.c.bf16 %v9250_v9, %v9249_v21  ;;  %11973 = vmatpush3.bf16.msra.mxu0 %v11954_v15  ;;  %v9246_v49 = vmul.f32 %v16127_v25, %v9238_v26  ;;  %v9256_v25 = vld [vmem:[%s16947_s6 + $0x8] sm:$0xff] }
0x4685   :  { %v9234_v41 = vmul.f32 %v9228_v6, %v9224_v2  ;;  %v9225_v44 = vadd.f32 %v10413_v47, %v9211_v31  ;;  %v9212_v29 = vmul.f32 %v10412_v53, %v9198_v12  ;;  %v9251_v58 = vadd.f32 %v9243_v38, %v9233_v30  ;;  %v12440_v26 = vld [vmem:[%s16950_s23 + $0x8] sm:$0xff]   ;;  %v12449_v2 = vld [vmem:[#allocation26 + $0x30] sm:$0xff]   ;;  %v12450_v31 = vld [vmem:[#allocation26 + $0x38] sm:$0xff]  }
0x4686   :  { %11959 = vmatprep.subr.bf16.mxu1 %v11958_v18  ;;  %11975 = vmatprep.subr.bf16.mxu0 %v11958_v18  ;;  %v12451_v12 = vld [vmem:[%s16951_s12] sm:$0xff]   ;;  %v12454_v38 = vld [vmem:[%s16951_s12 + $0x18] sm:$0xff]  }
0x4687   :  { %v9252_v51 = vadd.f32 %v9244_v40, %v9234_v41  ;;  %v9235_v59 = vmul.f32 %v9228_v6, %v9225_v44  ;;  %v9226_v24 = vadd.f32 %v10413_v47, %v9212_v29  ;;  %11961 = vmatpush3.bf16.msra.mxu1 %v11958_v18  ;;  %v10424_v47 = vld [vmem:[%s16947_s6 + $0x30] sm:$0xff]  ;;  %v12452_v40 = vld [vmem:[%s16951_s12 + $0x8] sm:$0xff]   ;;  %v12455_v41 = vld [vmem:[%s16951_s12 + $0x20] sm:$0xff]  }
0x4688   :  { %11977 = vmatpush3.bf16.msra.mxu0 %v11958_v18  ;;  %v12456_v44 = vld [vmem:[%s16951_s12 + $0x28] sm:$0xff]   ;;  %v10428_v29 = vld [vmem:[%s16952_s5] ss:$0 sm:$0xff] }
0x4689   :  { %v11962_v63 = vpack.c.bf16 %v9252_v51, %v9251_v58  ;;  %v9236_v27 = vmul.f32 %v9228_v6, %v9226_v24  ;;  %v9253_v35 = vadd.f32 %v9245_v55, %v9235_v59 }
0x468b   :  { %v9254_v36 = vadd.f32 %v9246_v49, %v9236_v27  ;;  %11963 = vmatprep.subr.bf16.mxu1 %v11962_v63  ;;  %11979 = vmatprep.subr.bf16.mxu0 %v11962_v63  ;;  %v12457_v27 = vld [vmem:[%s16951_s12 + $0x30] sm:$0xff]  }
0x468c   :  { %11965 = vmatpush3.bf16.msra.mxu1 %v11962_v63  ;;  %11981 = vmatpush3.bf16.msra.mxu0 %v11962_v63 }
0x468d   :  { %v11966_v53 = vpack.c.bf16 %v9254_v36, %v9253_v35  ;;  %v12458_v35 = vld [vmem:[%s16951_s12 + $0x38] sm:$0xff]   ;;  %v10434_v36 = vld [vmem:[%s16953_s28] ss:$0 sm:$0xff] }
0x468f   :  { %11967 = vmatprep.subr.bf16.mxu1 %v11966_v53  ;;  %11983 = vmatprep.subr.bf16.mxu0 %v11966_v53 }
0x4690   :  { %11969 = vmatpush3.bf16.msra.mxu1 %v11966_v53  ;;  %11985 = vmatpush3.bf16.msra.mxu0 %v11966_v53 }
0x4691   :  { %11987 = vmatprep.subr.bf16.mxu1 %v11954_v15  ;;  %12003 = vmatprep.subr.bf16.mxu0 %v11954_v15 }
0x4693   :  { %11822 = vmatmul.mubr.msk.f32.vlgmr.msra.gmra.mrb[232].mxu0 %vm379_vm0, %v10417_v5  ;;  %11803 = vmatmul.mubr.msk.f32.vlgmr.msra.gmra.mrb[232].mxu1 %vm379_vm0, %v9256_v25 }
0x4694   :  { %11989 = vmatpush3.bf16.msra.mxu1 %v11954_v15  ;;  %12005 = vmatpush3.bf16.msra.mxu0 %v11954_v15 }
0x4695   :  { %11991 = vmatprep.subr.bf16.mxu1 %v11958_v18  ;;  %12007 = vmatprep.subr.bf16.mxu0 %v11958_v18 }
0x4696   :  { %11840 = vmatprep.mubr.msk.f32.mxu1 %vm379_vm0, %v10420_v42  ;;  %11859 = vmatprep.mubr.msk.f32.mxu0 %vm379_vm0, %v10424_v47 }
0x4698   :  { %11993 = vmatpush3.bf16.msra.mxu1 %v11958_v18  ;;  %12009 = vmatpush3.bf16.msra.mxu0 %v11958_v18  ;;  %v12453_v18 = vld [vmem:[%s16951_s12 + $0x10] sm:$0xff]  }
0x4699   :  { %11995 = vmatprep.subr.bf16.mxu1 %v11962_v63  ;;  %12011 = vmatprep.subr.bf16.mxu0 %v11962_v63 }
0x469c   :  { %11997 = vmatpush3.bf16.msra.mxu1 %v11962_v63  ;;  %12013 = vmatpush3.bf16.msra.mxu0 %v11962_v63 }
0x469d   :  { %11999 = vmatprep.subr.bf16.mxu1 %v11966_v53  ;;  %12015 = vmatprep.subr.bf16.mxu0 %v11966_v53 }
0x46a0   :  { %12001 = vmatpush3.bf16.msra.mxu1 %v11966_v53  ;;  %12017 = vmatpush3.bf16.msra.mxu0 %v11966_v53 }
0x46a1   :  { %11862 = vmatprep.subr.bf16.mxu1 %v13599_v52  ;;  %11874 = vmatprep.subr.bf16.mxu0 %v13599_v52 }
0x46a3   :  { %11841 = vmatmul.mubr.msk.f32.vlgmr.msra.gmra.mrb[234].mxu1 %vm379_vm0, %v10421_v20  ;;  %11860 = vmatmul.mubr.msk.f32.vlgmr.msra.gmra.mrb[234].mxu0 %vm379_vm0, %v10425_v39 }
0x46a4   :  { %11863 = vmatpush3.bf16.msra.mxu1 %v12439_v23  ;;  %11870 = vmatprep.mubr.msk.bf16.mxu1 %vm13600_vm5, %v13599_v52 }
0x46a5   :  { %11864 = vmatprep.subr.bf16.mxu1 %v13599_v52  ;;  %11890 = vmatprep.mubr.msk.bf16.mxu0 %vm13600_vm5, %v13599_v52 }
0x46a6   :  { %11875 = vmatpush3.bf16.msra.mxu0 %v12443_v62 }
0x46a7   :  { %11876 = vmatprep.subr.bf16.mxu0 %v13599_v52 }
0x46a8   :  { %11865 = vmatpush3.bf16.msra.mxu1 %v12440_v26 }
0x46a9   :  { %11866 = vmatprep.subr.bf16.mxu1 %v13599_v52 }
0x46aa   :  { %11877 = vmatpush3.bf16.msra.mxu0 %v12444_v1 }
0x46ab   :  { %11878 = vmatprep.subr.bf16.mxu0 %v13599_v52 }
0x46ac   :  { %11867 = vmatpush3.bf16.msra.mxu1 %v12441_v50 }
0x46ad   :  { %11868 = vmatprep.subr.bf16.mxu1 %v13599_v52 }
0x46ae   :  { %11879 = vmatpush3.bf16.msra.mxu0 %v12445_v17 }
0x46af   :  { %11880 = vmatprep.subr.bf16.mxu0 %v13599_v52 }
0x46b0   :  { %11869 = vmatpush3.bf16.msra.mxu1 %v12442_v54 }
0x46b1   :  { %11894 = vmatprep.subr.bf16.mxu1 %v13599_v52 }
0x46b2   :  { %11881 = vmatpush3.bf16.msra.mxu0 %v12446_v43 }
0x46b3   :  { %11882 = vmatprep.subr.bf16.mxu0 %v13599_v52 }
0x46b6   :  { %11883 = vmatpush3.bf16.msra.mxu0 %v12447_v19 }
0x46b7   :  { %11884 = vmatprep.subr.bf16.mxu0 %v13599_v52 }
0x46ba   :  { %11885 = vmatpush3.bf16.msra.mxu0 %v12448_v8 }
0x46bb   :  { %11886 = vmatprep.subr.bf16.mxu0 %v13599_v52 }
0x46be   :  { %11887 = vmatpush3.bf16.msra.mxu0 %v12449_v2 }
0x46bf   :  { %11888 = vmatprep.subr.bf16.mxu0 %v13599_v52 }
0x46c2   :  { %11889 = vmatpush3.bf16.msra.mxu0 %v12450_v31 }
0x46c3   :  { %11914 = vmatprep.subr.bf16.mxu0 %v13599_v52 }
0x4766   :  { %v11823_v6 = vpop.f32.mrb[232].mxu0  ;;  %v11804_v60 = vpop.f32.mrb[232].mxu1 }
0x4767   :  { %v9413_v14 = vpop.f32.mrb[233].mxu0  ;;  %v9329_v57 = vpop.f32.mrb[233].mxu1 }
0x4768   :  { %v12384_v32 = vpack.i.bf16 %v11823_v6, %v9413_v14  ;;  %v12459_v14 = vld [vmem:[%s13761_s30] sm:$0xff]  }
0x476a   :  { %12385 = vrot.lane.b32.xlu0 %v12384_v32, %s13577_s22  ;;  %s13601_s22 = smov 32   ;;  %v10443_v32 = vld [vmem:[#allocation27] ss:$0 sm:$0xff] }
0x4776   :  { %v11842_v33 = vpop.f32.mrb[234].mxu1  ;;  %v11861_v4 = vpop.f32.mrb[234].mxu0 }
0x4777   :  { %v9497_v0 = vpop.f32.mrb[235].mxu1  ;;  %v9581_v22 = vpop.f32.mrb[235].mxu0 }
0x4778   :  { %v12389_v45 = vpack.i.bf16 %v11842_v33, %v9497_v0  ;;  %v12394_v28 = vpack.i.bf16 %v11861_v4, %v9581_v22 }
0x477a   :  { %12390 = vrot.lane.b32.xlu1 %v12389_v45, %s13601_s22 }
0x477e   :  { %12395 = vrot.lane.b32.xlu1 %v12394_v28, %s13602_s26 }
0x47dc   :  { %v12386_v16 = vpop.permute.xlu0 %12385 }
0x47dd   :  { %v12388_v7 = vunpack.i.h.bf16 %v12386_v16  ;;  %v12387_v11 = vunpack.i.l.bf16 %v12386_v16 }
0x47df   :  { %v9614_v15 = vsel %vm536_vm1, %v9329_v57, %v12387_v11  ;;  %v9615_v46 = vsel %vm536_vm1, %v11804_v60, %v12388_v7  ;;  %v12460_v57 = vld [vmem:[%s13761_s30 + $0x8] sm:$0xff]  }
0x47ec   :  { %v12391_v56 = vpop.permute.xlu1 %12390 }
0x47ed   :  { %v12393_v48 = vunpack.i.h.bf16 %v12391_v56  ;;  %v12392_v34 = vunpack.i.l.bf16 %v12391_v56 }
0x47ef   :  { %v9617_v37 = vsel %vm2063_vm4, %v9615_v46, %v12393_v48  ;;  %v9616_v3 = vsel %vm2063_vm4, %v9614_v15, %v12392_v34 }
0x47f0   :  { %v12396_v10 = vpop.permute.xlu1 %12395 }
0x47f1   :  { %v12398_v13 = vunpack.i.h.bf16 %v12396_v10  ;;  %v12397_v61 = vunpack.i.l.bf16 %v12396_v10 }
0x47f3   :  { %v9619_v21 = vsel %vm9618_vm6, %v9616_v3, %v12397_v61  ;;  %v9620_v9 = vsel %vm9618_vm6, %v9617_v37, %v12398_v13 }
0x47f4   :  { %v9621_v30 = vpack.c.bf16 %v9620_v9, %v9619_v21 }
0x47f6   :  { %11871 = vmatmul.mubr.msk.bf16.vlgmr.msra.gmra.mrb[236].mxu1 %vm379_vm0, %v9621_v30 }
0x47f7   :  { %11910 = vmatprep.mubr.msk.bf16.mxu1 %vm13600_vm5, %v13599_v52  ;;  %11895 = vmatpush3.bf16.msra.mxu1 %v12451_v12 }
0x47f8   :  { %11896 = vmatprep.subr.bf16.mxu1 %v13599_v52 }
0x47fb   :  { %11897 = vmatpush3.bf16.msra.mxu1 %v12452_v40 }
0x47fc   :  { %11898 = vmatprep.subr.bf16.mxu1 %v13599_v52 }
0x47ff   :  { %11899 = vmatpush3.bf16.msra.mxu1 %v12453_v18 }
0x4800   :  { %11900 = vmatprep.subr.bf16.mxu1 %v13599_v52 }
0x4803   :  { %11901 = vmatpush3.bf16.msra.mxu1 %v12454_v38 }
0x4804   :  { %11902 = vmatprep.subr.bf16.mxu1 %v13599_v52 }
0x4807   :  { %11903 = vmatpush3.bf16.msra.mxu1 %v12455_v41 }
0x4808   :  { %11904 = vmatprep.subr.bf16.mxu1 %v13599_v52 }
0x480b   :  { %11905 = vmatpush3.bf16.msra.mxu1 %v12456_v44 }
0x480c   :  { %11906 = vmatprep.subr.bf16.mxu1 %v13599_v52 }
0x480f   :  { %11907 = vmatpush3.bf16.msra.mxu1 %v12457_v27 }
0x4810   :  { %11908 = vmatprep.subr.bf16.mxu1 %v13599_v52 }
0x4813   :  { %11909 = vmatpush3.bf16.msra.mxu1 %v12458_v35 }
0x48c9   :  { %v9698_v58 = vpop.f32.mrb[236].mxu1 }
0x48ca   :  { %v11872_v51 = vpop.f32.mrb[237].mxu1  ;;  %v9699_v24 = vadd.f32 %v10428_v29, %v9698_v58 }
0x48cb   :  { %v9701_v59 = vpop.f32.mrb[238].mxu1 }
0x48cc   :  { %v9702_v49 = vadd.f32 %v10428_v29, %v9701_v59  ;;  %v11873_v55 = vpop.f32.mrb[239].mxu1 }
0x48ce   :  { %v9705_v63 = vpack.c.bf16 %v9702_v49, %v9699_v24 }
0x48d0   :  { %11891 = vmatmul.mubr.bf16.vlgmr.msra.gmra.mrb[236].mxu0 %v9705_v63 }
0x48d1   :  { %11918 = vmatprep.mubr.msk.bf16.mxu0 %vm13600_vm5, %v13599_v52  ;;  %11915 = vmatpush3.bf16.msra.mxu0 %v12459_v14 }
0x48d2   :  { %11916 = vmatprep.subr.bf16.mxu0 %v13599_v52  ;;  %v10452_v52 = vld [vmem:[#allocation29] ss:$0 sm:$0xff] }
0x48d5   :  { %11917 = vmatpush3.bf16.msra.mxu0 %v12460_v57 }
0x49a3   :  { %v9811_v53 = vpop.f32.mrb[236].mxu0 }
0x49a4   :  { %v9812_v5 = vadd.f32 %v10434_v36, %v9811_v53  ;;  %v11892_v25 = vpop.f32.mrb[237].mxu0 }
0x49a5   :  { %v9814_v42 = vpop.f32.mrb[238].mxu0 }
0x49a6   :  { %v9820_v47 = vmul.f32 0.3, %v9812_v5  ;;  %v9815_v20 = vadd.f32 %v10434_v36, %v9814_v42  ;;  %v11893_v39 = vpop.f32.mrb[239].mxu0  ;;  %vm9818_vm7 = vcmp.gt.f32.partialorder %v9812_v5, 0.0 }
0x49a8   :  { %vm9819_vm8 = vcmp.gt.f32.partialorder %v9815_v20, 0.0  ;;  %v9821_v23 = vmul.f32 0.3, %v9815_v20  ;;  %v9822_v26 = vsel %vm9818_vm7, %v9812_v5, %v9820_v47 }
0x49aa   :  { %v9823_v6 = vsel %vm9819_vm8, %v9815_v20, %v9821_v23 }
0x49ab   :  { %v9824_v60 = vpack.c.bf16 %v9823_v6, %v9822_v26 }
0x49ad   :  { %11911 = vmatmul.mubr.bf16.vlgmr.msra.gmra.mrb[240].mxu1 %v9824_v60 }
0x4a80   :  { %v9930_v50 = vpop.f32.mrb[240].mxu1 }
0x4a81   :  { %v9931_v54 = vadd.f32 %v10443_v32, %v9930_v50  ;;  %v11912_v33 = vpop.f32.mrb[241].mxu1 }
0x4a82   :  { %v9933_v4 = vpop.f32.mrb[242].mxu1 }
0x4a83   :  { %v9939_v62 = vmul.f32 0.3, %v9931_v54  ;;  %v9934_v0 = vadd.f32 %v10443_v32, %v9933_v4  ;;  %v11913_v22 = vpop.f32.mrb[243].mxu1  ;;  %vm9937_vm9 = vcmp.gt.f32.partialorder %v9931_v54, 0.0 }
0x4a85   :  { %vm9938_vm10 = vcmp.gt.f32.partialorder %v9934_v0, 0.0  ;;  %v9940_v45 = vmul.f32 0.3, %v9934_v0  ;;  %v9941_v28 = vsel %vm9937_vm9, %v9931_v54, %v9939_v62 }
0x4a87   :  { %v9942_v1 = vsel %vm9938_vm10, %v9934_v0, %v9940_v45 }
0x4a88   :  { %v9943_v17 = vpack.c.bf16 %v9942_v1, %v9941_v28 }
0x4a8a   :  { %11919 = vmatmul.mubr.msk.bf16.vlgmr.msra.gmra.mrb[240].mxu0 %vm2063_vm4, %v9943_v17 }
0x4b5d   :  { %v10004_v43 = vpop.f32.mrb[240].mxu0 }
0x4b5e   :  { %v10005_v19 = vadd.f32 %v10452_v52, %v10004_v43  ;;  %v11920_v8 = vpop.f32.mrb[241].mxu0 }
0x4b5f   :  { %v10007_v16 = vpop.f32.mrb[242].mxu0 }
0x4b60   :  { %10011 = vst.msk [vmem:[%s13771_s9] sm:$0xff] %vm379_vm0, %v10005_v19  ;;  %v10008_v56 = vadd.f32 %v10452_v52, %v10007_v16  ;;  %v11921_v7 = vpop.f32.mrb[243].mxu0 }
0x4b62   :  { %10012 = vst.msk [vmem:[%s13771_s9 + $0x8] sm:$0xff] %vm379_vm0, %v10008_v56 }
0x4b63   :  { %10017 = vsyncpa [#allocation5], 1 }
0x4b64   :  { %10018 = vsyncpa [#allocation7], 1 }
0x4b65   :  { %10019 = vsyncpa [#allocation10], 1 }
0x4b66   :  { %10020 = vsyncpa [#allocation13], 1 }
0x4b67   :  { %10021 = vsyncpa [#allocation16], 1 }
0x4b68   :  { %10022 = vsyncpa [#allocation19], 1 }
0x4b69   :  { %10023 = vsyncpa [#allocation22], 1 }
0x4b6a   :  { %10024 = vsyncpa [#allocation25], 1 }
0x4b6b   :  { %10025 = vsyncpa [#allocation28], 1 }

</bundles_post_ra>
